<compile_context>
chip_gen: v7x
topology: tpu7x:2x2x1
jax: 0.10.0
libtpu: 0.0.40
codegen_flags: <defaults>
</compile_context>

<pallas_src>
import jax
import jax.numpy as jnp
from jax.experimental import pallas as pl
from jax.experimental.pallas import tpu as pltpu

EPS = 1e-5
_VMEM = pl.BlockSpec(memory_space=pltpu.MemorySpace.VMEM)


# ---------------------------------------------------------------------------
# Pallas kernels
# ---------------------------------------------------------------------------
def _gemm_bn_relu_kernel(cols_ref, w_ref, b_ref, g_ref, beta_ref, o_ref):
    """Fused conv(im2col GEMM) + bias + BatchNorm(batch stats) + ReLU.

    cols_ref : (R, K)   im2col rows, R = N*H*W, K = 9*Cin   (lane-dense)
    w_ref    : (K, C)   flattened conv weight (ky, kx, cin) x cout
    b_ref / g_ref / beta_ref : (1, C) conv bias / BN gamma / BN beta
    o_ref    : (R, C)
    """
    r = cols_ref.shape[0]

    # Single MXU matmul per conv, f32 accumulation.
    y = jnp.dot(cols_ref[...], w_ref[...], preferred_element_type=jnp.float32)
    y = y + b_ref[...]

    # BatchNorm (training semantics): biased batch stats over the R rows,
    # computed in one pass and folded into a single per-channel FMA.
    inv_r = 1.0 / r
    mean = jnp.sum(y, axis=0, keepdims=True) * inv_r          # (1, C)
    ex2 = jnp.sum(y * y, axis=0, keepdims=True) * inv_r       # (1, C)
    var = ex2 - mean * mean
    scale = g_ref[...] * jax.lax.rsqrt(var + EPS)             # (1, C)
    shift = beta_ref[...] - mean * scale                      # (1, C)

    o_ref[...] = jnp.maximum(y * scale + shift, 0.0)


def _gemm_bias_kernel(x_ref, w_ref, b_ref, o_ref):
    """1x1 conv as a plain GEMM + bias: (R, Cin) @ (Cin, Cout) + b."""
    o_ref[...] = (
        jnp.dot(x_ref[...], w_ref[...], preferred_element_type=jnp.float32)
        + b_ref[...]
    )


def _maxpool2x2_kernel(x_ref, o_ref):
    """MaxPool2d(kernel=2, stride=2), floor mode, NHWC.  Fully unrolled
    (output spatial is at most 4x3 here), purely elementwise maxima of four
    static slices -- no reductions, no reshapes."""
    _, ho, wo, _ = o_ref.shape
    for oi in range(ho):
        for oj in range(wo):
            a = x_ref[:, 2 * oi:2 * oi + 1, 2 * oj:2 * oj + 1, :]
            b = x_ref[:, 2 * oi:2 * oi + 1, 2 * oj + 1:2 * oj + 2, :]
            c = x_ref[:, 2 * oi + 1:2 * oi + 2, 2 * oj:2 * oj + 1, :]
            d = x_ref[:, 2 * oi + 1:2 * oi + 2, 2 * oj + 1:2 * oj + 2, :]
            o_ref[:, oi:oi + 1, oj:oj + 1, :] = jnp.maximum(
                jnp.maximum(a, b), jnp.maximum(c, d))


# ---------------------------------------------------------------------------
# Wrappers (layout plumbing around the Pallas kernels)
# ---------------------------------------------------------------------------
def _im2col_3x3(x_nhwc):
    """(N,H,W,C) -> (N*H*W, 9*C) for a 3x3 / stride-1 / pad-1 conv.

    Static pad + 9 shifted slices + lane-axis concat; done by XLA in the
    wrapper so the kernel only sees dense 2D operands."""
    n, h, w, c = x_nhwc.shape
    xp = jnp.pad(x_nhwc, ((0, 0), (1, 1), (1, 1), (0, 0)))
    taps = [xp[:, ky:ky + h, kx:kx + w, :].reshape(n * h * w, c)
            for ky in range(3) for kx in range(3)]
    return jnp.concatenate(taps, axis=-1)


def conv3x3_bn_relu(x_nhwc, w, b, gamma, beta):
    """Conv2d(3x3, pad=1, bias) -> BatchNorm2d(train) -> ReLU, one kernel."""
    n, h, w_sp, cin = x_nhwc.shape
    cout = w.shape[-1]
    cols = _im2col_3x3(x_nhwc)                                # (R, 9*Cin)
    out = pl.pallas_call(
        _gemm_bn_relu_kernel,
        out_shape=jax.ShapeDtypeStruct((n * h * w_sp, cout), jnp.float32),
        in_specs=[_VMEM] * 5,
        out_specs=_VMEM,
    )(cols, w.reshape(9 * cin, cout),
      b.reshape(1, cout), gamma.reshape(1, cout), beta.reshape(1, cout))
    return out.reshape(n, h, w_sp, cout)


def conv_block_fwd(x_nhwc, p):
    """conv_block: (Conv3x3 -> BN -> ReLU) x 2."""
    w1, b1, g1, be1, w2, b2, g2, be2 = p
    y = conv3x3_bn_relu(x_nhwc, w1, b1, g1, be1)
    return conv3x3_bn_relu(y, w2, b2, g2, be2)


def maxpool2x2(x_nhwc):
    n, h, w, c = x_nhwc.shape
    ho, wo = h // 2, w // 2
    return pl.pallas_call(
        _maxpool2x2_kernel,
        out_shape=jax.ShapeDtypeStruct((n, ho, wo, c), jnp.float32),
        in_specs=[_VMEM],
        out_specs=_VMEM,
    )(x_nhwc)


def nearest_resize(x_nhwc, out_h, out_w):
    """nn.Upsample(size=(out_h,out_w)) default mode='nearest':
    src_index = floor(dst_index * in / out).  Static gather (plumbing)."""
    n, h, w, c = x_nhwc.shape
    rows = (jnp.arange(out_h) * h) // out_h
    cols = (jnp.arange(out_w) * w) // out_w
    return x_nhwc[:, rows][:, :, cols]


def up_conv_fwd(x_nhwc, p, out_h, out_w):
    """up_conv1: Upsample(nearest, fixed size) -> Conv3x3 -> BN -> ReLU."""
    w, b, g, be = p
    return conv3x3_bn_relu(nearest_resize(x_nhwc, out_h, out_w), w, b, g, be)


def conv1x1_fwd(x_nhwc, p):
    """Conv2d(kernel_size=1, bias=True)."""
    w, b = p                                                  # w: (Cin, Cout)
    n, h, w_sp, cin = x_nhwc.shape
    cout = w.shape[-1]
    out = pl.pallas_call(
        _gemm_bias_kernel,
        out_shape=jax.ShapeDtypeStruct((n * h * w_sp, cout), jnp.float32),
        in_specs=[_VMEM] * 3,
        out_specs=_VMEM,
    )(x_nhwc.reshape(n * h * w_sp, cin), w, b.reshape(1, cout))
    return out.reshape(n, h, w_sp, cout)


def unet_forward(x_nchw, params):
    """U_Net.forward, NCHW in / NCHW out (kernels work in NHWC/(R,C))."""
    x = jnp.transpose(x_nchw, (0, 2, 3, 1)).astype(jnp.float32)   # -> NHWC
    x1 = conv_block_fwd(x, params['Conv1'])            # (N, 9, 7,  64)
    x2 = maxpool2x2(x1)                                # (N, 4, 3,  64)
    x2 = conv_block_fwd(x2, params['Conv2'])           # (N, 4, 3, 128)
    x3 = maxpool2x2(x2)                                # (N, 2, 1, 128)
    x3 = conv_block_fwd(x3, params['Conv3'])           # (N, 2, 1, 256)
    d4 = conv_block_fwd(x3, params['Up_conv4'])        # (N, 2, 1, 256)
    d3 = up_conv_fwd(d4, params['Up3'], 4, 3)          # (N, 4, 3, 128)
    d3 = jnp.concatenate([x2, d3], axis=-1)            # torch.cat((x2,d3),1)
    d3 = conv_block_fwd(d3, params['Up_conv3'])        # (N, 4, 3, 128)
    d2 = up_conv_fwd(d3, params['Up2'], 9, 7)          # (N, 9, 7,  64)
    d2 = jnp.concatenate([x1, d2], axis=-1)            # torch.cat((x1,d2),1)
    d2 = conv_block_fwd(d2, params['Up_conv2'])        # (N, 9, 7,  64)
    d1 = conv1x1_fwd(d2, params['Conv_1x1'])           # (N, 9, 7,  31)
    return jnp.transpose(d1, (0, 3, 1, 2))             # -> NCHW


# ---------------------------------------------------------------------------
# Pure-JAX reference (lax.conv, HIGHEST precision) for self-validation
# ---------------------------------------------------------------------------
def _ref_conv3x3_bn_relu(x, w, b, g, be):
    y = jax.lax.conv_general_dilated(
        x, w, window_strides=(1, 1), padding=[(1, 1), (1, 1)],
        dimension_numbers=('NHWC', 'HWIO', 'NHWC'),
        precision=jax.lax.Precision.HIGHEST) + b
    mean = jnp.mean(y, axis=(0, 1, 2), keepdims=True)
    var = jnp.mean((y - mean) ** 2, axis=(0, 1, 2), keepdims=True)
    y = (y - mean) * jax.lax.rsqrt(var + EPS) * g + be
    return jnp.maximum(y, 0.0)


def _ref_maxpool2x2(x):
    n, h, w, c = x.shape
    ho, wo = h // 2, w // 2
    x = x[:, :2 * ho, :2 * wo, :].reshape(n, ho, 2, wo, 2, c)
    return jnp.max(x, axis=(2, 4))


def reference_forward(x_nchw, params):
    def block(x, p):
        w1, b1, g1, be1, w2, b2, g2, be2 = p
        return _ref_conv3x3_bn_relu(
            _ref_conv3x3_bn_relu(x, w1, b1, g1, be1), w2, b2, g2, be2)

    def up(x, p, oh, ow):
        w, b, g, be = p
        return _ref_conv3x3_bn_relu(nearest_resize(x, oh, ow), w, b, g, be)

    x = jnp.transpose(x_nchw, (0, 2, 3, 1)).astype(jnp.float32)
    x1 = block(x, params['Conv1'])
    x2 = _ref_maxpool2x2(x1)
    x2 = block(x2, params['Conv2'])
    x3 = _ref_maxpool2x2(x2)
    x3 = block(x3, params['Conv3'])
    d4 = block(x3, params['Up_conv4'])
    d3 = up(d4, params['Up3'], 4, 3)
    d3 = jnp.concatenate([x2, d3], axis=-1)
    d3 = block(d3, params['Up_conv3'])
    d2 = up(d3, params['Up2'], 9, 7)
    d2 = jnp.concatenate([x1, d2], axis=-1)
    d2 = block(d2, params['Up_conv2'])
    w, b = params['Conv_1x1']
    d1 = jnp.einsum('nhwc,cd->nhwd', d2, w,
                    precision=jax.lax.Precision.HIGHEST) + b
    return jnp.transpose(d1, (0, 3, 1, 2))


# ---------------------------------------------------------------------------
# Parameter init (PyTorch-like uniform init; BN weight=1 / bias=0 defaults)
# ---------------------------------------------------------------------------
def _init_conv(key, kh, kw, cin, cout):
    kw_key, kb_key = jax.random.split(key)
    bound = (1.0 / (cin * kh * kw)) ** 0.5
    w = jax.random.uniform(kw_key, (kh, kw, cin, cout), jnp.float32, -bound, bound)
    b = jax.random.uniform(kb_key, (cout,), jnp.float32, -bound, bound)
    return w, b


def _init_conv_block(key, cin, cout):
    k1, k2 = jax.random.split(key)
    w1, b1 = _init_conv(k1, 3, 3, cin, cout)
    w2, b2 = _init_conv(k2, 3, 3, cout, cout)
    ones = jnp.ones((cout,), jnp.float32)
    zeros = jnp.zeros((cout,), jnp.float32)
    return (w1, b1, ones, zeros, w2, b2, ones, zeros)


def _init_up_conv(key, cin, cout):
    w, b = _init_conv(key, 3, 3, cin, cout)
    return (w, b, jnp.ones((cout,), jnp.float32), jnp.zeros((cout,), jnp.float32))


def init_unet_params(key, img_ch=31, output_ch=31):
    ks = jax.random.split(key, 10)
    w11, b11 = _init_conv(ks[9], 1, 1, 64, output_ch)
    return {
        'Conv1':    _init_conv_block(ks[0], img_ch, 64),
        'Conv2':    _init_conv_block(ks[1], 64, 128),
        'Conv3':    _init_conv_block(ks[2], 128, 256),
        # NOTE: self.Conv4 (conv_block(256, 512)) is defined in __init__ but
        # never used in forward(), so it is intentionally omitted.
        'Up_conv4': _init_conv_block(ks[3], 256, 256),
        'Up3':      _init_up_conv(ks[4], 256, 128),
        'Up_conv3': _init_conv_block(ks[5], 256, 128),
        'Up2':      _init_up_conv(ks[6], 128, 64),
        'Up_conv2': _init_conv_block(ks[7], 128, 64),
        'Conv_1x1': (w11.reshape(64, output_ch), b11),
    }


if __name__ == "__main__":
    key = jax.random.PRNGKey(0)
    kx, kp = jax.random.split(key)

    # Shapes implied by the module: img_ch=31 and the hard-coded Upsample
    # targets (4,3)/(9,7) require a 9x7 spatial input for the skip concats.
    N, CH, H, W = 2, 31, 9, 7
    x = jax.random.normal(kx, (N, CH, H, W), jnp.float32)
    params = init_unet_params(kp)

    out = jax.block_until_ready(jax.jit(unet_forward)(x, params))
    assert out.shape == (N, 31, H, W), out.shape

    ref = jax.block_until_ready(jax.jit(reference_forward)(x, params))
    max_err = float(jnp.max(jnp.abs(out - ref)))
    assert jnp.allclose(out, ref, rtol=5e-2, atol=5e-2), max_err

    print("KERNEL_OK")
</pallas_src>

<mosaic_0001>
module attributes {stable_mosaic.version = 11 : i64} {
  func.func @_gemm_bn_relu_kernel(%arg0: memref<126x279xf32, #tpu.memory_space<vmem>>, %arg1: memref<279x64xf32, #tpu.memory_space<vmem>>, %arg2: memref<1x64xf32, #tpu.memory_space<vmem>>, %arg3: memref<1x64xf32, #tpu.memory_space<vmem>>, %arg4: memref<1x64xf32, #tpu.memory_space<vmem>>, %arg5: memref<126x64xf32, #tpu.memory_space<vmem>>) attributes {dimension_semantics = [], scalar_prefetch = 0 : i64, scratch_operands = 0 : i64, tpu.core_type = #tpu.core_type<tc>} {
    %c0 = arith.constant 0 : index
    %c0_0 = arith.constant 0 : index
    %0 = vector.load %arg0[%c0, %c0_0] : memref<126x279xf32, #tpu.memory_space<vmem>>, vector<126x279xf32>
    %c0_1 = arith.constant 0 : index
    %c0_2 = arith.constant 0 : index
    %1 = vector.load %arg1[%c0_1, %c0_2] : memref<279x64xf32, #tpu.memory_space<vmem>>, vector<279x64xf32>
    %cst = arith.constant dense<0.000000e+00> : vector<126x64xf32>
    %2 = tpu.matmul %0, %1, %cst {dimension_numbers = #tpu.dot_dimension_numbers<[1], [0], [0], [1], [0, 0, 1, 1], [], []>} : vector<126x279xf32>, vector<279x64xf32>, vector<126x64xf32> -> vector<126x64xf32>
    %c0_3 = arith.constant 0 : index
    %c0_4 = arith.constant 0 : index
    %3 = vector.load %arg2[%c0_3, %c0_4] : memref<1x64xf32, #tpu.memory_space<vmem>>, vector<1x64xf32>
    %4 = vector.broadcast %3 : vector<1x64xf32> to vector<126x64xf32>
    %5 = arith.addf %2, %4 : vector<126x64xf32>
    %cst_5 = arith.constant dense<0.000000e+00> : vector<64xf32>
    %6 = vector.multi_reduction <add>, %5, %cst_5 [0] : vector<126x64xf32> to vector<64xf32>
    %7 = vector.shape_cast %6 : vector<64xf32> to vector<1x64xf32>
    %cst_6 = arith.constant 0.00793650839 : f32
    %8 = vector.broadcast %cst_6 : f32 to vector<1x64xf32>
    %9 = arith.mulf %7, %8 : vector<1x64xf32>
    %10 = arith.mulf %5, %5 : vector<126x64xf32>
    %cst_7 = arith.constant dense<0.000000e+00> : vector<64xf32>
    %11 = vector.multi_reduction <add>, %10, %cst_7 [0] : vector<126x64xf32> to vector<64xf32>
    %12 = vector.shape_cast %11 : vector<64xf32> to vector<1x64xf32>
    %cst_8 = arith.constant 0.00793650839 : f32
    %13 = vector.broadcast %cst_8 : f32 to vector<1x64xf32>
    %14 = arith.mulf %12, %13 : vector<1x64xf32>
    %15 = arith.mulf %9, %9 : vector<1x64xf32>
    %16 = arith.subf %14, %15 : vector<1x64xf32>
    %c0_9 = arith.constant 0 : index
    %c0_10 = arith.constant 0 : index
    %17 = vector.load %arg3[%c0_9, %c0_10] : memref<1x64xf32, #tpu.memory_space<vmem>>, vector<1x64xf32>
    %cst_11 = arith.constant 9.99999974E-6 : f32
    %18 = vector.broadcast %cst_11 : f32 to vector<1x64xf32>
    %19 = arith.addf %16, %18 : vector<1x64xf32>
    %20 = math.rsqrt %19 : vector<1x64xf32>
    %21 = arith.mulf %17, %20 : vector<1x64xf32>
    %c0_12 = arith.constant 0 : index
    %c0_13 = arith.constant 0 : index
    %22 = vector.load %arg4[%c0_12, %c0_13] : memref<1x64xf32, #tpu.memory_space<vmem>>, vector<1x64xf32>
    %23 = arith.mulf %9, %21 : vector<1x64xf32>
    %24 = arith.subf %22, %23 : vector<1x64xf32>
    %25 = vector.broadcast %21 : vector<1x64xf32> to vector<126x64xf32>
    %26 = arith.mulf %5, %25 : vector<126x64xf32>
    %27 = vector.broadcast %24 : vector<1x64xf32> to vector<126x64xf32>
    %28 = arith.addf %26, %27 : vector<126x64xf32>
    %cst_14 = arith.constant 0.000000e+00 : f32
    %29 = vector.broadcast %cst_14 : f32 to vector<126x64xf32>
    %30 = arith.maximumf %28, %29 : vector<126x64xf32>
    %c0_15 = arith.constant 0 : index
    %c0_16 = arith.constant 0 : index
    %31 = vector.load %arg5[%c0_15, %c0_16] : memref<126x64xf32, #tpu.memory_space<vmem>>, vector<126x64xf32>
    tpu.vector_store %arg5[%c0_15, %c0_16], %30 {strides = array<i32>} : memref<126x64xf32, #tpu.memory_space<vmem>>, vector<126x64xf32>,
    return
  }
}

module attributes {stable_mosaic.version = 11 : i64} {
  func.func @_gemm_bn_relu_kernel(%arg0: memref<126x576xf32, #tpu.memory_space<vmem>>, %arg1: memref<576x64xf32, #tpu.memory_space<vmem>>, %arg2: memref<1x64xf32, #tpu.memory_space<vmem>>, %arg3: memref<1x64xf32, #tpu.memory_space<vmem>>, %arg4: memref<1x64xf32, #tpu.memory_space<vmem>>, %arg5: memref<126x64xf32, #tpu.memory_space<vmem>>) attributes {dimension_semantics = [], scalar_prefetch = 0 : i64, scratch_operands = 0 : i64, tpu.core_type = #tpu.core_type<tc>} {
    %c0 = arith.constant 0 : index
    %c0_0 = arith.constant 0 : index
    %0 = vector.load %arg0[%c0, %c0_0] : memref<126x576xf32, #tpu.memory_space<vmem>>, vector<126x576xf32>
    %c0_1 = arith.constant 0 : index
    %c0_2 = arith.constant 0 : index
    %1 = vector.load %arg1[%c0_1, %c0_2] : memref<576x64xf32, #tpu.memory_space<vmem>>, vector<576x64xf32>
    %cst = arith.constant dense<0.000000e+00> : vector<126x64xf32>
    %2 = tpu.matmul %0, %1, %cst {dimension_numbers = #tpu.dot_dimension_numbers<[1], [0], [0], [1], [0, 0, 1, 1], [], []>} : vector<126x576xf32>, vector<576x64xf32>, vector<126x64xf32> -> vector<126x64xf32>
    %c0_3 = arith.constant 0 : index
    %c0_4 = arith.constant 0 : index
    %3 = vector.load %arg2[%c0_3, %c0_4] : memref<1x64xf32, #tpu.memory_space<vmem>>, vector<1x64xf32>
    %4 = vector.broadcast %3 : vector<1x64xf32> to vector<126x64xf32>
    %5 = arith.addf %2, %4 : vector<126x64xf32>
    %cst_5 = arith.constant dense<0.000000e+00> : vector<64xf32>
    %6 = vector.multi_reduction <add>, %5, %cst_5 [0] : vector<126x64xf32> to vector<64xf32>
    %7 = vector.shape_cast %6 : vector<64xf32> to vector<1x64xf32>
    %cst_6 = arith.constant 0.00793650839 : f32
    %8 = vector.broadcast %cst_6 : f32 to vector<1x64xf32>
    %9 = arith.mulf %7, %8 : vector<1x64xf32>
    %10 = arith.mulf %5, %5 : vector<126x64xf32>
    %cst_7 = arith.constant dense<0.000000e+00> : vector<64xf32>
    %11 = vector.multi_reduction <add>, %10, %cst_7 [0] : vector<126x64xf32> to vector<64xf32>
    %12 = vector.shape_cast %11 : vector<64xf32> to vector<1x64xf32>
    %cst_8 = arith.constant 0.00793650839 : f32
    %13 = vector.broadcast %cst_8 : f32 to vector<1x64xf32>
    %14 = arith.mulf %12, %13 : vector<1x64xf32>
    %15 = arith.mulf %9, %9 : vector<1x64xf32>
    %16 = arith.subf %14, %15 : vector<1x64xf32>
    %c0_9 = arith.constant 0 : index
    %c0_10 = arith.constant 0 : index
    %17 = vector.load %arg3[%c0_9, %c0_10] : memref<1x64xf32, #tpu.memory_space<vmem>>, vector<1x64xf32>
    %cst_11 = arith.constant 9.99999974E-6 : f32
    %18 = vector.broadcast %cst_11 : f32 to vector<1x64xf32>
    %19 = arith.addf %16, %18 : vector<1x64xf32>
    %20 = math.rsqrt %19 : vector<1x64xf32>
    %21 = arith.mulf %17, %20 : vector<1x64xf32>
    %c0_12 = arith.constant 0 : index
    %c0_13 = arith.constant 0 : index
    %22 = vector.load %arg4[%c0_12, %c0_13] : memref<1x64xf32, #tpu.memory_space<vmem>>, vector<1x64xf32>
    %23 = arith.mulf %9, %21 : vector<1x64xf32>
    %24 = arith.subf %22, %23 : vector<1x64xf32>
    %25 = vector.broadcast %21 : vector<1x64xf32> to vector<126x64xf32>
    %26 = arith.mulf %5, %25 : vector<126x64xf32>
    %27 = vector.broadcast %24 : vector<1x64xf32> to vector<126x64xf32>
    %28 = arith.addf %26, %27 : vector<126x64xf32>
    %cst_14 = arith.constant 0.000000e+00 : f32
    %29 = vector.broadcast %cst_14 : f32 to vector<126x64xf32>
    %30 = arith.maximumf %28, %29 : vector<126x64xf32>
    %c0_15 = arith.constant 0 : index
    %c0_16 = arith.constant 0 : index
    %31 = vector.load %arg5[%c0_15, %c0_16] : memref<126x64xf32, #tpu.memory_space<vmem>>, vector<126x64xf32>
    tpu.vector_store %arg5[%c0_15, %c0_16], %30 {strides = array<i32>} : memref<126x64xf32, #tpu.memory_space<vmem>>, vector<126x64xf32>,
    return
  }
}

module attributes {stable_mosaic.version = 11 : i64} {
  func.func @_maxpool2x2_kernel(%arg0: memref<2x9x7x64xf32, #tpu.memory_space<vmem>>, %arg1: memref<2x4x3x64xf32, #tpu.memory_space<vmem>>) attributes {dimension_semantics = [], scalar_prefetch = 0 : i64, scratch_operands = 0 : i64, tpu.core_type = #tpu.core_type<tc>} {
    %c0 = arith.constant 0 : index
    %c0_0 = arith.constant 0 : index
    %c0_1 = arith.constant 0 : index
    %c0_2 = arith.constant 0 : index
    %0 = vector.load %arg0[%c0, %c0_0, %c0_1, %c0_2] : memref<2x9x7x64xf32, #tpu.memory_space<vmem>>, vector<2x1x1x64xf32>
    %c0_3 = arith.constant 0 : index
    %c0_4 = arith.constant 0 : index
    %c1 = arith.constant 1 : index
    %c0_5 = arith.constant 0 : index
    %1 = vector.load %arg0[%c0_3, %c0_4, %c1, %c0_5] : memref<2x9x7x64xf32, #tpu.memory_space<vmem>>, vector<2x1x1x64xf32>
    %c0_6 = arith.constant 0 : index
    %c1_7 = arith.constant 1 : index
    %c0_8 = arith.constant 0 : index
    %c0_9 = arith.constant 0 : index
    %2 = vector.load %arg0[%c0_6, %c1_7, %c0_8, %c0_9] : memref<2x9x7x64xf32, #tpu.memory_space<vmem>>, vector<2x1x1x64xf32>
    %c0_10 = arith.constant 0 : index
    %c1_11 = arith.constant 1 : index
    %c1_12 = arith.constant 1 : index
    %c0_13 = arith.constant 0 : index
    %3 = vector.load %arg0[%c0_10, %c1_11, %c1_12, %c0_13] : memref<2x9x7x64xf32, #tpu.memory_space<vmem>>, vector<2x1x1x64xf32>
    %4 = arith.maximumf %0, %1 : vector<2x1x1x64xf32>
    %5 = arith.maximumf %2, %3 : vector<2x1x1x64xf32>
    %6 = arith.maximumf %4, %5 : vector<2x1x1x64xf32>
    %c0_14 = arith.constant 0 : index
    %c0_15 = arith.constant 0 : index
    %c0_16 = arith.constant 0 : index
    %c0_17 = arith.constant 0 : index
    %7 = vector.load %arg1[%c0_14, %c0_15, %c0_16, %c0_17] : memref<2x4x3x64xf32, #tpu.memory_space<vmem>>, vector<2x1x1x64xf32>
    tpu.vector_store %arg1[%c0_14, %c0_15, %c0_16, %c0_17], %6 {strides = array<i32>} : memref<2x4x3x64xf32, #tpu.memory_space<vmem>>, vector<2x1x1x64xf32>,
    %c0_18 = arith.constant 0 : index
    %c0_19 = arith.constant 0 : index
    %c2 = arith.constant 2 : index
    %c0_20 = arith.constant 0 : index
    %8 = vector.load %arg0[%c0_18, %c0_19, %c2, %c0_20] : memref<2x9x7x64xf32, #tpu.memory_space<vmem>>, vector<2x1x1x64xf32>
    %c0_21 = arith.constant 0 : index
    %c0_22 = arith.constant 0 : index
    %c3 = arith.constant 3 : index
    %c0_23 = arith.constant 0 : index
    %9 = vector.load %arg0[%c0_21, %c0_22, %c3, %c0_23] : memref<2x9x7x64xf32, #tpu.memory_space<vmem>>, vector<2x1x1x64xf32>
    %c0_24 = arith.constant 0 : index
    %c1_25 = arith.constant 1 : index
    %c2_26 = arith.constant 2 : index
    %c0_27 = arith.constant 0 : index
    %10 = vector.load %arg0[%c0_24, %c1_25, %c2_26, %c0_27] : memref<2x9x7x64xf32, #tpu.memory_space<vmem>>, vector<2x1x1x64xf32>
    %c0_28 = arith.constant 0 : index
    %c1_29 = arith.constant 1 : index
    %c3_30 = arith.constant 3 : index
    %c0_31 = arith.constant 0 : index
    %11 = vector.load %arg0[%c0_28, %c1_29, %c3_30, %c0_31] : memref<2x9x7x64xf32, #tpu.memory_space<vmem>>, vector<2x1x1x64xf32>
    %12 = arith.maximumf %8, %9 : vector<2x1x1x64xf32>
    %13 = arith.maximumf %10, %11 : vector<2x1x1x64xf32>
    %14 = arith.maximumf %12, %13 : vector<2x1x1x64xf32>
    %c0_32 = arith.constant 0 : index
    %c0_33 = arith.constant 0 : index
    %c1_34 = arith.constant 1 : index
    %c0_35 = arith.constant 0 : index
    %15 = vector.load %arg1[%c0_32, %c0_33, %c1_34, %c0_35] : memref<2x4x3x64xf32, #tpu.memory_space<vmem>>, vector<2x1x1x64xf32>
    tpu.vector_store %arg1[%c0_32, %c0_33, %c1_34, %c0_35], %14 {strides = array<i32>} : memref<2x4x3x64xf32, #tpu.memory_space<vmem>>, vector<2x1x1x64xf32>,
    %c0_36 = arith.constant 0 : index
    %c0_37 = arith.constant 0 : index
    %c4 = arith.constant 4 : index
    %c0_38 = arith.constant 0 : index
    %16 = vector.load %arg0[%c0_36, %c0_37, %c4, %c0_38] : memref<2x9x7x64xf32, #tpu.memory_space<vmem>>, vector<2x1x1x64xf32>
    %c0_39 = arith.constant 0 : index
    %c0_40 = arith.constant 0 : index
    %c5 = arith.constant 5 : index
    %c0_41 = arith.constant 0 : index
    %17 = vector.load %arg0[%c0_39, %c0_40, %c5, %c0_41] : memref<2x9x7x64xf32, #tpu.memory_space<vmem>>, vector<2x1x1x64xf32>
    %c0_42 = arith.constant 0 : index
    %c1_43 = arith.constant 1 : index
    %c4_44 = arith.constant 4 : index
    %c0_45 = arith.constant 0 : index
    %18 = vector.load %arg0[%c0_42, %c1_43, %c4_44, %c0_45] : memref<2x9x7x64xf32, #tpu.memory_space<vmem>>, vector<2x1x1x64xf32>
    %c0_46 = arith.constant 0 : index
    %c1_47 = arith.constant 1 : index
    %c5_48 = arith.constant 5 : index
    %c0_49 = arith.constant 0 : index
    %19 = vector.load %arg0[%c0_46, %c1_47, %c5_48, %c0_49] : memref<2x9x7x64xf32, #tpu.memory_space<vmem>>, vector<2x1x1x64xf32>
    %20 = arith.maximumf %16, %17 : vector<2x1x1x64xf32>
    %21 = arith.maximumf %18, %19 : vector<2x1x1x64xf32>
    %22 = arith.maximumf %20, %21 : vector<2x1x1x64xf32>
    %c0_50 = arith.constant 0 : index
    %c0_51 = arith.constant 0 : index
    %c2_52 = arith.constant 2 : index
    %c0_53 = arith.constant 0 : index
    %23 = vector.load %arg1[%c0_50, %c0_51, %c2_52, %c0_53] : memref<2x4x3x64xf32, #tpu.memory_space<vmem>>, vector<2x1x1x64xf32>
    tpu.vector_store %arg1[%c0_50, %c0_51, %c2_52, %c0_53], %22 {strides = array<i32>} : memref<2x4x3x64xf32, #tpu.memory_space<vmem>>, vector<2x1x1x64xf32>,
    %c0_54 = arith.constant 0 : index
    %c2_55 = arith.constant 2 : index
    %c0_56 = arith.constant 0 : index
    %c0_57 = arith.constant 0 : index
    %24 = vector.load %arg0[%c0_54, %c2_55, %c0_56, %c0_57] : memref<2x9x7x64xf32, #tpu.memory_space<vmem>>, vector<2x1x1x64xf32>
    %c0_58 = arith.constant 0 : index
    %c2_59 = arith.constant 2 : index
    %c1_60 = arith.constant 1 : index
    %c0_61 = arith.constant 0 : index
    %25 = vector.load %arg0[%c0_58, %c2_59, %c1_60, %c0_61] : memref<2x9x7x64xf32, #tpu.memory_space<vmem>>, vector<2x1x1x64xf32>
    %c0_62 = arith.constant 0 : index
    %c3_63 = arith.constant 3 : index
    %c0_64 = arith.constant 0 : index
    %c0_65 = arith.constant 0 : index
    %26 = vector.load %arg0[%c0_62, %c3_63, %c0_64, %c0_65] : memref<2x9x7x64xf32, #tpu.memory_space<vmem>>, vector<2x1x1x64xf32>
    %c0_66 = arith.constant 0 : index
    %c3_67 = arith.constant 3 : index
    %c1_68 = arith.constant 1 : index
    %c0_69 = arith.constant 0 : index
    %27 = vector.load %arg0[%c0_66, %c3_67, %c1_68, %c0_69] : memref<2x9x7x64xf32, #tpu.memory_space<vmem>>, vector<2x1x1x64xf32>
    %28 = arith.maximumf %24, %25 : vector<2x1x1x64xf32>
    %29 = arith.maximumf %26, %27 : vector<2x1x1x64xf32>
    %30 = arith.maximumf %28, %29 : vector<2x1x1x64xf32>
    %c0_70 = arith.constant 0 : index
    %c1_71 = arith.constant 1 : index
    %c0_72 = arith.constant 0 : index
    %c0_73 = arith.constant 0 : index
    %31 = vector.load %arg1[%c0_70, %c1_71, %c0_72, %c0_73] : memref<2x4x3x64xf32, #tpu.memory_space<vmem>>, vector<2x1x1x64xf32>
    tpu.vector_store %arg1[%c0_70, %c1_71, %c0_72, %c0_73], %30 {strides = array<i32>} : memref<2x4x3x64xf32, #tpu.memory_space<vmem>>, vector<2x1x1x64xf32>,
    %c0_74 = arith.constant 0 : index
    %c2_75 = arith.constant 2 : index
    %c2_76 = arith.constant 2 : index
    %c0_77 = arith.constant 0 : index
    %32 = vector.load %arg0[%c0_74, %c2_75, %c2_76, %c0_77] : memref<2x9x7x64xf32, #tpu.memory_space<vmem>>, vector<2x1x1x64xf32>
    %c0_78 = arith.constant 0 : index
    %c2_79 = arith.constant 2 : index
    %c3_80 = arith.constant 3 : index
    %c0_81 = arith.constant 0 : index
    %33 = vector.load %arg0[%c0_78, %c2_79, %c3_80, %c0_81] : memref<2x9x7x64xf32, #tpu.memory_space<vmem>>, vector<2x1x1x64xf32>
    %c0_82 = arith.constant 0 : index
    %c3_83 = arith.constant 3 : index
    %c2_84 = arith.constant 2 : index
    %c0_85 = arith.constant 0 : index
    %34 = vector.load %arg0[%c0_82, %c3_83, %c2_84, %c0_85] : memref<2x9x7x64xf32, #tpu.memory_space<vmem>>, vector<2x1x1x64xf32>
    %c0_86 = arith.constant 0 : index
    %c3_87 = arith.constant 3 : index
    %c3_88 = arith.constant 3 : index
    %c0_89 = arith.constant 0 : index
    %35 = vector.load %arg0[%c0_86, %c3_87, %c3_88, %c0_89] : memref<2x9x7x64xf32, #tpu.memory_space<vmem>>, vector<2x1x1x64xf32>
    %36 = arith.maximumf %32, %33 : vector<2x1x1x64xf32>
    %37 = arith.maximumf %34, %35 : vector<2x1x1x64xf32>
    %38 = arith.maximumf %36, %37 : vector<2x1x1x64xf32>
    %c0_90 = arith.constant 0 : index
    %c1_91 = arith.constant 1 : index
    %c1_92 = arith.constant 1 : index
    %c0_93 = arith.constant 0 : index
    %39 = vector.load %arg1[%c0_90, %c1_91, %c1_92, %c0_93] : memref<2x4x3x64xf32, #tpu.memory_space<vmem>>, vector<2x1x1x64xf32>
    tpu.vector_store %arg1[%c0_90, %c1_91, %c1_92, %c0_93], %38 {strides = array<i32>} : memref<2x4x3x64xf32, #tpu.memory_space<vmem>>, vector<2x1x1x64xf32>,
    %c0_94 = arith.constant 0 : index
    %c2_95 = arith.constant 2 : index
    %c4_96 = arith.constant 4 : index
    %c0_97 = arith.constant 0 : index
    %40 = vector.load %arg0[%c0_94, %c2_95, %c4_96, %c0_97] : memref<2x9x7x64xf32, #tpu.memory_space<vmem>>, vector<2x1x1x64xf32>
    %c0_98 = arith.constant 0 : index
    %c2_99 = arith.constant 2 : index
    %c5_100 = arith.constant 5 : index
    %c0_101 = arith.constant 0 : index
    %41 = vector.load %arg0[%c0_98, %c2_99, %c5_100, %c0_101] : memref<2x9x7x64xf32, #tpu.memory_space<vmem>>, vector<2x1x1x64xf32>
    %c0_102 = arith.constant 0 : index
    %c3_103 = arith.constant 3 : index
    %c4_104 = arith.constant 4 : index
    %c0_105 = arith.constant 0 : index
    %42 = vector.load %arg0[%c0_102, %c3_103, %c4_104, %c0_105] : memref<2x9x7x64xf32, #tpu.memory_space<vmem>>, vector<2x1x1x64xf32>
    %c0_106 = arith.constant 0 : index
    %c3_107 = arith.constant 3 : index
    %c5_108 = arith.constant 5 : index
    %c0_109 = arith.constant 0 : index
    %43 = vector.load %arg0[%c0_106, %c3_107, %c5_108, %c0_109] : memref<2x9x7x64xf32, #tpu.memory_space<vmem>>, vector<2x1x1x64xf32>
    %44 = arith.maximumf %40, %41 : vector<2x1x1x64xf32>
    %45 = arith.maximumf %42, %43 : vector<2x1x1x64xf32>
    %46 = arith.maximumf %44, %45 : vector<2x1x1x64xf32>
    %c0_110 = arith.constant 0 : index
    %c1_111 = arith.constant 1 : index
    %c2_112 = arith.constant 2 : index
    %c0_113 = arith.constant 0 : index
    %47 = vector.load %arg1[%c0_110, %c1_111, %c2_112, %c0_113] : memref<2x4x3x64xf32, #tpu.memory_space<vmem>>, vector<2x1x1x64xf32>
    tpu.vector_store %arg1[%c0_110, %c1_111, %c2_112, %c0_113], %46 {strides = array<i32>} : memref<2x4x3x64xf32, #tpu.memory_space<vmem>>, vector<2x1x1x64xf32>,
    %c0_114 = arith.constant 0 : index
    %c4_115 = arith.constant 4 : index
    %c0_116 = arith.constant 0 : index
    %c0_117 = arith.constant 0 : index
    %48 = vector.load %arg0[%c0_114, %c4_115, %c0_116, %c0_117] : memref<2x9x7x64xf32, #tpu.memory_space<vmem>>, vector<2x1x1x64xf32>
    %c0_118 = arith.constant 0 : index
    %c4_119 = arith.constant 4 : index
    %c1_120 = arith.constant 1 : index
    %c0_121 = arith.constant 0 : index
    %49 = vector.load %arg0[%c0_118, %c4_119, %c1_120, %c0_121] : memref<2x9x7x64xf32, #tpu.memory_space<vmem>>, vector<2x1x1x64xf32>
    %c0_122 = arith.constant 0 : index
    %c5_123 = arith.constant 5 : index
    %c0_124 = arith.constant 0 : index
    %c0_125 = arith.constant 0 : index
    %50 = vector.load %arg0[%c0_122, %c5_123, %c0_124, %c0_125] : memref<2x9x7x64xf32, #tpu.memory_space<vmem>>, vector<2x1x1x64xf32>
    %c0_126 = arith.constant 0 : index
    %c5_127 = arith.constant 5 : index
    %c1_128 = arith.constant 1 : index
    %c0_129 = arith.constant 0 : index
    %51 = vector.load %arg0[%c0_126, %c5_127, %c1_128, %c0_129] : memref<2x9x7x64xf32, #tpu.memory_space<vmem>>, vector<2x1x1x64xf32>
    %52 = arith.maximumf %48, %49 : vector<2x1x1x64xf32>
    %53 = arith.maximumf %50, %51 : vector<2x1x1x64xf32>
    %54 = arith.maximumf %52, %53 : vector<2x1x1x64xf32>
    %c0_130 = arith.constant 0 : index
    %c2_131 = arith.constant 2 : index
    %c0_132 = arith.constant 0 : index
    %c0_133 = arith.constant 0 : index
    %55 = vector.load %arg1[%c0_130, %c2_131, %c0_132, %c0_133] : memref<2x4x3x64xf32, #tpu.memory_space<vmem>>, vector<2x1x1x64xf32>
    tpu.vector_store %arg1[%c0_130, %c2_131, %c0_132, %c0_133], %54 {strides = array<i32>} : memref<2x4x3x64xf32, #tpu.memory_space<vmem>>, vector<2x1x1x64xf32>,
    %c0_134 = arith.constant 0 : index
    %c4_135 = arith.constant 4 : index
    %c2_136 = arith.constant 2 : index
    %c0_137 = arith.constant 0 : index
    %56 = vector.load %arg0[%c0_134, %c4_135, %c2_136, %c0_137] : memref<2x9x7x64xf32, #tpu.memory_space<vmem>>, vector<2x1x1x64xf32>
    %c0_138 = arith.constant 0 : index
    %c4_139 = arith.constant 4 : index
    %c3_140 = arith.constant 3 : index
    %c0_141 = arith.constant 0 : index
    %57 = vector.load %arg0[%c0_138, %c4_139, %c3_140, %c0_141] : memref<2x9x7x64xf32, #tpu.memory_space<vmem>>, vector<2x1x1x64xf32>
    %c0_142 = arith.constant 0 : index
    %c5_143 = arith.constant 5 : index
    %c2_144 = arith.constant 2 : index
    %c0_145 = arith.constant 0 : index
    %58 = vector.load %arg0[%c0_142, %c5_143, %c2_144, %c0_145] : memref<2x9x7x64xf32, #tpu.memory_space<vmem>>, vector<2x1x1x64xf32>
    %c0_146 = arith.constant 0 : index
    %c5_147 = arith.constant 5 : index
    %c3_148 = arith.constant 3 : index
    %c0_149 = arith.constant 0 : index
    %59 = vector.load %arg0[%c0_146, %c5_147, %c3_148, %c0_149] : memref<2x9x7x64xf32, #tpu.memory_space<vmem>>, vector<2x1x1x64xf32>
    %60 = arith.maximumf %56, %57 : vector<2x1x1x64xf32>
    %61 = arith.maximumf %58, %59 : vector<2x1x1x64xf32>
    %62 = arith.maximumf %60, %61 : vector<2x1x1x64xf32>
    %c0_150 = arith.constant 0 : index
    %c2_151 = arith.constant 2 : index
    %c1_152 = arith.constant 1 : index
    %c0_153 = arith.constant 0 : index
    %63 = vector.load %arg1[%c0_150, %c2_151, %c1_152, %c0_153] : memref<2x4x3x64xf32, #tpu.memory_space<vmem>>, vector<2x1x1x64xf32>
    tpu.vector_store %arg1[%c0_150, %c2_151, %c1_152, %c0_153], %62 {strides = array<i32>} : memref<2x4x3x64xf32, #tpu.memory_space<vmem>>, vector<2x1x1x64xf32>,
    %c0_154 = arith.constant 0 : index
    %c4_155 = arith.constant 4 : index
    %c4_156 = arith.constant 4 : index
    %c0_157 = arith.constant 0 : index
    %64 = vector.load %arg0[%c0_154, %c4_155, %c4_156, %c0_157] : memref<2x9x7x64xf32, #tpu.memory_space<vmem>>, vector<2x1x1x64xf32>
    %c0_158 = arith.constant 0 : index
    %c4_159 = arith.constant 4 : index
    %c5_160 = arith.constant 5 : index
    %c0_161 = arith.constant 0 : index
    %65 = vector.load %arg0[%c0_158, %c4_159, %c5_160, %c0_161] : memref<2x9x7x64xf32, #tpu.memory_space<vmem>>, vector<2x1x1x64xf32>
    %c0_162 = arith.constant 0 : index
    %c5_163 = arith.constant 5 : index
    %c4_164 = arith.constant 4 : index
    %c0_165 = arith.constant 0 : index
    %66 = vector.load %arg0[%c0_162, %c5_163, %c4_164, %c0_165] : memref<2x9x7x64xf32, #tpu.memory_space<vmem>>, vector<2x1x1x64xf32>
    %c0_166 = arith.constant 0 : index
    %c5_167 = arith.constant 5 : index
    %c5_168 = arith.constant 5 : index
    %c0_169 = arith.constant 0 : index
    %67 = vector.load %arg0[%c0_166, %c5_167, %c5_168, %c0_169] : memref<2x9x7x64xf32, #tpu.memory_space<vmem>>, vector<2x1x1x64xf32>
    %68 = arith.maximumf %64, %65 : vector<2x1x1x64xf32>
    %69 = arith.maximumf %66, %67 : vector<2x1x1x64xf32>
    %70 = arith.maximumf %68, %69 : vector<2x1x1x64xf32>
    %c0_170 = arith.constant 0 : index
    %c2_171 = arith.constant 2 : index
    %c2_172 = arith.constant 2 : index
    %c0_173 = arith.constant 0 : index
    %71 = vector.load %arg1[%c0_170, %c2_171, %c2_172, %c0_173] : memref<2x4x3x64xf32, #tpu.memory_space<vmem>>, vector<2x1x1x64xf32>
    tpu.vector_store %arg1[%c0_170, %c2_171, %c2_172, %c0_173], %70 {strides = array<i32>} : memref<2x4x3x64xf32, #tpu.memory_space<vmem>>, vector<2x1x1x64xf32>,
    %c0_174 = arith.constant 0 : index
    %c6 = arith.constant 6 : index
    %c0_175 = arith.constant 0 : index
    %c0_176 = arith.constant 0 : index
    %72 = vector.load %arg0[%c0_174, %c6, %c0_175, %c0_176] : memref<2x9x7x64xf32, #tpu.memory_space<vmem>>, vector<2x1x1x64xf32>
    %c0_177 = arith.constant 0 : index
    %c6_178 = arith.constant 6 : index
    %c1_179 = arith.constant 1 : index
    %c0_180 = arith.constant 0 : index
    %73 = vector.load %arg0[%c0_177, %c6_178, %c1_179, %c0_180] : memref<2x9x7x64xf32, #tpu.memory_space<vmem>>, vector<2x1x1x64xf32>
    %c0_181 = arith.constant 0 : index
    %c7 = arith.constant 7 : index
    %c0_182 = arith.constant 0 : index
    %c0_183 = arith.constant 0 : index
    %74 = vector.load %arg0[%c0_181, %c7, %c0_182, %c0_183] : memref<2x9x7x64xf32, #tpu.memory_space<vmem>>, vector<2x1x1x64xf32>
    %c0_184 = arith.constant 0 : index
    %c7_185 = arith.constant 7 : index
    %c1_186 = arith.constant 1 : index
    %c0_187 = arith.constant 0 : index
    %75 = vector.load %arg0[%c0_184, %c7_185, %c1_186, %c0_187] : memref<2x9x7x64xf32, #tpu.memory_space<vmem>>, vector<2x1x1x64xf32>
    %76 = arith.maximumf %72, %73 : vector<2x1x1x64xf32>
    %77 = arith.maximumf %74, %75 : vector<2x1x1x64xf32>
    %78 = arith.maximumf %76, %77 : vector<2x1x1x64xf32>
    %c0_188 = arith.constant 0 : index
    %c3_189 = arith.constant 3 : index
    %c0_190 = arith.constant 0 : index
    %c0_191 = arith.constant 0 : index
    %79 = vector.load %arg1[%c0_188, %c3_189, %c0_190, %c0_191] : memref<2x4x3x64xf32, #tpu.memory_space<vmem>>, vector<2x1x1x64xf32>
    tpu.vector_store %arg1[%c0_188, %c3_189, %c0_190, %c0_191], %78 {strides = array<i32>} : memref<2x4x3x64xf32, #tpu.memory_space<vmem>>, vector<2x1x1x64xf32>,
    %c0_192 = arith.constant 0 : index
    %c6_193 = arith.constant 6 : index
    %c2_194 = arith.constant 2 : index
    %c0_195 = arith.constant 0 : index
    %80 = vector.load %arg0[%c0_192, %c6_193, %c2_194, %c0_195] : memref<2x9x7x64xf32, #tpu.memory_space<vmem>>, vector<2x1x1x64xf32>
    %c0_196 = arith.constant 0 : index
    %c6_197 = arith.constant 6 : index
    %c3_198 = arith.constant 3 : index
    %c0_199 = arith.constant 0 : index
    %81 = vector.load %arg0[%c0_196, %c6_197, %c3_198, %c0_199] : memref<2x9x7x64xf32, #tpu.memory_space<vmem>>, vector<2x1x1x64xf32>
    %c0_200 = arith.constant 0 : index
    %c7_201 = arith.constant 7 : index
    %c2_202 = arith.constant 2 : index
    %c0_203 = arith.constant 0 : index
    %82 = vector.load %arg0[%c0_200, %c7_201, %c2_202, %c0_203] : memref<2x9x7x64xf32, #tpu.memory_space<vmem>>, vector<2x1x1x64xf32>
    %c0_204 = arith.constant 0 : index
    %c7_205 = arith.constant 7 : index
    %c3_206 = arith.constant 3 : index
    %c0_207 = arith.constant 0 : index
    %83 = vector.load %arg0[%c0_204, %c7_205, %c3_206, %c0_207] : memref<2x9x7x64xf32, #tpu.memory_space<vmem>>, vector<2x1x1x64xf32>
    %84 = arith.maximumf %80, %81 : vector<2x1x1x64xf32>
    %85 = arith.maximumf %82, %83 : vector<2x1x1x64xf32>
    %86 = arith.maximumf %84, %85 : vector<2x1x1x64xf32>
    %c0_208 = arith.constant 0 : index
    %c3_209 = arith.constant 3 : index
    %c1_210 = arith.constant 1 : index
    %c0_211 = arith.constant 0 : index
    %87 = vector.load %arg1[%c0_208, %c3_209, %c1_210, %c0_211] : memref<2x4x3x64xf32, #tpu.memory_space<vmem>>, vector<2x1x1x64xf32>
    tpu.vector_store %arg1[%c0_208, %c3_209, %c1_210, %c0_211], %86 {strides = array<i32>} : memref<2x4x3x64xf32, #tpu.memory_space<vmem>>, vector<2x1x1x64xf32>,
    %c0_212 = arith.constant 0 : index
    %c6_213 = arith.constant 6 : index
    %c4_214 = arith.constant 4 : index
    %c0_215 = arith.constant 0 : index
    %88 = vector.load %arg0[%c0_212, %c6_213, %c4_214, %c0_215] : memref<2x9x7x64xf32, #tpu.memory_space<vmem>>, vector<2x1x1x64xf32>
    %c0_216 = arith.constant 0 : index
    %c6_217 = arith.constant 6 : index
    %c5_218 = arith.constant 5 : index
    %c0_219 = arith.constant 0 : index
    %89 = vector.load %arg0[%c0_216, %c6_217, %c5_218, %c0_219] : memref<2x9x7x64xf32, #tpu.memory_space<vmem>>, vector<2x1x1x64xf32>
    %c0_220 = arith.constant 0 : index
    %c7_221 = arith.constant 7 : index
    %c4_222 = arith.constant 4 : index
    %c0_223 = arith.constant 0 : index
    %90 = vector.load %arg0[%c0_220, %c7_221, %c4_222, %c0_223] : memref<2x9x7x64xf32, #tpu.memory_space<vmem>>, vector<2x1x1x64xf32>
    %c0_224 = arith.constant 0 : index
    %c7_225 = arith.constant 7 : index
    %c5_226 = arith.constant 5 : index
    %c0_227 = arith.constant 0 : index
    %91 = vector.load %arg0[%c0_224, %c7_225, %c5_226, %c0_227] : memref<2x9x7x64xf32, #tpu.memory_space<vmem>>, vector<2x1x1x64xf32>
    %92 = arith.maximumf %88, %89 : vector<2x1x1x64xf32>
    %93 = arith.maximumf %90, %91 : vector<2x1x1x64xf32>
    %94 = arith.maximumf %92, %93 : vector<2x1x1x64xf32>
    %c0_228 = arith.constant 0 : index
    %c3_229 = arith.constant 3 : index
    %c2_230 = arith.constant 2 : index
    %c0_231 = arith.constant 0 : index
    %95 = vector.load %arg1[%c0_228, %c3_229, %c2_230, %c0_231] : memref<2x4x3x64xf32, #tpu.memory_space<vmem>>, vector<2x1x1x64xf32>
    tpu.vector_store %arg1[%c0_228, %c3_229, %c2_230, %c0_231], %94 {strides = array<i32>} : memref<2x4x3x64xf32, #tpu.memory_space<vmem>>, vector<2x1x1x64xf32>,
    return
  }
}

module attributes {stable_mosaic.version = 11 : i64} {
  func.func @_gemm_bn_relu_kernel(%arg0: memref<24x576xf32, #tpu.memory_space<vmem>>, %arg1: memref<576x128xf32, #tpu.memory_space<vmem>>, %arg2: memref<1x128xf32, #tpu.memory_space<vmem>>, %arg3: memref<1x128xf32, #tpu.memory_space<vmem>>, %arg4: memref<1x128xf32, #tpu.memory_space<vmem>>, %arg5: memref<24x128xf32, #tpu.memory_space<vmem>>) attributes {dimension_semantics = [], scalar_prefetch = 0 : i64, scratch_operands = 0 : i64, tpu.core_type = #tpu.core_type<tc>} {
    %c0 = arith.constant 0 : index
    %c0_0 = arith.constant 0 : index
    %0 = vector.load %arg0[%c0, %c0_0] : memref<24x576xf32, #tpu.memory_space<vmem>>, vector<24x576xf32>
    %c0_1 = arith.constant 0 : index
    %c0_2 = arith.constant 0 : index
    %1 = vector.load %arg1[%c0_1, %c0_2] : memref<576x128xf32, #tpu.memory_space<vmem>>, vector<576x128xf32>
    %cst = arith.constant dense<0.000000e+00> : vector<24x128xf32>
    %2 = tpu.matmul %0, %1, %cst {dimension_numbers = #tpu.dot_dimension_numbers<[1], [0], [0], [1], [0, 0, 1, 1], [], []>} : vector<24x576xf32>, vector<576x128xf32>, vector<24x128xf32> -> vector<24x128xf32>
    %c0_3 = arith.constant 0 : index
    %c0_4 = arith.constant 0 : index
    %3 = vector.load %arg2[%c0_3, %c0_4] : memref<1x128xf32, #tpu.memory_space<vmem>>, vector<1x128xf32>
    %4 = vector.broadcast %3 : vector<1x128xf32> to vector<24x128xf32>
    %5 = arith.addf %2, %4 : vector<24x128xf32>
    %cst_5 = arith.constant dense<0.000000e+00> : vector<128xf32>
    %6 = vector.multi_reduction <add>, %5, %cst_5 [0] : vector<24x128xf32> to vector<128xf32>
    %7 = vector.shape_cast %6 : vector<128xf32> to vector<1x128xf32>
    %cst_6 = arith.constant 0.0416666679 : f32
    %8 = vector.broadcast %cst_6 : f32 to vector<1x128xf32>
    %9 = arith.mulf %7, %8 : vector<1x128xf32>
    %10 = arith.mulf %5, %5 : vector<24x128xf32>
    %cst_7 = arith.constant dense<0.000000e+00> : vector<128xf32>
    %11 = vector.multi_reduction <add>, %10, %cst_7 [0] : vector<24x128xf32> to vector<128xf32>
    %12 = vector.shape_cast %11 : vector<128xf32> to vector<1x128xf32>
    %cst_8 = arith.constant 0.0416666679 : f32
    %13 = vector.broadcast %cst_8 : f32 to vector<1x128xf32>
    %14 = arith.mulf %12, %13 : vector<1x128xf32>
    %15 = arith.mulf %9, %9 : vector<1x128xf32>
    %16 = arith.subf %14, %15 : vector<1x128xf32>
    %c0_9 = arith.constant 0 : index
    %c0_10 = arith.constant 0 : index
    %17 = vector.load %arg3[%c0_9, %c0_10] : memref<1x128xf32, #tpu.memory_space<vmem>>, vector<1x128xf32>
    %cst_11 = arith.constant 9.99999974E-6 : f32
    %18 = vector.broadcast %cst_11 : f32 to vector<1x128xf32>
    %19 = arith.addf %16, %18 : vector<1x128xf32>
    %20 = math.rsqrt %19 : vector<1x128xf32>
    %21 = arith.mulf %17, %20 : vector<1x128xf32>
    %c0_12 = arith.constant 0 : index
    %c0_13 = arith.constant 0 : index
    %22 = vector.load %arg4[%c0_12, %c0_13] : memref<1x128xf32, #tpu.memory_space<vmem>>, vector<1x128xf32>
    %23 = arith.mulf %9, %21 : vector<1x128xf32>
    %24 = arith.subf %22, %23 : vector<1x128xf32>
    %25 = vector.broadcast %21 : vector<1x128xf32> to vector<24x128xf32>
    %26 = arith.mulf %5, %25 : vector<24x128xf32>
    %27 = vector.broadcast %24 : vector<1x128xf32> to vector<24x128xf32>
    %28 = arith.addf %26, %27 : vector<24x128xf32>
    %cst_14 = arith.constant 0.000000e+00 : f32
    %29 = vector.broadcast %cst_14 : f32 to vector<24x128xf32>
    %30 = arith.maximumf %28, %29 : vector<24x128xf32>
    %c0_15 = arith.constant 0 : index
    %c0_16 = arith.constant 0 : index
    %31 = vector.load %arg5[%c0_15, %c0_16] : memref<24x128xf32, #tpu.memory_space<vmem>>, vector<24x128xf32>
    tpu.vector_store %arg5[%c0_15, %c0_16], %30 {strides = array<i32>} : memref<24x128xf32, #tpu.memory_space<vmem>>, vector<24x128xf32>,
    return
  }
}

module attributes {stable_mosaic.version = 11 : i64} {
  func.func @_maxpool2x2_kernel(%arg0: memref<2x4x3x128xf32, #tpu.memory_space<vmem>>, %arg1: memref<2x2x1x128xf32, #tpu.memory_space<vmem>>) attributes {dimension_semantics = [], scalar_prefetch = 0 : i64, scratch_operands = 0 : i64, tpu.core_type = #tpu.core_type<tc>} {
    %c0 = arith.constant 0 : index
    %c0_0 = arith.constant 0 : index
    %c0_1 = arith.constant 0 : index
    %c0_2 = arith.constant 0 : index
    %0 = vector.load %arg0[%c0, %c0_0, %c0_1, %c0_2] : memref<2x4x3x128xf32, #tpu.memory_space<vmem>>, vector<2x1x1x128xf32>
    %c0_3 = arith.constant 0 : index
    %c0_4 = arith.constant 0 : index
    %c1 = arith.constant 1 : index
    %c0_5 = arith.constant 0 : index
    %1 = vector.load %arg0[%c0_3, %c0_4, %c1, %c0_5] : memref<2x4x3x128xf32, #tpu.memory_space<vmem>>, vector<2x1x1x128xf32>
    %c0_6 = arith.constant 0 : index
    %c1_7 = arith.constant 1 : index
    %c0_8 = arith.constant 0 : index
    %c0_9 = arith.constant 0 : index
    %2 = vector.load %arg0[%c0_6, %c1_7, %c0_8, %c0_9] : memref<2x4x3x128xf32, #tpu.memory_space<vmem>>, vector<2x1x1x128xf32>
    %c0_10 = arith.constant 0 : index
    %c1_11 = arith.constant 1 : index
    %c1_12 = arith.constant 1 : index
    %c0_13 = arith.constant 0 : index
    %3 = vector.load %arg0[%c0_10, %c1_11, %c1_12, %c0_13] : memref<2x4x3x128xf32, #tpu.memory_space<vmem>>, vector<2x1x1x128xf32>
    %4 = arith.maximumf %0, %1 : vector<2x1x1x128xf32>
    %5 = arith.maximumf %2, %3 : vector<2x1x1x128xf32>
    %6 = arith.maximumf %4, %5 : vector<2x1x1x128xf32>
    %c0_14 = arith.constant 0 : index
    %c0_15 = arith.constant 0 : index
    %c0_16 = arith.constant 0 : index
    %c0_17 = arith.constant 0 : index
    %7 = vector.load %arg1[%c0_14, %c0_15, %c0_16, %c0_17] : memref<2x2x1x128xf32, #tpu.memory_space<vmem>>, vector<2x1x1x128xf32>
    tpu.vector_store %arg1[%c0_14, %c0_15, %c0_16, %c0_17], %6 {strides = array<i32>} : memref<2x2x1x128xf32, #tpu.memory_space<vmem>>, vector<2x1x1x128xf32>,
    %c0_18 = arith.constant 0 : index
    %c2 = arith.constant 2 : index
    %c0_19 = arith.constant 0 : index
    %c0_20 = arith.constant 0 : index
    %8 = vector.load %arg0[%c0_18, %c2, %c0_19, %c0_20] : memref<2x4x3x128xf32, #tpu.memory_space<vmem>>, vector<2x1x1x128xf32>
    %c0_21 = arith.constant 0 : index
    %c2_22 = arith.constant 2 : index
    %c1_23 = arith.constant 1 : index
    %c0_24 = arith.constant 0 : index
    %9 = vector.load %arg0[%c0_21, %c2_22, %c1_23, %c0_24] : memref<2x4x3x128xf32, #tpu.memory_space<vmem>>, vector<2x1x1x128xf32>
    %c0_25 = arith.constant 0 : index
    %c3 = arith.constant 3 : index
    %c0_26 = arith.constant 0 : index
    %c0_27 = arith.constant 0 : index
    %10 = vector.load %arg0[%c0_25, %c3, %c0_26, %c0_27] : memref<2x4x3x128xf32, #tpu.memory_space<vmem>>, vector<2x1x1x128xf32>
    %c0_28 = arith.constant 0 : index
    %c3_29 = arith.constant 3 : index
    %c1_30 = arith.constant 1 : index
    %c0_31 = arith.constant 0 : index
    %11 = vector.load %arg0[%c0_28, %c3_29, %c1_30, %c0_31] : memref<2x4x3x128xf32, #tpu.memory_space<vmem>>, vector<2x1x1x128xf32>
    %12 = arith.maximumf %8, %9 : vector<2x1x1x128xf32>
    %13 = arith.maximumf %10, %11 : vector<2x1x1x128xf32>
    %14 = arith.maximumf %12, %13 : vector<2x1x1x128xf32>
    %c0_32 = arith.constant 0 : index
    %c1_33 = arith.constant 1 : index
    %c0_34 = arith.constant 0 : index
    %c0_35 = arith.constant 0 : index
    %15 = vector.load %arg1[%c0_32, %c1_33, %c0_34, %c0_35] : memref<2x2x1x128xf32, #tpu.memory_space<vmem>>, vector<2x1x1x128xf32>
    tpu.vector_store %arg1[%c0_32, %c1_33, %c0_34, %c0_35], %14 {strides = array<i32>} : memref<2x2x1x128xf32, #tpu.memory_space<vmem>>, vector<2x1x1x128xf32>,
    return
  }
}

module attributes {stable_mosaic.version = 11 : i64} {
  func.func @_gemm_bn_relu_kernel(%arg0: memref<24x1152xf32, #tpu.memory_space<vmem>>, %arg1: memref<1152x128xf32, #tpu.memory_space<vmem>>, %arg2: memref<1x128xf32, #tpu.memory_space<vmem>>, %arg3: memref<1x128xf32, #tpu.memory_space<vmem>>, %arg4: memref<1x128xf32, #tpu.memory_space<vmem>>, %arg5: memref<24x128xf32, #tpu.memory_space<vmem>>) attributes {dimension_semantics = [], scalar_prefetch = 0 : i64, scratch_operands = 0 : i64, tpu.core_type = #tpu.core_type<tc>} {
    %c0 = arith.constant 0 : index
    %c0_0 = arith.constant 0 : index
    %0 = vector.load %arg0[%c0, %c0_0] : memref<24x1152xf32, #tpu.memory_space<vmem>>, vector<24x1152xf32>
    %c0_1 = arith.constant 0 : index
    %c0_2 = arith.constant 0 : index
    %1 = vector.load %arg1[%c0_1, %c0_2] : memref<1152x128xf32, #tpu.memory_space<vmem>>, vector<1152x128xf32>
    %cst = arith.constant dense<0.000000e+00> : vector<24x128xf32>
    %2 = tpu.matmul %0, %1, %cst {dimension_numbers = #tpu.dot_dimension_numbers<[1], [0], [0], [1], [0, 0, 1, 1], [], []>} : vector<24x1152xf32>, vector<1152x128xf32>, vector<24x128xf32> -> vector<24x128xf32>
    %c0_3 = arith.constant 0 : index
    %c0_4 = arith.constant 0 : index
    %3 = vector.load %arg2[%c0_3, %c0_4] : memref<1x128xf32, #tpu.memory_space<vmem>>, vector<1x128xf32>
    %4 = vector.broadcast %3 : vector<1x128xf32> to vector<24x128xf32>
    %5 = arith.addf %2, %4 : vector<24x128xf32>
    %cst_5 = arith.constant dense<0.000000e+00> : vector<128xf32>
    %6 = vector.multi_reduction <add>, %5, %cst_5 [0] : vector<24x128xf32> to vector<128xf32>
    %7 = vector.shape_cast %6 : vector<128xf32> to vector<1x128xf32>
    %cst_6 = arith.constant 0.0416666679 : f32
    %8 = vector.broadcast %cst_6 : f32 to vector<1x128xf32>
    %9 = arith.mulf %7, %8 : vector<1x128xf32>
    %10 = arith.mulf %5, %5 : vector<24x128xf32>
    %cst_7 = arith.constant dense<0.000000e+00> : vector<128xf32>
    %11 = vector.multi_reduction <add>, %10, %cst_7 [0] : vector<24x128xf32> to vector<128xf32>
    %12 = vector.shape_cast %11 : vector<128xf32> to vector<1x128xf32>
    %cst_8 = arith.constant 0.0416666679 : f32
    %13 = vector.broadcast %cst_8 : f32 to vector<1x128xf32>
    %14 = arith.mulf %12, %13 : vector<1x128xf32>
    %15 = arith.mulf %9, %9 : vector<1x128xf32>
    %16 = arith.subf %14, %15 : vector<1x128xf32>
    %c0_9 = arith.constant 0 : index
    %c0_10 = arith.constant 0 : index
    %17 = vector.load %arg3[%c0_9, %c0_10] : memref<1x128xf32, #tpu.memory_space<vmem>>, vector<1x128xf32>
    %cst_11 = arith.constant 9.99999974E-6 : f32
    %18 = vector.broadcast %cst_11 : f32 to vector<1x128xf32>
    %19 = arith.addf %16, %18 : vector<1x128xf32>
    %20 = math.rsqrt %19 : vector<1x128xf32>
    %21 = arith.mulf %17, %20 : vector<1x128xf32>
    %c0_12 = arith.constant 0 : index
    %c0_13 = arith.constant 0 : index
    %22 = vector.load %arg4[%c0_12, %c0_13] : memref<1x128xf32, #tpu.memory_space<vmem>>, vector<1x128xf32>
    %23 = arith.mulf %9, %21 : vector<1x128xf32>
    %24 = arith.subf %22, %23 : vector<1x128xf32>
    %25 = vector.broadcast %21 : vector<1x128xf32> to vector<24x128xf32>
    %26 = arith.mulf %5, %25 : vector<24x128xf32>
    %27 = vector.broadcast %24 : vector<1x128xf32> to vector<24x128xf32>
    %28 = arith.addf %26, %27 : vector<24x128xf32>
    %cst_14 = arith.constant 0.000000e+00 : f32
    %29 = vector.broadcast %cst_14 : f32 to vector<24x128xf32>
    %30 = arith.maximumf %28, %29 : vector<24x128xf32>
    %c0_15 = arith.constant 0 : index
    %c0_16 = arith.constant 0 : index
    %31 = vector.load %arg5[%c0_15, %c0_16] : memref<24x128xf32, #tpu.memory_space<vmem>>, vector<24x128xf32>
    tpu.vector_store %arg5[%c0_15, %c0_16], %30 {strides = array<i32>} : memref<24x128xf32, #tpu.memory_space<vmem>>, vector<24x128xf32>,
    return
  }
}

module attributes {stable_mosaic.version = 11 : i64} {
  func.func @_gemm_bn_relu_kernel(%arg0: memref<4x1152xf32, #tpu.memory_space<vmem>>, %arg1: memref<1152x256xf32, #tpu.memory_space<vmem>>, %arg2: memref<1x256xf32, #tpu.memory_space<vmem>>, %arg3: memref<1x256xf32, #tpu.memory_space<vmem>>, %arg4: memref<1x256xf32, #tpu.memory_space<vmem>>, %arg5: memref<4x256xf32, #tpu.memory_space<vmem>>) attributes {dimension_semantics = [], scalar_prefetch = 0 : i64, scratch_operands = 0 : i64, tpu.core_type = #tpu.core_type<tc>} {
    %c0 = arith.constant 0 : index
    %c0_0 = arith.constant 0 : index
    %0 = vector.load %arg0[%c0, %c0_0] : memref<4x1152xf32, #tpu.memory_space<vmem>>, vector<4x1152xf32>
    %c0_1 = arith.constant 0 : index
    %c0_2 = arith.constant 0 : index
    %1 = vector.load %arg1[%c0_1, %c0_2] : memref<1152x256xf32, #tpu.memory_space<vmem>>, vector<1152x256xf32>
    %cst = arith.constant dense<0.000000e+00> : vector<4x256xf32>
    %2 = tpu.matmul %0, %1, %cst {dimension_numbers = #tpu.dot_dimension_numbers<[1], [0], [0], [1], [0, 0, 1, 1], [], []>} : vector<4x1152xf32>, vector<1152x256xf32>, vector<4x256xf32> -> vector<4x256xf32>
    %c0_3 = arith.constant 0 : index
    %c0_4 = arith.constant 0 : index
    %3 = vector.load %arg2[%c0_3, %c0_4] : memref<1x256xf32, #tpu.memory_space<vmem>>, vector<1x256xf32>
    %4 = vector.broadcast %3 : vector<1x256xf32> to vector<4x256xf32>
    %5 = arith.addf %2, %4 : vector<4x256xf32>
    %cst_5 = arith.constant dense<0.000000e+00> : vector<256xf32>
    %6 = vector.multi_reduction <add>, %5, %cst_5 [0] : vector<4x256xf32> to vector<256xf32>
    %7 = vector.shape_cast %6 : vector<256xf32> to vector<1x256xf32>
    %cst_6 = arith.constant 2.500000e-01 : f32
    %8 = vector.broadcast %cst_6 : f32 to vector<1x256xf32>
    %9 = arith.mulf %7, %8 : vector<1x256xf32>
    %10 = arith.mulf %5, %5 : vector<4x256xf32>
    %cst_7 = arith.constant dense<0.000000e+00> : vector<256xf32>
    %11 = vector.multi_reduction <add>, %10, %cst_7 [0] : vector<4x256xf32> to vector<256xf32>
    %12 = vector.shape_cast %11 : vector<256xf32> to vector<1x256xf32>
    %cst_8 = arith.constant 2.500000e-01 : f32
    %13 = vector.broadcast %cst_8 : f32 to vector<1x256xf32>
    %14 = arith.mulf %12, %13 : vector<1x256xf32>
    %15 = arith.mulf %9, %9 : vector<1x256xf32>
    %16 = arith.subf %14, %15 : vector<1x256xf32>
    %c0_9 = arith.constant 0 : index
    %c0_10 = arith.constant 0 : index
    %17 = vector.load %arg3[%c0_9, %c0_10] : memref<1x256xf32, #tpu.memory_space<vmem>>, vector<1x256xf32>
    %cst_11 = arith.constant 9.99999974E-6 : f32
    %18 = vector.broadcast %cst_11 : f32 to vector<1x256xf32>
    %19 = arith.addf %16, %18 : vector<1x256xf32>
    %20 = math.rsqrt %19 : vector<1x256xf32>
    %21 = arith.mulf %17, %20 : vector<1x256xf32>
    %c0_12 = arith.constant 0 : index
    %c0_13 = arith.constant 0 : index
    %22 = vector.load %arg4[%c0_12, %c0_13] : memref<1x256xf32, #tpu.memory_space<vmem>>, vector<1x256xf32>
    %23 = arith.mulf %9, %21 : vector<1x256xf32>
    %24 = arith.subf %22, %23 : vector<1x256xf32>
    %25 = vector.broadcast %21 : vector<1x256xf32> to vector<4x256xf32>
    %26 = arith.mulf %5, %25 : vector<4x256xf32>
    %27 = vector.broadcast %24 : vector<1x256xf32> to vector<4x256xf32>
    %28 = arith.addf %26, %27 : vector<4x256xf32>
    %cst_14 = arith.constant 0.000000e+00 : f32
    %29 = vector.broadcast %cst_14 : f32 to vector<4x256xf32>
    %30 = arith.maximumf %28, %29 : vector<4x256xf32>
    %c0_15 = arith.constant 0 : index
    %c0_16 = arith.constant 0 : index
    %31 = vector.load %arg5[%c0_15, %c0_16] : memref<4x256xf32, #tpu.memory_space<vmem>>, vector<4x256xf32>
    tpu.vector_store %arg5[%c0_15, %c0_16], %30 {strides = array<i32>} : memref<4x256xf32, #tpu.memory_space<vmem>>, vector<4x256xf32>,
    return
  }
}

module attributes {stable_mosaic.version = 11 : i64} {
  func.func @_gemm_bn_relu_kernel(%arg0: memref<4x2304xf32, #tpu.memory_space<vmem>>, %arg1: memref<2304x256xf32, #tpu.memory_space<vmem>>, %arg2: memref<1x256xf32, #tpu.memory_space<vmem>>, %arg3: memref<1x256xf32, #tpu.memory_space<vmem>>, %arg4: memref<1x256xf32, #tpu.memory_space<vmem>>, %arg5: memref<4x256xf32, #tpu.memory_space<vmem>>) attributes {dimension_semantics = [], scalar_prefetch = 0 : i64, scratch_operands = 0 : i64, tpu.core_type = #tpu.core_type<tc>} {
    %c0 = arith.constant 0 : index
    %c0_0 = arith.constant 0 : index
    %0 = vector.load %arg0[%c0, %c0_0] : memref<4x2304xf32, #tpu.memory_space<vmem>>, vector<4x2304xf32>
    %c0_1 = arith.constant 0 : index
    %c0_2 = arith.constant 0 : index
    %1 = vector.load %arg1[%c0_1, %c0_2] : memref<2304x256xf32, #tpu.memory_space<vmem>>, vector<2304x256xf32>
    %cst = arith.constant dense<0.000000e+00> : vector<4x256xf32>
    %2 = tpu.matmul %0, %1, %cst {dimension_numbers = #tpu.dot_dimension_numbers<[1], [0], [0], [1], [0, 0, 1, 1], [], []>} : vector<4x2304xf32>, vector<2304x256xf32>, vector<4x256xf32> -> vector<4x256xf32>
    %c0_3 = arith.constant 0 : index
    %c0_4 = arith.constant 0 : index
    %3 = vector.load %arg2[%c0_3, %c0_4] : memref<1x256xf32, #tpu.memory_space<vmem>>, vector<1x256xf32>
    %4 = vector.broadcast %3 : vector<1x256xf32> to vector<4x256xf32>
    %5 = arith.addf %2, %4 : vector<4x256xf32>
    %cst_5 = arith.constant dense<0.000000e+00> : vector<256xf32>
    %6 = vector.multi_reduction <add>, %5, %cst_5 [0] : vector<4x256xf32> to vector<256xf32>
    %7 = vector.shape_cast %6 : vector<256xf32> to vector<1x256xf32>
    %cst_6 = arith.constant 2.500000e-01 : f32
    %8 = vector.broadcast %cst_6 : f32 to vector<1x256xf32>
    %9 = arith.mulf %7, %8 : vector<1x256xf32>
    %10 = arith.mulf %5, %5 : vector<4x256xf32>
    %cst_7 = arith.constant dense<0.000000e+00> : vector<256xf32>
    %11 = vector.multi_reduction <add>, %10, %cst_7 [0] : vector<4x256xf32> to vector<256xf32>
    %12 = vector.shape_cast %11 : vector<256xf32> to vector<1x256xf32>
    %cst_8 = arith.constant 2.500000e-01 : f32
    %13 = vector.broadcast %cst_8 : f32 to vector<1x256xf32>
    %14 = arith.mulf %12, %13 : vector<1x256xf32>
    %15 = arith.mulf %9, %9 : vector<1x256xf32>
    %16 = arith.subf %14, %15 : vector<1x256xf32>
    %c0_9 = arith.constant 0 : index
    %c0_10 = arith.constant 0 : index
    %17 = vector.load %arg3[%c0_9, %c0_10] : memref<1x256xf32, #tpu.memory_space<vmem>>, vector<1x256xf32>
    %cst_11 = arith.constant 9.99999974E-6 : f32
    %18 = vector.broadcast %cst_11 : f32 to vector<1x256xf32>
    %19 = arith.addf %16, %18 : vector<1x256xf32>
    %20 = math.rsqrt %19 : vector<1x256xf32>
    %21 = arith.mulf %17, %20 : vector<1x256xf32>
    %c0_12 = arith.constant 0 : index
    %c0_13 = arith.constant 0 : index
    %22 = vector.load %arg4[%c0_12, %c0_13] : memref<1x256xf32, #tpu.memory_space<vmem>>, vector<1x256xf32>
    %23 = arith.mulf %9, %21 : vector<1x256xf32>
    %24 = arith.subf %22, %23 : vector<1x256xf32>
    %25 = vector.broadcast %21 : vector<1x256xf32> to vector<4x256xf32>
    %26 = arith.mulf %5, %25 : vector<4x256xf32>
    %27 = vector.broadcast %24 : vector<1x256xf32> to vector<4x256xf32>
    %28 = arith.addf %26, %27 : vector<4x256xf32>
    %cst_14 = arith.constant 0.000000e+00 : f32
    %29 = vector.broadcast %cst_14 : f32 to vector<4x256xf32>
    %30 = arith.maximumf %28, %29 : vector<4x256xf32>
    %c0_15 = arith.constant 0 : index
    %c0_16 = arith.constant 0 : index
    %31 = vector.load %arg5[%c0_15, %c0_16] : memref<4x256xf32, #tpu.memory_space<vmem>>, vector<4x256xf32>
    tpu.vector_store %arg5[%c0_15, %c0_16], %30 {strides = array<i32>} : memref<4x256xf32, #tpu.memory_space<vmem>>, vector<4x256xf32>,
    return
  }
}

module attributes {stable_mosaic.version = 11 : i64} {
  func.func @_gemm_bn_relu_kernel(%arg0: memref<24x2304xf32, #tpu.memory_space<vmem>>, %arg1: memref<2304x128xf32, #tpu.memory_space<vmem>>, %arg2: memref<1x128xf32, #tpu.memory_space<vmem>>, %arg3: memref<1x128xf32, #tpu.memory_space<vmem>>, %arg4: memref<1x128xf32, #tpu.memory_space<vmem>>, %arg5: memref<24x128xf32, #tpu.memory_space<vmem>>) attributes {dimension_semantics = [], scalar_prefetch = 0 : i64, scratch_operands = 0 : i64, tpu.core_type = #tpu.core_type<tc>} {
    %c0 = arith.constant 0 : index
    %c0_0 = arith.constant 0 : index
    %0 = vector.load %arg0[%c0, %c0_0] : memref<24x2304xf32, #tpu.memory_space<vmem>>, vector<24x2304xf32>
    %c0_1 = arith.constant 0 : index
    %c0_2 = arith.constant 0 : index
    %1 = vector.load %arg1[%c0_1, %c0_2] : memref<2304x128xf32, #tpu.memory_space<vmem>>, vector<2304x128xf32>
    %cst = arith.constant dense<0.000000e+00> : vector<24x128xf32>
    %2 = tpu.matmul %0, %1, %cst {dimension_numbers = #tpu.dot_dimension_numbers<[1], [0], [0], [1], [0, 0, 1, 1], [], []>} : vector<24x2304xf32>, vector<2304x128xf32>, vector<24x128xf32> -> vector<24x128xf32>
    %c0_3 = arith.constant 0 : index
    %c0_4 = arith.constant 0 : index
    %3 = vector.load %arg2[%c0_3, %c0_4] : memref<1x128xf32, #tpu.memory_space<vmem>>, vector<1x128xf32>
    %4 = vector.broadcast %3 : vector<1x128xf32> to vector<24x128xf32>
    %5 = arith.addf %2, %4 : vector<24x128xf32>
    %cst_5 = arith.constant dense<0.000000e+00> : vector<128xf32>
    %6 = vector.multi_reduction <add>, %5, %cst_5 [0] : vector<24x128xf32> to vector<128xf32>
    %7 = vector.shape_cast %6 : vector<128xf32> to vector<1x128xf32>
    %cst_6 = arith.constant 0.0416666679 : f32
    %8 = vector.broadcast %cst_6 : f32 to vector<1x128xf32>
    %9 = arith.mulf %7, %8 : vector<1x128xf32>
    %10 = arith.mulf %5, %5 : vector<24x128xf32>
    %cst_7 = arith.constant dense<0.000000e+00> : vector<128xf32>
    %11 = vector.multi_reduction <add>, %10, %cst_7 [0] : vector<24x128xf32> to vector<128xf32>
    %12 = vector.shape_cast %11 : vector<128xf32> to vector<1x128xf32>
    %cst_8 = arith.constant 0.0416666679 : f32
    %13 = vector.broadcast %cst_8 : f32 to vector<1x128xf32>
    %14 = arith.mulf %12, %13 : vector<1x128xf32>
    %15 = arith.mulf %9, %9 : vector<1x128xf32>
    %16 = arith.subf %14, %15 : vector<1x128xf32>
    %c0_9 = arith.constant 0 : index
    %c0_10 = arith.constant 0 : index
    %17 = vector.load %arg3[%c0_9, %c0_10] : memref<1x128xf32, #tpu.memory_space<vmem>>, vector<1x128xf32>
    %cst_11 = arith.constant 9.99999974E-6 : f32
    %18 = vector.broadcast %cst_11 : f32 to vector<1x128xf32>
    %19 = arith.addf %16, %18 : vector<1x128xf32>
    %20 = math.rsqrt %19 : vector<1x128xf32>
    %21 = arith.mulf %17, %20 : vector<1x128xf32>
    %c0_12 = arith.constant 0 : index
    %c0_13 = arith.constant 0 : index
    %22 = vector.load %arg4[%c0_12, %c0_13] : memref<1x128xf32, #tpu.memory_space<vmem>>, vector<1x128xf32>
    %23 = arith.mulf %9, %21 : vector<1x128xf32>
    %24 = arith.subf %22, %23 : vector<1x128xf32>
    %25 = vector.broadcast %21 : vector<1x128xf32> to vector<24x128xf32>
    %26 = arith.mulf %5, %25 : vector<24x128xf32>
    %27 = vector.broadcast %24 : vector<1x128xf32> to vector<24x128xf32>
    %28 = arith.addf %26, %27 : vector<24x128xf32>
    %cst_14 = arith.constant 0.000000e+00 : f32
    %29 = vector.broadcast %cst_14 : f32 to vector<24x128xf32>
    %30 = arith.maximumf %28, %29 : vector<24x128xf32>
    %c0_15 = arith.constant 0 : index
    %c0_16 = arith.constant 0 : index
    %31 = vector.load %arg5[%c0_15, %c0_16] : memref<24x128xf32, #tpu.memory_space<vmem>>, vector<24x128xf32>
    tpu.vector_store %arg5[%c0_15, %c0_16], %30 {strides = array<i32>} : memref<24x128xf32, #tpu.memory_space<vmem>>, vector<24x128xf32>,
    return
  }
}

module attributes {stable_mosaic.version = 11 : i64} {
  func.func @_gemm_bn_relu_kernel(%arg0: memref<126x1152xf32, #tpu.memory_space<vmem>>, %arg1: memref<1152x64xf32, #tpu.memory_space<vmem>>, %arg2: memref<1x64xf32, #tpu.memory_space<vmem>>, %arg3: memref<1x64xf32, #tpu.memory_space<vmem>>, %arg4: memref<1x64xf32, #tpu.memory_space<vmem>>, %arg5: memref<126x64xf32, #tpu.memory_space<vmem>>) attributes {dimension_semantics = [], scalar_prefetch = 0 : i64, scratch_operands = 0 : i64, tpu.core_type = #tpu.core_type<tc>} {
    %c0 = arith.constant 0 : index
    %c0_0 = arith.constant 0 : index
    %0 = vector.load %arg0[%c0, %c0_0] : memref<126x1152xf32, #tpu.memory_space<vmem>>, vector<126x1152xf32>
    %c0_1 = arith.constant 0 : index
    %c0_2 = arith.constant 0 : index
    %1 = vector.load %arg1[%c0_1, %c0_2] : memref<1152x64xf32, #tpu.memory_space<vmem>>, vector<1152x64xf32>
    %cst = arith.constant dense<0.000000e+00> : vector<126x64xf32>
    %2 = tpu.matmul %0, %1, %cst {dimension_numbers = #tpu.dot_dimension_numbers<[1], [0], [0], [1], [0, 0, 1, 1], [], []>} : vector<126x1152xf32>, vector<1152x64xf32>, vector<126x64xf32> -> vector<126x64xf32>
    %c0_3 = arith.constant 0 : index
    %c0_4 = arith.constant 0 : index
    %3 = vector.load %arg2[%c0_3, %c0_4] : memref<1x64xf32, #tpu.memory_space<vmem>>, vector<1x64xf32>
    %4 = vector.broadcast %3 : vector<1x64xf32> to vector<126x64xf32>
    %5 = arith.addf %2, %4 : vector<126x64xf32>
    %cst_5 = arith.constant dense<0.000000e+00> : vector<64xf32>
    %6 = vector.multi_reduction <add>, %5, %cst_5 [0] : vector<126x64xf32> to vector<64xf32>
    %7 = vector.shape_cast %6 : vector<64xf32> to vector<1x64xf32>
    %cst_6 = arith.constant 0.00793650839 : f32
    %8 = vector.broadcast %cst_6 : f32 to vector<1x64xf32>
    %9 = arith.mulf %7, %8 : vector<1x64xf32>
    %10 = arith.mulf %5, %5 : vector<126x64xf32>
    %cst_7 = arith.constant dense<0.000000e+00> : vector<64xf32>
    %11 = vector.multi_reduction <add>, %10, %cst_7 [0] : vector<126x64xf32> to vector<64xf32>
    %12 = vector.shape_cast %11 : vector<64xf32> to vector<1x64xf32>
    %cst_8 = arith.constant 0.00793650839 : f32
    %13 = vector.broadcast %cst_8 : f32 to vector<1x64xf32>
    %14 = arith.mulf %12, %13 : vector<1x64xf32>
    %15 = arith.mulf %9, %9 : vector<1x64xf32>
    %16 = arith.subf %14, %15 : vector<1x64xf32>
    %c0_9 = arith.constant 0 : index
    %c0_10 = arith.constant 0 : index
    %17 = vector.load %arg3[%c0_9, %c0_10] : memref<1x64xf32, #tpu.memory_space<vmem>>, vector<1x64xf32>
    %cst_11 = arith.constant 9.99999974E-6 : f32
    %18 = vector.broadcast %cst_11 : f32 to vector<1x64xf32>
    %19 = arith.addf %16, %18 : vector<1x64xf32>
    %20 = math.rsqrt %19 : vector<1x64xf32>
    %21 = arith.mulf %17, %20 : vector<1x64xf32>
    %c0_12 = arith.constant 0 : index
    %c0_13 = arith.constant 0 : index
    %22 = vector.load %arg4[%c0_12, %c0_13] : memref<1x64xf32, #tpu.memory_space<vmem>>, vector<1x64xf32>
    %23 = arith.mulf %9, %21 : vector<1x64xf32>
    %24 = arith.subf %22, %23 : vector<1x64xf32>
    %25 = vector.broadcast %21 : vector<1x64xf32> to vector<126x64xf32>
    %26 = arith.mulf %5, %25 : vector<126x64xf32>
    %27 = vector.broadcast %24 : vector<1x64xf32> to vector<126x64xf32>
    %28 = arith.addf %26, %27 : vector<126x64xf32>
    %cst_14 = arith.constant 0.000000e+00 : f32
    %29 = vector.broadcast %cst_14 : f32 to vector<126x64xf32>
    %30 = arith.maximumf %28, %29 : vector<126x64xf32>
    %c0_15 = arith.constant 0 : index
    %c0_16 = arith.constant 0 : index
    %31 = vector.load %arg5[%c0_15, %c0_16] : memref<126x64xf32, #tpu.memory_space<vmem>>, vector<126x64xf32>
    tpu.vector_store %arg5[%c0_15, %c0_16], %30 {strides = array<i32>} : memref<126x64xf32, #tpu.memory_space<vmem>>, vector<126x64xf32>,
    return
  }
}

module attributes {stable_mosaic.version = 11 : i64} {
  func.func @_gemm_bias_kernel(%arg0: memref<126x64xf32, #tpu.memory_space<vmem>>, %arg1: memref<64x31xf32, #tpu.memory_space<vmem>>, %arg2: memref<1x31xf32, #tpu.memory_space<vmem>>, %arg3: memref<126x31xf32, #tpu.memory_space<vmem>>) attributes {dimension_semantics = [], scalar_prefetch = 0 : i64, scratch_operands = 0 : i64, tpu.core_type = #tpu.core_type<tc>} {
    %c0 = arith.constant 0 : index
    %c0_0 = arith.constant 0 : index
    %0 = vector.load %arg0[%c0, %c0_0] : memref<126x64xf32, #tpu.memory_space<vmem>>, vector<126x64xf32>
    %c0_1 = arith.constant 0 : index
    %c0_2 = arith.constant 0 : index
    %1 = vector.load %arg1[%c0_1, %c0_2] : memref<64x31xf32, #tpu.memory_space<vmem>>, vector<64x31xf32>
    %cst = arith.constant dense<0.000000e+00> : vector<126x31xf32>
    %2 = tpu.matmul %0, %1, %cst {dimension_numbers = #tpu.dot_dimension_numbers<[1], [0], [0], [1], [0, 0, 1, 1], [], []>} : vector<126x64xf32>, vector<64x31xf32>, vector<126x31xf32> -> vector<126x31xf32>
    %c0_3 = arith.constant 0 : index
    %c0_4 = arith.constant 0 : index
    %3 = vector.load %arg2[%c0_3, %c0_4] : memref<1x31xf32, #tpu.memory_space<vmem>>, vector<1x31xf32>
    %4 = vector.broadcast %3 : vector<1x31xf32> to vector<126x31xf32>
    %5 = arith.addf %2, %4 : vector<126x31xf32>
    %c0_5 = arith.constant 0 : index
    %c0_6 = arith.constant 0 : index
    %6 = vector.load %arg3[%c0_5, %c0_6] : memref<126x31xf32, #tpu.memory_space<vmem>>, vector<126x31xf32>
    tpu.vector_store %arg3[%c0_5, %c0_6], %5 {strides = array<i32>} : memref<126x31xf32, #tpu.memory_space<vmem>>, vector<126x31xf32>,
    return
  }
}

</mosaic_0001>

<bundles_post_ra>
// kernel: unet_forward.17
= control target key start
LH: loop header
LB: loop body
LE: loop exit
PB: predicated region body
PF: predicated region fallthrough
CT: control target
= control target key end

     0   :  { %vm159_vm0 = vcmask 1046528   ;;  %vm110_vm1 = vcmask 187392   ;;  %vm453_vm2 = vcmask 523264   ;;  %vm483_vm3 = vcmask 521216   ;;  %s1365_s1 = inlined_call_operand.vmem [shape: f32[279,64], index: 1, kind: input, shape index: {}]   ;;  %s1366_s0 = inlined_call_operand.vmem [shape: f32[126,279], index: 0, kind: input, shape index: {}]   ;;  %s1367_s2 = inlined_call_operand.vmem [shape: f32[1,64], index: 2, kind: input, shape index: {}]   ;;  %s1368_s3 = inlined_call_operand.vmem [shape: f32[1,64], index: 3, kind: input, shape index: {}]   ;;  %s1369_s4 = inlined_call_operand.vmem [shape: f32[1,64], index: 4, kind: input, shape index: {}]   ;;  %s1370_s5 = inlined_call_operand.vmem [shape: f32[126,64], index: 5, kind: output, shape index: {}]  }
   0x1   :  { %v84_v0 = vld [vmem:[%s1365_s1 + $0x80] sm:$0xff]  ;;  %v85_v1 = vld [vmem:[%s1365_s1 + $0x88] sm:$0xff]  ;;  %v86_v5 = vld [vmem:[%s1365_s1 + $0x90] sm:$0xff] }
   0x2   :  { %v68_v2 = vld [vmem:[%s1365_s1] sm:$0xff]  ;;  %v783_v3 = vpack.c.bf16 %v85_v1, %v84_v0  ;;  %v69_v4 = vld [vmem:[%s1365_s1 + $0x8] sm:$0xff]  ;;  %v87_v6 = vld [vmem:[%s1365_s1 + $0x98] sm:$0xff] }
   0x3   :  { %v785_v7 = vpack.c.bf16 %v69_v4, %v68_v2  ;;  %v787_v8 = vpack.c.bf16 %v87_v6, %v86_v5  ;;  %v70_v9 = vld [vmem:[%s1365_s1 + $0x10] sm:$0xff]  ;;  %v71_v10 = vld [vmem:[%s1365_s1 + $0x18] sm:$0xff]  ;;  %v88_v11 = vld [vmem:[%s1365_s1 + $0xa0] sm:$0xff] }
   0x4   :  { %784 = vmatprep.subr.bf16.mxu0 %v783_v3  ;;  %819 = vmatprep.subr.bf16.mxu1 %v783_v3  ;;  %v89_v12 = vld [vmem:[%s1365_s1 + $0xa8] sm:$0xff]  ;;  %v789_v13 = vpack.c.bf16 %v71_v10, %v70_v9  ;;  %v72_v15 = vld [vmem:[%s1365_s1 + $0x20] sm:$0xff]  ;;  %v90_v17 = vld [vmem:[%s1365_s1 + $0xb0] sm:$0xff] }
   0x5   :  { %786 = vmatpush3.bf16.msra.mxu0 %v785_v7  ;;  %827 = vmatpush3.bf16.msra.mxu1 %v785_v7  ;;  %v791_v14 = vpack.c.bf16 %v89_v12, %v88_v11  ;;  %v73_v16 = vld [vmem:[%s1365_s1 + $0x28] sm:$0xff]  ;;  %v91_v18 = vld [vmem:[%s1365_s1 + $0xb8] sm:$0xff]  ;;  %v74_v21 = vld [vmem:[%s1365_s1 + $0x30] sm:$0xff] }
   0x6   :  { %788 = vmatprep.subr.bf16.mxu0 %v787_v8  ;;  %820 = vmatprep.subr.bf16.mxu1 %v787_v8  ;;  %v793_v19 = vpack.c.bf16 %v73_v16, %v72_v15  ;;  %v795_v20 = vpack.c.bf16 %v91_v18, %v90_v17  ;;  %v75_v22 = vld [vmem:[%s1365_s1 + $0x38] sm:$0xff]  ;;  %v92_v23 = vld [vmem:[%s1365_s1 + $0xc0] sm:$0xff]  ;;  %v93_v24 = vld [vmem:[%s1365_s1 + $0xc8] sm:$0xff] }
   0x7   :  { %v21_v25 = vld [vmem:[%s1366_s0 + $0x8] sm:$0xff]  ;;  %v797_v27 = vpack.c.bf16 %v75_v22, %v74_v21  ;;  %v799_v28 = vpack.c.bf16 %v93_v24, %v92_v23  ;;  %v76_v29 = vld [vmem:[%s1365_s1 + $0x40] sm:$0xff]  ;;  %v94_v31 = vld [vmem:[%s1365_s1 + $0xd0] sm:$0xff] }
   0x8   :  { %227 = vmatprep.mubr.f32.mxu0 %v21_v25  ;;  %v57_v26 = vld [vmem:[%s1366_s0 + $0x128] sm:$0xff]  ;;  %v95_v32 = vld [vmem:[%s1365_s1 + $0xd8] sm:$0xff]  ;;  %v78_v35 = vld [vmem:[%s1365_s1 + $0x50] sm:$0xff] }
   0x9   :  { %790 = vmatpush3.bf16.msra.mxu0 %v789_v13  ;;  %828 = vmatpush3.bf16.msra.mxu1 %v789_v13  ;;  %v77_v30 = vld [vmem:[%s1365_s1 + $0x48] sm:$0xff]  ;;  %v803_v34 = vpack.c.bf16 %v95_v32, %v94_v31  ;;  %v79_v36 = vld [vmem:[%s1365_s1 + $0x58] sm:$0xff]  ;;  %v96_v37 = vld [vmem:[%s1365_s1 + $0xe0] sm:$0xff] }
   0xa   :  { %792 = vmatprep.subr.bf16.mxu0 %v791_v14  ;;  %821 = vmatprep.subr.bf16.mxu1 %v791_v14  ;;  %v801_v33 = vpack.c.bf16 %v77_v30, %v76_v29  ;;  %v97_v38 = vld [vmem:[%s1365_s1 + $0xe8] sm:$0xff]  ;;  %v805_v39 = vpack.c.bf16 %v79_v36, %v78_v35  ;;  %v80_v41 = vld [vmem:[%s1365_s1 + $0x60] sm:$0xff]  ;;  %v98_v43 = vld [vmem:[%s1365_s1 + $0xf0] sm:$0xff] }
   0xb   :  { %287 = vmatprep.mubr.f32.mxu1 %v57_v26  ;;  %v807_v40 = vpack.c.bf16 %v97_v38, %v96_v37  ;;  %v81_v42 = vld [vmem:[%s1365_s1 + $0x68] sm:$0xff]  ;;  %v99_v44 = vld [vmem:[%s1365_s1 + $0xf8] sm:$0xff]  ;;  %v82_v47 = vld [vmem:[%s1365_s1 + $0x70] sm:$0xff] }
   0xc   :  { %v809_v45 = vpack.c.bf16 %v81_v42, %v80_v41  ;;  %v811_v46 = vpack.c.bf16 %v99_v44, %v98_v43  ;;  %v83_v48 = vld [vmem:[%s1365_s1 + $0x78] sm:$0xff]  ;;  %v100_v49 = vld [vmem:[%s1365_s1 + $0x100] sm:$0xff]  ;;  %v101_v50 = vld [vmem:[%s1365_s1 + $0x108] sm:$0xff] }
   0xd   :  { %794 = vmatpush3.bf16.msra.mxu0 %v793_v19  ;;  %829 = vmatpush3.bf16.msra.mxu1 %v793_v19  ;;  %v813_v51 = vpack.c.bf16 %v83_v48, %v82_v47  ;;  %v815_v52 = vpack.c.bf16 %v101_v50, %v100_v49  ;;  %v20_v53 = vld [vmem:[%s1366_s0] sm:$0xff]  ;;  %v102_v57 = vld [vmem:[%s1365_s1 + $0x110] sm:$0x7f]  ;;  %v23_v58 = vld [vmem:[%s1366_s0 + $0x18] sm:$0xff] }
   0xe   :  { %796 = vmatprep.subr.bf16.mxu0 %v795_v20  ;;  %822 = vmatprep.subr.bf16.mxu1 %v795_v20  ;;  %v56_v54 = vld [vmem:[%s1366_s0 + $0x120] sm:$0xff]  ;;  %v59_v59 = vld [vmem:[%s1366_s0 + $0x138] sm:$0xff]  ;;  %v26_v62 = vld [vmem:[%s1366_s0 + $0x30] sm:$0xff] }
   0xf   :  { %v24_v55 = vld [vmem:[%s1366_s0 + $0x20] sm:$0xff]  ;;  %v27_v60 = vld [vmem:[%s1366_s0 + $0x38] sm:$0xff]  ;;  %v62_v63 = vld [vmem:[%s1366_s0 + $0x150] sm:$0xff] }
  0x10   :  { %v60_v56 = vld [vmem:[%s1366_s0 + $0x140] sm:$0xff]  ;;  %v63_v61 = vld [vmem:[%s1366_s0 + $0x158] sm:$0xff]  ;;  %v30_v0 = vld [vmem:[%s1366_s0 + $0x50] sm:$0xff] }
  0x11   :  { %798 = vmatpush3.bf16.msra.mxu0 %v797_v27  ;;  %830 = vmatpush3.bf16.msra.mxu1 %v797_v27  ;;  %v66_v1 = vld [vmem:[%s1366_s0 + $0x170] sm:$0x3f]  ;;  %v29_v2 = vld [vmem:[%s1366_s0 + $0x48] sm:$0xff]  ;;  %v32_v6 = vld [vmem:[%s1366_s0 + $0x60] sm:$0xff] }
  0x12   :  { %800 = vmatprep.subr.bf16.mxu0 %v799_v28  ;;  %823 = vmatprep.subr.bf16.mxu1 %v799_v28  ;;  %v65_v3 = vld [vmem:[%s1366_s0 + $0x168] sm:$0x3f]  ;;  %v22_v5 = vld [vmem:[%s1366_s0 + $0x10] sm:$0xff]  ;;  %v36_v8 = vld [vmem:[%s1366_s0 + $0x80] sm:$0xff] }
  0x13   :  { %v33_v4 = vld [vmem:[%s1366_s0 + $0x68] sm:$0xff]  ;;  %v28_v9 = vld [vmem:[%s1366_s0 + $0x40] sm:$0xff]  ;;  %v35_v10 = vld [vmem:[%s1366_s0 + $0x78] sm:$0xff] }
  0x14   :  { %v25_v7 = vld [vmem:[%s1366_s0 + $0x28] sm:$0xff]  ;;  %v31_v11 = vld [vmem:[%s1366_s0 + $0x58] sm:$0xff]  ;;  %v34_v13 = vld [vmem:[%s1366_s0 + $0x70] sm:$0xff] }
  0x15   :  { %802 = vmatpush3.bf16.msra.mxu0 %v801_v33  ;;  %831 = vmatpush3.bf16.msra.mxu1 %v801_v33  ;;  %v39_v12 = vld [vmem:[%s1366_s0 + $0x98] sm:$0xff]  ;;  %v38_v14 = vld [vmem:[%s1366_s0 + $0x90] sm:$0xff]  ;;  %v37_v15 = vld [vmem:[%s1366_s0 + $0x88] sm:$0xff] }
  0x16   :  { %804 = vmatprep.subr.bf16.mxu0 %v803_v34  ;;  %824 = vmatprep.subr.bf16.mxu1 %v803_v34  ;;  %v42_v16 = vld [vmem:[%s1366_s0 + $0xb0] sm:$0xff]  ;;  %v40_v17 = vld [vmem:[%s1366_s0 + $0xa0] sm:$0xff]  ;;  %v41_v18 = vld [vmem:[%s1366_s0 + $0xa8] sm:$0xff] }
  0x17   :  { %v43_v19 = vld [vmem:[%s1366_s0 + $0xb8] sm:$0xff]  ;;  %v45_v20 = vld [vmem:[%s1366_s0 + $0xc8] sm:$0xff]  ;;  %v46_v21 = vld [vmem:[%s1366_s0 + $0xd0] sm:$0xff] }
  0x18   :  { %v44_v22 = vld [vmem:[%s1366_s0 + $0xc0] sm:$0xff]  ;;  %v49_v23 = vld [vmem:[%s1366_s0 + $0xe8] sm:$0xff]  ;;  %v47_v26 = vld [vmem:[%s1366_s0 + $0xd8] sm:$0xff] }
  0x19   :  { %806 = vmatpush3.bf16.msra.mxu0 %v805_v39  ;;  %832 = vmatpush3.bf16.msra.mxu1 %v805_v39  ;;  %v48_v24 = vld [vmem:[%s1366_s0 + $0xe0] sm:$0xff]  ;;  %v55_v27 = vld [vmem:[%s1366_s0 + $0x118] sm:$0xff]  ;;  %v58_v29 = vld [vmem:[%s1366_s0 + $0x130] sm:$0xff] }
  0x1a   :  { %808 = vmatprep.subr.bf16.mxu0 %v807_v40  ;;  %825 = vmatprep.subr.bf16.mxu1 %v807_v40  ;;  %v52_v25 = vld [vmem:[%s1366_s0 + $0x100] sm:$0xff]  ;;  %v51_v28 = vld [vmem:[%s1366_s0 + $0xf8] sm:$0xff]  ;;  %v50_v30 = vld [vmem:[%s1366_s0 + $0xf0] sm:$0xff] }
  0x1b   :  { %v61_v31 = vld [vmem:[%s1366_s0 + $0x148] sm:$0xff]  ;;  %v54_v32 = vld [vmem:[%s1366_s0 + $0x110] sm:$0xff]  ;;  %v64_v33 = vld [vmem:[%s1366_s0 + $0x160] sm:$0xff] }
  0x1c   :  { %v53_v34 = vld [vmem:[%s1366_s0 + $0x108] sm:$0xff]  ;;  %v67_v35 = vld [vmem:[%s1366_s0 + $0x178] sm:$0x3f] }
  0x1d   :  { %810 = vmatpush3.bf16.msra.mxu0 %v809_v45  ;;  %833 = vmatpush3.bf16.msra.mxu1 %v809_v45 }
  0x1e   :  { %812 = vmatprep.subr.bf16.mxu0 %v811_v46  ;;  %826 = vmatprep.subr.bf16.mxu1 %v811_v46 }
  0x21   :  { %814 = vmatpush3.bf16.msra.mxu0 %v813_v51  ;;  %834 = vmatpush3.bf16.msra.mxu1 %v813_v51 }
  0x22   :  { %816 = vmatprep.subr.bf16.mxu1 %v815_v52 }
  0x24   :  { %228 = vmatmul.mubr.f32.vlgmr.msra.gmra.mrb[0].mxu0 %v20_v53  ;;  %288 = vmatmul.mubr.f32.vlgmr.msra.gmra.mrb[0].mxu1 %v56_v54 }
  0x25   :  { %232 = vmatprep.mubr.f32.mxu0 %v24_v55  ;;  %292 = vmatprep.mubr.f32.mxu1 %v60_v56 }
  0x26   :  { %818 = vmatpush3.bf16.msra.mxu1 %v815_v52 }
  0x27   :  { %757 = vmatprep.subr.msk.mxu1 %vm159_vm0, %v102_v57 }
  0x28   :  { %233 = vmatmul.mubr.f32.gmra.mrb[2].mxu0 %v23_v58  ;;  %293 = vmatmul.mubr.f32.gmra.mrb[2].mxu1 %v59_v59  ;;  %v1143_v58 = vld [vmem:[%s1367_s2] ss:$0 sm:$0xff] }
  0x29   :  { %237 = vmatprep.mubr.f32.mxu0 %v27_v60  ;;  %297 = vmatprep.mubr.f32.mxu1 %v63_v61 }
  0x2a   :  { %758 = vmatpush3.msk.msra.mxu1 %vm159_vm0, %v102_v57 }
  0x2c   :  { %238 = vmatmul.mubr.f32.gmra.mrb[4].mxu0 %v26_v62  ;;  %298 = vmatmul.mubr.f32.gmra.mrb[4].mxu1 %v62_v63 }
  0x2d   :  { %242 = vmatprep.mubr.f32.mxu0 %v30_v0  ;;  %302 = vmatprep.mubr.f32.mxu1 %v66_v1 }
  0x30   :  { %243 = vmatmul.mubr.f32.gmra.mrb[6].mxu0 %v29_v2  ;;  %303 = vmatmul.mubr.f32.gmra.mrb[6].mxu1 %v65_v3 }
  0x31   :  { %247 = vmatprep.mubr.f32.mxu0 %v33_v4  ;;  %759 = vmatprep.mubr.msk.f32.mxu1 %vm110_vm1, %v22_v5 }
  0x34   :  { %248 = vmatmul.mubr.f32.gmra.mrb[8].mxu0 %v32_v6  ;;  %760 = vmatmul.mubr.msk.f32.vlgmr.msra.gmra.mrb[8].mxu1 %vm110_vm1, %v25_v7 }
  0x35   :  { %252 = vmatprep.mubr.f32.mxu0 %v36_v8  ;;  %762 = vmatprep.mubr.msk.f32.mxu1 %vm110_vm1, %v28_v9 }
  0x38   :  { %253 = vmatmul.mubr.f32.gmra.mrb[10].mxu0 %v35_v10  ;;  %763 = vmatmul.mubr.msk.f32.gmra.mrb[10].mxu1 %vm110_vm1, %v31_v11 }
  0x39   :  { %257 = vmatprep.mubr.f32.mxu0 %v39_v12  ;;  %765 = vmatprep.mubr.msk.f32.mxu1 %vm110_vm1, %v34_v13 }
  0x3c   :  { %258 = vmatmul.mubr.f32.gmra.mrb[12].mxu0 %v38_v14  ;;  %766 = vmatmul.mubr.msk.f32.gmra.mrb[12].mxu1 %vm110_vm1, %v37_v15 }
  0x3d   :  { %262 = vmatprep.mubr.f32.mxu0 %v42_v16  ;;  %768 = vmatprep.mubr.msk.f32.mxu1 %vm110_vm1, %v40_v17 }
  0x40   :  { %263 = vmatmul.mubr.f32.gmra.mrb[14].mxu0 %v41_v18  ;;  %769 = vmatmul.mubr.msk.f32.gmra.mrb[14].mxu1 %vm110_vm1, %v43_v19 }
  0x41   :  { %267 = vmatprep.mubr.f32.mxu0 %v45_v20  ;;  %771 = vmatprep.mubr.msk.f32.mxu1 %vm110_vm1, %v46_v21 }
  0x44   :  { %268 = vmatmul.mubr.f32.gmra.mrb[16].mxu0 %v44_v22  ;;  %772 = vmatmul.mubr.msk.f32.gmra.mrb[16].mxu1 %vm110_vm1, %v49_v23 }
  0x45   :  { %272 = vmatprep.mubr.f32.mxu0 %v48_v24  ;;  %774 = vmatprep.mubr.msk.f32.mxu1 %vm110_vm1, %v52_v25 }
  0x48   :  { %273 = vmatmul.mubr.f32.gmra.mrb[18].mxu0 %v47_v26  ;;  %775 = vmatmul.mubr.msk.f32.gmra.mrb[18].mxu1 %vm110_vm1, %v55_v27 }
  0x49   :  { %277 = vmatprep.mubr.f32.mxu0 %v51_v28  ;;  %777 = vmatprep.mubr.msk.f32.mxu1 %vm110_vm1, %v58_v29 }
  0x4c   :  { %278 = vmatmul.mubr.f32.gmra.mrb[20].mxu0 %v50_v30  ;;  %778 = vmatmul.mubr.msk.f32.gmra.mrb[20].mxu1 %vm110_vm1, %v61_v31 }
  0x4d   :  { %282 = vmatprep.mubr.f32.mxu0 %v54_v32  ;;  %780 = vmatprep.mubr.msk.f32.mxu1 %vm110_vm1, %v64_v33 }
  0x50   :  { %283 = vmatmul.mubr.f32.gmra.mrb[22].mxu0 %v53_v34  ;;  %781 = vmatmul.mubr.msk.f32.gmra.mrb[22].mxu1 %vm110_vm1, %v67_v35 }
  0xf7   :  { %v686_v36 = vpop.f32.mrb[0].mxu0  ;;  %v722_v37 = vpop.f32.mrb[0].mxu1 }
  0xf8   :  { %v687_v38 = vpop.f32.mrb[1].mxu0  ;;  %v723_v39 = vpop.f32.mrb[1].mxu1 }
  0xf9   :  { %v688_v40 = vadd.f32 %v687_v38, %v686_v36  ;;  %v1134_v41 = vadd.f32 %v723_v39, %v722_v37 }
  0xfb   :  { %v689_v42 = vpop.f32.mrb[2].mxu0  ;;  %v725_v43 = vpop.f32.mrb[2].mxu1  ;;  %v230_v0 = vadd.f32 %v688_v40, %v1143_v58 }
  0xfc   :  { %v690_v44 = vpop.f32.mrb[3].mxu0  ;;  %v726_v45 = vpop.f32.mrb[3].mxu1 }
  0xfd   :  { %v691_v46 = vadd.f32 %v690_v44, %v689_v42  ;;  %v1136_v47 = vadd.f32 %v726_v45, %v725_v43 }
  0xff   :  { %v692_v48 = vpop.f32.mrb[4].mxu0  ;;  %v728_v49 = vpop.f32.mrb[4].mxu1  ;;  %v235_v61 = vadd.f32 %v691_v46, %v1143_v58 }
 0x100   :  { %v693_v50 = vpop.f32.mrb[5].mxu0  ;;  %v729_v51 = vpop.f32.mrb[5].mxu1 }
 0x101   :  { %v694_v52 = vadd.f32 %v693_v50, %v692_v48  ;;  %v1138_v53 = vadd.f32 %v729_v51, %v728_v49 }
 0x103   :  { %v695_v54 = vpop.f32.mrb[6].mxu0  ;;  %v731_v55 = vpop.f32.mrb[6].mxu1  ;;  %v240_v13 = vadd.f32 %v694_v52, %v1143_v58 }
 0x104   :  { %v696_v56 = vpop.f32.mrb[7].mxu0  ;;  %v732_v57 = vpop.f32.mrb[7].mxu1 }
 0x105   :  { %v697_v59 = vadd.f32 %v696_v56, %v695_v54  ;;  %v1145_v60 = vadd.f32 %v732_v57, %v731_v55 }
 0x107   :  { %v698_v62 = vpop.f32.mrb[8].mxu0  ;;  %v761_v63 = vpop.f32.mrb[8].mxu1  ;;  %v245_v7 = vadd.f32 %v697_v59, %v1143_v58 }
 0x108   :  { %v1149_v1 = vadd.f32 %v761_v63, %v235_v61  ;;  %v699_v2 = vpop.f32.mrb[9].mxu0  ;;  %v374_v3 = vpop.f32.mrb[9].mxu1 }
 0x109   :  { %v700_v4 = vadd.f32 %v699_v2, %v698_v62  ;;  %v1151_v5 = vadd.f32 %v374_v3, %v230_v0 }
 0x10a   :  { %v494_v6 = vmul.f32 %v1149_v1, %v1149_v1  ;;  %v455_v8 = vsel %vm453_vm2, %v1149_v1, 0.0 }
 0x10b   :  { %v454_v9 = vsel %vm453_vm2, %v1151_v5, 0.0  ;;  %v493_v10 = vmul.f32 %v1151_v5, %v1151_v5  ;;  %v701_v11 = vpop.f32.mrb[10].mxu0  ;;  %v764_v12 = vpop.f32.mrb[10].mxu1  ;;  %v250_v22 = vadd.f32 %v700_v4, %v1143_v58 }
 0x10c   :  { %v1163_v14 = vadd.f32 %v764_v12, %v245_v7  ;;  %v702_v15 = vpop.f32.mrb[11].mxu0  ;;  %v384_v16 = vpop.f32.mrb[11].mxu1  ;;  %v510_v17 = vsel %vm453_vm2, %v494_v6, 0.0  ;;  %v456_v21 = vadd.f32 %v455_v8, %v454_v9 }
 0x10d   :  { %v509_v18 = vsel %vm453_vm2, %v493_v10, 0.0  ;;  %v703_v19 = vadd.f32 %v702_v15, %v701_v11  ;;  %v1167_v20 = vadd.f32 %v384_v16, %v240_v13 }
 0x10e   :  { %v496_v23 = vmul.f32 %v1163_v14, %v1163_v14  ;;  %v511_v29 = vadd.f32 %v510_v17, %v509_v18  ;;  %v459_v30 = vsel %vm453_vm2, %v1163_v14, 0.0 }
 0x10f   :  { %v457_v24 = vsel %vm453_vm2, %v1167_v20, 0.0  ;;  %v495_v25 = vmul.f32 %v1167_v20, %v1167_v20  ;;  %v704_v26 = vpop.f32.mrb[12].mxu0  ;;  %v255_v27 = vadd.f32 %v703_v19, %v1143_v58  ;;  %v767_v28 = vpop.f32.mrb[12].mxu1 }
 0x110   :  { %v458_v31 = vadd.f32 %v457_v24, %v456_v21  ;;  %v705_v32 = vpop.f32.mrb[13].mxu0  ;;  %v394_v33 = vpop.f32.mrb[13].mxu1  ;;  %v514_v40 = vsel %vm453_vm2, %v496_v23, 0.0 }
 0x111   :  { %v512_v34 = vsel %vm453_vm2, %v495_v25, 0.0  ;;  %v1180_v35 = vadd.f32 %v767_v28, %v255_v27  ;;  %v706_v36 = vadd.f32 %v705_v32, %v704_v26  ;;  %v1182_v37 = vadd.f32 %v394_v33, %v250_v22 }
 0x112   :  { %v513_v38 = vadd.f32 %v512_v34, %v511_v29  ;;  %v460_v39 = vadd.f32 %v459_v30, %v458_v31  ;;  %v295_v28 = vadd.f32 %v1136_v47, %v1143_v58  ;;  %v290_v34 = vadd.f32 %v1134_v41, %v1143_v58 }
 0x113   :  { %v498_v42 = vmul.f32 %v1180_v35, %v1180_v35  ;;  %v461_v43 = vsel %vm453_vm2, %v1182_v37, 0.0  ;;  %v497_v44 = vmul.f32 %v1182_v37, %v1182_v37  ;;  %v707_v45 = vpop.f32.mrb[14].mxu0  ;;  %v770_v46 = vpop.f32.mrb[14].mxu1  ;;  %v260_v51 = vadd.f32 %v706_v36, %v1143_v58 }
 0x114   :  { %v462_v48 = vadd.f32 %v461_v43, %v460_v39  ;;  %v515_v49 = vadd.f32 %v514_v40, %v513_v38  ;;  %v708_v50 = vpop.f32.mrb[15].mxu0  ;;  %v404_v52 = vpop.f32.mrb[15].mxu1  ;;  %v463_v54 = vsel %vm453_vm2, %v1180_v35, 0.0 }
 0x115   :  { %v516_v55 = vsel %vm453_vm2, %v497_v44, 0.0  ;;  %v709_v56 = vadd.f32 %v708_v50, %v707_v45  ;;  %v1195_v59 = vadd.f32 %v404_v52, %v260_v51  ;;  %v518_v62 = vsel %vm453_vm2, %v498_v42, 0.0 }
 0x116   :  { %v517_v57 = vadd.f32 %v516_v55, %v515_v49  ;;  %v464_v61 = vadd.f32 %v463_v54, %v462_v48  ;;  %v300_v52 = vadd.f32 %v1138_v53, %v1143_v58 }
 0x117   :  { %v265_v63 = vadd.f32 %v709_v56, %v1143_v58  ;;  %v710_v0 = vpop.f32.mrb[16].mxu0  ;;  %v773_v2 = vpop.f32.mrb[16].mxu1  ;;  %v465_v3 = vsel %vm453_vm2, %v1195_v59, 0.0  ;;  %v499_v4 = vmul.f32 %v1195_v59, %v1195_v59 }
 0x118   :  { %v519_v6 = vadd.f32 %v518_v62, %v517_v57  ;;  %v711_v7 = vpop.f32.mrb[17].mxu0  ;;  %v414_v8 = vpop.f32.mrb[17].mxu1  ;;  %v466_v10 = vadd.f32 %v465_v3, %v464_v61 }
 0x119   :  { %v1203_v9 = vadd.f32 %v770_v46, %v265_v63  ;;  %v712_v11 = vadd.f32 %v711_v7, %v710_v0  ;;  %v520_v12 = vsel %vm453_vm2, %v499_v4, 0.0  ;;  %v305_v46 = vadd.f32 %v1145_v60, %v1143_v58 }
 0x11a   :  { %v521_v15 = vadd.f32 %v520_v12, %v519_v6 }
 0x11b   :  { %v500_v13 = vmul.f32 %v1203_v9, %v1203_v9  ;;  %v713_v16 = vpop.f32.mrb[18].mxu0  ;;  %v270_v17 = vadd.f32 %v712_v11, %v1143_v58  ;;  %v467_v18 = vsel %vm453_vm2, %v1203_v9, 0.0  ;;  %v776_v19 = vpop.f32.mrb[18].mxu1 }
 0x11c   :  { %v714_v21 = vpop.f32.mrb[19].mxu0  ;;  %v468_v22 = vadd.f32 %v467_v18, %v466_v10  ;;  %v424_v23 = vpop.f32.mrb[19].mxu1 }
 0x11d   :  { %v715_v24 = vadd.f32 %v714_v21, %v713_v16  ;;  %v1211_v25 = vadd.f32 %v414_v8, %v270_v17  ;;  %v522_v26 = vsel %vm453_vm2, %v500_v13, 0.0 }
 0x11e   :  { %v523_v27 = vadd.f32 %v522_v26, %v521_v15 }
 0x11f   :  { %v275_v29 = vadd.f32 %v715_v24, %v1143_v58  ;;  %v469_v30 = vsel %vm453_vm2, %v1211_v25, 0.0  ;;  %v501_v31 = vmul.f32 %v1211_v25, %v1211_v25  ;;  %v716_v32 = vpop.f32.mrb[20].mxu0  ;;  %v779_v33 = vpop.f32.mrb[20].mxu1 }
 0x120   :  { %v470_v36 = vadd.f32 %v469_v30, %v468_v22  ;;  %v1223_v38 = vadd.f32 %v779_v33, %v295_v28  ;;  %v717_v39 = vpop.f32.mrb[21].mxu0  ;;  %v434_v40 = vpop.f32.mrb[21].mxu1 }
 0x121   :  { %v1225_v42 = vadd.f32 %v773_v2, %v275_v29  ;;  %v524_v47 = vsel %vm453_vm2, %v501_v31, 0.0  ;;  %v718_v43 = vadd.f32 %v717_v39, %v716_v32  ;;  %v1228_v44 = vadd.f32 %v434_v40, %v290_v34 }
 0x122   :  { %v525_v45 = vadd.f32 %v524_v47, %v523_v27  ;;  %v506_v15 = vmul.f32 %v1223_v38, %v1223_v38 }
 0x123   :  { %v502_v48 = vmul.f32 %v1225_v42, %v1225_v42  ;;  %v471_v41 = vsel %vm453_vm2, %v1225_v42, 0.0  ;;  %v280_v49 = vadd.f32 %v718_v43, %v1143_v58  ;;  %v719_v50 = vpop.f32.mrb[22].mxu0  ;;  %v782_v51 = vpop.f32.mrb[22].mxu1  ;;  %v505_v10 = vmul.f32 %v1228_v44, %v1228_v44 }
 0x124   :  { %v472_v54 = vadd.f32 %v471_v41, %v470_v36  ;;  %v1239_v55 = vadd.f32 %v782_v51, %v305_v46  ;;  %v720_v56 = vpop.f32.mrb[23].mxu0  ;;  %v444_v57 = vpop.f32.mrb[23].mxu1  ;;  %v534_v26 = vsel %vm453_vm2, %v506_v15, 0.0 }
 0x125   :  { %v526_v60 = vsel %vm453_vm2, %v502_v48, 0.0  ;;  %v1242_v61 = vadd.f32 %v424_v23, %v280_v49  ;;  %v721_v62 = vadd.f32 %v720_v56, %v719_v50  ;;  %v1244_v63 = vadd.f32 %v444_v57, %v300_v52 }
 0x126   :  { %v527_v0 = vadd.f32 %v526_v60, %v525_v45  ;;  %v532_v21 = vsel %vm453_vm2, %v505_v10, 0.0  ;;  %v508_v27 = vmul.f32 %v1239_v55, %v1239_v55  ;;  %v484_v31 = vsel %vm483_vm3, %v1239_v55, 0.0  ;;  %v553_v10 = vld [vmem:[%s1369_s4] sm:$0x1] }
 0x127   :  { %v473_v2 = vsel %vm453_vm2, %v1242_v61, 0.0  ;;  %v503_v3 = vmul.f32 %v1242_v61, %v1242_v61  ;;  %v285_v53 = vadd.f32 %v721_v62, %v1143_v58  ;;  %v477_v58 = vsel %vm453_vm2, %v1228_v44, 0.0 }
 0x128   :  { %v474_v4 = vadd.f32 %v473_v2, %v472_v54  ;;  %v507_v22 = vmul.f32 %v1244_v63, %v1244_v63  ;;  %v481_v28 = vsel %vm453_vm2, %v1244_v63, 0.0  ;;  %v538_v36 = vsel %vm483_vm3, %v508_v27, 0.0 }
 0x129   :  { %v528_v6 = vsel %vm453_vm2, %v503_v3, 0.0  ;;  %v1252_v7 = vadd.f32 %v776_v19, %v285_v53  ;;  %v479_v19 = vsel %vm453_vm2, %v1223_v38, 0.0  ;;  %v557_v2 = vlaneseq  ;;  %v549_v53 = vld [vmem:[%s1368_s3] sm:$0x1] }
 0x12a   :  { %v529_v8 = vadd.f32 %v528_v6, %v527_v0  ;;  %v536_v32 = vsel %vm453_vm2, %v507_v22, 0.0 }
 0x12b   :  { %v475_v11 = vsel %vm453_vm2, %v1252_v7, 0.0  ;;  %v504_v12 = vmul.f32 %v1252_v7, %v1252_v7  ;;  %v558_v3 = vshrl.u32 %v557_v2, 7 }
 0x12c   :  { %v476_v13 = vadd.f32 %v475_v11, %v474_v4 }
 0x12d   :  { %v530_v16 = vsel %vm453_vm2, %v504_v12, 0.0  ;;  %v559_v4 = vsub.s32 0, %v558_v3 }
 0x12e   :  { %v531_v17 = vadd.f32 %v530_v16, %v529_v8  ;;  %v478_v18 = vadd.f32 %v477_v58, %v476_v13 }
 0x130   :  { %v480_v23 = vadd.f32 %v479_v19, %v478_v18  ;;  %v533_v24 = vadd.f32 %v532_v21, %v531_v17 }
 0x132   :  { %v482_v29 = vadd.f32 %v481_v28, %v480_v23  ;;  %v535_v30 = vadd.f32 %v534_v26, %v533_v24 }
 0x134   :  { %v485_v33 = vadd.f32 %v484_v31, %v482_v29  ;;  %v537_v34 = vadd.f32 %v536_v32, %v535_v30 }
 0x136   :  { %v486_v39 = vrot.slane %v485_v33, 4  ;;  %v539_v40 = vadd.f32 %v538_v36, %v537_v34 }
 0x138   :  { %v487_v47 = vadd.f32 %v486_v39, %v485_v33  ;;  %v540_v43 = vrot.slane %v539_v40, 4 }
 0x13a   :  { %v488_v45 = vrot.slane %v487_v47, 2  ;;  %v541_v46 = vadd.f32 %v540_v43, %v539_v40 }
 0x13c   :  { %v489_v48 = vadd.f32 %v488_v45, %v487_v47  ;;  %v542_v41 = vrot.slane %v541_v46, 2 }
 0x13e   :  { %v490_v49 = vrot.slane %v489_v48, 1  ;;  %v543_v50 = vadd.f32 %v542_v41, %v541_v46 }
 0x140   :  { %v491_v51 = vadd.f32 %v490_v49, %v489_v48  ;;  %v544_v52 = vrot.slane %v543_v50, 1 }
 0x142   :  { %v492_v54 = vmul.f32 0.007936508, %v491_v51  ;;  %v545_v56 = vadd.f32 %v544_v52, %v543_v50 }
 0x144   :  { %v546_v57 = vmul.f32 0.007936508, %v545_v56  ;;  %v547_v60 = vmul.f32 %v492_v54, %v492_v54 }
 0x146   :  { %v548_v62 = vsub.f32 %v546_v57, %v547_v60 }
 0x148   :  { %v550_v0 = vadd.f32 1e-05, %v548_v62 }
 0x14a   :  { %835 = vrsqrt.f32 %v550_v0 }
 0x154   :  { %v836_v6 = vpop.eup %835 }
 0x155   :  { %v552_v8 = vmul.f32 %v836_v6, %v549_v53 }
 0x157   :  { %v554_v11 = vmul.f32 %v552_v8, %v492_v54  ;;  %v560_v12 = vrot.slane %v552_v8, %v559_v4 }
 0x159   :  { %v555_v13 = vsub.f32 %v553_v10, %v554_v11  ;;  %v562_v15 = vmul.f32 %v560_v12, %v1151_v5  ;;  %v565_v58 = vmul.f32 %v560_v12, %v1163_v14  ;;  %v566_v16 = vmul.f32 %v560_v12, %v1182_v37 }
 0x15a   :  { %v567_v17 = vmul.f32 %v560_v12, %v1180_v35  ;;  %v568_v18 = vmul.f32 %v560_v12, %v1195_v59  ;;  %v569_v19 = vmul.f32 %v560_v12, %v1203_v9  ;;  %v570_v21 = vmul.f32 %v560_v12, %v1211_v25 }
 0x15b   :  { %v571_v22 = vmul.f32 %v560_v12, %v1225_v42  ;;  %v572_v23 = vmul.f32 %v560_v12, %v1242_v61  ;;  %v573_v24 = vmul.f32 %v560_v12, %v1252_v7  ;;  %v574_v5 = vmul.f32 %v560_v12, %v1228_v44 }
 0x15c   :  { %v575_v14 = vmul.f32 %v560_v12, %v1223_v38  ;;  %v576_v37 = vmul.f32 %v560_v12, %v1244_v63  ;;  %v563_v35 = vmul.f32 %v560_v12, %v1149_v1  ;;  %v564_v59 = vmul.f32 %v560_v12, %v1167_v20 }
 0x15d   :  { %v577_v9 = vmul.f32 %v560_v12, %v1239_v55  ;;  %v582_v26 = vrot.slane %v555_v13, %v559_v4 }
 0x15f   :  { %v584_v25 = vadd.f32 %v582_v26, %v562_v15  ;;  %v585_v27 = vadd.f32 %v582_v26, %v563_v35  ;;  %v586_v42 = vadd.f32 %v582_v26, %v564_v59  ;;  %v587_v28 = vadd.f32 %v582_v26, %v565_v58 }
 0x160   :  { %v588_v61 = vadd.f32 %v582_v26, %v566_v16  ;;  %v589_v29 = vadd.f32 %v582_v26, %v567_v17  ;;  %v590_v7 = vadd.f32 %v582_v26, %v568_v18  ;;  %v591_v30 = vadd.f32 %v582_v26, %v569_v19 }
 0x161   :  { %v592_v44 = vadd.f32 %v582_v26, %v570_v21  ;;  %v593_v31 = vadd.f32 %v582_v26, %v571_v22  ;;  %v594_v38 = vadd.f32 %v582_v26, %v572_v23  ;;  %v595_v32 = vadd.f32 %v582_v26, %v573_v24 }
 0x162   :  { %v596_v63 = vadd.f32 %v582_v26, %v574_v5  ;;  %v597_v33 = vadd.f32 %v582_v26, %v575_v14  ;;  %v598_v1 = vadd.f32 %v582_v26, %v576_v37  ;;  %v599_v34 = vadd.f32 %v582_v26, %v577_v9 }
 0x163   :  { %v600_v20 = vmax.f32 %v584_v25, 0.0  ;;  %v601_v36 = vmax.f32 %v585_v27, 0.0  ;;  %v602_v55 = vmax.f32 %v586_v42, 0.0  ;;  %v603_v39 = vmax.f32 %v587_v28, 0.0 }
 0x164   :  { %v604_v40 = vmax.f32 %v588_v61, 0.0  ;;  %v605_v47 = vmax.f32 %v589_v29, 0.0  ;;  %v606_v43 = vmax.f32 %v590_v7, 0.0  ;;  %v607_v45 = vmax.f32 %v591_v30, 0.0 }
 0x165   :  { %v608_v46 = vmax.f32 %v592_v44, 0.0  ;;  %v609_v48 = vmax.f32 %v593_v31, 0.0  ;;  %v610_v41 = vmax.f32 %v594_v38, 0.0  ;;  %v611_v49 = vmax.f32 %v595_v32, 0.0  ;;  %616 = vst.msk [vmem:[%s1370_s5] sm:$0xff] %vm453_vm2, %v600_v20  ;;  %617 = vst.msk [vmem:[%s1370_s5 + $0x8] sm:$0xff] %vm453_vm2, %v601_v36 }
 0x166   :  { %618 = vst.msk [vmem:[%s1370_s5 + $0x10] sm:$0xff] %vm453_vm2, %v602_v55  ;;  %619 = vst.msk [vmem:[%s1370_s5 + $0x18] sm:$0xff] %vm453_vm2, %v603_v39  ;;  %v612_v50 = vmax.f32 %v596_v63, 0.0  ;;  %v613_v51 = vmax.f32 %v597_v33, 0.0  ;;  %v614_v52 = vmax.f32 %v598_v1, 0.0  ;;  %v615_v54 = vmax.f32 %v599_v34, 0.0 }
 0x167   :  { %620 = vst.msk [vmem:[%s1370_s5 + $0x20] sm:$0xff] %vm453_vm2, %v604_v40  ;;  %621 = vst.msk [vmem:[%s1370_s5 + $0x28] sm:$0xff] %vm453_vm2, %v605_v47 }
 0x168   :  { %622 = vst.msk [vmem:[%s1370_s5 + $0x30] sm:$0xff] %vm453_vm2, %v606_v43  ;;  %623 = vst.msk [vmem:[%s1370_s5 + $0x38] sm:$0xff] %vm453_vm2, %v607_v45 }
 0x169   :  { %624 = vst.msk [vmem:[%s1370_s5 + $0x40] sm:$0xff] %vm453_vm2, %v608_v46  ;;  %625 = vst.msk [vmem:[%s1370_s5 + $0x48] sm:$0xff] %vm453_vm2, %v609_v48 }
 0x16a   :  { %626 = vst.msk [vmem:[%s1370_s5 + $0x50] sm:$0xff] %vm453_vm2, %v610_v41  ;;  %627 = vst.msk [vmem:[%s1370_s5 + $0x58] sm:$0xff] %vm453_vm2, %v611_v49 }
 0x16b   :  { %628 = vst.msk [vmem:[%s1370_s5 + $0x60] sm:$0xff] %vm453_vm2, %v612_v50  ;;  %629 = vst.msk [vmem:[%s1370_s5 + $0x68] sm:$0xff] %vm453_vm2, %v613_v51 }
 0x16c   :  { %630 = vst.msk [vmem:[%s1370_s5 + $0x70] sm:$0xff] %vm453_vm2, %v614_v52 }
 0x16d   :  { %631 = vst.msk [vmem:[%s1370_s5 + $0x78] sm:$0x3f] %vm483_vm3, %v615_v54 }

// kernel: unet_forward.18
= control target key start
LH: loop header
LB: loop body
LE: loop exit
PB: predicated region body
PF: predicated region fallthrough
CT: control target
= control target key end

     0   :  { %vm179_vm0 = vcmask 523264   ;;  %vm692_vm1 = vcmask 521216   ;;  %s1927_s1 = inlined_call_operand.vmem [shape: f32[576,64], index: 1, kind: input, shape index: {}]   ;;  %s1928_s0 = inlined_call_operand.vmem [shape: f32[126,576], index: 0, kind: input, shape index: {}]   ;;  %s1929_s2 = inlined_call_operand.vmem [shape: f32[1,64], index: 2, kind: input, shape index: {}]   ;;  %s1930_s3 = inlined_call_operand.vmem [shape: f32[1,64], index: 3, kind: input, shape index: {}]   ;;  %s1931_s4 = inlined_call_operand.vmem [shape: f32[1,64], index: 4, kind: input, shape index: {}]   ;;  %s1932_s5 = inlined_call_operand.vmem [shape: f32[126,64], index: 5, kind: output, shape index: {}]  }
   0x1   :  { %v116_v0 = vld [vmem:[%s1927_s1 + $0x80] sm:$0xff]  ;;  %v117_v1 = vld [vmem:[%s1927_s1 + $0x88] sm:$0xff]  ;;  %v118_v11 = vld [vmem:[%s1927_s1 + $0x90] sm:$0xff] }
   0x2   :  { %v148_v2 = vld [vmem:[%s1927_s1 + $0x180] sm:$0xff]  ;;  %v1086_v3 = vpack.c.bf16 %v117_v1, %v116_v0  ;;  %v149_v4 = vld [vmem:[%s1927_s1 + $0x188] sm:$0xff]  ;;  %v119_v13 = vld [vmem:[%s1927_s1 + $0x98] sm:$0xff] }
   0x3   :  { %v100_v5 = vld [vmem:[%s1927_s1] sm:$0xff]  ;;  %v101_v6 = vld [vmem:[%s1927_s1 + $0x8] sm:$0xff]  ;;  %v1118_v7 = vpack.c.bf16 %v149_v4, %v148_v2  ;;  %v150_v14 = vld [vmem:[%s1927_s1 + $0x190] sm:$0xff]  ;;  %v1090_v16 = vpack.c.bf16 %v119_v13, %v118_v11 }
   0x4   :  { %v1088_v8 = vpack.c.bf16 %v101_v6, %v100_v5  ;;  %v132_v9 = vld [vmem:[%s1927_s1 + $0x100] sm:$0xff]  ;;  %v133_v10 = vld [vmem:[%s1927_s1 + $0x108] sm:$0xff]  ;;  %1087 = vmatprep.subr.bf16.mxu0 %v1086_v3  ;;  %v151_v15 = vld [vmem:[%s1927_s1 + $0x198] sm:$0xff] }
   0x5   :  { %v1120_v12 = vpack.c.bf16 %v133_v10, %v132_v9  ;;  %1119 = vmatprep.subr.bf16.mxu1 %v1118_v7  ;;  %v1122_v17 = vpack.c.bf16 %v151_v15, %v150_v14  ;;  %v102_v18 = vld [vmem:[%s1927_s1 + $0x10] sm:$0xff]  ;;  %v103_v19 = vld [vmem:[%s1927_s1 + $0x18] sm:$0xff]  ;;  %v120_v23 = vld [vmem:[%s1927_s1 + $0xa0] sm:$0xff] }
   0x6   :  { %1089 = vmatpush3.bf16.msra.mxu0 %v1088_v8  ;;  %v134_v20 = vld [vmem:[%s1927_s1 + $0x110] sm:$0xff]  ;;  %v1092_v21 = vpack.c.bf16 %v103_v19, %v102_v18  ;;  %v135_v22 = vld [vmem:[%s1927_s1 + $0x118] sm:$0xff]  ;;  %v121_v24 = vld [vmem:[%s1927_s1 + $0xa8] sm:$0xff] }
   0x7   :  { %1121 = vmatpush3.bf16.msra.mxu1 %v1120_v12  ;;  %1091 = vmatprep.subr.bf16.mxu0 %v1090_v16  ;;  %v1124_v25 = vpack.c.bf16 %v135_v22, %v134_v20  ;;  %v1094_v26 = vpack.c.bf16 %v121_v24, %v120_v23  ;;  %v152_v27 = vld [vmem:[%s1927_s1 + $0x1a0] sm:$0xff]  ;;  %v153_v28 = vld [vmem:[%s1927_s1 + $0x1a8] sm:$0xff]  ;;  %v122_v35 = vld [vmem:[%s1927_s1 + $0xb0] sm:$0xff] }
   0x8   :  { %1123 = vmatprep.subr.bf16.mxu1 %v1122_v17  ;;  %v104_v29 = vld [vmem:[%s1927_s1 + $0x20] sm:$0xff]  ;;  %v1126_v30 = vpack.c.bf16 %v153_v28, %v152_v27  ;;  %v105_v31 = vld [vmem:[%s1927_s1 + $0x28] sm:$0xff]  ;;  %v123_v36 = vld [vmem:[%s1927_s1 + $0xb8] sm:$0xff] }
   0x9   :  { %v136_v32 = vld [vmem:[%s1927_s1 + $0x120] sm:$0xff]  ;;  %v137_v33 = vld [vmem:[%s1927_s1 + $0x128] sm:$0xff]  ;;  %v1096_v34 = vpack.c.bf16 %v105_v31, %v104_v29  ;;  %v154_v37 = vld [vmem:[%s1927_s1 + $0x1b0] sm:$0xff]  ;;  %v1098_v39 = vpack.c.bf16 %v123_v36, %v122_v35 }
   0xa   :  { %1093 = vmatpush3.bf16.msra.mxu0 %v1092_v21  ;;  %v1128_v38 = vpack.c.bf16 %v137_v33, %v136_v32  ;;  %v155_v40 = vld [vmem:[%s1927_s1 + $0x1b8] sm:$0xff]  ;;  %v106_v41 = vld [vmem:[%s1927_s1 + $0x30] sm:$0xff]  ;;  %v124_v46 = vld [vmem:[%s1927_s1 + $0xc0] sm:$0xff] }
   0xb   :  { %1125 = vmatpush3.bf16.msra.mxu1 %v1124_v25  ;;  %1095 = vmatprep.subr.bf16.mxu0 %v1094_v26  ;;  %v107_v42 = vld [vmem:[%s1927_s1 + $0x38] sm:$0xff]  ;;  %v1130_v43 = vpack.c.bf16 %v155_v40, %v154_v37  ;;  %v138_v44 = vld [vmem:[%s1927_s1 + $0x130] sm:$0xff]  ;;  %v125_v47 = vld [vmem:[%s1927_s1 + $0xc8] sm:$0xff] }
   0xc   :  { %1127 = vmatprep.subr.bf16.mxu1 %v1126_v30  ;;  %v139_v45 = vld [vmem:[%s1927_s1 + $0x138] sm:$0xff]  ;;  %v156_v48 = vld [vmem:[%s1927_s1 + $0x1c0] sm:$0xff]  ;;  %v157_v49 = vld [vmem:[%s1927_s1 + $0x1c8] sm:$0xff]  ;;  %v1100_v50 = vpack.c.bf16 %v107_v42, %v106_v41  ;;  %v1102_v52 = vpack.c.bf16 %v125_v47, %v124_v46 }
   0xd   :  { %v1132_v51 = vpack.c.bf16 %v139_v45, %v138_v44  ;;  %v108_v53 = vld [vmem:[%s1927_s1 + $0x40] sm:$0xff]  ;;  %v109_v54 = vld [vmem:[%s1927_s1 + $0x48] sm:$0xff]  ;;  %v1134_v56 = vpack.c.bf16 %v157_v49, %v156_v48  ;;  %v126_v58 = vld [vmem:[%s1927_s1 + $0xd0] sm:$0xff] }
   0xe   :  { %1097 = vmatpush3.bf16.msra.mxu0 %v1096_v34  ;;  %v140_v55 = vld [vmem:[%s1927_s1 + $0x140] sm:$0xff]  ;;  %v141_v57 = vld [vmem:[%s1927_s1 + $0x148] sm:$0xff]  ;;  %v127_v59 = vld [vmem:[%s1927_s1 + $0xd8] sm:$0xff]  ;;  %v1104_v62 = vpack.c.bf16 %v109_v54, %v108_v53 }
   0xf   :  { %1129 = vmatpush3.bf16.msra.mxu1 %v1128_v38  ;;  %1099 = vmatprep.subr.bf16.mxu0 %v1098_v39  ;;  %v158_v60 = vld [vmem:[%s1927_s1 + $0x1d0] sm:$0xff]  ;;  %v159_v61 = vld [vmem:[%s1927_s1 + $0x1d8] sm:$0xff]  ;;  %v1136_v63 = vpack.c.bf16 %v141_v57, %v140_v55  ;;  %v1106_v0 = vpack.c.bf16 %v127_v59, %v126_v58  ;;  %v128_v6 = vld [vmem:[%s1927_s1 + $0xe0] sm:$0xff] }
  0x10   :  { %1131 = vmatprep.subr.bf16.mxu1 %v1130_v43  ;;  %v110_v1 = vld [vmem:[%s1927_s1 + $0x50] sm:$0xff]  ;;  %v111_v2 = vld [vmem:[%s1927_s1 + $0x58] sm:$0xff]  ;;  %v1138_v4 = vpack.c.bf16 %v159_v61, %v158_v60  ;;  %v129_v7 = vld [vmem:[%s1927_s1 + $0xe8] sm:$0xff] }
  0x11   :  { %v142_v3 = vld [vmem:[%s1927_s1 + $0x150] sm:$0xff]  ;;  %v143_v5 = vld [vmem:[%s1927_s1 + $0x158] sm:$0xff]  ;;  %v160_v8 = vld [vmem:[%s1927_s1 + $0x1e0] sm:$0xff]  ;;  %v1108_v10 = vpack.c.bf16 %v111_v2, %v110_v1  ;;  %v1110_v14 = vpack.c.bf16 %v129_v7, %v128_v6 }
  0x12   :  { %1101 = vmatpush3.bf16.msra.mxu0 %v1100_v50  ;;  %v161_v9 = vld [vmem:[%s1927_s1 + $0x1e8] sm:$0xff]  ;;  %v112_v11 = vld [vmem:[%s1927_s1 + $0x60] sm:$0xff]  ;;  %v1140_v13 = vpack.c.bf16 %v143_v5, %v142_v3  ;;  %v23_v17 = vld [vmem:[%s1928_s0 + $0x18] sm:$0xff] }
  0x13   :  { %1133 = vmatpush3.bf16.msra.mxu1 %v1132_v51  ;;  %1103 = vmatprep.subr.bf16.mxu0 %v1102_v52  ;;  %v113_v12 = vld [vmem:[%s1927_s1 + $0x68] sm:$0xff]  ;;  %v144_v15 = vld [vmem:[%s1927_s1 + $0x160] sm:$0xff]  ;;  %v1142_v18 = vpack.c.bf16 %v161_v9, %v160_v8  ;;  %v130_v20 = vld [vmem:[%s1927_s1 + $0xf0] sm:$0xff] }
  0x14   :  { %1135 = vmatprep.subr.bf16.mxu1 %v1134_v56  ;;  %v21_v16 = vld [vmem:[%s1928_s0 + $0x8] sm:$0xff]  ;;  %v131_v21 = vld [vmem:[%s1927_s1 + $0xf8] sm:$0xff]  ;;  %v162_v22 = vld [vmem:[%s1927_s1 + $0x1f0] sm:$0xff]  ;;  %437 = vmatprep.mubr.f32.mxu1 %v23_v17  ;;  %v1112_v24 = vpack.c.bf16 %v113_v12, %v112_v11 }
  0x15   :  { %v145_v19 = vld [vmem:[%s1927_s1 + $0x168] sm:$0xff]  ;;  %292 = vmatprep.mubr.f32.mxu0 %v21_v16  ;;  %v163_v23 = vld [vmem:[%s1927_s1 + $0x1f8] sm:$0xff]  ;;  %v1114_v26 = vpack.c.bf16 %v131_v21, %v130_v20  ;;  %v114_v27 = vld [vmem:[%s1927_s1 + $0x70] sm:$0xff] }
  0x16   :  { %1105 = vmatpush3.bf16.msra.mxu0 %v1104_v62  ;;  %v1144_v25 = vpack.c.bf16 %v145_v19, %v144_v15  ;;  %v115_v28 = vld [vmem:[%s1927_s1 + $0x78] sm:$0xff]  ;;  %v146_v29 = vld [vmem:[%s1927_s1 + $0x170] sm:$0xff]  ;;  %v1146_v30 = vpack.c.bf16 %v163_v23, %v162_v22  ;;  %v164_v32 = vld [vmem:[%s1927_s1 + $0x200] sm:$0xff] }
  0x17   :  { %1137 = vmatpush3.bf16.msra.mxu1 %v1136_v63  ;;  %1107 = vmatprep.subr.bf16.mxu0 %v1106_v0  ;;  %v147_v31 = vld [vmem:[%s1927_s1 + $0x178] sm:$0xff]  ;;  %v165_v33 = vld [vmem:[%s1927_s1 + $0x208] sm:$0xff]  ;;  %v1116_v34 = vpack.c.bf16 %v115_v28, %v114_v27  ;;  %v166_v37 = vld [vmem:[%s1927_s1 + $0x210] sm:$0xff] }
  0x18   :  { %1139 = vmatprep.subr.bf16.mxu1 %v1138_v4  ;;  %v1148_v35 = vpack.c.bf16 %v147_v31, %v146_v29  ;;  %v1150_v36 = vpack.c.bf16 %v165_v33, %v164_v32  ;;  %v167_v38 = vld [vmem:[%s1927_s1 + $0x218] sm:$0xff]  ;;  %v20_v39 = vld [vmem:[%s1928_s0] sm:$0xff]  ;;  %v22_v40 = vld [vmem:[%s1928_s0 + $0x10] sm:$0xff] }
  0x19   :  { %v26_v41 = vld [vmem:[%s1928_s0 + $0x30] sm:$0xff]  ;;  %v28_v42 = vld [vmem:[%s1928_s0 + $0x40] sm:$0xff]  ;;  %v1154_v43 = vpack.c.bf16 %v167_v38, %v166_v37  ;;  %v169_v45 = vld [vmem:[%s1927_s1 + $0x228] sm:$0xff] }
  0x1a   :  { %1109 = vmatpush3.bf16.msra.mxu0 %v1108_v10  ;;  %v168_v44 = vld [vmem:[%s1927_s1 + $0x220] sm:$0xff]  ;;  %v25_v46 = vld [vmem:[%s1928_s0 + $0x28] sm:$0xff]  ;;  %v27_v47 = vld [vmem:[%s1928_s0 + $0x38] sm:$0xff] }
  0x1b   :  { %1141 = vmatpush3.bf16.msra.mxu1 %v1140_v13  ;;  %1111 = vmatprep.subr.bf16.mxu0 %v1110_v14  ;;  %v31_v48 = vld [vmem:[%s1928_s0 + $0x58] sm:$0xff]  ;;  %v33_v49 = vld [vmem:[%s1928_s0 + $0x68] sm:$0xff]  ;;  %v1158_v50 = vpack.c.bf16 %v169_v45, %v168_v44  ;;  %v30_v51 = vld [vmem:[%s1928_s0 + $0x50] sm:$0xff] }
  0x1c   :  { %1143 = vmatprep.subr.bf16.mxu1 %v1142_v18  ;;  %v170_v52 = vld [vmem:[%s1927_s1 + $0x230] sm:$0xff]  ;;  %v32_v53 = vld [vmem:[%s1928_s0 + $0x60] sm:$0xff]  ;;  %v171_v55 = vld [vmem:[%s1927_s1 + $0x238] sm:$0xff] }
  0x1d   :  { %v36_v54 = vld [vmem:[%s1928_s0 + $0x80] sm:$0xff]  ;;  %v38_v56 = vld [vmem:[%s1928_s0 + $0x90] sm:$0xff]  ;;  %v1162_v57 = vpack.c.bf16 %v171_v55, %v170_v52  ;;  %v35_v58 = vld [vmem:[%s1928_s0 + $0x78] sm:$0xff] }
  0x1e   :  { %1113 = vmatpush3.bf16.msra.mxu0 %v1112_v24  ;;  %v37_v59 = vld [vmem:[%s1928_s0 + $0x88] sm:$0xff]  ;;  %v43_v61 = vld [vmem:[%s1928_s0 + $0xb8] sm:$0xff]  ;;  %v40_v62 = vld [vmem:[%s1928_s0 + $0xa0] sm:$0xff] }
  0x1f   :  { %1145 = vmatpush3.bf16.msra.mxu1 %v1144_v25  ;;  %1115 = vmatprep.subr.bf16.mxu0 %v1114_v26  ;;  %v41_v60 = vld [vmem:[%s1928_s0 + $0xa8] sm:$0xff]  ;;  %v42_v63 = vld [vmem:[%s1928_s0 + $0xb0] sm:$0xff]  ;;  %v48_v1 = vld [vmem:[%s1928_s0 + $0xe0] sm:$0xff] }
  0x20   :  { %1147 = vmatprep.subr.bf16.mxu1 %v1146_v30  ;;  %v46_v0 = vld [vmem:[%s1928_s0 + $0xd0] sm:$0xff]  ;;  %v45_v2 = vld [vmem:[%s1928_s0 + $0xc8] sm:$0xff]  ;;  %v47_v3 = vld [vmem:[%s1928_s0 + $0xd8] sm:$0xff] }
  0x21   :  { %v51_v4 = vld [vmem:[%s1928_s0 + $0xf8] sm:$0xff]  ;;  %v53_v5 = vld [vmem:[%s1928_s0 + $0x108] sm:$0xff]  ;;  %v50_v6 = vld [vmem:[%s1928_s0 + $0xf0] sm:$0xff] }
  0x22   :  { %1117 = vmatpush3.bf16.msra.mxu0 %v1116_v34  ;;  %v52_v7 = vld [vmem:[%s1928_s0 + $0x100] sm:$0xff]  ;;  %v58_v9 = vld [vmem:[%s1928_s0 + $0x130] sm:$0xff]  ;;  %v55_v10 = vld [vmem:[%s1928_s0 + $0x118] sm:$0xff] }
  0x23   :  { %1149 = vmatpush3.bf16.msra.mxu1 %v1148_v35  ;;  %1151 = vmatprep.subr.bf16.mxu0 %v1150_v36  ;;  %v56_v8 = vld [vmem:[%s1928_s0 + $0x120] sm:$0xff]  ;;  %v57_v11 = vld [vmem:[%s1928_s0 + $0x128] sm:$0xff]  ;;  %v63_v13 = vld [vmem:[%s1928_s0 + $0x158] sm:$0xff] }
  0x24   :  { %1166 = vmatprep.subr.bf16.mxu1 %v1150_v36  ;;  %v61_v12 = vld [vmem:[%s1928_s0 + $0x148] sm:$0xff]  ;;  %v60_v14 = vld [vmem:[%s1928_s0 + $0x140] sm:$0xff]  ;;  %v62_v15 = vld [vmem:[%s1928_s0 + $0x150] sm:$0xff] }
  0x25   :  { %293 = vmatmul.mubr.f32.vlgmr.msra.gmra.mrb[0].mxu0 %v20_v39  ;;  %v66_v16 = vld [vmem:[%s1928_s0 + $0x170] sm:$0xff]  ;;  %v68_v17 = vld [vmem:[%s1928_s0 + $0x180] sm:$0xff]  ;;  %v65_v18 = vld [vmem:[%s1928_s0 + $0x168] sm:$0xff] }
  0x26   :  { %438 = vmatmul.mubr.f32.vlgmr.msra.gmra.mrb[0].mxu1 %v22_v40  ;;  %1153 = vmatpush3.bf16.msra.mxu0 %v1150_v36  ;;  %v67_v19 = vld [vmem:[%s1928_s0 + $0x178] sm:$0xff]  ;;  %v73_v21 = vld [vmem:[%s1928_s0 + $0x1a8] sm:$0xff]  ;;  %v70_v22 = vld [vmem:[%s1928_s0 + $0x190] sm:$0xff] }
  0x27   :  { %297 = vmatprep.mubr.f32.mxu0 %v26_v41  ;;  %442 = vmatprep.mubr.f32.mxu1 %v28_v42  ;;  %v71_v20 = vld [vmem:[%s1928_s0 + $0x198] sm:$0xff]  ;;  %v72_v23 = vld [vmem:[%s1928_s0 + $0x1a0] sm:$0xff]  ;;  %v78_v25 = vld [vmem:[%s1928_s0 + $0x1d0] sm:$0xff] }
  0x28   :  { %1155 = vmatprep.subr.bf16.mxu0 %v1154_v43  ;;  %1170 = vmatpush3.bf16.msra.mxu1 %v1150_v36  ;;  %v76_v24 = vld [vmem:[%s1928_s0 + $0x1c0] sm:$0xff]  ;;  %v75_v26 = vld [vmem:[%s1928_s0 + $0x1b8] sm:$0xff]  ;;  %v77_v27 = vld [vmem:[%s1928_s0 + $0x1c8] sm:$0xff] }
  0x29   :  { %298 = vmatmul.mubr.f32.gmra.mrb[2].mxu0 %v25_v46  ;;  %1167 = vmatprep.subr.bf16.mxu1 %v1154_v43  ;;  %v81_v28 = vld [vmem:[%s1928_s0 + $0x1e8] sm:$0xff]  ;;  %v83_v29 = vld [vmem:[%s1928_s0 + $0x1f8] sm:$0xff]  ;;  %v80_v30 = vld [vmem:[%s1928_s0 + $0x1e0] sm:$0xff] }
  0x2a   :  { %443 = vmatmul.mubr.f32.gmra.mrb[2].mxu1 %v27_v47  ;;  %302 = vmatprep.mubr.f32.mxu0 %v31_v48  ;;  %v82_v31 = vld [vmem:[%s1928_s0 + $0x1f0] sm:$0xff]  ;;  %v88_v33 = vld [vmem:[%s1928_s0 + $0x220] sm:$0xff]  ;;  %v85_v34 = vld [vmem:[%s1928_s0 + $0x208] sm:$0xff] }
  0x2b   :  { %447 = vmatprep.mubr.f32.mxu1 %v33_v49  ;;  %1157 = vmatpush3.bf16.msra.mxu0 %v1154_v43  ;;  %v86_v32 = vld [vmem:[%s1928_s0 + $0x210] sm:$0xff]  ;;  %v87_v35 = vld [vmem:[%s1928_s0 + $0x218] sm:$0xff]  ;;  %v93_v37 = vld [vmem:[%s1928_s0 + $0x248] sm:$0xff] }
  0x2c   :  { %1159 = vmatprep.subr.bf16.mxu0 %v1158_v50  ;;  %1171 = vmatpush3.bf16.msra.mxu1 %v1154_v43  ;;  %v91_v36 = vld [vmem:[%s1928_s0 + $0x238] sm:$0xff]  ;;  %v90_v38 = vld [vmem:[%s1928_s0 + $0x230] sm:$0xff]  ;;  %v92_v39 = vld [vmem:[%s1928_s0 + $0x240] sm:$0xff] }
  0x2d   :  { %303 = vmatmul.mubr.f32.gmra.mrb[4].mxu0 %v30_v51  ;;  %1168 = vmatprep.subr.bf16.mxu1 %v1158_v50  ;;  %v96_v40 = vld [vmem:[%s1928_s0 + $0x260] sm:$0x3f]  ;;  %v98_v41 = vld [vmem:[%s1928_s0 + $0x270] sm:$0x3f]  ;;  %v95_v42 = vld [vmem:[%s1928_s0 + $0x258] sm:$0x3f] }
  0x2e   :  { %448 = vmatmul.mubr.f32.gmra.mrb[4].mxu1 %v32_v53  ;;  %307 = vmatprep.mubr.f32.mxu0 %v36_v54  ;;  %v97_v43 = vld [vmem:[%s1928_s0 + $0x268] sm:$0x3f]  ;;  %v24_v44 = vld [vmem:[%s1928_s0 + $0x20] sm:$0xff]  ;;  %v34_v48 = vld [vmem:[%s1928_s0 + $0x70] sm:$0xff] }
  0x2f   :  { %452 = vmatprep.mubr.f32.mxu1 %v38_v56  ;;  %1161 = vmatpush3.bf16.msra.mxu0 %v1158_v50  ;;  %v64_v45 = vld [vmem:[%s1928_s0 + $0x160] sm:$0xff]  ;;  %v29_v46 = vld [vmem:[%s1928_s0 + $0x48] sm:$0xff]  ;;  %v74_v49 = vld [vmem:[%s1928_s0 + $0x1b0] sm:$0xff] }
  0x30   :  { %1163 = vmatprep.subr.bf16.mxu0 %v1162_v57  ;;  %1172 = vmatpush3.bf16.msra.mxu1 %v1158_v50  ;;  %v69_v47 = vld [vmem:[%s1928_s0 + $0x188] sm:$0xff]  ;;  %v39_v50 = vld [vmem:[%s1928_s0 + $0x98] sm:$0xff]  ;;  %v44_v52 = vld [vmem:[%s1928_s0 + $0xc0] sm:$0xff] }
  0x31   :  { %308 = vmatmul.mubr.f32.gmra.mrb[6].mxu0 %v35_v58  ;;  %1169 = vmatprep.subr.bf16.mxu1 %v1162_v57  ;;  %v79_v51 = vld [vmem:[%s1928_s0 + $0x1d8] sm:$0xff]  ;;  %v84_v53 = vld [vmem:[%s1928_s0 + $0x200] sm:$0xff]  ;;  %v49_v54 = vld [vmem:[%s1928_s0 + $0xe8] sm:$0xff] }
  0x32   :  { %453 = vmatmul.mubr.f32.gmra.mrb[6].mxu1 %v37_v59  ;;  %312 = vmatprep.mubr.f32.mxu0 %v41_v60  ;;  %v89_v55 = vld [vmem:[%s1928_s0 + $0x228] sm:$0xff]  ;;  %v54_v56 = vld [vmem:[%s1928_s0 + $0x110] sm:$0xff]  ;;  %v59_v58 = vld [vmem:[%s1928_s0 + $0x138] sm:$0xff] }
  0x33   :  { %457 = vmatprep.mubr.f32.mxu1 %v43_v61  ;;  %1165 = vmatpush3.bf16.msra.mxu0 %v1162_v57  ;;  %v99_v59 = vld [vmem:[%s1928_s0 + $0x278] sm:$0x3f]  ;;  %v1681_v61 = vld [vmem:[%s1929_s2] ss:$0 sm:$0xff] }
  0x34   :  { %1173 = vmatpush3.bf16.msra.mxu1 %v1162_v57  ;;  %v94_v57 = vld [vmem:[%s1928_s0 + $0x250] sm:$0xff] }
  0x35   :  { %313 = vmatmul.mubr.f32.gmra.mrb[8].mxu0 %v40_v62 }
  0x36   :  { %458 = vmatmul.mubr.f32.gmra.mrb[8].mxu1 %v42_v63  ;;  %317 = vmatprep.mubr.f32.mxu0 %v46_v0 }
  0x37   :  { %462 = vmatprep.mubr.f32.mxu1 %v48_v1 }
  0x39   :  { %318 = vmatmul.mubr.f32.gmra.mrb[10].mxu0 %v45_v2 }
  0x3a   :  { %463 = vmatmul.mubr.f32.gmra.mrb[10].mxu1 %v47_v3  ;;  %322 = vmatprep.mubr.f32.mxu0 %v51_v4 }
  0x3b   :  { %467 = vmatprep.mubr.f32.mxu1 %v53_v5 }
  0x3d   :  { %323 = vmatmul.mubr.f32.gmra.mrb[12].mxu0 %v50_v6 }
  0x3e   :  { %468 = vmatmul.mubr.f32.gmra.mrb[12].mxu1 %v52_v7  ;;  %327 = vmatprep.mubr.f32.mxu0 %v56_v8 }
  0x3f   :  { %472 = vmatprep.mubr.f32.mxu1 %v58_v9 }
  0x41   :  { %328 = vmatmul.mubr.f32.gmra.mrb[14].mxu0 %v55_v10 }
  0x42   :  { %473 = vmatmul.mubr.f32.gmra.mrb[14].mxu1 %v57_v11  ;;  %332 = vmatprep.mubr.f32.mxu0 %v61_v12 }
  0x43   :  { %477 = vmatprep.mubr.f32.mxu1 %v63_v13 }
  0x45   :  { %333 = vmatmul.mubr.f32.gmra.mrb[16].mxu0 %v60_v14 }
  0x46   :  { %478 = vmatmul.mubr.f32.gmra.mrb[16].mxu1 %v62_v15  ;;  %337 = vmatprep.mubr.f32.mxu0 %v66_v16 }
  0x47   :  { %482 = vmatprep.mubr.f32.mxu1 %v68_v17 }
  0x49   :  { %338 = vmatmul.mubr.f32.gmra.mrb[18].mxu0 %v65_v18 }
  0x4a   :  { %483 = vmatmul.mubr.f32.gmra.mrb[18].mxu1 %v67_v19  ;;  %342 = vmatprep.mubr.f32.mxu0 %v71_v20 }
  0x4b   :  { %487 = vmatprep.mubr.f32.mxu1 %v73_v21 }
  0x4d   :  { %343 = vmatmul.mubr.f32.gmra.mrb[20].mxu0 %v70_v22 }
  0x4e   :  { %488 = vmatmul.mubr.f32.gmra.mrb[20].mxu1 %v72_v23  ;;  %347 = vmatprep.mubr.f32.mxu0 %v76_v24 }
  0x4f   :  { %492 = vmatprep.mubr.f32.mxu1 %v78_v25 }
  0x51   :  { %348 = vmatmul.mubr.f32.gmra.mrb[22].mxu0 %v75_v26 }
  0x52   :  { %493 = vmatmul.mubr.f32.gmra.mrb[22].mxu1 %v77_v27  ;;  %352 = vmatprep.mubr.f32.mxu0 %v81_v28 }
  0x53   :  { %497 = vmatprep.mubr.f32.mxu1 %v83_v29 }
  0x55   :  { %353 = vmatmul.mubr.f32.gmra.mrb[24].mxu0 %v80_v30 }
  0x56   :  { %498 = vmatmul.mubr.f32.gmra.mrb[24].mxu1 %v82_v31  ;;  %357 = vmatprep.mubr.f32.mxu0 %v86_v32 }
  0x57   :  { %502 = vmatprep.mubr.f32.mxu1 %v88_v33 }
  0x59   :  { %358 = vmatmul.mubr.f32.gmra.mrb[26].mxu0 %v85_v34 }
  0x5a   :  { %503 = vmatmul.mubr.f32.gmra.mrb[26].mxu1 %v87_v35  ;;  %362 = vmatprep.mubr.f32.mxu0 %v91_v36 }
  0x5b   :  { %507 = vmatprep.mubr.f32.mxu1 %v93_v37 }
  0x5d   :  { %363 = vmatmul.mubr.f32.gmra.mrb[28].mxu0 %v90_v38 }
  0x5e   :  { %508 = vmatmul.mubr.f32.gmra.mrb[28].mxu1 %v92_v39  ;;  %367 = vmatprep.mubr.f32.mxu0 %v96_v40 }
  0x5f   :  { %512 = vmatprep.mubr.f32.mxu1 %v98_v41 }
  0x61   :  { %368 = vmatmul.mubr.f32.gmra.mrb[30].mxu0 %v95_v42 }
  0x62   :  { %513 = vmatmul.mubr.f32.gmra.mrb[30].mxu1 %v97_v43  ;;  %1062 = vmatprep.mubr.msk.f32.mxu0 %vm179_vm0, %v24_v44 }
  0x63   :  { %1074 = vmatprep.mubr.msk.f32.mxu1 %vm179_vm0, %v64_v45 }
  0x65   :  { %1063 = vmatmul.mubr.msk.f32.vlgmr.msra.gmra.mrb[32].mxu0 %vm179_vm0, %v29_v46 }
  0x66   :  { %1075 = vmatmul.mubr.msk.f32.vlgmr.msra.gmra.mrb[32].mxu1 %vm179_vm0, %v69_v47  ;;  %1065 = vmatprep.mubr.msk.f32.mxu0 %vm179_vm0, %v34_v48 }
  0x67   :  { %1077 = vmatprep.mubr.msk.f32.mxu1 %vm179_vm0, %v74_v49 }
  0x69   :  { %1066 = vmatmul.mubr.msk.f32.gmra.mrb[34].mxu0 %vm179_vm0, %v39_v50 }
  0x6a   :  { %1078 = vmatmul.mubr.msk.f32.gmra.mrb[34].mxu1 %vm179_vm0, %v79_v51  ;;  %1068 = vmatprep.mubr.msk.f32.mxu0 %vm179_vm0, %v44_v52 }
  0x6b   :  { %1080 = vmatprep.mubr.msk.f32.mxu1 %vm179_vm0, %v84_v53 }
  0x6d   :  { %1069 = vmatmul.mubr.msk.f32.gmra.mrb[36].mxu0 %vm179_vm0, %v49_v54 }
  0x6e   :  { %1081 = vmatmul.mubr.msk.f32.gmra.mrb[36].mxu1 %vm179_vm0, %v89_v55  ;;  %1071 = vmatprep.mubr.msk.f32.mxu0 %vm179_vm0, %v54_v56 }
  0x6f   :  { %1083 = vmatprep.mubr.msk.f32.mxu1 %vm179_vm0, %v94_v57 }
  0x71   :  { %1072 = vmatmul.mubr.msk.f32.gmra.mrb[38].mxu0 %vm179_vm0, %v59_v58 }
  0x72   :  { %1084 = vmatmul.mubr.msk.f32.gmra.mrb[38].mxu1 %vm179_vm0, %v99_v59 }
  0xf8   :  { %v894_v60 = vpop.f32.mrb[0].mxu0 }
  0xf9   :  { %v895_v62 = vpop.f32.mrb[1].mxu0  ;;  %v974_v63 = vpop.f32.mrb[0].mxu1 }
  0xfa   :  { %v896_v0 = vadd.f32 %v895_v62, %v894_v60  ;;  %v975_v1 = vpop.f32.mrb[1].mxu1 }
  0xfb   :  { %v976_v2 = vadd.f32 %v975_v1, %v974_v63 }
  0xfc   :  { %v295_v3 = vadd.f32 %v896_v0, %v1681_v61  ;;  %v897_v4 = vpop.f32.mrb[2].mxu0 }
  0xfd   :  { %v898_v5 = vpop.f32.mrb[3].mxu0  ;;  %v977_v6 = vpop.f32.mrb[2].mxu1 }
  0xfe   :  { %v899_v7 = vadd.f32 %v898_v5, %v897_v4  ;;  %v978_v8 = vpop.f32.mrb[3].mxu1  ;;  %v1684_v9 = vadd.f32 %v976_v2, %v295_v3 }
  0xff   :  { %v979_v10 = vadd.f32 %v978_v8, %v977_v6 }
 0x100   :  { %v300_v11 = vadd.f32 %v899_v7, %v1681_v61  ;;  %v900_v12 = vpop.f32.mrb[4].mxu0 }
 0x101   :  { %v901_v13 = vpop.f32.mrb[5].mxu0  ;;  %v980_v14 = vpop.f32.mrb[4].mxu1 }
 0x102   :  { %v902_v15 = vadd.f32 %v901_v13, %v900_v12  ;;  %v981_v16 = vpop.f32.mrb[5].mxu1  ;;  %v1687_v17 = vadd.f32 %v979_v10, %v300_v11 }
 0x103   :  { %v982_v18 = vadd.f32 %v981_v16, %v980_v14 }
 0x104   :  { %v305_v19 = vadd.f32 %v902_v15, %v1681_v61  ;;  %v903_v20 = vpop.f32.mrb[6].mxu0 }
 0x105   :  { %v904_v21 = vpop.f32.mrb[7].mxu0  ;;  %v983_v22 = vpop.f32.mrb[6].mxu1 }
 0x106   :  { %v905_v23 = vadd.f32 %v904_v21, %v903_v20  ;;  %v984_v24 = vpop.f32.mrb[7].mxu1  ;;  %v1690_v25 = vadd.f32 %v982_v18, %v305_v19 }
 0x107   :  { %v985_v26 = vadd.f32 %v984_v24, %v983_v22 }
 0x108   :  { %v310_v27 = vadd.f32 %v905_v23, %v1681_v61  ;;  %v906_v28 = vpop.f32.mrb[8].mxu0 }
 0x109   :  { %v907_v29 = vpop.f32.mrb[9].mxu0  ;;  %v986_v30 = vpop.f32.mrb[8].mxu1 }
 0x10a   :  { %v908_v31 = vadd.f32 %v907_v29, %v906_v28  ;;  %v987_v32 = vpop.f32.mrb[9].mxu1  ;;  %v1693_v33 = vadd.f32 %v985_v26, %v310_v27 }
 0x10b   :  { %v988_v34 = vadd.f32 %v987_v32, %v986_v30 }
 0x10c   :  { %v315_v35 = vadd.f32 %v908_v31, %v1681_v61  ;;  %v909_v36 = vpop.f32.mrb[10].mxu0 }
 0x10d   :  { %v910_v37 = vpop.f32.mrb[11].mxu0  ;;  %v989_v38 = vpop.f32.mrb[10].mxu1 }
 0x10e   :  { %v911_v39 = vadd.f32 %v910_v37, %v909_v36  ;;  %v990_v40 = vpop.f32.mrb[11].mxu1  ;;  %v1696_v41 = vadd.f32 %v988_v34, %v315_v35 }
 0x10f   :  { %v991_v42 = vadd.f32 %v990_v40, %v989_v38 }
 0x110   :  { %v320_v43 = vadd.f32 %v911_v39, %v1681_v61  ;;  %v912_v44 = vpop.f32.mrb[12].mxu0 }
 0x111   :  { %v913_v45 = vpop.f32.mrb[13].mxu0  ;;  %v992_v46 = vpop.f32.mrb[12].mxu1 }
 0x112   :  { %v914_v47 = vadd.f32 %v913_v45, %v912_v44  ;;  %v993_v48 = vpop.f32.mrb[13].mxu1  ;;  %v1699_v49 = vadd.f32 %v991_v42, %v320_v43 }
 0x113   :  { %v994_v50 = vadd.f32 %v993_v48, %v992_v46 }
 0x114   :  { %v325_v51 = vadd.f32 %v914_v47, %v1681_v61  ;;  %v915_v52 = vpop.f32.mrb[14].mxu0 }
 0x115   :  { %v916_v53 = vpop.f32.mrb[15].mxu0  ;;  %v995_v54 = vpop.f32.mrb[14].mxu1 }
 0x116   :  { %v917_v55 = vadd.f32 %v916_v53, %v915_v52  ;;  %v996_v56 = vpop.f32.mrb[15].mxu1  ;;  %v1702_v57 = vadd.f32 %v994_v50, %v325_v51 }
 0x117   :  { %v997_v58 = vadd.f32 %v996_v56, %v995_v54 }
 0x118   :  { %v330_v59 = vadd.f32 %v917_v55, %v1681_v61  ;;  %v918_v60 = vpop.f32.mrb[16].mxu0 }
 0x119   :  { %v919_v62 = vpop.f32.mrb[17].mxu0  ;;  %v998_v63 = vpop.f32.mrb[16].mxu1 }
 0x11a   :  { %v920_v0 = vadd.f32 %v919_v62, %v918_v60  ;;  %v999_v1 = vpop.f32.mrb[17].mxu1  ;;  %v1705_v2 = vadd.f32 %v997_v58, %v330_v59 }
 0x11b   :  { %v1000_v3 = vadd.f32 %v999_v1, %v998_v63 }
 0x11c   :  { %v335_v4 = vadd.f32 %v920_v0, %v1681_v61  ;;  %v921_v5 = vpop.f32.mrb[18].mxu0 }
 0x11d   :  { %v922_v6 = vpop.f32.mrb[19].mxu0  ;;  %v1001_v7 = vpop.f32.mrb[18].mxu1 }
 0x11e   :  { %v923_v8 = vadd.f32 %v922_v6, %v921_v5  ;;  %v1002_v10 = vpop.f32.mrb[19].mxu1  ;;  %v480_v11 = vadd.f32 %v1000_v3, %v335_v4 }
 0x11f   :  { %v1003_v12 = vadd.f32 %v1002_v10, %v1001_v7 }
 0x120   :  { %v340_v13 = vadd.f32 %v923_v8, %v1681_v61  ;;  %v924_v14 = vpop.f32.mrb[20].mxu0 }
 0x121   :  { %v925_v15 = vpop.f32.mrb[21].mxu0  ;;  %v1004_v16 = vpop.f32.mrb[20].mxu1 }
 0x122   :  { %v926_v18 = vadd.f32 %v925_v15, %v924_v14  ;;  %v1005_v19 = vpop.f32.mrb[21].mxu1  ;;  %v485_v20 = vadd.f32 %v1003_v12, %v340_v13 }
 0x123   :  { %v1006_v21 = vadd.f32 %v1005_v19, %v1004_v16 }
 0x124   :  { %v345_v22 = vadd.f32 %v926_v18, %v1681_v61  ;;  %v927_v23 = vpop.f32.mrb[22].mxu0 }
 0x125   :  { %v928_v24 = vpop.f32.mrb[23].mxu0  ;;  %v1007_v26 = vpop.f32.mrb[22].mxu1 }
 0x126   :  { %v929_v27 = vadd.f32 %v928_v24, %v927_v23  ;;  %v1008_v28 = vpop.f32.mrb[23].mxu1  ;;  %v490_v29 = vadd.f32 %v1006_v21, %v345_v22 }
 0x127   :  { %v1009_v30 = vadd.f32 %v1008_v28, %v1007_v26 }
 0x128   :  { %v350_v31 = vadd.f32 %v929_v27, %v1681_v61  ;;  %v930_v32 = vpop.f32.mrb[24].mxu0 }
 0x129   :  { %v931_v34 = vpop.f32.mrb[25].mxu0  ;;  %v1010_v35 = vpop.f32.mrb[24].mxu1 }
 0x12a   :  { %v932_v36 = vadd.f32 %v931_v34, %v930_v32  ;;  %v1011_v37 = vpop.f32.mrb[25].mxu1  ;;  %v495_v38 = vadd.f32 %v1009_v30, %v350_v31 }
 0x12b   :  { %v1012_v39 = vadd.f32 %v1011_v37, %v1010_v35 }
 0x12c   :  { %v355_v40 = vadd.f32 %v932_v36, %v1681_v61  ;;  %v933_v42 = vpop.f32.mrb[26].mxu0 }
 0x12d   :  { %v934_v43 = vpop.f32.mrb[27].mxu0  ;;  %v1013_v44 = vpop.f32.mrb[26].mxu1 }
 0x12e   :  { %v935_v45 = vadd.f32 %v934_v43, %v933_v42  ;;  %v1014_v46 = vpop.f32.mrb[27].mxu1  ;;  %v1712_v47 = vadd.f32 %v1012_v39, %v355_v40 }
 0x12f   :  { %v1015_v48 = vadd.f32 %v1014_v46, %v1013_v44 }
 0x130   :  { %v360_v50 = vadd.f32 %v935_v45, %v1681_v61  ;;  %v936_v51 = vpop.f32.mrb[28].mxu0 }
 0x131   :  { %v937_v52 = vpop.f32.mrb[29].mxu0  ;;  %v1016_v53 = vpop.f32.mrb[28].mxu1 }
 0x132   :  { %v938_v54 = vadd.f32 %v937_v52, %v936_v51  ;;  %v1017_v55 = vpop.f32.mrb[29].mxu1  ;;  %v505_v56 = vadd.f32 %v1015_v48, %v360_v50 }
 0x133   :  { %v1018_v58 = vadd.f32 %v1017_v55, %v1016_v53 }
 0x134   :  { %v365_v59 = vadd.f32 %v938_v54, %v1681_v61  ;;  %v939_v60 = vpop.f32.mrb[30].mxu0 }
 0x135   :  { %v940_v62 = vpop.f32.mrb[31].mxu0  ;;  %v1019_v63 = vpop.f32.mrb[30].mxu1 }
 0x136   :  { %v941_v0 = vadd.f32 %v940_v62, %v939_v60  ;;  %v1020_v1 = vpop.f32.mrb[31].mxu1  ;;  %v1716_v3 = vadd.f32 %v1018_v58, %v365_v59 }
 0x137   :  { %v1021_v4 = vadd.f32 %v1020_v1, %v1019_v63 }
 0x138   :  { %v370_v5 = vadd.f32 %v941_v0, %v1681_v61  ;;  %v1064_v6 = vpop.f32.mrb[32].mxu0 }
 0x139   :  { %v1720_v7 = vadd.f32 %v1064_v6, %v1687_v17  ;;  %v1076_v8 = vpop.f32.mrb[32].mxu1  ;;  %v584_v10 = vpop.f32.mrb[33].mxu0 }
 0x13a   :  { %v1722_v12 = vadd.f32 %v1076_v8, %v485_v20  ;;  %v1725_v13 = vadd.f32 %v584_v10, %v1684_v9  ;;  %v624_v14 = vpop.f32.mrb[33].mxu1  ;;  %v515_v15 = vadd.f32 %v1021_v4, %v370_v5 }
 0x13b   :  { %v703_v16 = vmul.f32 %v1720_v7, %v1720_v7  ;;  %v1729_v18 = vadd.f32 %v624_v14, %v480_v11  ;;  %v664_v17 = vsel %vm179_vm0, %v1720_v7, 0.0 }
 0x13c   :  { %v702_v61 = vmul.f32 %v1725_v13, %v1725_v13  ;;  %v1067_v19 = vpop.f32.mrb[34].mxu0  ;;  %v663_v20 = vsel %vm179_vm0, %v1725_v13, 0.0 }
 0x13d   :  { %v1079_v21 = vpop.f32.mrb[34].mxu1  ;;  %v594_v9 = vpop.f32.mrb[35].mxu0  ;;  %v1738_v22 = vadd.f32 %v1067_v19, %v1693_v33  ;;  %v719_v11 = vsel %vm179_vm0, %v703_v16, 0.0  ;;  %v665_v30 = vadd.f32 %v664_v17, %v663_v20 }
 0x13e   :  { %v1740_v23 = vadd.f32 %v1079_v21, %v495_v38  ;;  %v634_v24 = vpop.f32.mrb[35].mxu1  ;;  %v718_v26 = vsel %vm179_vm0, %v702_v61, 0.0  ;;  %v1745_v27 = vadd.f32 %v594_v9, %v1690_v25  ;;  %v711_v61 = vmul.f32 %v1722_v12, %v1722_v12 }
 0x13f   :  { %v1747_v28 = vadd.f32 %v634_v24, %v490_v29  ;;  %v705_v32 = vmul.f32 %v1738_v22, %v1738_v22  ;;  %v720_v37 = vadd.f32 %v719_v11, %v718_v26  ;;  %v668_v39 = vsel %vm179_vm0, %v1738_v22, 0.0 }
 0x140   :  { %v1070_v31 = vpop.f32.mrb[36].mxu0  ;;  %v666_v33 = vsel %vm179_vm0, %v1745_v27, 0.0  ;;  %v704_v34 = vmul.f32 %v1745_v27, %v1745_v27  ;;  %v680_v11 = vsel %vm179_vm0, %v1722_v12, 0.0 }
 0x141   :  { %v1082_v35 = vpop.f32.mrb[36].mxu1  ;;  %v604_v36 = vpop.f32.mrb[37].mxu0  ;;  %v667_v38 = vadd.f32 %v666_v33, %v665_v30  ;;  %v1756_v25 = vadd.f32 %v1070_v31, %v1699_v49  ;;  %v723_v48 = vsel %vm179_vm0, %v705_v32, 0.0  ;;  %v712_v9 = vmul.f32 %v1747_v28, %v1747_v28 }
 0x142   :  { %v644_v29 = vpop.f32.mrb[37].mxu1  ;;  %v721_v40 = vsel %vm179_vm0, %v704_v34, 0.0  ;;  %v1761_v42 = vadd.f32 %v1082_v35, %v505_v56  ;;  %v1764_v43 = vadd.f32 %v604_v36, %v1696_v41  ;;  %v735_v30 = vsel %vm179_vm0, %v711_v61, 0.0 }
 0x143   :  { %v722_v44 = vadd.f32 %v721_v40, %v720_v37  ;;  %v669_v45 = vadd.f32 %v668_v39, %v667_v38  ;;  %v707_v49 = vmul.f32 %v1756_v25, %v1756_v25  ;;  %v1774_v41 = vadd.f32 %v644_v29, %v1712_v47 }
 0x144   :  { %v1073_v46 = vpop.f32.mrb[38].mxu0  ;;  %v670_v50 = vsel %vm179_vm0, %v1764_v43, 0.0  ;;  %v706_v51 = vmul.f32 %v1764_v43, %v1764_v43  ;;  %v672_v0 = vsel %vm179_vm0, %v1756_v25, 0.0  ;;  %v713_v31 = vmul.f32 %v1740_v23, %v1740_v23 }
 0x145   :  { %v1085_v52 = vpop.f32.mrb[38].mxu1  ;;  %v614_v53 = vpop.f32.mrb[39].mxu0  ;;  %v671_v54 = vadd.f32 %v670_v50, %v669_v45  ;;  %v724_v55 = vadd.f32 %v723_v48, %v722_v44  ;;  %v1778_v59 = vadd.f32 %v1073_v46, %v1705_v2  ;;  %v727_v1 = vsel %vm179_vm0, %v707_v49, 0.0 }
 0x146   :  { %v654_v56 = vpop.f32.mrb[39].mxu1  ;;  %v725_v58 = vsel %vm179_vm0, %v706_v51, 0.0  ;;  %v1780_v60 = vadd.f32 %v1085_v52, %v515_v15  ;;  %v1783_v63 = vadd.f32 %v614_v53, %v1702_v57  ;;  %v710_v57 = vmul.f32 %v1729_v18, %v1729_v18 }
 0x147   :  { %v726_v62 = vadd.f32 %v725_v58, %v724_v55  ;;  %v709_v47 = vmul.f32 %v1778_v59, %v1778_v59  ;;  %v673_v4 = vadd.f32 %v672_v0, %v671_v54  ;;  %v1795_v8 = vadd.f32 %v654_v56, %v1716_v3 }
 0x148   :  { %v674_v5 = vsel %vm179_vm0, %v1783_v63, 0.0  ;;  %v708_v2 = vmul.f32 %v1783_v63, %v1783_v63  ;;  %v676_v15 = vsel %vm179_vm0, %v1778_v59, 0.0  ;;  %v678_v3 = vsel %vm179_vm0, %v1729_v18, 0.0 }
 0x149   :  { %v728_v6 = vadd.f32 %v727_v1, %v726_v62  ;;  %v675_v10 = vadd.f32 %v674_v5, %v673_v4  ;;  %v731_v19 = vsel %vm179_vm0, %v709_v47, 0.0  ;;  %v733_v21 = vsel %vm179_vm0, %v710_v57, 0.0 }
 0x14a   :  { %v729_v14 = vsel %vm179_vm0, %v708_v2, 0.0  ;;  %v682_v33 = vsel %vm179_vm0, %v1747_v28, 0.0  ;;  %v737_v35 = vsel %vm179_vm0, %v712_v9, 0.0  ;;  %v714_v36 = vmul.f32 %v1774_v41, %v1774_v41 }
 0x14b   :  { %v730_v16 = vadd.f32 %v729_v14, %v728_v6  ;;  %v677_v17 = vadd.f32 %v676_v15, %v675_v10  ;;  %v684_v38 = vsel %vm179_vm0, %v1740_v23, 0.0  ;;  %v739_v39 = vsel %vm179_vm0, %v713_v31, 0.0 }
 0x14c   :  { %v715_v40 = vmul.f32 %v1761_v42, %v1761_v42  ;;  %v686_v45 = vsel %vm179_vm0, %v1774_v41, 0.0  ;;  %v741_v48 = vsel %vm179_vm0, %v714_v36, 0.0  ;;  %v716_v50 = vmul.f32 %v1795_v8, %v1795_v8 }
 0x14d   :  { %v732_v20 = vadd.f32 %v731_v19, %v730_v16  ;;  %v679_v24 = vadd.f32 %v678_v3, %v677_v17  ;;  %v688_v51 = vsel %vm179_vm0, %v1761_v42, 0.0  ;;  %v717_v54 = vmul.f32 %v1780_v60, %v1780_v60 }
 0x14e   :  { %v743_v53 = vsel %vm179_vm0, %v715_v40, 0.0  ;;  %v690_v56 = vsel %vm179_vm0, %v1795_v8, 0.0  ;;  %v745_v0 = vsel %vm179_vm0, %v716_v50, 0.0  ;;  %v693_v1 = vsel %vm692_vm1, %v1780_v60, 0.0 }
 0x14f   :  { %v734_v26 = vadd.f32 %v733_v21, %v732_v20  ;;  %v681_v32 = vadd.f32 %v680_v11, %v679_v24  ;;  %v747_v4 = vsel %vm692_vm1, %v717_v54, 0.0  ;;  %v766_v31 = vlaneseq }
 0x151   :  { %v736_v34 = vadd.f32 %v735_v30, %v734_v26  ;;  %v683_v37 = vadd.f32 %v682_v33, %v681_v32  ;;  %v767_v32 = vshrl.u32 %v766_v31, 7  ;;  %v758_v33 = vld [vmem:[%s1930_s3] sm:$0x1] }
 0x153   :  { %v738_v29 = vadd.f32 %v737_v35, %v736_v34  ;;  %v685_v44 = vadd.f32 %v684_v38, %v683_v37  ;;  %v768_v34 = vsub.s32 0, %v767_v32  ;;  %v762_v37 = vld [vmem:[%s1931_s4] sm:$0x1] }
 0x155   :  { %v740_v46 = vadd.f32 %v739_v39, %v738_v29  ;;  %v687_v49 = vadd.f32 %v686_v45, %v685_v44 }
 0x157   :  { %v742_v52 = vadd.f32 %v741_v48, %v740_v46  ;;  %v689_v55 = vadd.f32 %v688_v51, %v687_v49 }
 0x159   :  { %v744_v58 = vadd.f32 %v743_v53, %v742_v52  ;;  %v691_v62 = vadd.f32 %v690_v56, %v689_v55 }
 0x15b   :  { %v746_v47 = vadd.f32 %v745_v0, %v744_v58  ;;  %v694_v5 = vadd.f32 %v693_v1, %v691_v62 }
 0x15d   :  { %v748_v2 = vadd.f32 %v747_v4, %v746_v47  ;;  %v695_v6 = vrot.slane %v694_v5, 4 }
 0x15f   :  { %v749_v57 = vrot.slane %v748_v2, 4  ;;  %v696_v10 = vadd.f32 %v695_v6, %v694_v5 }
 0x161   :  { %v750_v14 = vadd.f32 %v749_v57, %v748_v2  ;;  %v697_v15 = vrot.slane %v696_v10, 2 }
 0x163   :  { %v751_v16 = vrot.slane %v750_v14, 2  ;;  %v698_v61 = vadd.f32 %v697_v15, %v696_v10 }
 0x165   :  { %v752_v19 = vadd.f32 %v751_v16, %v750_v14  ;;  %v699_v17 = vrot.slane %v698_v61, 1 }
 0x167   :  { %v753_v3 = vrot.slane %v752_v19, 1  ;;  %v700_v20 = vadd.f32 %v699_v17, %v698_v61 }
 0x169   :  { %v754_v21 = vadd.f32 %v753_v3, %v752_v19  ;;  %v701_v9 = vmul.f32 0.007936508, %v700_v20 }
 0x16b   :  { %v755_v24 = vmul.f32 0.007936508, %v754_v21  ;;  %v756_v11 = vmul.f32 %v701_v9, %v701_v9 }
 0x16d   :  { %v757_v26 = vsub.f32 %v755_v24, %v756_v11 }
 0x16f   :  { %v759_v30 = vadd.f32 1e-05, %v757_v26 }
 0x171   :  { %1174 = vrsqrt.f32 %v759_v30 }
 0x17b   :  { %v1175_v35 = vpop.eup %1174 }
 0x17c   :  { %v761_v36 = vmul.f32 %v1175_v35, %v758_v33 }
 0x17e   :  { %v763_v38 = vmul.f32 %v761_v36, %v701_v9  ;;  %v769_v29 = vrot.slane %v761_v36, %v768_v34 }
 0x180   :  { %v764_v39 = vsub.f32 %v762_v37, %v763_v38  ;;  %v771_v40 = vmul.f32 %v769_v29, %v1725_v13  ;;  %v774_v44 = vmul.f32 %v769_v29, %v1738_v22  ;;  %v775_v45 = vmul.f32 %v769_v29, %v1764_v43 }
 0x181   :  { %v776_v46 = vmul.f32 %v769_v29, %v1756_v25  ;;  %v777_v48 = vmul.f32 %v769_v29, %v1783_v63  ;;  %v778_v49 = vmul.f32 %v769_v29, %v1778_v59  ;;  %v779_v50 = vmul.f32 %v769_v29, %v1729_v18 }
 0x182   :  { %v780_v51 = vmul.f32 %v769_v29, %v1722_v12  ;;  %v781_v52 = vmul.f32 %v769_v29, %v1747_v28  ;;  %v782_v53 = vmul.f32 %v769_v29, %v1740_v23  ;;  %v783_v13 = vmul.f32 %v769_v29, %v1774_v41 }
 0x183   :  { %v784_v22 = vmul.f32 %v769_v29, %v1761_v42  ;;  %v785_v43 = vmul.f32 %v769_v29, %v1795_v8  ;;  %v772_v25 = vmul.f32 %v769_v29, %v1720_v7  ;;  %v773_v63 = vmul.f32 %v769_v29, %v1745_v27 }
 0x184   :  { %v786_v59 = vmul.f32 %v769_v29, %v1780_v60  ;;  %v791_v54 = vrot.slane %v764_v39, %v768_v34 }
 0x186   :  { %v793_v18 = vadd.f32 %v791_v54, %v771_v40  ;;  %v794_v55 = vadd.f32 %v791_v54, %v772_v25  ;;  %v795_v12 = vadd.f32 %v791_v54, %v773_v63  ;;  %v796_v56 = vadd.f32 %v791_v54, %v774_v44 }
 0x187   :  { %v797_v28 = vadd.f32 %v791_v54, %v775_v45  ;;  %v798_v58 = vadd.f32 %v791_v54, %v776_v46  ;;  %v799_v23 = vadd.f32 %v791_v54, %v777_v48  ;;  %v800_v62 = vadd.f32 %v791_v54, %v778_v49 }
 0x188   :  { %v801_v41 = vadd.f32 %v791_v54, %v779_v50  ;;  %v802_v0 = vadd.f32 %v791_v54, %v780_v51  ;;  %v803_v42 = vadd.f32 %v791_v54, %v781_v52  ;;  %v804_v1 = vadd.f32 %v791_v54, %v782_v53 }
 0x189   :  { %v805_v8 = vadd.f32 %v791_v54, %v783_v13  ;;  %v806_v47 = vadd.f32 %v791_v54, %v784_v22  ;;  %v807_v7 = vadd.f32 %v791_v54, %v785_v43  ;;  %v808_v4 = vadd.f32 %v791_v54, %v786_v59 }
 0x18a   :  { %v809_v27 = vmax.f32 %v793_v18, 0.0  ;;  %v810_v5 = vmax.f32 %v794_v55, 0.0  ;;  %v811_v60 = vmax.f32 %v795_v12, 0.0  ;;  %v812_v2 = vmax.f32 %v796_v56, 0.0 }
 0x18b   :  { %v813_v6 = vmax.f32 %v797_v28, 0.0  ;;  %v814_v57 = vmax.f32 %v798_v58, 0.0  ;;  %v815_v10 = vmax.f32 %v799_v23, 0.0  ;;  %v816_v14 = vmax.f32 %v800_v62, 0.0 }
 0x18c   :  { %v817_v15 = vmax.f32 %v801_v41, 0.0  ;;  %v818_v16 = vmax.f32 %v802_v0, 0.0  ;;  %v819_v61 = vmax.f32 %v803_v42, 0.0  ;;  %v820_v19 = vmax.f32 %v804_v1, 0.0  ;;  %825 = vst.msk [vmem:[%s1932_s5] sm:$0xff] %vm179_vm0, %v809_v27  ;;  %826 = vst.msk [vmem:[%s1932_s5 + $0x8] sm:$0xff] %vm179_vm0, %v810_v5 }
 0x18d   :  { %827 = vst.msk [vmem:[%s1932_s5 + $0x10] sm:$0xff] %vm179_vm0, %v811_v60  ;;  %828 = vst.msk [vmem:[%s1932_s5 + $0x18] sm:$0xff] %vm179_vm0, %v812_v2  ;;  %v821_v17 = vmax.f32 %v805_v8, 0.0  ;;  %v822_v3 = vmax.f32 %v806_v47, 0.0  ;;  %v823_v20 = vmax.f32 %v807_v7, 0.0  ;;  %v824_v21 = vmax.f32 %v808_v4, 0.0 }
 0x18e   :  { %829 = vst.msk [vmem:[%s1932_s5 + $0x20] sm:$0xff] %vm179_vm0, %v813_v6  ;;  %830 = vst.msk [vmem:[%s1932_s5 + $0x28] sm:$0xff] %vm179_vm0, %v814_v57 }
 0x18f   :  { %831 = vst.msk [vmem:[%s1932_s5 + $0x30] sm:$0xff] %vm179_vm0, %v815_v10  ;;  %832 = vst.msk [vmem:[%s1932_s5 + $0x38] sm:$0xff] %vm179_vm0, %v816_v14 }
 0x190   :  { %833 = vst.msk [vmem:[%s1932_s5 + $0x40] sm:$0xff] %vm179_vm0, %v817_v15  ;;  %834 = vst.msk [vmem:[%s1932_s5 + $0x48] sm:$0xff] %vm179_vm0, %v818_v16 }
 0x191   :  { %835 = vst.msk [vmem:[%s1932_s5 + $0x50] sm:$0xff] %vm179_vm0, %v819_v61  ;;  %836 = vst.msk [vmem:[%s1932_s5 + $0x58] sm:$0xff] %vm179_vm0, %v820_v19 }
 0x192   :  { %837 = vst.msk [vmem:[%s1932_s5 + $0x60] sm:$0xff] %vm179_vm0, %v821_v17  ;;  %838 = vst.msk [vmem:[%s1932_s5 + $0x68] sm:$0xff] %vm179_vm0, %v822_v3 }
 0x193   :  { %839 = vst.msk [vmem:[%s1932_s5 + $0x70] sm:$0xff] %vm179_vm0, %v823_v20 }
 0x194   :  { %840 = vst.msk [vmem:[%s1932_s5 + $0x78] sm:$0x3f] %vm692_vm1, %v824_v21 }

// kernel: unet_forward.19
= control target key start
LH: loop header
LB: loop body
LE: loop exit
PB: predicated region body
PF: predicated region fallthrough
CT: control target
= control target key end

     0   :  { %vm23_vm0 = vcmask 516096   ;;  %s711_s0 = inlined_call_operand.vmem [shape: f32[2,9,7,64], index: 0, kind: input, shape index: {}]   ;;  %s712_s1 = inlined_call_operand.vmem [shape: f32[2,4,3,64], index: 1, kind: output, shape index: {}]  }
   0x1   :  { %v8_v0 = vld [vmem:[%s711_s0] sm:$0x1]  ;;  %v10_v1 = vld [vmem:[%s711_s0 + $0x1] sm:$0x1]  ;;  %v215_v2 = vld [vmem:[%s711_s0 + $0x8] sm:$0x1] }
   0x2   :  { %v217_v3 = vld [vmem:[%s711_s0 + $0x9] sm:$0x1]  ;;  %v17_v4 = vmax.f32 %v8_v0, %v10_v1  ;;  %v9_v5 = vld [vmem:[%s711_s0 + $0x48] sm:$0x1]  ;;  %v216_v8 = vld [vmem:[%s711_s0 + $0x50] sm:$0x1] }
   0x3   :  { %v11_v6 = vld [vmem:[%s711_s0 + $0x49] sm:$0x1]  ;;  %v19_v7 = vmax.f32 %v215_v2, %v217_v3  ;;  %v218_v9 = vld [vmem:[%s711_s0 + $0x51] sm:$0x1]  ;;  %v26_v11 = vld [vmem:[%s711_s0 + $0x2] sm:$0x1] }
   0x4   :  { %v18_v10 = vmax.f32 %v9_v5, %v11_v6  ;;  %v20_v12 = vmax.f32 %v216_v8, %v218_v9  ;;  %v28_v13 = vld [vmem:[%s711_s0 + $0x3] sm:$0x1]  ;;  %v219_v14 = vld [vmem:[%s711_s0 + $0xa] sm:$0x1]  ;;  %v221_v15 = vld [vmem:[%s711_s0 + $0xb] sm:$0x1] }
   0x5   :  { %v21_v16 = vmax.f32 %v17_v4, %v19_v7  ;;  %v34_v17 = vmax.f32 %v26_v11, %v28_v13  ;;  %v36_v18 = vmax.f32 %v219_v14, %v221_v15  ;;  %v27_v19 = vld [vmem:[%s711_s0 + $0x4a] sm:$0x1]  ;;  %v29_v20 = vld [vmem:[%s711_s0 + $0x4b] sm:$0x1]  ;;  %v220_v21 = vld [vmem:[%s711_s0 + $0x52] sm:$0x1] }
   0x6   :  { %v22_v22 = vmax.f32 %v18_v10, %v20_v12  ;;  %v222_v23 = vld [vmem:[%s711_s0 + $0x53] sm:$0x1]  ;;  %v35_v24 = vmax.f32 %v27_v19, %v29_v20  ;;  %v42_v25 = vld [vmem:[%s711_s0 + $0x4] sm:$0x1]  ;;  %v44_v26 = vld [vmem:[%s711_s0 + $0x5] sm:$0x1] }
   0x7   :  { %24 = vst.msk [vmem:[%s712_s1] sm:$0x1] %vm23_vm0, %v21_v16  ;;  %v38_v27 = vmax.f32 %v34_v17, %v36_v18  ;;  %v37_v28 = vmax.f32 %v220_v21, %v222_v23  ;;  %v223_v29 = vld [vmem:[%s711_s0 + $0xc] sm:$0x1]  ;;  %v225_v30 = vld [vmem:[%s711_s0 + $0xd] sm:$0x1]  ;;  %v50_v31 = vmax.f32 %v42_v25, %v44_v26 }
   0x8   :  { %v43_v32 = vld [vmem:[%s711_s0 + $0x4c] sm:$0x1]  ;;  %25 = vst.msk [vmem:[%s712_s1 + $0x10] sm:$0x1] %vm23_vm0, %v22_v22  ;;  %v52_v33 = vmax.f32 %v223_v29, %v225_v30  ;;  %v45_v34 = vld [vmem:[%s711_s0 + $0x4d] sm:$0x1] }
   0x9   :  { %v224_v35 = vld [vmem:[%s711_s0 + $0x54] sm:$0x1]  ;;  %v226_v36 = vld [vmem:[%s711_s0 + $0x55] sm:$0x1]  ;;  %40 = vst.msk [vmem:[%s712_s1 + $0x1] sm:$0x1] %vm23_vm0, %v38_v27  ;;  %v39_v37 = vmax.f32 %v35_v24, %v37_v28  ;;  %v51_v38 = vmax.f32 %v43_v32, %v45_v34 }
   0xa   :  { %v53_v39 = vmax.f32 %v224_v35, %v226_v36  ;;  %v227_v40 = vld [vmem:[%s711_s0 + $0x10] sm:$0x1]  ;;  %v229_v41 = vld [vmem:[%s711_s0 + $0x11] sm:$0x1]  ;;  %v231_v42 = vld [vmem:[%s711_s0 + $0x18] sm:$0x1]  ;;  %v54_v43 = vmax.f32 %v50_v31, %v52_v33 }
   0xb   :  { %v233_v44 = vld [vmem:[%s711_s0 + $0x19] sm:$0x1]  ;;  %v68_v45 = vmax.f32 %v227_v40, %v229_v41  ;;  %v228_v46 = vld [vmem:[%s711_s0 + $0x58] sm:$0x1]  ;;  %41 = vst.msk [vmem:[%s712_s1 + $0x11] sm:$0x1] %vm23_vm0, %v39_v37 }
   0xc   :  { %v230_v47 = vld [vmem:[%s711_s0 + $0x59] sm:$0x1]  ;;  %v55_v48 = vmax.f32 %v51_v38, %v53_v39  ;;  %v70_v49 = vmax.f32 %v231_v42, %v233_v44  ;;  %v232_v50 = vld [vmem:[%s711_s0 + $0x60] sm:$0x1]  ;;  %v234_v51 = vld [vmem:[%s711_s0 + $0x61] sm:$0x1] }
   0xd   :  { %v69_v52 = vmax.f32 %v228_v46, %v230_v47  ;;  %v237_v53 = vld [vmem:[%s711_s0 + $0x12] sm:$0x1]  ;;  %56 = vst.msk [vmem:[%s712_s1 + $0x2] sm:$0x1] %vm23_vm0, %v54_v43  ;;  %v71_v54 = vmax.f32 %v232_v50, %v234_v51  ;;  %v239_v55 = vld [vmem:[%s711_s0 + $0x13] sm:$0x1] }
   0xe   :  { %v241_v56 = vld [vmem:[%s711_s0 + $0x1a] sm:$0x1]  ;;  %v243_v57 = vld [vmem:[%s711_s0 + $0x1b] sm:$0x1]  ;;  %57 = vst.msk [vmem:[%s712_s1 + $0x12] sm:$0x1] %vm23_vm0, %v55_v48  ;;  %v72_v58 = vmax.f32 %v68_v45, %v70_v49  ;;  %v85_v59 = vmax.f32 %v237_v53, %v239_v55 }
   0xf   :  { %v87_v60 = vmax.f32 %v241_v56, %v243_v57  ;;  %v238_v61 = vld [vmem:[%s711_s0 + $0x5a] sm:$0x1]  ;;  %v240_v62 = vld [vmem:[%s711_s0 + $0x5b] sm:$0x1]  ;;  %v242_v63 = vld [vmem:[%s711_s0 + $0x62] sm:$0x1]  ;;  %v73_v0 = vmax.f32 %v69_v52, %v71_v54 }
  0x10   :  { %v244_v1 = vld [vmem:[%s711_s0 + $0x63] sm:$0x1]  ;;  %v86_v2 = vmax.f32 %v238_v61, %v240_v62  ;;  %v247_v3 = vld [vmem:[%s711_s0 + $0x14] sm:$0x1]  ;;  %v249_v4 = vld [vmem:[%s711_s0 + $0x15] sm:$0x1] }
  0x11   :  { %235 = vst.msk [vmem:[%s712_s1 + $0x4] sm:$0x1] %vm23_vm0, %v72_v58  ;;  %v89_v5 = vmax.f32 %v85_v59, %v87_v60  ;;  %v88_v6 = vmax.f32 %v242_v63, %v244_v1  ;;  %v251_v7 = vld [vmem:[%s711_s0 + $0x1c] sm:$0x1]  ;;  %v253_v8 = vld [vmem:[%s711_s0 + $0x1d] sm:$0x1]  ;;  %v101_v9 = vmax.f32 %v247_v3, %v249_v4 }
  0x12   :  { %v248_v10 = vld [vmem:[%s711_s0 + $0x5c] sm:$0x1]  ;;  %236 = vst.msk [vmem:[%s712_s1 + $0x14] sm:$0x1] %vm23_vm0, %v73_v0  ;;  %v103_v11 = vmax.f32 %v251_v7, %v253_v8  ;;  %v250_v12 = vld [vmem:[%s711_s0 + $0x5d] sm:$0x1] }
  0x13   :  { %v252_v13 = vld [vmem:[%s711_s0 + $0x64] sm:$0x1]  ;;  %v254_v14 = vld [vmem:[%s711_s0 + $0x65] sm:$0x1]  ;;  %245 = vst.msk [vmem:[%s712_s1 + $0x5] sm:$0x1] %vm23_vm0, %v89_v5  ;;  %v90_v15 = vmax.f32 %v86_v2, %v88_v6  ;;  %v102_v16 = vmax.f32 %v248_v10, %v250_v12 }
  0x14   :  { %v104_v17 = vmax.f32 %v252_v13, %v254_v14  ;;  %v257_v18 = vld [vmem:[%s711_s0 + $0x20] sm:$0x1]  ;;  %v259_v19 = vld [vmem:[%s711_s0 + $0x21] sm:$0x1]  ;;  %v261_v20 = vld [vmem:[%s711_s0 + $0x28] sm:$0x1]  ;;  %v105_v21 = vmax.f32 %v101_v9, %v103_v11 }
  0x15   :  { %v263_v22 = vld [vmem:[%s711_s0 + $0x29] sm:$0x1]  ;;  %v119_v23 = vmax.f32 %v257_v18, %v259_v19  ;;  %v258_v24 = vld [vmem:[%s711_s0 + $0x68] sm:$0x1]  ;;  %246 = vst.msk [vmem:[%s712_s1 + $0x15] sm:$0x1] %vm23_vm0, %v90_v15 }
  0x16   :  { %v260_v25 = vld [vmem:[%s711_s0 + $0x69] sm:$0x1]  ;;  %v106_v26 = vmax.f32 %v102_v16, %v104_v17  ;;  %v121_v27 = vmax.f32 %v261_v20, %v263_v22  ;;  %v262_v28 = vld [vmem:[%s711_s0 + $0x70] sm:$0x1]  ;;  %v264_v29 = vld [vmem:[%s711_s0 + $0x71] sm:$0x1] }
  0x17   :  { %v120_v30 = vmax.f32 %v258_v24, %v260_v25  ;;  %v267_v31 = vld [vmem:[%s711_s0 + $0x22] sm:$0x1]  ;;  %255 = vst.msk [vmem:[%s712_s1 + $0x6] sm:$0x1] %vm23_vm0, %v105_v21  ;;  %v122_v32 = vmax.f32 %v262_v28, %v264_v29  ;;  %v269_v33 = vld [vmem:[%s711_s0 + $0x23] sm:$0x1] }
  0x18   :  { %v271_v34 = vld [vmem:[%s711_s0 + $0x2a] sm:$0x1]  ;;  %v273_v35 = vld [vmem:[%s711_s0 + $0x2b] sm:$0x1]  ;;  %256 = vst.msk [vmem:[%s712_s1 + $0x16] sm:$0x1] %vm23_vm0, %v106_v26  ;;  %v123_v36 = vmax.f32 %v119_v23, %v121_v27  ;;  %v136_v37 = vmax.f32 %v267_v31, %v269_v33 }
  0x19   :  { %v138_v38 = vmax.f32 %v271_v34, %v273_v35  ;;  %v268_v39 = vld [vmem:[%s711_s0 + $0x6a] sm:$0x1]  ;;  %v270_v40 = vld [vmem:[%s711_s0 + $0x6b] sm:$0x1]  ;;  %v272_v41 = vld [vmem:[%s711_s0 + $0x72] sm:$0x1]  ;;  %v124_v42 = vmax.f32 %v120_v30, %v122_v32 }
  0x1a   :  { %v274_v43 = vld [vmem:[%s711_s0 + $0x73] sm:$0x1]  ;;  %v137_v44 = vmax.f32 %v268_v39, %v270_v40  ;;  %v277_v45 = vld [vmem:[%s711_s0 + $0x24] sm:$0x1]  ;;  %v279_v46 = vld [vmem:[%s711_s0 + $0x25] sm:$0x1] }
  0x1b   :  { %265 = vst.msk [vmem:[%s712_s1 + $0x8] sm:$0x1] %vm23_vm0, %v123_v36  ;;  %v140_v47 = vmax.f32 %v136_v37, %v138_v38  ;;  %v139_v48 = vmax.f32 %v272_v41, %v274_v43  ;;  %v281_v49 = vld [vmem:[%s711_s0 + $0x2c] sm:$0x1]  ;;  %v283_v50 = vld [vmem:[%s711_s0 + $0x2d] sm:$0x1]  ;;  %v152_v51 = vmax.f32 %v277_v45, %v279_v46 }
  0x1c   :  { %v278_v52 = vld [vmem:[%s711_s0 + $0x6c] sm:$0x1]  ;;  %266 = vst.msk [vmem:[%s712_s1 + $0x18] sm:$0x1] %vm23_vm0, %v124_v42  ;;  %v154_v53 = vmax.f32 %v281_v49, %v283_v50  ;;  %v280_v54 = vld [vmem:[%s711_s0 + $0x6d] sm:$0x1] }
  0x1d   :  { %v282_v55 = vld [vmem:[%s711_s0 + $0x74] sm:$0x1]  ;;  %v284_v56 = vld [vmem:[%s711_s0 + $0x75] sm:$0x1]  ;;  %275 = vst.msk [vmem:[%s712_s1 + $0x9] sm:$0x1] %vm23_vm0, %v140_v47  ;;  %v141_v57 = vmax.f32 %v137_v44, %v139_v48  ;;  %v153_v58 = vmax.f32 %v278_v52, %v280_v54 }
  0x1e   :  { %v155_v59 = vmax.f32 %v282_v55, %v284_v56  ;;  %v287_v60 = vld [vmem:[%s711_s0 + $0x30] sm:$0x1]  ;;  %v289_v61 = vld [vmem:[%s711_s0 + $0x31] sm:$0x1]  ;;  %v291_v62 = vld [vmem:[%s711_s0 + $0x38] sm:$0x1]  ;;  %v156_v63 = vmax.f32 %v152_v51, %v154_v53 }
  0x1f   :  { %v293_v0 = vld [vmem:[%s711_s0 + $0x39] sm:$0x1]  ;;  %v170_v1 = vmax.f32 %v287_v60, %v289_v61  ;;  %v288_v2 = vld [vmem:[%s711_s0 + $0x78] sm:$0x1]  ;;  %276 = vst.msk [vmem:[%s712_s1 + $0x19] sm:$0x1] %vm23_vm0, %v141_v57 }
  0x20   :  { %v290_v3 = vld [vmem:[%s711_s0 + $0x79] sm:$0x1]  ;;  %v157_v4 = vmax.f32 %v153_v58, %v155_v59  ;;  %v172_v5 = vmax.f32 %v291_v62, %v293_v0  ;;  %v292_v6 = vld [vmem:[%s711_s0 + $0x80] sm:$0x1]  ;;  %v294_v7 = vld [vmem:[%s711_s0 + $0x81] sm:$0x1] }
  0x21   :  { %v171_v8 = vmax.f32 %v288_v2, %v290_v3  ;;  %v297_v9 = vld [vmem:[%s711_s0 + $0x32] sm:$0x1]  ;;  %285 = vst.msk [vmem:[%s712_s1 + $0xa] sm:$0x1] %vm23_vm0, %v156_v63  ;;  %v173_v10 = vmax.f32 %v292_v6, %v294_v7  ;;  %v299_v11 = vld [vmem:[%s711_s0 + $0x33] sm:$0x1] }
  0x22   :  { %v301_v12 = vld [vmem:[%s711_s0 + $0x3a] sm:$0x1]  ;;  %v303_v13 = vld [vmem:[%s711_s0 + $0x3b] sm:$0x1]  ;;  %286 = vst.msk [vmem:[%s712_s1 + $0x1a] sm:$0x1] %vm23_vm0, %v157_v4  ;;  %v174_v14 = vmax.f32 %v170_v1, %v172_v5  ;;  %v187_v15 = vmax.f32 %v297_v9, %v299_v11 }
  0x23   :  { %v189_v16 = vmax.f32 %v301_v12, %v303_v13  ;;  %v298_v17 = vld [vmem:[%s711_s0 + $0x7a] sm:$0x1]  ;;  %v300_v18 = vld [vmem:[%s711_s0 + $0x7b] sm:$0x1]  ;;  %v302_v19 = vld [vmem:[%s711_s0 + $0x82] sm:$0x1]  ;;  %v175_v20 = vmax.f32 %v171_v8, %v173_v10 }
  0x24   :  { %v304_v21 = vld [vmem:[%s711_s0 + $0x83] sm:$0x1]  ;;  %v188_v22 = vmax.f32 %v298_v17, %v300_v18  ;;  %v307_v23 = vld [vmem:[%s711_s0 + $0x34] sm:$0x1]  ;;  %v309_v24 = vld [vmem:[%s711_s0 + $0x35] sm:$0x1] }
  0x25   :  { %295 = vst.msk [vmem:[%s712_s1 + $0xc] sm:$0x1] %vm23_vm0, %v174_v14  ;;  %v191_v25 = vmax.f32 %v187_v15, %v189_v16  ;;  %v190_v26 = vmax.f32 %v302_v19, %v304_v21  ;;  %v311_v27 = vld [vmem:[%s711_s0 + $0x3c] sm:$0x1]  ;;  %v313_v28 = vld [vmem:[%s711_s0 + $0x3d] sm:$0x1]  ;;  %v203_v29 = vmax.f32 %v307_v23, %v309_v24 }
  0x26   :  { %v308_v30 = vld [vmem:[%s711_s0 + $0x7c] sm:$0x1]  ;;  %296 = vst.msk [vmem:[%s712_s1 + $0x1c] sm:$0x1] %vm23_vm0, %v175_v20  ;;  %v205_v31 = vmax.f32 %v311_v27, %v313_v28  ;;  %v310_v32 = vld [vmem:[%s711_s0 + $0x7d] sm:$0x1] }
  0x27   :  { %v312_v33 = vld [vmem:[%s711_s0 + $0x84] sm:$0x1]  ;;  %v314_v34 = vld [vmem:[%s711_s0 + $0x85] sm:$0x1]  ;;  %305 = vst.msk [vmem:[%s712_s1 + $0xd] sm:$0x1] %vm23_vm0, %v191_v25  ;;  %v192_v35 = vmax.f32 %v188_v22, %v190_v26  ;;  %v204_v36 = vmax.f32 %v308_v30, %v310_v32 }
  0x28   :  { %v206_v37 = vmax.f32 %v312_v33, %v314_v34  ;;  %v207_v38 = vmax.f32 %v203_v29, %v205_v31 }
  0x29   :  { %306 = vst.msk [vmem:[%s712_s1 + $0x1d] sm:$0x1] %vm23_vm0, %v192_v35 }
  0x2a   :  { %v208_v39 = vmax.f32 %v204_v36, %v206_v37  ;;  %315 = vst.msk [vmem:[%s712_s1 + $0xe] sm:$0x1] %vm23_vm0, %v207_v38 }
  0x2c   :  { %316 = vst.msk [vmem:[%s712_s1 + $0x1e] sm:$0x1] %vm23_vm0, %v208_v39 }

// kernel: unet_forward.20
= control target key start
LH: loop header
LB: loop body
LE: loop exit
PB: predicated region body
PF: predicated region fallthrough
CT: control target
= control target key end

     0   :  { %vm634_vm0 = vmmov 0   ;;  %vm114_vm1 = vcmask 523264   ;;  %s945_s1 = inlined_call_operand.vmem [shape: f32[576,128], index: 1, kind: input, shape index: {}]   ;;  %s946_s0 = inlined_call_operand.vmem [shape: f32[24,576], index: 0, kind: input, shape index: {}]   ;;  %s947_s2 = inlined_call_operand.vmem [shape: f32[1,128], index: 2, kind: input, shape index: {}]   ;;  %s948_s3 = inlined_call_operand.vmem [shape: f32[1,128], index: 3, kind: input, shape index: {}]   ;;  %s949_s4 = inlined_call_operand.vmem [shape: f32[1,128], index: 4, kind: input, shape index: {}]   ;;  %s950_s5 = inlined_call_operand.vmem [shape: f32[24,128], index: 5, kind: output, shape index: {}]  }
   0x1   :  { %v51_v0 = vld [vmem:[%s945_s1 + $0x80] sm:$0xff]  ;;  %v52_v1 = vld [vmem:[%s945_s1 + $0x88] sm:$0xff]  ;;  %v53_v11 = vld [vmem:[%s945_s1 + $0x90] sm:$0xff] }
   0x2   :  { %v83_v2 = vld [vmem:[%s945_s1 + $0x180] sm:$0xff]  ;;  %v544_v3 = vpack.c.bf16 %v52_v1, %v51_v0  ;;  %v84_v4 = vld [vmem:[%s945_s1 + $0x188] sm:$0xff]  ;;  %v54_v13 = vld [vmem:[%s945_s1 + $0x98] sm:$0xff] }
   0x3   :  { %v35_v5 = vld [vmem:[%s945_s1] sm:$0xff]  ;;  %v36_v6 = vld [vmem:[%s945_s1 + $0x8] sm:$0xff]  ;;  %v576_v7 = vpack.c.bf16 %v84_v4, %v83_v2  ;;  %v85_v14 = vld [vmem:[%s945_s1 + $0x190] sm:$0xff]  ;;  %v548_v16 = vpack.c.bf16 %v54_v13, %v53_v11 }
   0x4   :  { %v546_v8 = vpack.c.bf16 %v36_v6, %v35_v5  ;;  %v67_v9 = vld [vmem:[%s945_s1 + $0x100] sm:$0xff]  ;;  %v68_v10 = vld [vmem:[%s945_s1 + $0x108] sm:$0xff]  ;;  %545 = vmatprep.subr.bf16.mxu0 %v544_v3  ;;  %v86_v15 = vld [vmem:[%s945_s1 + $0x198] sm:$0xff] }
   0x5   :  { %v578_v12 = vpack.c.bf16 %v68_v10, %v67_v9  ;;  %577 = vmatprep.subr.bf16.mxu1 %v576_v7  ;;  %v580_v17 = vpack.c.bf16 %v86_v15, %v85_v14  ;;  %v37_v18 = vld [vmem:[%s945_s1 + $0x10] sm:$0xff]  ;;  %v38_v19 = vld [vmem:[%s945_s1 + $0x18] sm:$0xff]  ;;  %v55_v23 = vld [vmem:[%s945_s1 + $0xa0] sm:$0xff] }
   0x6   :  { %547 = vmatpush3.bf16.msra.mxu0 %v546_v8  ;;  %v69_v20 = vld [vmem:[%s945_s1 + $0x110] sm:$0xff]  ;;  %v550_v21 = vpack.c.bf16 %v38_v19, %v37_v18  ;;  %v70_v22 = vld [vmem:[%s945_s1 + $0x118] sm:$0xff]  ;;  %v56_v24 = vld [vmem:[%s945_s1 + $0xa8] sm:$0xff] }
   0x7   :  { %579 = vmatpush3.bf16.msra.mxu1 %v578_v12  ;;  %549 = vmatprep.subr.bf16.mxu0 %v548_v16  ;;  %v582_v25 = vpack.c.bf16 %v70_v22, %v69_v20  ;;  %v552_v26 = vpack.c.bf16 %v56_v24, %v55_v23  ;;  %v87_v27 = vld [vmem:[%s945_s1 + $0x1a0] sm:$0xff]  ;;  %v88_v28 = vld [vmem:[%s945_s1 + $0x1a8] sm:$0xff]  ;;  %v57_v35 = vld [vmem:[%s945_s1 + $0xb0] sm:$0xff] }
   0x8   :  { %581 = vmatprep.subr.bf16.mxu1 %v580_v17  ;;  %v39_v29 = vld [vmem:[%s945_s1 + $0x20] sm:$0xff]  ;;  %v584_v30 = vpack.c.bf16 %v88_v28, %v87_v27  ;;  %v40_v31 = vld [vmem:[%s945_s1 + $0x28] sm:$0xff]  ;;  %v58_v36 = vld [vmem:[%s945_s1 + $0xb8] sm:$0xff] }
   0x9   :  { %v71_v32 = vld [vmem:[%s945_s1 + $0x120] sm:$0xff]  ;;  %v72_v33 = vld [vmem:[%s945_s1 + $0x128] sm:$0xff]  ;;  %v554_v34 = vpack.c.bf16 %v40_v31, %v39_v29  ;;  %v89_v37 = vld [vmem:[%s945_s1 + $0x1b0] sm:$0xff]  ;;  %v556_v39 = vpack.c.bf16 %v58_v36, %v57_v35 }
   0xa   :  { %551 = vmatpush3.bf16.msra.mxu0 %v550_v21  ;;  %v586_v38 = vpack.c.bf16 %v72_v33, %v71_v32  ;;  %v90_v40 = vld [vmem:[%s945_s1 + $0x1b8] sm:$0xff]  ;;  %v41_v41 = vld [vmem:[%s945_s1 + $0x30] sm:$0xff]  ;;  %v59_v46 = vld [vmem:[%s945_s1 + $0xc0] sm:$0xff] }
   0xb   :  { %583 = vmatpush3.bf16.msra.mxu1 %v582_v25  ;;  %553 = vmatprep.subr.bf16.mxu0 %v552_v26  ;;  %v42_v42 = vld [vmem:[%s945_s1 + $0x38] sm:$0xff]  ;;  %v588_v43 = vpack.c.bf16 %v90_v40, %v89_v37  ;;  %v73_v44 = vld [vmem:[%s945_s1 + $0x130] sm:$0xff]  ;;  %v60_v47 = vld [vmem:[%s945_s1 + $0xc8] sm:$0xff] }
   0xc   :  { %585 = vmatprep.subr.bf16.mxu1 %v584_v30  ;;  %v74_v45 = vld [vmem:[%s945_s1 + $0x138] sm:$0xff]  ;;  %v91_v48 = vld [vmem:[%s945_s1 + $0x1c0] sm:$0xff]  ;;  %v92_v49 = vld [vmem:[%s945_s1 + $0x1c8] sm:$0xff]  ;;  %v558_v50 = vpack.c.bf16 %v42_v42, %v41_v41  ;;  %v560_v52 = vpack.c.bf16 %v60_v47, %v59_v46 }
   0xd   :  { %v590_v51 = vpack.c.bf16 %v74_v45, %v73_v44  ;;  %v43_v53 = vld [vmem:[%s945_s1 + $0x40] sm:$0xff]  ;;  %v44_v54 = vld [vmem:[%s945_s1 + $0x48] sm:$0xff]  ;;  %v592_v56 = vpack.c.bf16 %v92_v49, %v91_v48  ;;  %v61_v58 = vld [vmem:[%s945_s1 + $0xd0] sm:$0xff] }
   0xe   :  { %555 = vmatpush3.bf16.msra.mxu0 %v554_v34  ;;  %v75_v55 = vld [vmem:[%s945_s1 + $0x140] sm:$0xff]  ;;  %v76_v57 = vld [vmem:[%s945_s1 + $0x148] sm:$0xff]  ;;  %v62_v59 = vld [vmem:[%s945_s1 + $0xd8] sm:$0xff]  ;;  %v562_v62 = vpack.c.bf16 %v44_v54, %v43_v53 }
   0xf   :  { %587 = vmatpush3.bf16.msra.mxu1 %v586_v38  ;;  %557 = vmatprep.subr.bf16.mxu0 %v556_v39  ;;  %v93_v60 = vld [vmem:[%s945_s1 + $0x1d0] sm:$0xff]  ;;  %v94_v61 = vld [vmem:[%s945_s1 + $0x1d8] sm:$0xff]  ;;  %v594_v63 = vpack.c.bf16 %v76_v57, %v75_v55  ;;  %v564_v0 = vpack.c.bf16 %v62_v59, %v61_v58  ;;  %v63_v6 = vld [vmem:[%s945_s1 + $0xe0] sm:$0xff]  ;;  %v633_v39 = vmov 0.0|0.0   ;;  %v635_v57 = vmov 0.0  }
  0x10   :  { %589 = vmatprep.subr.bf16.mxu1 %v588_v43  ;;  %v45_v1 = vld [vmem:[%s945_s1 + $0x50] sm:$0xff]  ;;  %v46_v2 = vld [vmem:[%s945_s1 + $0x58] sm:$0xff]  ;;  %v596_v4 = vpack.c.bf16 %v94_v61, %v93_v60  ;;  %v64_v7 = vld [vmem:[%s945_s1 + $0xe8] sm:$0xff] }
  0x11   :  { %v77_v3 = vld [vmem:[%s945_s1 + $0x150] sm:$0xff]  ;;  %v78_v5 = vld [vmem:[%s945_s1 + $0x158] sm:$0xff]  ;;  %v95_v8 = vld [vmem:[%s945_s1 + $0x1e0] sm:$0xff]  ;;  %v566_v10 = vpack.c.bf16 %v46_v2, %v45_v1  ;;  %v568_v14 = vpack.c.bf16 %v64_v7, %v63_v6 }
  0x12   :  { %559 = vmatpush3.bf16.msra.mxu0 %v558_v50  ;;  %v96_v9 = vld [vmem:[%s945_s1 + $0x1e8] sm:$0xff]  ;;  %v47_v11 = vld [vmem:[%s945_s1 + $0x60] sm:$0xff]  ;;  %v598_v13 = vpack.c.bf16 %v78_v5, %v77_v3  ;;  %v23_v17 = vld [vmem:[%s946_s0 + $0x18] sm:$0xff] }
  0x13   :  { %591 = vmatpush3.bf16.msra.mxu1 %v590_v51  ;;  %561 = vmatprep.subr.bf16.mxu0 %v560_v52  ;;  %v48_v12 = vld [vmem:[%s945_s1 + $0x68] sm:$0xff]  ;;  %v79_v15 = vld [vmem:[%s945_s1 + $0x160] sm:$0xff]  ;;  %v600_v18 = vpack.c.bf16 %v96_v9, %v95_v8  ;;  %v65_v20 = vld [vmem:[%s945_s1 + $0xf0] sm:$0xff] }
  0x14   :  { %593 = vmatprep.subr.bf16.mxu1 %v592_v56  ;;  %v21_v16 = vld [vmem:[%s946_s0 + $0x8] sm:$0xff]  ;;  %v66_v21 = vld [vmem:[%s945_s1 + $0xf8] sm:$0xff]  ;;  %v97_v22 = vld [vmem:[%s945_s1 + $0x1f0] sm:$0xff]  ;;  %268 = vmatprep.mubr.f32.mxu1 %v23_v17  ;;  %v570_v24 = vpack.c.bf16 %v48_v12, %v47_v11 }
  0x15   :  { %v80_v19 = vld [vmem:[%s945_s1 + $0x168] sm:$0xff]  ;;  %188 = vmatprep.mubr.f32.mxu0 %v21_v16  ;;  %v98_v23 = vld [vmem:[%s945_s1 + $0x1f8] sm:$0xff]  ;;  %v572_v26 = vpack.c.bf16 %v66_v21, %v65_v20  ;;  %v49_v27 = vld [vmem:[%s945_s1 + $0x70] sm:$0xff] }
  0x16   :  { %563 = vmatpush3.bf16.msra.mxu0 %v562_v62  ;;  %v602_v25 = vpack.c.bf16 %v80_v19, %v79_v15  ;;  %v50_v28 = vld [vmem:[%s945_s1 + $0x78] sm:$0xff]  ;;  %v604_v29 = vpack.c.bf16 %v98_v23, %v97_v22  ;;  %v81_v30 = vld [vmem:[%s945_s1 + $0x170] sm:$0xff]  ;;  %v99_v34 = vld [vmem:[%s945_s1 + $0x200] sm:$0xff] }
  0x17   :  { %595 = vmatpush3.bf16.msra.mxu1 %v594_v63  ;;  %565 = vmatprep.subr.bf16.mxu0 %v564_v0  ;;  %v82_v31 = vld [vmem:[%s945_s1 + $0x178] sm:$0xff]  ;;  %v574_v32 = vpack.c.bf16 %v50_v28, %v49_v27  ;;  %v100_v35 = vld [vmem:[%s945_s1 + $0x208] sm:$0xff]  ;;  %v20_v36 = vld [vmem:[%s946_s0] sm:$0xff] }
  0x18   :  { %597 = vmatprep.subr.bf16.mxu1 %v596_v4  ;;  %v606_v33 = vpack.c.bf16 %v82_v31, %v81_v30  ;;  %v609_v37 = vpack.c.bf16 %v100_v35, %v99_v34  ;;  %v22_v38 = vld [vmem:[%s946_s0 + $0x10] sm:$0xff]  ;;  %v102_v41 = vld [vmem:[%s945_s1 + $0x218] sm:$0xff]  ;;  %v25_v43 = vld [vmem:[%s946_s0 + $0x28] sm:$0xff] }
  0x19   :  { %v101_v40 = vld [vmem:[%s945_s1 + $0x210] sm:$0xff]  ;;  %v28_v45 = vld [vmem:[%s946_s0 + $0x40] sm:$0xff]  ;;  %v27_v46 = vld [vmem:[%s946_s0 + $0x38] sm:$0xff] }
  0x1a   :  { %567 = vmatpush3.bf16.msra.mxu0 %v566_v10  ;;  %v26_v42 = vld [vmem:[%s946_s0 + $0x30] sm:$0xff]  ;;  %v612_v44 = vpack.c.bf16 %v102_v41, %v101_v40  ;;  %v103_v47 = vld [vmem:[%s945_s1 + $0x220] sm:$0xff]  ;;  %v104_v48 = vld [vmem:[%s945_s1 + $0x228] sm:$0xff] }
  0x1b   :  { %599 = vmatpush3.bf16.msra.mxu1 %v598_v13  ;;  %569 = vmatprep.subr.bf16.mxu0 %v568_v14  ;;  %v31_v49 = vld [vmem:[%s946_s0 + $0x58] sm:$0xff]  ;;  %v30_v50 = vld [vmem:[%s946_s0 + $0x50] sm:$0xff]  ;;  %v615_v51 = vpack.c.bf16 %v104_v48, %v103_v47  ;;  %v33_v52 = vld [vmem:[%s946_s0 + $0x68] sm:$0xff] }
  0x1c   :  { %601 = vmatprep.subr.bf16.mxu1 %v600_v18  ;;  %v32_v53 = vld [vmem:[%s946_s0 + $0x60] sm:$0xff]  ;;  %v105_v54 = vld [vmem:[%s945_s1 + $0x230] sm:$0xff]  ;;  %v106_v55 = vld [vmem:[%s945_s1 + $0x238] sm:$0xff] }
  0x1d   :  { %v618_v56 = vpack.c.bf16 %v106_v55, %v105_v54  ;;  %v24_v58 = vld [vmem:[%s946_s0 + $0x20] sm:$0xff]  ;;  %v29_v59 = vld [vmem:[%s946_s0 + $0x48] sm:$0xff]  ;;  %v34_v60 = vld [vmem:[%s946_s0 + $0x70] sm:$0xff]  ;;  %v395_v55 = vlaneseq }
  0x1e   :  { %571 = vmatpush3.bf16.msra.mxu0 %v570_v24  ;;  %v422_v63 = vld [vmem:[%s947_s2] ss:$0 sm:$0xff] }
  0x1f   :  { %603 = vmatpush3.bf16.msra.mxu1 %v602_v25  ;;  %573 = vmatprep.subr.bf16.mxu0 %v572_v26 }
  0x20   :  { %605 = vmatprep.subr.bf16.mxu1 %v604_v29 }
  0x22   :  { %575 = vmatpush3.bf16.msra.mxu0 %v574_v32 }
  0x23   :  { %607 = vmatpush3.bf16.msra.mxu1 %v606_v33  ;;  %608 = vmatprep.subr.bf16.mxu0 %v633_v39 }
  0x24   :  { %620 = vmatprep.subr.bf16.mxu1 %v633_v39 }
  0x25   :  { %189 = vmatmul.mubr.f32.vlgmr.msra.gmra.mrb[0].mxu0 %v20_v36 }
  0x26   :  { %269 = vmatmul.mubr.f32.vlgmr.msra.gmra.mrb[0].mxu1 %v22_v38  ;;  %610 = vmatpush3.bf16.msra.mxu0 %v609_v37 }
  0x27   :  { %624 = vmatpush3.bf16.msra.mxu1 %v609_v37  ;;  %193 = vmatprep.mubr.f32.mxu0 %v26_v42 }
  0x28   :  { %611 = vmatprep.subr.bf16.mxu0 %v633_v39  ;;  %621 = vmatprep.subr.bf16.mxu1 %v633_v39 }
  0x29   :  { %194 = vmatmul.mubr.f32.gmra.mrb[2].mxu0 %v25_v43  ;;  %273 = vmatprep.mubr.f32.mxu1 %v28_v45 }
  0x2a   :  { %613 = vmatpush3.bf16.msra.mxu0 %v612_v44  ;;  %274 = vmatmul.mubr.f32.gmra.mrb[2].mxu1 %v27_v46 }
  0x2b   :  { %625 = vmatpush3.bf16.msra.mxu1 %v612_v44  ;;  %198 = vmatprep.mubr.f32.mxu0 %v31_v49 }
  0x2c   :  { %614 = vmatprep.subr.bf16.mxu0 %v633_v39  ;;  %622 = vmatprep.subr.bf16.mxu1 %v633_v39 }
  0x2d   :  { %199 = vmatmul.mubr.f32.gmra.mrb[4].mxu0 %v30_v50  ;;  %278 = vmatprep.mubr.f32.mxu1 %v33_v52 }
  0x2e   :  { %616 = vmatpush3.bf16.msra.mxu0 %v615_v51  ;;  %279 = vmatmul.mubr.f32.gmra.mrb[4].mxu1 %v32_v53 }
  0x2f   :  { %626 = vmatpush3.bf16.msra.mxu1 %v615_v51  ;;  %617 = vmatprep.subr.bf16.mxu0 %v633_v39 }
  0x30   :  { %623 = vmatprep.subr.bf16.mxu1 %v633_v39  ;;  %535 = vmatprep.mubr.msk.f32.mxu0 %vm634_vm0, %v635_v57 }
  0x31   :  { %538 = vmatprep.mubr.msk.f32.mxu1 %vm634_vm0, %v635_v57 }
  0x32   :  { %619 = vmatpush3.bf16.msra.mxu0 %v618_v56 }
  0x33   :  { %627 = vmatpush3.bf16.msra.mxu1 %v618_v56  ;;  %v396_v56 = vshrl.u32 %v395_v55, 7 }
  0x35   :  { %536 = vmatmul.mubr.msk.f32.vlgmr.msra.gmra.mrb[6].mxu0 %vm114_vm1, %v24_v58  ;;  %v397_v58 = vsub.s32 0, %v396_v56 }
  0x36   :  { %539 = vmatmul.mubr.msk.f32.vlgmr.msra.gmra.mrb[6].mxu1 %vm114_vm1, %v29_v59 }
  0x37   :  { %541 = vmatprep.mubr.msk.f32.mxu1 %vm634_vm0, %v635_v57  ;;  %v387_v57 = vld [vmem:[%s948_s3] sm:$0x1] }
  0x3a   :  { %542 = vmatmul.mubr.msk.f32.gmra.mrb[8].mxu1 %vm114_vm1, %v34_v60 }
  0xf8   :  { %v458_v61 = vpop.f32.mrb[0].mxu0 }
  0xf9   :  { %v499_v62 = vpop.f32.mrb[0].mxu1  ;;  %v459_v0 = vpop.f32.mrb[1].mxu0 }
  0xfa   :  { %v460_v1 = vadd.f32 %v459_v0, %v458_v61  ;;  %v500_v2 = vpop.f32.mrb[1].mxu1  ;;  %v391_v61 = vld [vmem:[%s949_s4] sm:$0x1] }
  0xfb   :  { %v501_v3 = vadd.f32 %v500_v2, %v499_v62 }
  0xfc   :  { %v191_v4 = vadd.f32 %v460_v1, %v422_v63  ;;  %v461_v5 = vpop.f32.mrb[2].mxu0 }
  0xfd   :  { %v462_v6 = vpop.f32.mrb[3].mxu0  ;;  %v502_v7 = vpop.f32.mrb[2].mxu1 }
  0xfe   :  { %v463_v8 = vadd.f32 %v462_v6, %v461_v5  ;;  %v503_v9 = vpop.f32.mrb[3].mxu1  ;;  %v271_v10 = vadd.f32 %v501_v3, %v191_v4 }
  0xff   :  { %v504_v11 = vadd.f32 %v503_v9, %v502_v7 }
 0x100   :  { %v196_v12 = vadd.f32 %v463_v8, %v422_v63  ;;  %v464_v13 = vpop.f32.mrb[4].mxu0 }
 0x101   :  { %v465_v14 = vpop.f32.mrb[5].mxu0  ;;  %v505_v15 = vpop.f32.mrb[4].mxu1 }
 0x102   :  { %v466_v16 = vadd.f32 %v465_v14, %v464_v13  ;;  %v506_v17 = vpop.f32.mrb[5].mxu1  ;;  %v276_v18 = vadd.f32 %v504_v11, %v196_v12 }
 0x103   :  { %v507_v19 = vadd.f32 %v506_v17, %v505_v15 }
 0x104   :  { %v201_v20 = vadd.f32 %v466_v16, %v422_v63 }
 0x106   :  { %v281_v21 = vadd.f32 %v507_v19, %v201_v20 }
 0x108   :  { %v350_v22 = vpop.f32.mrb[6].mxu0 }
 0x109   :  { %v351_v23 = vadd.f32 %v350_v22, %v271_v10  ;;  %v355_v24 = vpop.f32.mrb[6].mxu1  ;;  %v537_v25 = vpop.f32.mrb[7].mxu0 }
 0x10a   :  { %v356_v26 = vadd.f32 %v355_v24, %v276_v18  ;;  %v540_v27 = vpop.f32.mrb[7].mxu1 }
 0x10b   :  { %v373_v28 = vmul.f32 %v351_v23, %v351_v23 }
 0x10c   :  { %v364_v29 = vadd.f32 %v356_v26, %v351_v23  ;;  %v374_v30 = vmul.f32 %v356_v26, %v356_v26 }
 0x10d   :  { %v360_v31 = vpop.f32.mrb[8].mxu1 }
 0x10e   :  { %v376_v32 = vadd.f32 %v374_v30, %v373_v28  ;;  %v361_v33 = vadd.f32 %v360_v31, %v281_v21  ;;  %v543_v34 = vpop.f32.mrb[9].mxu1 }
 0x110   :  { %v365_v35 = vadd.f32 %v364_v29, %v361_v33  ;;  %v375_v36 = vmul.f32 %v361_v33, %v361_v33 }
 0x112   :  { %v366_v37 = vrot.slane %v365_v35, 4  ;;  %v377_v38 = vadd.f32 %v376_v32, %v375_v36 }
 0x114   :  { %v367_v39 = vadd.f32 %v366_v37, %v365_v35  ;;  %v378_v40 = vrot.slane %v377_v38, 4 }
 0x116   :  { %v368_v41 = vrot.slane %v367_v39, 2  ;;  %v379_v42 = vadd.f32 %v378_v40, %v377_v38 }
 0x118   :  { %v369_v43 = vadd.f32 %v368_v41, %v367_v39  ;;  %v380_v44 = vrot.slane %v379_v42, 2 }
 0x11a   :  { %v370_v45 = vrot.slane %v369_v43, 1  ;;  %v381_v46 = vadd.f32 %v380_v44, %v379_v42 }
 0x11c   :  { %v371_v47 = vadd.f32 %v370_v45, %v369_v43  ;;  %v382_v48 = vrot.slane %v381_v46, 1 }
 0x11e   :  { %v372_v49 = vmul.f32 0.041666668, %v371_v47  ;;  %v383_v50 = vadd.f32 %v382_v48, %v381_v46 }
 0x120   :  { %v384_v51 = vmul.f32 0.041666668, %v383_v50  ;;  %v385_v52 = vmul.f32 %v372_v49, %v372_v49 }
 0x122   :  { %v386_v53 = vsub.f32 %v384_v51, %v385_v52 }
 0x124   :  { %v388_v54 = vadd.f32 1e-05, %v386_v53 }
 0x126   :  { %631 = vrsqrt.f32 %v388_v54 }
 0x130   :  { %v632_v59 = vpop.eup %631 }
 0x131   :  { %v390_v60 = vmul.f32 %v632_v59, %v387_v57 }
 0x133   :  { %v392_v62 = vmul.f32 %v390_v60, %v372_v49  ;;  %v398_v63 = vrot.slane %v390_v60, %v397_v58 }
 0x135   :  { %v393_v0 = vsub.f32 %v391_v61, %v392_v62  ;;  %v400_v1 = vmul.f32 %v398_v63, %v351_v23  ;;  %v401_v2 = vmul.f32 %v398_v63, %v356_v26  ;;  %v402_v3 = vmul.f32 %v398_v63, %v361_v33 }
 0x137   :  { %v407_v4 = vrot.slane %v393_v0, %v397_v58 }
 0x139   :  { %v409_v5 = vadd.f32 %v407_v4, %v400_v1  ;;  %v410_v6 = vadd.f32 %v407_v4, %v401_v2  ;;  %v411_v7 = vadd.f32 %v407_v4, %v402_v3 }
 0x13b   :  { %v412_v8 = vmax.f32 %v409_v5, 0.0  ;;  %v413_v9 = vmax.f32 %v410_v6, 0.0  ;;  %v414_v10 = vmax.f32 %v411_v7, 0.0 }
 0x13d   :  { %415 = vst [vmem:[%s950_s5] sm:$0xff] %v412_v8  ;;  %416 = vst [vmem:[%s950_s5 + $0x8] sm:$0xff] %v413_v9 }
 0x13e   :  { %417 = vst [vmem:[%s950_s5 + $0x10] sm:$0xff] %v414_v10 }

// kernel: unet_forward.22
= control target key start
LH: loop header
LB: loop body
LE: loop exit
PB: predicated region body
PF: predicated region fallthrough
CT: control target
= control target key end

     0   :  { %s132_s0 = inlined_call_operand.vmem [shape: f32[2,4,3,128], index: 0, kind: input, shape index: {}]   ;;  %s133_s1 = inlined_call_operand.vmem [shape: f32[2,2,1,128], index: 1, kind: output, shape index: {}]  }
   0x1   :  { %v8_v0 = vld [vmem:[%s132_s0] sm:$0x1]  ;;  %v10_v1 = vld [vmem:[%s132_s0 + $0x1] sm:$0x1]  ;;  %v48_v2 = vld [vmem:[%s132_s0 + $0x4] sm:$0x1] }
   0x2   :  { %v50_v3 = vld [vmem:[%s132_s0 + $0x5] sm:$0x1]  ;;  %v17_v4 = vmax.f32 %v8_v0, %v10_v1  ;;  %v9_v5 = vld [vmem:[%s132_s0 + $0x10] sm:$0x1]  ;;  %v11_v6 = vld [vmem:[%s132_s0 + $0x11] sm:$0x1] }
   0x3   :  { %v19_v7 = vmax.f32 %v48_v2, %v50_v3  ;;  %v49_v8 = vld [vmem:[%s132_s0 + $0x14] sm:$0x1]  ;;  %v51_v9 = vld [vmem:[%s132_s0 + $0x15] sm:$0x1]  ;;  %v18_v10 = vmax.f32 %v9_v5, %v11_v6  ;;  %v52_v11 = vld [vmem:[%s132_s0 + $0x8] sm:$0x1] }
   0x4   :  { %v20_v12 = vmax.f32 %v49_v8, %v51_v9  ;;  %v54_v13 = vld [vmem:[%s132_s0 + $0x9] sm:$0x1]  ;;  %v56_v14 = vld [vmem:[%s132_s0 + $0xc] sm:$0x1]  ;;  %v58_v15 = vld [vmem:[%s132_s0 + $0xd] sm:$0x1] }
   0x5   :  { %v21_v16 = vmax.f32 %v17_v4, %v19_v7  ;;  %v35_v17 = vmax.f32 %v52_v11, %v54_v13  ;;  %v37_v18 = vmax.f32 %v56_v14, %v58_v15  ;;  %v53_v19 = vld [vmem:[%s132_s0 + $0x18] sm:$0x1]  ;;  %v55_v20 = vld [vmem:[%s132_s0 + $0x19] sm:$0x1]  ;;  %v57_v21 = vld [vmem:[%s132_s0 + $0x1c] sm:$0x1] }
   0x6   :  { %v22_v22 = vmax.f32 %v18_v10, %v20_v12  ;;  %v59_v23 = vld [vmem:[%s132_s0 + $0x1d] sm:$0x1]  ;;  %v36_v24 = vmax.f32 %v53_v19, %v55_v20 }
   0x7   :  { %23 = vst [vmem:[%s133_s1] sm:$0x1] %v21_v16  ;;  %v39_v25 = vmax.f32 %v35_v17, %v37_v18  ;;  %v38_v26 = vmax.f32 %v57_v21, %v59_v23 }
   0x8   :  { %24 = vst [vmem:[%s133_s1 + $0x2] sm:$0x1] %v22_v22 }
   0x9   :  { %60 = vst [vmem:[%s133_s1 + $0x1] sm:$0x1] %v39_v25  ;;  %v40_v27 = vmax.f32 %v36_v24, %v38_v26 }
   0xb   :  { %61 = vst [vmem:[%s133_s1 + $0x3] sm:$0x1] %v40_v27 }

// kernel: unet_forward.21
= control target key start
LH: loop header
LB: loop body
LE: loop exit
PB: predicated region body
PF: predicated region fallthrough
CT: control target
= control target key end

     0   :  { %vm1055_vm0 = vmmov 0   ;;  %s1637_s1 = inlined_call_operand.vmem [shape: f32[1152,128], index: 1, kind: input, shape index: {}]   ;;  %s1638_s0 = inlined_call_operand.vmem [shape: f32[24,1152], index: 0, kind: input, shape index: {}]   ;;  %s1639_s2 = inlined_call_operand.vmem [shape: f32[1,128], index: 2, kind: input, shape index: {}]   ;;  %s1640_s3 = inlined_call_operand.vmem [shape: f32[1,128], index: 3, kind: input, shape index: {}]   ;;  %s1641_s4 = inlined_call_operand.vmem [shape: f32[1,128], index: 4, kind: input, shape index: {}]   ;;  %s1642_s5 = inlined_call_operand.vmem [shape: f32[24,128], index: 5, kind: output, shape index: {}]  }
   0x1   :  { %v63_v0 = vld [vmem:[%s1637_s1 + $0x80] sm:$0xff]  ;;  %v64_v1 = vld [vmem:[%s1637_s1 + $0x88] sm:$0xff]  ;;  %v65_v11 = vld [vmem:[%s1637_s1 + $0x90] sm:$0xff] }
   0x2   :  { %v95_v2 = vld [vmem:[%s1637_s1 + $0x180] sm:$0xff]  ;;  %v881_v3 = vpack.c.bf16 %v64_v1, %v63_v0  ;;  %v96_v4 = vld [vmem:[%s1637_s1 + $0x188] sm:$0xff]  ;;  %v66_v13 = vld [vmem:[%s1637_s1 + $0x98] sm:$0xff] }
   0x3   :  { %v47_v5 = vld [vmem:[%s1637_s1] sm:$0xff]  ;;  %v48_v6 = vld [vmem:[%s1637_s1 + $0x8] sm:$0xff]  ;;  %v913_v7 = vpack.c.bf16 %v96_v4, %v95_v2  ;;  %v97_v14 = vld [vmem:[%s1637_s1 + $0x190] sm:$0xff]  ;;  %v885_v16 = vpack.c.bf16 %v66_v13, %v65_v11 }
   0x4   :  { %v883_v8 = vpack.c.bf16 %v48_v6, %v47_v5  ;;  %v79_v9 = vld [vmem:[%s1637_s1 + $0x100] sm:$0xff]  ;;  %v80_v10 = vld [vmem:[%s1637_s1 + $0x108] sm:$0xff]  ;;  %882 = vmatprep.subr.bf16.mxu0 %v881_v3  ;;  %v98_v15 = vld [vmem:[%s1637_s1 + $0x198] sm:$0xff] }
   0x5   :  { %v915_v12 = vpack.c.bf16 %v80_v10, %v79_v9  ;;  %914 = vmatprep.subr.bf16.mxu1 %v913_v7  ;;  %v917_v17 = vpack.c.bf16 %v98_v15, %v97_v14  ;;  %v49_v18 = vld [vmem:[%s1637_s1 + $0x10] sm:$0xff]  ;;  %v50_v19 = vld [vmem:[%s1637_s1 + $0x18] sm:$0xff]  ;;  %v67_v23 = vld [vmem:[%s1637_s1 + $0xa0] sm:$0xff] }
   0x6   :  { %884 = vmatpush3.bf16.msra.mxu0 %v883_v8  ;;  %v81_v20 = vld [vmem:[%s1637_s1 + $0x110] sm:$0xff]  ;;  %v887_v21 = vpack.c.bf16 %v50_v19, %v49_v18  ;;  %v82_v22 = vld [vmem:[%s1637_s1 + $0x118] sm:$0xff]  ;;  %v68_v24 = vld [vmem:[%s1637_s1 + $0xa8] sm:$0xff] }
   0x7   :  { %916 = vmatpush3.bf16.msra.mxu1 %v915_v12  ;;  %886 = vmatprep.subr.bf16.mxu0 %v885_v16  ;;  %v919_v25 = vpack.c.bf16 %v82_v22, %v81_v20  ;;  %v889_v26 = vpack.c.bf16 %v68_v24, %v67_v23  ;;  %v99_v27 = vld [vmem:[%s1637_s1 + $0x1a0] sm:$0xff]  ;;  %v100_v28 = vld [vmem:[%s1637_s1 + $0x1a8] sm:$0xff]  ;;  %v69_v35 = vld [vmem:[%s1637_s1 + $0xb0] sm:$0xff] }
   0x8   :  { %918 = vmatprep.subr.bf16.mxu1 %v917_v17  ;;  %v51_v29 = vld [vmem:[%s1637_s1 + $0x20] sm:$0xff]  ;;  %v921_v30 = vpack.c.bf16 %v100_v28, %v99_v27  ;;  %v52_v31 = vld [vmem:[%s1637_s1 + $0x28] sm:$0xff]  ;;  %v70_v36 = vld [vmem:[%s1637_s1 + $0xb8] sm:$0xff] }
   0x9   :  { %v83_v32 = vld [vmem:[%s1637_s1 + $0x120] sm:$0xff]  ;;  %v84_v33 = vld [vmem:[%s1637_s1 + $0x128] sm:$0xff]  ;;  %v891_v34 = vpack.c.bf16 %v52_v31, %v51_v29  ;;  %v101_v37 = vld [vmem:[%s1637_s1 + $0x1b0] sm:$0xff]  ;;  %v893_v39 = vpack.c.bf16 %v70_v36, %v69_v35 }
   0xa   :  { %888 = vmatpush3.bf16.msra.mxu0 %v887_v21  ;;  %v923_v38 = vpack.c.bf16 %v84_v33, %v83_v32  ;;  %v102_v40 = vld [vmem:[%s1637_s1 + $0x1b8] sm:$0xff]  ;;  %v53_v41 = vld [vmem:[%s1637_s1 + $0x30] sm:$0xff]  ;;  %v71_v46 = vld [vmem:[%s1637_s1 + $0xc0] sm:$0xff] }
   0xb   :  { %920 = vmatpush3.bf16.msra.mxu1 %v919_v25  ;;  %890 = vmatprep.subr.bf16.mxu0 %v889_v26  ;;  %v54_v42 = vld [vmem:[%s1637_s1 + $0x38] sm:$0xff]  ;;  %v925_v43 = vpack.c.bf16 %v102_v40, %v101_v37  ;;  %v85_v44 = vld [vmem:[%s1637_s1 + $0x130] sm:$0xff]  ;;  %v72_v47 = vld [vmem:[%s1637_s1 + $0xc8] sm:$0xff] }
   0xc   :  { %922 = vmatprep.subr.bf16.mxu1 %v921_v30  ;;  %v86_v45 = vld [vmem:[%s1637_s1 + $0x138] sm:$0xff]  ;;  %v103_v48 = vld [vmem:[%s1637_s1 + $0x1c0] sm:$0xff]  ;;  %v104_v49 = vld [vmem:[%s1637_s1 + $0x1c8] sm:$0xff]  ;;  %v895_v50 = vpack.c.bf16 %v54_v42, %v53_v41  ;;  %v897_v52 = vpack.c.bf16 %v72_v47, %v71_v46 }
   0xd   :  { %v927_v51 = vpack.c.bf16 %v86_v45, %v85_v44  ;;  %v55_v53 = vld [vmem:[%s1637_s1 + $0x40] sm:$0xff]  ;;  %v56_v54 = vld [vmem:[%s1637_s1 + $0x48] sm:$0xff]  ;;  %v929_v56 = vpack.c.bf16 %v104_v49, %v103_v48  ;;  %v73_v58 = vld [vmem:[%s1637_s1 + $0xd0] sm:$0xff] }
   0xe   :  { %892 = vmatpush3.bf16.msra.mxu0 %v891_v34  ;;  %v87_v55 = vld [vmem:[%s1637_s1 + $0x140] sm:$0xff]  ;;  %v88_v57 = vld [vmem:[%s1637_s1 + $0x148] sm:$0xff]  ;;  %v74_v59 = vld [vmem:[%s1637_s1 + $0xd8] sm:$0xff]  ;;  %v899_v62 = vpack.c.bf16 %v56_v54, %v55_v53 }
   0xf   :  { %924 = vmatpush3.bf16.msra.mxu1 %v923_v38  ;;  %894 = vmatprep.subr.bf16.mxu0 %v893_v39  ;;  %v105_v60 = vld [vmem:[%s1637_s1 + $0x1d0] sm:$0xff]  ;;  %v106_v61 = vld [vmem:[%s1637_s1 + $0x1d8] sm:$0xff]  ;;  %v931_v63 = vpack.c.bf16 %v88_v57, %v87_v55  ;;  %v901_v0 = vpack.c.bf16 %v74_v59, %v73_v58  ;;  %v75_v6 = vld [vmem:[%s1637_s1 + $0xe0] sm:$0xff] }
  0x10   :  { %926 = vmatprep.subr.bf16.mxu1 %v925_v43  ;;  %v57_v1 = vld [vmem:[%s1637_s1 + $0x50] sm:$0xff]  ;;  %v58_v2 = vld [vmem:[%s1637_s1 + $0x58] sm:$0xff]  ;;  %v933_v4 = vpack.c.bf16 %v106_v61, %v105_v60  ;;  %v76_v7 = vld [vmem:[%s1637_s1 + $0xe8] sm:$0xff] }
  0x11   :  { %v89_v3 = vld [vmem:[%s1637_s1 + $0x150] sm:$0xff]  ;;  %v90_v5 = vld [vmem:[%s1637_s1 + $0x158] sm:$0xff]  ;;  %v107_v8 = vld [vmem:[%s1637_s1 + $0x1e0] sm:$0xff]  ;;  %v903_v10 = vpack.c.bf16 %v58_v2, %v57_v1  ;;  %v905_v14 = vpack.c.bf16 %v76_v7, %v75_v6 }
  0x12   :  { %896 = vmatpush3.bf16.msra.mxu0 %v895_v50  ;;  %v108_v9 = vld [vmem:[%s1637_s1 + $0x1e8] sm:$0xff]  ;;  %v59_v11 = vld [vmem:[%s1637_s1 + $0x60] sm:$0xff]  ;;  %v935_v13 = vpack.c.bf16 %v90_v5, %v89_v3  ;;  %v23_v17 = vld [vmem:[%s1638_s0 + $0x18] sm:$0xff] }
  0x13   :  { %928 = vmatpush3.bf16.msra.mxu1 %v927_v51  ;;  %898 = vmatprep.subr.bf16.mxu0 %v897_v52  ;;  %v60_v12 = vld [vmem:[%s1637_s1 + $0x68] sm:$0xff]  ;;  %v91_v15 = vld [vmem:[%s1637_s1 + $0x160] sm:$0xff]  ;;  %v937_v18 = vpack.c.bf16 %v108_v9, %v107_v8  ;;  %v77_v20 = vld [vmem:[%s1637_s1 + $0xf0] sm:$0xff] }
  0x14   :  { %930 = vmatprep.subr.bf16.mxu1 %v929_v56  ;;  %v21_v16 = vld [vmem:[%s1638_s0 + $0x8] sm:$0xff]  ;;  %v78_v21 = vld [vmem:[%s1637_s1 + $0xf8] sm:$0xff]  ;;  %v109_v22 = vld [vmem:[%s1637_s1 + $0x1f0] sm:$0xff]  ;;  %342 = vmatprep.mubr.f32.mxu1 %v23_v17  ;;  %v907_v24 = vpack.c.bf16 %v60_v12, %v59_v11 }
  0x15   :  { %v92_v19 = vld [vmem:[%s1637_s1 + $0x168] sm:$0xff]  ;;  %262 = vmatprep.mubr.f32.mxu0 %v21_v16  ;;  %v110_v23 = vld [vmem:[%s1637_s1 + $0x1f8] sm:$0xff]  ;;  %v909_v26 = vpack.c.bf16 %v78_v21, %v77_v20  ;;  %v61_v27 = vld [vmem:[%s1637_s1 + $0x70] sm:$0xff] }
  0x16   :  { %900 = vmatpush3.bf16.msra.mxu0 %v899_v62  ;;  %v939_v25 = vpack.c.bf16 %v92_v19, %v91_v15  ;;  %v62_v28 = vld [vmem:[%s1637_s1 + $0x78] sm:$0xff]  ;;  %v93_v29 = vld [vmem:[%s1637_s1 + $0x170] sm:$0xff]  ;;  %v941_v30 = vpack.c.bf16 %v110_v23, %v109_v22  ;;  %v127_v32 = vld [vmem:[%s1637_s1 + $0x280] sm:$0xff] }
  0x17   :  { %932 = vmatpush3.bf16.msra.mxu1 %v931_v63  ;;  %902 = vmatprep.subr.bf16.mxu0 %v901_v0  ;;  %v94_v31 = vld [vmem:[%s1637_s1 + $0x178] sm:$0xff]  ;;  %v128_v33 = vld [vmem:[%s1637_s1 + $0x288] sm:$0xff]  ;;  %v159_v34 = vld [vmem:[%s1637_s1 + $0x380] sm:$0xff]  ;;  %v911_v36 = vpack.c.bf16 %v62_v28, %v61_v27 }
  0x18   :  { %934 = vmatprep.subr.bf16.mxu1 %v933_v4  ;;  %v160_v35 = vld [vmem:[%s1637_s1 + $0x388] sm:$0xff]  ;;  %v943_v37 = vpack.c.bf16 %v94_v31, %v93_v29  ;;  %v945_v38 = vpack.c.bf16 %v128_v33, %v127_v32  ;;  %v111_v39 = vld [vmem:[%s1637_s1 + $0x200] sm:$0xff]  ;;  %v129_v44 = vld [vmem:[%s1637_s1 + $0x290] sm:$0xff] }
  0x19   :  { %v112_v40 = vld [vmem:[%s1637_s1 + $0x208] sm:$0xff]  ;;  %v143_v41 = vld [vmem:[%s1637_s1 + $0x300] sm:$0xff]  ;;  %v977_v42 = vpack.c.bf16 %v160_v35, %v159_v34  ;;  %v130_v45 = vld [vmem:[%s1637_s1 + $0x298] sm:$0xff] }
  0x1a   :  { %904 = vmatpush3.bf16.msra.mxu0 %v903_v10  ;;  %v144_v43 = vld [vmem:[%s1637_s1 + $0x308] sm:$0xff]  ;;  %v161_v46 = vld [vmem:[%s1637_s1 + $0x390] sm:$0xff]  ;;  %v162_v47 = vld [vmem:[%s1637_s1 + $0x398] sm:$0xff]  ;;  %v947_v50 = vpack.c.bf16 %v112_v40, %v111_v39  ;;  %v949_v52 = vpack.c.bf16 %v130_v45, %v129_v44 }
  0x1b   :  { %936 = vmatpush3.bf16.msra.mxu1 %v935_v13  ;;  %906 = vmatprep.subr.bf16.mxu0 %v905_v14  ;;  %v20_v48 = vld [vmem:[%s1638_s0] sm:$0xff]  ;;  %v22_v49 = vld [vmem:[%s1638_s0 + $0x10] sm:$0xff]  ;;  %v979_v51 = vpack.c.bf16 %v144_v43, %v143_v41  ;;  %v114_v54 = vld [vmem:[%s1637_s1 + $0x218] sm:$0xff]  ;;  %v981_v56 = vpack.c.bf16 %v162_v47, %v161_v46 }
  0x1c   :  { %938 = vmatprep.subr.bf16.mxu1 %v937_v18  ;;  %v113_v53 = vld [vmem:[%s1637_s1 + $0x210] sm:$0xff]  ;;  %v146_v57 = vld [vmem:[%s1637_s1 + $0x318] sm:$0xff]  ;;  %v131_v58 = vld [vmem:[%s1637_s1 + $0x2a0] sm:$0xff] }
  0x1d   :  { %v145_v55 = vld [vmem:[%s1637_s1 + $0x310] sm:$0xff]  ;;  %v132_v59 = vld [vmem:[%s1637_s1 + $0x2a8] sm:$0xff]  ;;  %v163_v60 = vld [vmem:[%s1637_s1 + $0x3a0] sm:$0xff]  ;;  %v951_v62 = vpack.c.bf16 %v114_v54, %v113_v53 }
  0x1e   :  { %908 = vmatpush3.bf16.msra.mxu0 %v907_v24  ;;  %v164_v61 = vld [vmem:[%s1637_s1 + $0x3a8] sm:$0xff]  ;;  %v115_v63 = vld [vmem:[%s1637_s1 + $0x220] sm:$0xff]  ;;  %v983_v1 = vpack.c.bf16 %v146_v57, %v145_v55  ;;  %v953_v2 = vpack.c.bf16 %v132_v59, %v131_v58  ;;  %v30_v5 = vld [vmem:[%s1638_s0 + $0x50] sm:$0xff] }
  0x1f   :  { %940 = vmatpush3.bf16.msra.mxu1 %v939_v25  ;;  %910 = vmatprep.subr.bf16.mxu0 %v909_v26  ;;  %v116_v0 = vld [vmem:[%s1637_s1 + $0x228] sm:$0xff]  ;;  %v147_v3 = vld [vmem:[%s1637_s1 + $0x320] sm:$0xff]  ;;  %v985_v6 = vpack.c.bf16 %v164_v61, %v163_v60  ;;  %v133_v7 = vld [vmem:[%s1637_s1 + $0x2b0] sm:$0xff] }
  0x20   :  { %942 = vmatprep.subr.bf16.mxu1 %v941_v30  ;;  %v148_v4 = vld [vmem:[%s1637_s1 + $0x328] sm:$0xff]  ;;  %v134_v8 = vld [vmem:[%s1637_s1 + $0x2b8] sm:$0xff]  ;;  %v165_v9 = vld [vmem:[%s1637_s1 + $0x3b0] sm:$0xff]  ;;  %v955_v13 = vpack.c.bf16 %v116_v0, %v115_v63 }
  0x21   :  { %v166_v10 = vld [vmem:[%s1637_s1 + $0x3b8] sm:$0xff]  ;;  %v29_v11 = vld [vmem:[%s1638_s0 + $0x48] sm:$0xff]  ;;  %v32_v12 = vld [vmem:[%s1638_s0 + $0x60] sm:$0xff]  ;;  %v987_v17 = vpack.c.bf16 %v148_v4, %v147_v3  ;;  %v957_v18 = vpack.c.bf16 %v134_v8, %v133_v7 }
  0x22   :  { %912 = vmatpush3.bf16.msra.mxu0 %v911_v36  ;;  %v117_v14 = vld [vmem:[%s1637_s1 + $0x230] sm:$0xff]  ;;  %v118_v15 = vld [vmem:[%s1637_s1 + $0x238] sm:$0xff]  ;;  %v989_v22 = vpack.c.bf16 %v166_v10, %v165_v9  ;;  %v135_v23 = vld [vmem:[%s1637_s1 + $0x2c0] sm:$0xff] }
  0x23   :  { %944 = vmatpush3.bf16.msra.mxu1 %v943_v37  ;;  %946 = vmatprep.subr.bf16.mxu0 %v945_v38  ;;  %v31_v16 = vld [vmem:[%s1638_s0 + $0x58] sm:$0xff]  ;;  %v149_v19 = vld [vmem:[%s1637_s1 + $0x330] sm:$0xff]  ;;  %v136_v24 = vld [vmem:[%s1637_s1 + $0x2c8] sm:$0xff]  ;;  %v959_v29 = vpack.c.bf16 %v118_v15, %v117_v14 }
  0x24   :  { %978 = vmatprep.subr.bf16.mxu1 %v977_v42  ;;  %v150_v20 = vld [vmem:[%s1637_s1 + $0x338] sm:$0xff]  ;;  %v167_v25 = vld [vmem:[%s1637_s1 + $0x3c0] sm:$0xff]  ;;  %v168_v26 = vld [vmem:[%s1637_s1 + $0x3c8] sm:$0xff]  ;;  %v961_v33 = vpack.c.bf16 %v136_v24, %v135_v23 }
  0x25   :  { %263 = vmatmul.mubr.f32.vlgmr.msra.gmra.mrb[0].mxu0 %v20_v48  ;;  %v39_v21 = vld [vmem:[%s1638_s0 + $0x98] sm:$0xff]  ;;  %v38_v27 = vld [vmem:[%s1638_s0 + $0x90] sm:$0xff]  ;;  %v41_v28 = vld [vmem:[%s1638_s0 + $0xa8] sm:$0xff]  ;;  %v991_v32 = vpack.c.bf16 %v150_v20, %v149_v19  ;;  %v993_v37 = vpack.c.bf16 %v168_v26, %v167_v25  ;;  %v1054_v19 = vmov 0.0|0.0  }
  0x26   :  { %343 = vmatmul.mubr.f32.vlgmr.msra.gmra.mrb[0].mxu1 %v22_v49  ;;  %948 = vmatpush3.bf16.msra.mxu0 %v947_v50  ;;  %v119_v30 = vld [vmem:[%s1637_s1 + $0x240] sm:$0xff]  ;;  %v120_v34 = vld [vmem:[%s1637_s1 + $0x248] sm:$0xff]  ;;  %v137_v38 = vld [vmem:[%s1637_s1 + $0x2d0] sm:$0xff] }
  0x27   :  { %980 = vmatpush3.bf16.msra.mxu1 %v979_v51  ;;  %950 = vmatprep.subr.bf16.mxu0 %v949_v52  ;;  %v40_v31 = vld [vmem:[%s1638_s0 + $0xa0] sm:$0xff]  ;;  %v152_v36 = vld [vmem:[%s1637_s1 + $0x348] sm:$0xff]  ;;  %v138_v39 = vld [vmem:[%s1637_s1 + $0x2d8] sm:$0xff]  ;;  %v963_v44 = vpack.c.bf16 %v120_v34, %v119_v30 }
  0x28   :  { %982 = vmatprep.subr.bf16.mxu1 %v981_v56  ;;  %267 = vmatprep.mubr.f32.mxu0 %v30_v5  ;;  %v151_v35 = vld [vmem:[%s1637_s1 + $0x340] sm:$0xff]  ;;  %v25_v40 = vld [vmem:[%s1638_s0 + $0x28] sm:$0xff]  ;;  %v169_v41 = vld [vmem:[%s1637_s1 + $0x3d0] sm:$0xff]  ;;  %v965_v46 = vpack.c.bf16 %v138_v39, %v137_v38  ;;  %v1056_v39 = vmov 0.0  }
  0x29   :  { %347 = vmatprep.mubr.f32.mxu1 %v32_v12  ;;  %268 = vmatmul.mubr.f32.gmra.mrb[2].mxu0 %v29_v11  ;;  %v170_v42 = vld [vmem:[%s1637_s1 + $0x3d8] sm:$0xff]  ;;  %v995_v45 = vpack.c.bf16 %v152_v36, %v151_v35  ;;  %v121_v47 = vld [vmem:[%s1637_s1 + $0x250] sm:$0xff]  ;;  %v139_v52 = vld [vmem:[%s1637_s1 + $0x2e0] sm:$0xff] }
  0x2a   :  { %952 = vmatpush3.bf16.msra.mxu0 %v951_v62  ;;  %348 = vmatmul.mubr.f32.gmra.mrb[2].mxu1 %v31_v16  ;;  %v27_v43 = vld [vmem:[%s1638_s0 + $0x38] sm:$0xff]  ;;  %v153_v49 = vld [vmem:[%s1637_s1 + $0x350] sm:$0xff]  ;;  %v997_v50 = vpack.c.bf16 %v170_v42, %v169_v41  ;;  %v140_v53 = vld [vmem:[%s1637_s1 + $0x2e8] sm:$0xff] }
  0x2b   :  { %984 = vmatpush3.bf16.msra.mxu1 %v983_v1  ;;  %954 = vmatprep.subr.bf16.mxu0 %v953_v2  ;;  %v122_v48 = vld [vmem:[%s1637_s1 + $0x258] sm:$0xff]  ;;  %v171_v54 = vld [vmem:[%s1637_s1 + $0x3e0] sm:$0xff]  ;;  %v172_v55 = vld [vmem:[%s1637_s1 + $0x3e8] sm:$0xff]  ;;  %v969_v58 = vpack.c.bf16 %v140_v53, %v139_v52 }
  0x2c   :  { %986 = vmatprep.subr.bf16.mxu1 %v985_v6  ;;  %272 = vmatprep.mubr.f32.mxu0 %v39_v21  ;;  %v154_v51 = vld [vmem:[%s1637_s1 + $0x358] sm:$0xff]  ;;  %v967_v56 = vpack.c.bf16 %v122_v48, %v121_v47  ;;  %v123_v59 = vld [vmem:[%s1637_s1 + $0x260] sm:$0xff]  ;;  %v124_v60 = vld [vmem:[%s1637_s1 + $0x268] sm:$0xff]  ;;  %v1001_v62 = vpack.c.bf16 %v172_v55, %v171_v54 }
  0x2d   :  { %352 = vmatprep.mubr.f32.mxu1 %v41_v28  ;;  %273 = vmatmul.mubr.f32.gmra.mrb[4].mxu0 %v38_v27  ;;  %v999_v57 = vpack.c.bf16 %v154_v51, %v153_v49  ;;  %v155_v61 = vld [vmem:[%s1637_s1 + $0x360] sm:$0xff]  ;;  %v156_v63 = vld [vmem:[%s1637_s1 + $0x368] sm:$0xff]  ;;  %v141_v0 = vld [vmem:[%s1637_s1 + $0x2f0] sm:$0xff]  ;;  %v971_v4 = vpack.c.bf16 %v124_v60, %v123_v59 }
  0x2e   :  { %956 = vmatpush3.bf16.msra.mxu0 %v955_v13  ;;  %353 = vmatmul.mubr.f32.gmra.mrb[4].mxu1 %v40_v31  ;;  %v142_v1 = vld [vmem:[%s1637_s1 + $0x2f8] sm:$0xff]  ;;  %v173_v2 = vld [vmem:[%s1637_s1 + $0x3f0] sm:$0xff]  ;;  %v1003_v5 = vpack.c.bf16 %v156_v63, %v155_v61  ;;  %v175_v14 = vld [vmem:[%s1637_s1 + $0x400] sm:$0xff] }
  0x2f   :  { %988 = vmatpush3.bf16.msra.mxu1 %v987_v17  ;;  %958 = vmatprep.subr.bf16.mxu0 %v957_v18  ;;  %v174_v3 = vld [vmem:[%s1637_s1 + $0x3f8] sm:$0xff]  ;;  %v973_v6 = vpack.c.bf16 %v142_v1, %v141_v0  ;;  %v125_v7 = vld [vmem:[%s1637_s1 + $0x270] sm:$0xff]  ;;  %v176_v15 = vld [vmem:[%s1637_s1 + $0x408] sm:$0xff] }
  0x30   :  { %990 = vmatprep.subr.bf16.mxu1 %v989_v22  ;;  %422 = vmatprep.mubr.f32.mxu0 %v25_v40  ;;  %v126_v8 = vld [vmem:[%s1637_s1 + $0x278] sm:$0xff]  ;;  %v1005_v9 = vpack.c.bf16 %v174_v3, %v173_v2  ;;  %v157_v10 = vld [vmem:[%s1637_s1 + $0x370] sm:$0xff]  ;;  %v24_v16 = vld [vmem:[%s1638_s0 + $0x20] sm:$0xff]  ;;  %v1010_v17 = vpack.c.bf16 %v176_v15, %v175_v14 }
  0x31   :  { %502 = vmatprep.mubr.f32.mxu1 %v27_v43  ;;  %v158_v11 = vld [vmem:[%s1637_s1 + $0x378] sm:$0xff]  ;;  %v975_v12 = vpack.c.bf16 %v126_v8, %v125_v7  ;;  %v26_v18 = vld [vmem:[%s1638_s0 + $0x30] sm:$0xff]  ;;  %v33_v23 = vld [vmem:[%s1638_s0 + $0x68] sm:$0xff] }
  0x32   :  { %960 = vmatpush3.bf16.msra.mxu0 %v959_v29  ;;  %v1007_v13 = vpack.c.bf16 %v158_v11, %v157_v10  ;;  %v177_v20 = vld [vmem:[%s1637_s1 + $0x410] sm:$0xff]  ;;  %v178_v21 = vld [vmem:[%s1637_s1 + $0x418] sm:$0xff]  ;;  %v36_v24 = vld [vmem:[%s1638_s0 + $0x80] sm:$0xff] }
  0x33   :  { %992 = vmatpush3.bf16.msra.mxu1 %v991_v32  ;;  %962 = vmatprep.subr.bf16.mxu0 %v961_v33  ;;  %v34_v22 = vld [vmem:[%s1638_s0 + $0x70] sm:$0xff]  ;;  %v1013_v25 = vpack.c.bf16 %v178_v21, %v177_v20  ;;  %v35_v26 = vld [vmem:[%s1638_s0 + $0x78] sm:$0xff]  ;;  %v179_v27 = vld [vmem:[%s1637_s1 + $0x420] sm:$0xff] }
  0x34   :  { %994 = vmatprep.subr.bf16.mxu1 %v993_v37  ;;  %v180_v28 = vld [vmem:[%s1637_s1 + $0x428] sm:$0xff]  ;;  %v43_v29 = vld [vmem:[%s1638_s0 + $0xb8] sm:$0xff]  ;;  %v42_v30 = vld [vmem:[%s1638_s0 + $0xb0] sm:$0xff] }
  0x35   :  { %v45_v31 = vld [vmem:[%s1638_s0 + $0xc8] sm:$0xff]  ;;  %v1016_v32 = vpack.c.bf16 %v180_v28, %v179_v27  ;;  %v44_v33 = vld [vmem:[%s1638_s0 + $0xc0] sm:$0xff]  ;;  %v181_v34 = vld [vmem:[%s1637_s1 + $0x430] sm:$0xff] }
  0x36   :  { %964 = vmatpush3.bf16.msra.mxu0 %v963_v44  ;;  %v182_v35 = vld [vmem:[%s1637_s1 + $0x438] sm:$0xff]  ;;  %v183_v37 = vld [vmem:[%s1637_s1 + $0x440] sm:$0xff]  ;;  %v184_v38 = vld [vmem:[%s1637_s1 + $0x448] sm:$0xff] }
  0x37   :  { %996 = vmatpush3.bf16.msra.mxu1 %v995_v45  ;;  %966 = vmatprep.subr.bf16.mxu0 %v965_v46  ;;  %v1019_v36 = vpack.c.bf16 %v182_v35, %v181_v34  ;;  %v1022_v40 = vpack.c.bf16 %v184_v38, %v183_v37  ;;  %v185_v41 = vld [vmem:[%s1637_s1 + $0x450] sm:$0xff]  ;;  %v186_v42 = vld [vmem:[%s1637_s1 + $0x458] sm:$0xff]  ;;  %v187_v44 = vld [vmem:[%s1637_s1 + $0x460] sm:$0xff] }
  0x38   :  { %998 = vmatprep.subr.bf16.mxu1 %v997_v50  ;;  %v1025_v43 = vpack.c.bf16 %v186_v42, %v185_v41  ;;  %v188_v45 = vld [vmem:[%s1637_s1 + $0x468] sm:$0xff]  ;;  %v189_v47 = vld [vmem:[%s1637_s1 + $0x470] sm:$0xff]  ;;  %v190_v48 = vld [vmem:[%s1637_s1 + $0x478] sm:$0xff] }
  0x39   :  { %v1028_v46 = vpack.c.bf16 %v188_v45, %v187_v44  ;;  %v1031_v49 = vpack.c.bf16 %v190_v48, %v189_v47  ;;  %v28_v50 = vld [vmem:[%s1638_s0 + $0x40] sm:$0xff]  ;;  %v37_v51 = vld [vmem:[%s1638_s0 + $0x88] sm:$0xff]  ;;  %v46_v52 = vld [vmem:[%s1638_s0 + $0xd0] sm:$0xff] }
  0x3a   :  { %968 = vmatpush3.bf16.msra.mxu0 %v967_v56  ;;  %v656_v55 = vld [vmem:[%s1639_s2] ss:$0 sm:$0xff] }
  0x3b   :  { %1000 = vmatpush3.bf16.msra.mxu1 %v999_v57  ;;  %970 = vmatprep.subr.bf16.mxu0 %v969_v58 }
  0x3c   :  { %1002 = vmatprep.subr.bf16.mxu1 %v1001_v62 }
  0x3e   :  { %972 = vmatpush3.bf16.msra.mxu0 %v971_v4 }
  0x3f   :  { %1004 = vmatpush3.bf16.msra.mxu1 %v1003_v5  ;;  %974 = vmatprep.subr.bf16.mxu0 %v973_v6 }
  0x40   :  { %1006 = vmatprep.subr.bf16.mxu1 %v1005_v9 }
  0x42   :  { %976 = vmatpush3.bf16.msra.mxu0 %v975_v12 }
  0x43   :  { %1008 = vmatpush3.bf16.msra.mxu1 %v1007_v13  ;;  %1009 = vmatprep.subr.bf16.mxu0 %v1054_v19 }
  0x44   :  { %1033 = vmatprep.subr.bf16.mxu1 %v1054_v19 }
  0x45   :  { %423 = vmatmul.mubr.f32.vlgmr.msra.gmra.mrb[6].mxu0 %v24_v16 }
  0x46   :  { %503 = vmatmul.mubr.f32.vlgmr.msra.gmra.mrb[6].mxu1 %v26_v18  ;;  %1011 = vmatpush3.bf16.msra.mxu0 %v1010_v17 }
  0x47   :  { %1041 = vmatpush3.bf16.msra.mxu1 %v1010_v17  ;;  %427 = vmatprep.mubr.f32.mxu0 %v34_v22 }
  0x48   :  { %1012 = vmatprep.subr.bf16.mxu0 %v1054_v19  ;;  %1034 = vmatprep.subr.bf16.mxu1 %v1054_v19 }
  0x49   :  { %428 = vmatmul.mubr.f32.gmra.mrb[8].mxu0 %v33_v23  ;;  %507 = vmatprep.mubr.f32.mxu1 %v36_v24 }
  0x4a   :  { %1014 = vmatpush3.bf16.msra.mxu0 %v1013_v25  ;;  %508 = vmatmul.mubr.f32.gmra.mrb[8].mxu1 %v35_v26 }
  0x4b   :  { %1042 = vmatpush3.bf16.msra.mxu1 %v1013_v25  ;;  %432 = vmatprep.mubr.f32.mxu0 %v43_v29 }
  0x4c   :  { %1015 = vmatprep.subr.bf16.mxu0 %v1054_v19  ;;  %1035 = vmatprep.subr.bf16.mxu1 %v1054_v19 }
  0x4d   :  { %433 = vmatmul.mubr.f32.gmra.mrb[10].mxu0 %v42_v30  ;;  %512 = vmatprep.mubr.f32.mxu1 %v45_v31 }
  0x4e   :  { %1017 = vmatpush3.bf16.msra.mxu0 %v1016_v32  ;;  %513 = vmatmul.mubr.f32.gmra.mrb[10].mxu1 %v44_v33 }
  0x4f   :  { %1043 = vmatpush3.bf16.msra.mxu1 %v1016_v32  ;;  %1018 = vmatprep.subr.bf16.mxu0 %v1054_v19 }
  0x50   :  { %1036 = vmatprep.subr.bf16.mxu1 %v1054_v19  ;;  %872 = vmatprep.mubr.msk.f32.mxu0 %vm1055_vm0, %v1056_v39 }
  0x51   :  { %875 = vmatprep.mubr.msk.f32.mxu1 %vm1055_vm0, %v1056_v39 }
  0x52   :  { %1020 = vmatpush3.bf16.msra.mxu0 %v1019_v36 }
  0x53   :  { %1044 = vmatpush3.bf16.msra.mxu1 %v1019_v36  ;;  %1021 = vmatprep.subr.bf16.mxu0 %v1054_v19 }
  0x54   :  { %1037 = vmatprep.subr.bf16.mxu1 %v1054_v19 }
  0x56   :  { %1023 = vmatpush3.bf16.msra.mxu0 %v1022_v40 }
  0x57   :  { %1045 = vmatpush3.bf16.msra.mxu1 %v1022_v40  ;;  %1024 = vmatprep.subr.bf16.mxu0 %v1054_v19 }
  0x58   :  { %1038 = vmatprep.subr.bf16.mxu1 %v1054_v19 }
  0x5a   :  { %1026 = vmatpush3.bf16.msra.mxu0 %v1025_v43 }
  0x5b   :  { %1046 = vmatpush3.bf16.msra.mxu1 %v1025_v43  ;;  %1027 = vmatprep.subr.bf16.mxu0 %v1054_v19 }
  0x5c   :  { %1039 = vmatprep.subr.bf16.mxu1 %v1054_v19 }
  0x5e   :  { %1029 = vmatpush3.bf16.msra.mxu0 %v1028_v46 }
  0x5f   :  { %1047 = vmatpush3.bf16.msra.mxu1 %v1028_v46  ;;  %1030 = vmatprep.subr.bf16.mxu0 %v1054_v19 }
  0x60   :  { %1040 = vmatprep.subr.bf16.mxu1 %v1054_v19 }
  0x62   :  { %1032 = vmatpush3.bf16.msra.mxu0 %v1031_v49 }
  0x63   :  { %1048 = vmatpush3.bf16.msra.mxu1 %v1031_v49 }
  0x65   :  { %873 = vmatmul.mubr.f32.vlgmr.msra.gmra.mrb[12].mxu0 %v28_v50 }
  0x66   :  { %876 = vmatmul.mubr.f32.vlgmr.msra.gmra.mrb[12].mxu1 %v37_v51 }
  0x67   :  { %878 = vmatprep.mubr.msk.f32.mxu1 %vm1055_vm0, %v1056_v39 }
  0x6a   :  { %879 = vmatmul.mubr.f32.gmra.mrb[14].mxu1 %v46_v52 }
  0xf8   :  { %v689_v53 = vpop.f32.mrb[0].mxu0 }
  0xf9   :  { %v730_v54 = vpop.f32.mrb[0].mxu1  ;;  %v690_v56 = vpop.f32.mrb[1].mxu0 }
  0xfa   :  { %v691_v57 = vadd.f32 %v690_v56, %v689_v53  ;;  %v731_v58 = vpop.f32.mrb[1].mxu1 }
  0xfb   :  { %v732_v59 = vadd.f32 %v731_v58, %v730_v54 }
  0xfc   :  { %v265_v60 = vadd.f32 %v691_v57, %v656_v55  ;;  %v692_v62 = vpop.f32.mrb[2].mxu0 }
  0xfd   :  { %v693_v63 = vpop.f32.mrb[3].mxu0  ;;  %v733_v0 = vpop.f32.mrb[2].mxu1 }
  0xfe   :  { %v345_v61 = vadd.f32 %v732_v59, %v265_v60  ;;  %v694_v1 = vadd.f32 %v693_v63, %v692_v62  ;;  %v734_v2 = vpop.f32.mrb[3].mxu1 }
  0xff   :  { %v735_v3 = vadd.f32 %v734_v2, %v733_v0 }
 0x100   :  { %v270_v4 = vadd.f32 %v694_v1, %v656_v55  ;;  %v695_v5 = vpop.f32.mrb[4].mxu0 }
 0x101   :  { %v696_v6 = vpop.f32.mrb[5].mxu0  ;;  %v736_v7 = vpop.f32.mrb[4].mxu1 }
 0x102   :  { %v350_v8 = vadd.f32 %v735_v3, %v270_v4  ;;  %v697_v9 = vadd.f32 %v696_v6, %v695_v5  ;;  %v737_v10 = vpop.f32.mrb[5].mxu1 }
 0x103   :  { %v738_v11 = vadd.f32 %v737_v10, %v736_v7  ;;  %v629_v7 = vlaneseq }
 0x104   :  { %v275_v12 = vadd.f32 %v697_v9, %v656_v55  ;;  %v621_v9 = vld [vmem:[%s1640_s3] sm:$0x1] }
 0x106   :  { %v355_v13 = vadd.f32 %v738_v11, %v275_v12 }
 0x118   :  { %v771_v14 = vpop.f32.mrb[6].mxu0 }
 0x119   :  { %v812_v15 = vpop.f32.mrb[6].mxu1  ;;  %v772_v16 = vpop.f32.mrb[7].mxu0 }
 0x11a   :  { %v773_v17 = vadd.f32 %v772_v16, %v771_v14  ;;  %v813_v18 = vpop.f32.mrb[7].mxu1 }
 0x11b   :  { %v814_v19 = vadd.f32 %v813_v18, %v812_v15 }
 0x11c   :  { %v425_v20 = vadd.f32 %v773_v17, %v345_v61  ;;  %v774_v21 = vpop.f32.mrb[8].mxu0 }
 0x11d   :  { %v775_v22 = vpop.f32.mrb[9].mxu0  ;;  %v815_v23 = vpop.f32.mrb[8].mxu1 }
 0x11e   :  { %v776_v24 = vadd.f32 %v775_v22, %v774_v21  ;;  %v816_v25 = vpop.f32.mrb[9].mxu1  ;;  %v505_v26 = vadd.f32 %v814_v19, %v425_v20 }
 0x11f   :  { %v817_v27 = vadd.f32 %v816_v25, %v815_v23 }
 0x120   :  { %v430_v28 = vadd.f32 %v776_v24, %v350_v8  ;;  %v777_v29 = vpop.f32.mrb[10].mxu0  ;;  %v630_v8 = vshrl.u32 %v629_v7, 7 }
 0x121   :  { %v778_v30 = vpop.f32.mrb[11].mxu0  ;;  %v818_v31 = vpop.f32.mrb[10].mxu1 }
 0x122   :  { %v779_v32 = vadd.f32 %v778_v30, %v777_v29  ;;  %v819_v33 = vpop.f32.mrb[11].mxu1  ;;  %v510_v34 = vadd.f32 %v817_v27, %v430_v28  ;;  %v631_v10 = vsub.s32 0, %v630_v8 }
 0x123   :  { %v820_v35 = vadd.f32 %v819_v33, %v818_v31 }
 0x124   :  { %v435_v36 = vadd.f32 %v779_v32, %v355_v13  ;;  %v625_v13 = vld [vmem:[%s1641_s4] sm:$0x1] }
 0x126   :  { %v515_v37 = vadd.f32 %v820_v35, %v435_v36 }
 0x138   :  { %v584_v38 = vpop.f32.mrb[12].mxu0 }
 0x139   :  { %v585_v39 = vadd.f32 %v584_v38, %v505_v26  ;;  %v589_v40 = vpop.f32.mrb[12].mxu1  ;;  %v874_v41 = vpop.f32.mrb[13].mxu0 }
 0x13a   :  { %v590_v42 = vadd.f32 %v589_v40, %v510_v34  ;;  %v877_v43 = vpop.f32.mrb[13].mxu1 }
 0x13b   :  { %v607_v44 = vmul.f32 %v585_v39, %v585_v39 }
 0x13c   :  { %v598_v45 = vadd.f32 %v590_v42, %v585_v39  ;;  %v608_v46 = vmul.f32 %v590_v42, %v590_v42 }
 0x13d   :  { %v594_v47 = vpop.f32.mrb[14].mxu1 }
 0x13e   :  { %v610_v48 = vadd.f32 %v608_v46, %v607_v44  ;;  %v595_v49 = vadd.f32 %v594_v47, %v515_v37  ;;  %v880_v50 = vpop.f32.mrb[15].mxu1 }
 0x140   :  { %v599_v51 = vadd.f32 %v598_v45, %v595_v49  ;;  %v609_v52 = vmul.f32 %v595_v49, %v595_v49 }
 0x142   :  { %v600_v53 = vrot.slane %v599_v51, 4  ;;  %v611_v54 = vadd.f32 %v610_v48, %v609_v52 }
 0x144   :  { %v601_v55 = vadd.f32 %v600_v53, %v599_v51  ;;  %v612_v56 = vrot.slane %v611_v54, 4 }
 0x146   :  { %v602_v57 = vrot.slane %v601_v55, 2  ;;  %v613_v58 = vadd.f32 %v612_v56, %v611_v54 }
 0x148   :  { %v603_v59 = vadd.f32 %v602_v57, %v601_v55  ;;  %v614_v60 = vrot.slane %v613_v58, 2 }
 0x14a   :  { %v604_v61 = vrot.slane %v603_v59, 1  ;;  %v615_v62 = vadd.f32 %v614_v60, %v613_v58 }
 0x14c   :  { %v605_v63 = vadd.f32 %v604_v61, %v603_v59  ;;  %v616_v0 = vrot.slane %v615_v62, 1 }
 0x14e   :  { %v606_v1 = vmul.f32 0.041666668, %v605_v63  ;;  %v617_v2 = vadd.f32 %v616_v0, %v615_v62 }
 0x150   :  { %v618_v3 = vmul.f32 0.041666668, %v617_v2  ;;  %v619_v4 = vmul.f32 %v606_v1, %v606_v1 }
 0x152   :  { %v620_v5 = vsub.f32 %v618_v3, %v619_v4 }
 0x154   :  { %v622_v6 = vadd.f32 1e-05, %v620_v5 }
 0x156   :  { %1052 = vrsqrt.f32 %v622_v6 }
 0x160   :  { %v1053_v11 = vpop.eup %1052 }
 0x161   :  { %v624_v12 = vmul.f32 %v1053_v11, %v621_v9 }
 0x163   :  { %v626_v14 = vmul.f32 %v624_v12, %v606_v1  ;;  %v632_v15 = vrot.slane %v624_v12, %v631_v10 }
 0x165   :  { %v627_v16 = vsub.f32 %v625_v13, %v626_v14  ;;  %v634_v17 = vmul.f32 %v632_v15, %v585_v39  ;;  %v635_v18 = vmul.f32 %v632_v15, %v590_v42  ;;  %v636_v19 = vmul.f32 %v632_v15, %v595_v49 }
 0x167   :  { %v641_v20 = vrot.slane %v627_v16, %v631_v10 }
 0x169   :  { %v643_v21 = vadd.f32 %v641_v20, %v634_v17  ;;  %v644_v22 = vadd.f32 %v641_v20, %v635_v18  ;;  %v645_v23 = vadd.f32 %v641_v20, %v636_v19 }
 0x16b   :  { %v646_v24 = vmax.f32 %v643_v21, 0.0  ;;  %v647_v25 = vmax.f32 %v644_v22, 0.0  ;;  %v648_v26 = vmax.f32 %v645_v23, 0.0 }
 0x16d   :  { %649 = vst [vmem:[%s1642_s5] sm:$0xff] %v646_v24  ;;  %650 = vst [vmem:[%s1642_s5 + $0x8] sm:$0xff] %v647_v25 }
 0x16e   :  { %651 = vst [vmem:[%s1642_s5 + $0x10] sm:$0xff] %v648_v26 }

// kernel: unet_forward.23
= control target key start
LH: loop header
LB: loop body
LE: loop exit
PB: predicated region body
PF: predicated region fallthrough
CT: control target
= control target key end

     0   :  { %vm692_vm0 = vcmask 1043456   ;;  %s2075_s1 = inlined_call_operand.vmem [shape: f32[1152,256], index: 1, kind: input, shape index: {}]   ;;  %s2076_s0 = inlined_call_operand.vmem [shape: f32[4,1152], index: 0, kind: input, shape index: {}]   ;;  %s2077_s2 = inlined_call_operand.vmem [shape: f32[1,256], index: 2, kind: input, shape index: {}]   ;;  %s2078_s3 = inlined_call_operand.vmem [shape: f32[1,256], index: 3, kind: input, shape index: {}]   ;;  %s2079_s4 = inlined_call_operand.vmem [shape: f32[1,256], index: 4, kind: input, shape index: {}]   ;;  %s2080_s5 = inlined_call_operand.vmem [shape: f32[4,256], index: 5, kind: output, shape index: {}]  }
   0x1   :  { %v26_v0 = vld [vmem:[%s2075_s1 + $0x8] sm:$0xff]  ;;  %v28_v1 = vld [vmem:[%s2075_s1 + $0x18] sm:$0xff]  ;;  %v25_v5 = vld [vmem:[%s2075_s1] sm:$0xff] }
   0x2   :  { %v154_v2 = vld [vmem:[%s2075_s1 + $0x408] sm:$0xff]  ;;  %v814_v3 = vpack.c.bf16 %v28_v1, %v26_v0  ;;  %v156_v4 = vld [vmem:[%s2075_s1 + $0x418] sm:$0xff]  ;;  %v27_v6 = vld [vmem:[%s2075_s1 + $0x10] sm:$0xff] }
   0x3   :  { %v942_v7 = vpack.c.bf16 %v156_v4, %v154_v2  ;;  %v816_v8 = vpack.c.bf16 %v27_v6, %v25_v5  ;;  %v153_v9 = vld [vmem:[%s2075_s1 + $0x400] sm:$0xff]  ;;  %v155_v10 = vld [vmem:[%s2075_s1 + $0x410] sm:$0xff]  ;;  %v30_v11 = vld [vmem:[%s2075_s1 + $0x28] sm:$0xff] }
   0x4   :  { %815 = vmatprep.subr.bf16.mxu1 %v814_v3  ;;  %v944_v12 = vpack.c.bf16 %v155_v10, %v153_v9  ;;  %v32_v13 = vld [vmem:[%s2075_s1 + $0x38] sm:$0xff]  ;;  %v158_v14 = vld [vmem:[%s2075_s1 + $0x428] sm:$0xff]  ;;  %v29_v18 = vld [vmem:[%s2075_s1 + $0x20] sm:$0xff] }
   0x5   :  { %v160_v15 = vld [vmem:[%s2075_s1 + $0x438] sm:$0xff]  ;;  %943 = vmatprep.subr.bf16.mxu0 %v942_v7  ;;  %817 = vmatpush1.bf16.msra.mxu1 %v816_v8  ;;  %v818_v16 = vpack.c.bf16 %v32_v13, %v30_v11  ;;  %v31_v19 = vld [vmem:[%s2075_s1 + $0x30] sm:$0xff]  ;;  %v157_v20 = vld [vmem:[%s2075_s1 + $0x420] sm:$0xff] }
   0x6   :  { %v946_v17 = vpack.c.bf16 %v160_v15, %v158_v14  ;;  %945 = vmatpush1.bf16.msra.mxu0 %v944_v12  ;;  %v820_v21 = vpack.c.bf16 %v31_v19, %v29_v18  ;;  %v159_v22 = vld [vmem:[%s2075_s1 + $0x430] sm:$0xff]  ;;  %v34_v23 = vld [vmem:[%s2075_s1 + $0x48] sm:$0xff]  ;;  %v36_v24 = vld [vmem:[%s2075_s1 + $0x58] sm:$0xff] }
   0x7   :  { %819 = vmatprep.subr.bf16.mxu1 %v818_v16  ;;  %v948_v25 = vpack.c.bf16 %v159_v22, %v157_v20  ;;  %v822_v26 = vpack.c.bf16 %v36_v24, %v34_v23  ;;  %v162_v27 = vld [vmem:[%s2075_s1 + $0x448] sm:$0xff]  ;;  %v164_v28 = vld [vmem:[%s2075_s1 + $0x458] sm:$0xff]  ;;  %v33_v29 = vld [vmem:[%s2075_s1 + $0x40] sm:$0xff] }
   0x8   :  { %947 = vmatprep.subr.bf16.mxu0 %v946_v17  ;;  %v950_v30 = vpack.c.bf16 %v164_v28, %v162_v27  ;;  %v35_v31 = vld [vmem:[%s2075_s1 + $0x50] sm:$0xff]  ;;  %v161_v32 = vld [vmem:[%s2075_s1 + $0x440] sm:$0xff]  ;;  %v38_v35 = vld [vmem:[%s2075_s1 + $0x68] sm:$0xff] }
   0x9   :  { %v163_v33 = vld [vmem:[%s2075_s1 + $0x450] sm:$0xff]  ;;  %821 = vmatpush1.bf16.msra.mxu1 %v820_v21  ;;  %v824_v34 = vpack.c.bf16 %v35_v31, %v33_v29  ;;  %v40_v36 = vld [vmem:[%s2075_s1 + $0x78] sm:$0xff]  ;;  %v166_v37 = vld [vmem:[%s2075_s1 + $0x468] sm:$0xff] }
   0xa   :  { %949 = vmatpush1.bf16.msra.mxu0 %v948_v25  ;;  %823 = vmatprep.subr.bf16.mxu1 %v822_v26  ;;  %v952_v38 = vpack.c.bf16 %v163_v33, %v161_v32  ;;  %v826_v39 = vpack.c.bf16 %v40_v36, %v38_v35  ;;  %v168_v40 = vld [vmem:[%s2075_s1 + $0x478] sm:$0xff]  ;;  %v37_v41 = vld [vmem:[%s2075_s1 + $0x60] sm:$0xff]  ;;  %v39_v42 = vld [vmem:[%s2075_s1 + $0x70] sm:$0xff] }
   0xb   :  { %951 = vmatprep.subr.bf16.mxu0 %v950_v30  ;;  %v954_v43 = vpack.c.bf16 %v168_v40, %v166_v37  ;;  %v165_v44 = vld [vmem:[%s2075_s1 + $0x460] sm:$0xff]  ;;  %v167_v45 = vld [vmem:[%s2075_s1 + $0x470] sm:$0xff]  ;;  %v42_v46 = vld [vmem:[%s2075_s1 + $0x88] sm:$0xff]  ;;  %v828_v50 = vpack.c.bf16 %v39_v42, %v37_v41 }
   0xc   :  { %v44_v47 = vld [vmem:[%s2075_s1 + $0x98] sm:$0xff]  ;;  %v170_v48 = vld [vmem:[%s2075_s1 + $0x488] sm:$0xff]  ;;  %v956_v51 = vpack.c.bf16 %v167_v45, %v165_v44  ;;  %v41_v53 = vld [vmem:[%s2075_s1 + $0x80] sm:$0xff] }
   0xd   :  { %v172_v49 = vld [vmem:[%s2075_s1 + $0x498] sm:$0xff]  ;;  %825 = vmatpush1.bf16.msra.mxu1 %v824_v34  ;;  %v830_v52 = vpack.c.bf16 %v44_v47, %v42_v46  ;;  %v43_v54 = vld [vmem:[%s2075_s1 + $0x90] sm:$0xff]  ;;  %v169_v55 = vld [vmem:[%s2075_s1 + $0x480] sm:$0xff] }
   0xe   :  { %953 = vmatpush1.bf16.msra.mxu0 %v952_v38  ;;  %827 = vmatprep.subr.bf16.mxu1 %v826_v39  ;;  %v958_v56 = vpack.c.bf16 %v172_v49, %v170_v48  ;;  %v171_v57 = vld [vmem:[%s2075_s1 + $0x490] sm:$0xff]  ;;  %v46_v58 = vld [vmem:[%s2075_s1 + $0xa8] sm:$0xff]  ;;  %v48_v59 = vld [vmem:[%s2075_s1 + $0xb8] sm:$0xff]  ;;  %v832_v62 = vpack.c.bf16 %v43_v54, %v41_v53 }
   0xf   :  { %955 = vmatprep.subr.bf16.mxu0 %v954_v43  ;;  %v174_v60 = vld [vmem:[%s2075_s1 + $0x4a8] sm:$0xff]  ;;  %v176_v61 = vld [vmem:[%s2075_s1 + $0x4b8] sm:$0xff]  ;;  %v960_v63 = vpack.c.bf16 %v171_v57, %v169_v55  ;;  %v834_v0 = vpack.c.bf16 %v48_v59, %v46_v58  ;;  %v45_v1 = vld [vmem:[%s2075_s1 + $0xa0] sm:$0xff] }
  0x10   :  { %v47_v2 = vld [vmem:[%s2075_s1 + $0xb0] sm:$0xff]  ;;  %v173_v3 = vld [vmem:[%s2075_s1 + $0x4a0] sm:$0xff]  ;;  %v962_v4 = vpack.c.bf16 %v176_v61, %v174_v60  ;;  %v50_v6 = vld [vmem:[%s2075_s1 + $0xc8] sm:$0xff] }
  0x11   :  { %829 = vmatpush1.bf16.msra.mxu1 %v828_v50  ;;  %v175_v5 = vld [vmem:[%s2075_s1 + $0x4b0] sm:$0xff]  ;;  %v52_v7 = vld [vmem:[%s2075_s1 + $0xd8] sm:$0xff]  ;;  %v178_v8 = vld [vmem:[%s2075_s1 + $0x4c8] sm:$0xff]  ;;  %v836_v10 = vpack.c.bf16 %v47_v2, %v45_v1 }
  0x12   :  { %957 = vmatpush1.bf16.msra.mxu0 %v956_v51  ;;  %831 = vmatprep.subr.bf16.mxu1 %v830_v52  ;;  %v180_v9 = vld [vmem:[%s2075_s1 + $0x4d8] sm:$0xff]  ;;  %v964_v11 = vpack.c.bf16 %v175_v5, %v173_v3  ;;  %v838_v12 = vpack.c.bf16 %v52_v7, %v50_v6  ;;  %v49_v13 = vld [vmem:[%s2075_s1 + $0xc0] sm:$0xff]  ;;  %v51_v14 = vld [vmem:[%s2075_s1 + $0xd0] sm:$0xff] }
  0x13   :  { %959 = vmatprep.subr.bf16.mxu0 %v958_v56  ;;  %v177_v15 = vld [vmem:[%s2075_s1 + $0x4c0] sm:$0xff]  ;;  %v966_v16 = vpack.c.bf16 %v180_v9, %v178_v8  ;;  %v179_v17 = vld [vmem:[%s2075_s1 + $0x4d0] sm:$0xff]  ;;  %v54_v18 = vld [vmem:[%s2075_s1 + $0xe8] sm:$0xff]  ;;  %v840_v22 = vpack.c.bf16 %v51_v14, %v49_v13 }
  0x14   :  { %v56_v19 = vld [vmem:[%s2075_s1 + $0xf8] sm:$0xff]  ;;  %v182_v20 = vld [vmem:[%s2075_s1 + $0x4e8] sm:$0xff]  ;;  %v968_v23 = vpack.c.bf16 %v179_v17, %v177_v15  ;;  %v53_v25 = vld [vmem:[%s2075_s1 + $0xe0] sm:$0xff] }
  0x15   :  { %833 = vmatpush1.bf16.msra.mxu1 %v832_v62  ;;  %v184_v21 = vld [vmem:[%s2075_s1 + $0x4f8] sm:$0xff]  ;;  %v842_v24 = vpack.c.bf16 %v56_v19, %v54_v18  ;;  %v55_v26 = vld [vmem:[%s2075_s1 + $0xf0] sm:$0xff]  ;;  %v181_v27 = vld [vmem:[%s2075_s1 + $0x4e0] sm:$0xff] }
  0x16   :  { %961 = vmatpush1.bf16.msra.mxu0 %v960_v63  ;;  %835 = vmatprep.subr.bf16.mxu1 %v834_v0  ;;  %v970_v28 = vpack.c.bf16 %v184_v21, %v182_v20  ;;  %v183_v29 = vld [vmem:[%s2075_s1 + $0x4f0] sm:$0xff]  ;;  %v58_v30 = vld [vmem:[%s2075_s1 + $0x108] sm:$0xff]  ;;  %v60_v31 = vld [vmem:[%s2075_s1 + $0x118] sm:$0xff]  ;;  %v844_v34 = vpack.c.bf16 %v55_v26, %v53_v25 }
  0x17   :  { %963 = vmatprep.subr.bf16.mxu0 %v962_v4  ;;  %v186_v32 = vld [vmem:[%s2075_s1 + $0x508] sm:$0xff]  ;;  %v188_v33 = vld [vmem:[%s2075_s1 + $0x518] sm:$0xff]  ;;  %v972_v35 = vpack.c.bf16 %v183_v29, %v181_v27  ;;  %v846_v36 = vpack.c.bf16 %v60_v31, %v58_v30  ;;  %v57_v37 = vld [vmem:[%s2075_s1 + $0x100] sm:$0xff] }
  0x18   :  { %v59_v38 = vld [vmem:[%s2075_s1 + $0x110] sm:$0xff]  ;;  %v185_v39 = vld [vmem:[%s2075_s1 + $0x500] sm:$0xff]  ;;  %v974_v40 = vpack.c.bf16 %v188_v33, %v186_v32  ;;  %v62_v42 = vld [vmem:[%s2075_s1 + $0x128] sm:$0xff] }
  0x19   :  { %837 = vmatpush1.bf16.msra.mxu1 %v836_v10  ;;  %v187_v41 = vld [vmem:[%s2075_s1 + $0x510] sm:$0xff]  ;;  %v64_v43 = vld [vmem:[%s2075_s1 + $0x138] sm:$0xff]  ;;  %v190_v44 = vld [vmem:[%s2075_s1 + $0x528] sm:$0xff]  ;;  %v848_v46 = vpack.c.bf16 %v59_v38, %v57_v37 }
  0x1a   :  { %965 = vmatpush1.bf16.msra.mxu0 %v964_v11  ;;  %839 = vmatprep.subr.bf16.mxu1 %v838_v12  ;;  %v192_v45 = vld [vmem:[%s2075_s1 + $0x538] sm:$0xff]  ;;  %v976_v47 = vpack.c.bf16 %v187_v41, %v185_v39  ;;  %v850_v48 = vpack.c.bf16 %v64_v43, %v62_v42  ;;  %v61_v49 = vld [vmem:[%s2075_s1 + $0x120] sm:$0xff]  ;;  %v63_v50 = vld [vmem:[%s2075_s1 + $0x130] sm:$0xff] }
  0x1b   :  { %967 = vmatprep.subr.bf16.mxu0 %v966_v16  ;;  %v189_v51 = vld [vmem:[%s2075_s1 + $0x520] sm:$0xff]  ;;  %v978_v52 = vpack.c.bf16 %v192_v45, %v190_v44  ;;  %v191_v53 = vld [vmem:[%s2075_s1 + $0x530] sm:$0xff]  ;;  %v66_v54 = vld [vmem:[%s2075_s1 + $0x148] sm:$0xff]  ;;  %v852_v58 = vpack.c.bf16 %v63_v50, %v61_v49 }
  0x1c   :  { %v68_v55 = vld [vmem:[%s2075_s1 + $0x158] sm:$0xff]  ;;  %v194_v56 = vld [vmem:[%s2075_s1 + $0x548] sm:$0xff]  ;;  %v980_v59 = vpack.c.bf16 %v191_v53, %v189_v51  ;;  %v65_v61 = vld [vmem:[%s2075_s1 + $0x140] sm:$0xff] }
  0x1d   :  { %841 = vmatpush1.bf16.msra.mxu1 %v840_v22  ;;  %v196_v57 = vld [vmem:[%s2075_s1 + $0x558] sm:$0xff]  ;;  %v854_v60 = vpack.c.bf16 %v68_v55, %v66_v54  ;;  %v67_v62 = vld [vmem:[%s2075_s1 + $0x150] sm:$0xff]  ;;  %v193_v63 = vld [vmem:[%s2075_s1 + $0x540] sm:$0xff] }
  0x1e   :  { %969 = vmatpush1.bf16.msra.mxu0 %v968_v23  ;;  %843 = vmatprep.subr.bf16.mxu1 %v842_v24  ;;  %v982_v0 = vpack.c.bf16 %v196_v57, %v194_v56  ;;  %v195_v1 = vld [vmem:[%s2075_s1 + $0x550] sm:$0xff]  ;;  %v70_v2 = vld [vmem:[%s2075_s1 + $0x168] sm:$0xff]  ;;  %v72_v3 = vld [vmem:[%s2075_s1 + $0x178] sm:$0xff]  ;;  %v856_v6 = vpack.c.bf16 %v67_v62, %v65_v61 }
  0x1f   :  { %971 = vmatprep.subr.bf16.mxu0 %v970_v28  ;;  %v198_v4 = vld [vmem:[%s2075_s1 + $0x568] sm:$0xff]  ;;  %v200_v5 = vld [vmem:[%s2075_s1 + $0x578] sm:$0xff]  ;;  %v69_v7 = vld [vmem:[%s2075_s1 + $0x160] sm:$0xff]  ;;  %v984_v8 = vpack.c.bf16 %v195_v1, %v193_v63  ;;  %v858_v9 = vpack.c.bf16 %v72_v3, %v70_v2 }
  0x20   :  { %v71_v10 = vld [vmem:[%s2075_s1 + $0x170] sm:$0xff]  ;;  %v197_v11 = vld [vmem:[%s2075_s1 + $0x560] sm:$0xff]  ;;  %v986_v13 = vpack.c.bf16 %v200_v5, %v198_v4  ;;  %v74_v14 = vld [vmem:[%s2075_s1 + $0x188] sm:$0xff] }
  0x21   :  { %845 = vmatpush1.bf16.msra.mxu1 %v844_v34  ;;  %v199_v12 = vld [vmem:[%s2075_s1 + $0x570] sm:$0xff]  ;;  %v76_v15 = vld [vmem:[%s2075_s1 + $0x198] sm:$0xff]  ;;  %v1451_v16 = vld [vmem:[%s2076_s0] sm:$0xff]  ;;  %v860_v21 = vpack.c.bf16 %v71_v10, %v69_v7 }
  0x22   :  { %973 = vmatpush1.bf16.msra.mxu0 %v972_v35  ;;  %847 = vmatprep.subr.bf16.mxu1 %v846_v36  ;;  %v202_v17 = vld [vmem:[%s2075_s1 + $0x588] sm:$0xff]  ;;  %v204_v18 = vld [vmem:[%s2075_s1 + $0x598] sm:$0xff]  ;;  %v329_v19 = vcombine.high %v1451_v16, %v1451_v16  ;;  %v1464_v20 = vld [vmem:[%s2076_s0 + $0x10] sm:$0xff]  ;;  %v988_v23 = vpack.c.bf16 %v199_v12, %v197_v11  ;;  %v862_v24 = vpack.c.bf16 %v76_v15, %v74_v14 }
  0x23   :  { %975 = vmatprep.subr.bf16.mxu0 %v974_v40  ;;  %v331_v22 = vcombine.high %v1464_v20, %v1464_v20  ;;  %v73_v25 = vld [vmem:[%s2075_s1 + $0x180] sm:$0xff]  ;;  %v75_v26 = vld [vmem:[%s2075_s1 + $0x190] sm:$0xff]  ;;  %v990_v28 = vpack.c.bf16 %v204_v18, %v202_v17  ;;  %v78_v30 = vld [vmem:[%s2075_s1 + $0x1a8] sm:$0xff] }
  0x24   :  { %v201_v27 = vld [vmem:[%s2075_s1 + $0x580] sm:$0xff]  ;;  %v203_v29 = vld [vmem:[%s2075_s1 + $0x590] sm:$0xff]  ;;  %v80_v31 = vld [vmem:[%s2075_s1 + $0x1b8] sm:$0xff]  ;;  %401 = vmatprep.mubr.f32.mxu1 %v329_v19  ;;  %v864_v34 = vpack.c.bf16 %v75_v26, %v73_v25 }
  0x25   :  { %849 = vmatpush1.bf16.msra.mxu1 %v848_v46  ;;  %v206_v32 = vld [vmem:[%s2075_s1 + $0x5a8] sm:$0xff]  ;;  %v208_v33 = vld [vmem:[%s2075_s1 + $0x5b8] sm:$0xff]  ;;  %543 = vmatprep.mubr.f32.mxu0 %v331_v22  ;;  %v992_v35 = vpack.c.bf16 %v203_v29, %v201_v27  ;;  %v866_v36 = vpack.c.bf16 %v80_v31, %v78_v30  ;;  %v77_v37 = vld [vmem:[%s2075_s1 + $0x1a0] sm:$0xff] }
  0x26   :  { %977 = vmatpush1.bf16.msra.mxu0 %v976_v47  ;;  %851 = vmatprep.subr.bf16.mxu1 %v850_v48  ;;  %v79_v38 = vld [vmem:[%s2075_s1 + $0x1b0] sm:$0xff]  ;;  %v205_v39 = vld [vmem:[%s2075_s1 + $0x5a0] sm:$0xff]  ;;  %v994_v40 = vpack.c.bf16 %v208_v33, %v206_v32  ;;  %v82_v42 = vld [vmem:[%s2075_s1 + $0x1c8] sm:$0xff] }
  0x27   :  { %979 = vmatprep.subr.bf16.mxu0 %v978_v52  ;;  %v207_v41 = vld [vmem:[%s2075_s1 + $0x5b0] sm:$0xff]  ;;  %v84_v43 = vld [vmem:[%s2075_s1 + $0x1d8] sm:$0xff]  ;;  %v210_v44 = vld [vmem:[%s2075_s1 + $0x5c8] sm:$0xff]  ;;  %v868_v46 = vpack.c.bf16 %v79_v38, %v77_v37 }
  0x28   :  { %v212_v45 = vld [vmem:[%s2075_s1 + $0x5d8] sm:$0xff]  ;;  %v996_v47 = vpack.c.bf16 %v207_v41, %v205_v39  ;;  %v870_v48 = vpack.c.bf16 %v84_v43, %v82_v42  ;;  %v81_v49 = vld [vmem:[%s2075_s1 + $0x1c0] sm:$0xff]  ;;  %v83_v50 = vld [vmem:[%s2075_s1 + $0x1d0] sm:$0xff] }
  0x29   :  { %853 = vmatpush1.bf16.msra.mxu1 %v852_v58  ;;  %v209_v51 = vld [vmem:[%s2075_s1 + $0x5c0] sm:$0xff]  ;;  %v998_v52 = vpack.c.bf16 %v212_v45, %v210_v44  ;;  %v211_v53 = vld [vmem:[%s2075_s1 + $0x5d0] sm:$0xff]  ;;  %v86_v54 = vld [vmem:[%s2075_s1 + $0x1e8] sm:$0xff]  ;;  %v872_v58 = vpack.c.bf16 %v83_v50, %v81_v49 }
  0x2a   :  { %981 = vmatpush1.bf16.msra.mxu0 %v980_v59  ;;  %855 = vmatprep.subr.bf16.mxu1 %v854_v60  ;;  %v88_v55 = vld [vmem:[%s2075_s1 + $0x1f8] sm:$0xff]  ;;  %v214_v56 = vld [vmem:[%s2075_s1 + $0x5e8] sm:$0xff]  ;;  %v1000_v59 = vpack.c.bf16 %v211_v53, %v209_v51  ;;  %v85_v61 = vld [vmem:[%s2075_s1 + $0x1e0] sm:$0xff] }
  0x2b   :  { %983 = vmatprep.subr.bf16.mxu0 %v982_v0  ;;  %v216_v57 = vld [vmem:[%s2075_s1 + $0x5f8] sm:$0xff]  ;;  %v874_v60 = vpack.c.bf16 %v88_v55, %v86_v54  ;;  %v87_v62 = vld [vmem:[%s2075_s1 + $0x1f0] sm:$0xff]  ;;  %v213_v63 = vld [vmem:[%s2075_s1 + $0x5e0] sm:$0xff] }
  0x2c   :  { %v1002_v0 = vpack.c.bf16 %v216_v57, %v214_v56  ;;  %v215_v1 = vld [vmem:[%s2075_s1 + $0x5f0] sm:$0xff]  ;;  %v90_v2 = vld [vmem:[%s2075_s1 + $0x208] sm:$0xff]  ;;  %v92_v3 = vld [vmem:[%s2075_s1 + $0x218] sm:$0xff] }
  0x2d   :  { %857 = vmatpush1.bf16.msra.mxu1 %v856_v6  ;;  %v218_v4 = vld [vmem:[%s2075_s1 + $0x608] sm:$0xff]  ;;  %v220_v5 = vld [vmem:[%s2075_s1 + $0x618] sm:$0xff]  ;;  %v876_v6 = vpack.c.bf16 %v87_v62, %v85_v61  ;;  %v1004_v7 = vpack.c.bf16 %v215_v1, %v213_v63  ;;  %v91_v10 = vld [vmem:[%s2075_s1 + $0x210] sm:$0xff] }
  0x2e   :  { %985 = vmatpush1.bf16.msra.mxu0 %v984_v8  ;;  %859 = vmatprep.subr.bf16.mxu1 %v858_v9  ;;  %v878_v8 = vpack.c.bf16 %v92_v3, %v90_v2  ;;  %v89_v9 = vld [vmem:[%s2075_s1 + $0x200] sm:$0xff]  ;;  %v1006_v12 = vpack.c.bf16 %v220_v5, %v218_v4  ;;  %v94_v14 = vld [vmem:[%s2075_s1 + $0x228] sm:$0xff]  ;;  %v96_v15 = vld [vmem:[%s2075_s1 + $0x238] sm:$0xff] }
  0x2f   :  { %987 = vmatprep.subr.bf16.mxu0 %v986_v13  ;;  %v217_v11 = vld [vmem:[%s2075_s1 + $0x600] sm:$0xff]  ;;  %v219_v13 = vld [vmem:[%s2075_s1 + $0x610] sm:$0xff]  ;;  %v222_v17 = vld [vmem:[%s2075_s1 + $0x628] sm:$0xff]  ;;  %v880_v19 = vpack.c.bf16 %v91_v10, %v89_v9  ;;  %v882_v22 = vpack.c.bf16 %v96_v15, %v94_v14 }
  0x30   :  { %v224_v18 = vld [vmem:[%s2075_s1 + $0x638] sm:$0xff]  ;;  %v221_v25 = vld [vmem:[%s2075_s1 + $0x620] sm:$0xff]  ;;  %v223_v27 = vld [vmem:[%s2075_s1 + $0x630] sm:$0xff] }
  0x31   :  { %861 = vmatpush1.bf16.msra.mxu1 %v860_v21  ;;  %v1008_v21 = vpack.c.bf16 %v219_v13, %v217_v11  ;;  %v1010_v26 = vpack.c.bf16 %v224_v18, %v222_v17  ;;  %v100_v29 = vld [vmem:[%s2075_s1 + $0x258] sm:$0xff]  ;;  %v226_v30 = vld [vmem:[%s2075_s1 + $0x648] sm:$0xff]  ;;  %v1012_v33 = vpack.c.bf16 %v223_v27, %v221_v25  ;;  %v101_v45 = vld [vmem:[%s2075_s1 + $0x260] sm:$0xff] }
  0x32   :  { %989 = vmatpush1.bf16.msra.mxu0 %v988_v23  ;;  %863 = vmatprep.subr.bf16.mxu1 %v862_v24  ;;  %v93_v23 = vld [vmem:[%s2075_s1 + $0x220] sm:$0xff]  ;;  %v95_v24 = vld [vmem:[%s2075_s1 + $0x230] sm:$0xff]  ;;  %v228_v31 = vld [vmem:[%s2075_s1 + $0x658] sm:$0xff] }
  0x33   :  { %991 = vmatprep.subr.bf16.mxu0 %v990_v28  ;;  %v98_v28 = vld [vmem:[%s2075_s1 + $0x248] sm:$0xff]  ;;  %v884_v32 = vpack.c.bf16 %v95_v24, %v93_v23  ;;  %v1014_v37 = vpack.c.bf16 %v228_v31, %v226_v30  ;;  %v104_v39 = vld [vmem:[%s2075_s1 + $0x278] sm:$0xff]  ;;  %v231_v49 = vld [vmem:[%s2075_s1 + $0x670] sm:$0xff] }
  0x34   :  { %v102_v38 = vld [vmem:[%s2075_s1 + $0x268] sm:$0xff]  ;;  %v232_v41 = vld [vmem:[%s2075_s1 + $0x678] sm:$0xff]  ;;  %v105_v57 = vld [vmem:[%s2075_s1 + $0x280] sm:$0xff] }
  0x35   :  { %865 = vmatpush1.bf16.msra.mxu1 %v864_v34  ;;  %v886_v34 = vpack.c.bf16 %v100_v29, %v98_v28  ;;  %v890_v44 = vpack.c.bf16 %v104_v39, %v102_v38  ;;  %v106_v50 = vld [vmem:[%s2075_s1 + $0x288] sm:$0xff]  ;;  %v108_v51 = vld [vmem:[%s2075_s1 + $0x298] sm:$0xff]  ;;  %v235_v61 = vld [vmem:[%s2075_s1 + $0x690] sm:$0xff] }
  0x36   :  { %993 = vmatpush1.bf16.msra.mxu0 %v992_v35  ;;  %867 = vmatprep.subr.bf16.mxu1 %v866_v36  ;;  %v99_v35 = vld [vmem:[%s2075_s1 + $0x250] sm:$0xff]  ;;  %v225_v36 = vld [vmem:[%s2075_s1 + $0x640] sm:$0xff]  ;;  %v236_v53 = vld [vmem:[%s2075_s1 + $0x698] sm:$0xff]  ;;  %v894_v56 = vpack.c.bf16 %v108_v51, %v106_v50 }
  0x37   :  { %995 = vmatprep.subr.bf16.mxu0 %v994_v40  ;;  %v230_v40 = vld [vmem:[%s2075_s1 + $0x668] sm:$0xff]  ;;  %v112_v63 = vld [vmem:[%s2075_s1 + $0x2b8] sm:$0xff]  ;;  %v109_v5 = vld [vmem:[%s2075_s1 + $0x2a0] sm:$0xff] }
  0x38   :  { %v110_v62 = vld [vmem:[%s2075_s1 + $0x2a8] sm:$0xff]  ;;  %v240_v1 = vld [vmem:[%s2075_s1 + $0x6b8] sm:$0xff]  ;;  %v239_v9 = vld [vmem:[%s2075_s1 + $0x6b0] sm:$0xff] }
  0x39   :  { %869 = vmatpush1.bf16.msra.mxu1 %v868_v46  ;;  %v103_v46 = vld [vmem:[%s2075_s1 + $0x270] sm:$0xff]  ;;  %v898_v4 = vpack.c.bf16 %v112_v63, %v110_v62  ;;  %v114_v10 = vld [vmem:[%s2075_s1 + $0x2c8] sm:$0xff]  ;;  %v116_v11 = vld [vmem:[%s2075_s1 + $0x2d8] sm:$0xff] }
  0x3a   :  { %997 = vmatpush1.bf16.msra.mxu0 %v996_v47  ;;  %871 = vmatprep.subr.bf16.mxu1 %v870_v48  ;;  %v229_v47 = vld [vmem:[%s2075_s1 + $0x660] sm:$0xff]  ;;  %v1018_v48 = vpack.c.bf16 %v232_v41, %v230_v40  ;;  %v892_v54 = vpack.c.bf16 %v103_v46, %v101_v45  ;;  %v244_v13 = vld [vmem:[%s2075_s1 + $0x6d8] sm:$0xff]  ;;  %v115_v17 = vld [vmem:[%s2075_s1 + $0x2d0] sm:$0xff] }
  0x3b   :  { %999 = vmatprep.subr.bf16.mxu0 %v998_v52  ;;  %v234_v52 = vld [vmem:[%s2075_s1 + $0x688] sm:$0xff]  ;;  %v1020_v55 = vpack.c.bf16 %v231_v49, %v229_v47  ;;  %v113_v15 = vld [vmem:[%s2075_s1 + $0x2c0] sm:$0xff]  ;;  %v120_v25 = vld [vmem:[%s2075_s1 + $0x2f8] sm:$0xff] }
  0x3c   :  { %v118_v23 = vld [vmem:[%s2075_s1 + $0x2e8] sm:$0xff]  ;;  %v1736_v27 = vld [vmem:[%s2076_s0 + $0x18] sm:$0xff]  ;;  %v121_v45 = vld [vmem:[%s2075_s1 + $0x300] sm:$0xff] }
  0x3d   :  { %873 = vmatpush1.bf16.msra.mxu1 %v872_v58  ;;  %v107_v58 = vld [vmem:[%s2075_s1 + $0x290] sm:$0xff]  ;;  %v246_v28 = vld [vmem:[%s2075_s1 + $0x6e8] sm:$0xff]  ;;  %v248_v29 = vld [vmem:[%s2075_s1 + $0x6f8] sm:$0xff]  ;;  %v332_v31 = vcombine.high %v1736_v27, %v1736_v27 }
  0x3e   :  { %1001 = vmatpush1.bf16.msra.mxu0 %v1000_v59  ;;  %875 = vmatprep.subr.bf16.mxu1 %v874_v60  ;;  %v233_v59 = vld [vmem:[%s2075_s1 + $0x680] sm:$0xff]  ;;  %v1022_v60 = vpack.c.bf16 %v236_v53, %v234_v52  ;;  %v896_v2 = vpack.c.bf16 %v107_v58, %v105_v57  ;;  %v122_v38 = vld [vmem:[%s2075_s1 + $0x308] sm:$0xff]  ;;  %v124_v39 = vld [vmem:[%s2075_s1 + $0x318] sm:$0xff] }
  0x3f   :  { %1003 = vmatprep.subr.bf16.mxu0 %v1002_v0  ;;  %v238_v0 = vld [vmem:[%s2075_s1 + $0x6a8] sm:$0xff]  ;;  %v1024_v3 = vpack.c.bf16 %v235_v61, %v233_v59  ;;  %v252_v41 = vld [vmem:[%s2075_s1 + $0x718] sm:$0xff]  ;;  %v123_v46 = vld [vmem:[%s2075_s1 + $0x310] sm:$0xff] }
  0x40   :  { %v250_v40 = vld [vmem:[%s2075_s1 + $0x708] sm:$0xff]  ;;  %v249_v47 = vld [vmem:[%s2075_s1 + $0x700] sm:$0xff]  ;;  %v251_v49 = vld [vmem:[%s2075_s1 + $0x710] sm:$0xff] }
  0x41   :  { %877 = vmatpush1.bf16.msra.mxu1 %v876_v6  ;;  %v111_v6 = vld [vmem:[%s2075_s1 + $0x2b0] sm:$0xff]  ;;  %v126_v50 = vld [vmem:[%s2075_s1 + $0x328] sm:$0xff]  ;;  %v128_v51 = vld [vmem:[%s2075_s1 + $0x338] sm:$0xff] }
  0x42   :  { %1005 = vmatpush1.bf16.msra.mxu0 %v1004_v7  ;;  %879 = vmatprep.subr.bf16.mxu1 %v878_v8  ;;  %v237_v7 = vld [vmem:[%s2075_s1 + $0x6a0] sm:$0xff]  ;;  %v1026_v8 = vpack.c.bf16 %v240_v1, %v238_v0  ;;  %v900_v14 = vpack.c.bf16 %v111_v6, %v109_v5  ;;  %v254_v52 = vld [vmem:[%s2075_s1 + $0x728] sm:$0xff]  ;;  %v256_v53 = vld [vmem:[%s2075_s1 + $0x738] sm:$0xff] }
  0x43   :  { %1007 = vmatprep.subr.bf16.mxu0 %v1006_v12  ;;  %v242_v12 = vld [vmem:[%s2075_s1 + $0x6c8] sm:$0xff]  ;;  %v1028_v18 = vpack.c.bf16 %v239_v9, %v237_v7  ;;  %v125_v57 = vld [vmem:[%s2075_s1 + $0x320] sm:$0xff]  ;;  %v127_v58 = vld [vmem:[%s2075_s1 + $0x330] sm:$0xff] }
  0x44   :  { %402 = vmatmul.mubr.f32.vlgmr.msra.gmra.mrb[0].mxu1 %v1451_v16  ;;  %v97_v16 = vld [vmem:[%s2075_s1 + $0x240] sm:$0xff]  ;;  %v1030_v24 = vpack.c.bf16 %v244_v13, %v242_v12  ;;  %v255_v61 = vld [vmem:[%s2075_s1 + $0x730] sm:$0xff]  ;;  %v130_v62 = vld [vmem:[%s2075_s1 + $0x348] sm:$0xff] }
  0x45   :  { %881 = vmatpush1.bf16.msra.mxu1 %v880_v19  ;;  %544 = vmatmul.mubr.f32.vlgmr.msra.gmra.mrb[0].mxu0 %v1464_v20  ;;  %v227_v20 = vld [vmem:[%s2075_s1 + $0x650] sm:$0xff]  ;;  %v888_v42 = vpack.c.bf16 %v99_v35, %v97_v16  ;;  %v902_v19 = vpack.c.bf16 %v116_v11, %v114_v10  ;;  %v117_v16 = vld [vmem:[%s2075_s1 + $0x2e0] sm:$0xff]  ;;  %v132_v63 = vld [vmem:[%s2075_s1 + $0x358] sm:$0xff] }
  0x46   :  { %1009 = vmatpush1.bf16.msra.mxu0 %v1008_v21  ;;  %883 = vmatprep.subr.bf16.mxu1 %v882_v22  ;;  %v1016_v43 = vpack.c.bf16 %v227_v20, %v225_v36  ;;  %v241_v21 = vld [vmem:[%s2075_s1 + $0x6c0] sm:$0xff]  ;;  %v243_v22 = vld [vmem:[%s2075_s1 + $0x6d0] sm:$0xff]  ;;  %v258_v0 = vld [vmem:[%s2075_s1 + $0x748] sm:$0xff] }
  0x47   :  { %1011 = vmatprep.subr.bf16.mxu0 %v1010_v26  ;;  %v1731_v26 = vld [vmem:[%s2076_s0 + $0x8] sm:$0xff]  ;;  %v119_v35 = vld [vmem:[%s2075_s1 + $0x2f0] sm:$0xff]  ;;  %v245_v36 = vld [vmem:[%s2075_s1 + $0x6e0] sm:$0xff]  ;;  %614 = vmatprep.mubr.f32.mxu0 %v332_v31 }
  0x48   :  { %v330_v30 = vcombine.high %v1731_v26, %v1731_v26  ;;  %v247_v20 = vld [vmem:[%s2075_s1 + $0x6f0] sm:$0xff]  ;;  %v253_v59 = vld [vmem:[%s2075_s1 + $0x720] sm:$0xff]  ;;  %v260_v1 = vld [vmem:[%s2075_s1 + $0x758] sm:$0xff] }
  0x49   :  { %885 = vmatpush1.bf16.msra.mxu1 %v884_v32  ;;  %v904_v32 = vpack.c.bf16 %v115_v17, %v113_v15  ;;  %v129_v5 = vld [vmem:[%s2075_s1 + $0x340] sm:$0xff]  ;;  %v131_v6 = vld [vmem:[%s2075_s1 + $0x350] sm:$0xff]  ;;  %v134_v10 = vld [vmem:[%s2075_s1 + $0x368] sm:$0xff] }
  0x4a   :  { %1013 = vmatpush1.bf16.msra.mxu0 %v1012_v33  ;;  %887 = vmatprep.subr.bf16.mxu1 %v886_v34  ;;  %v1032_v33 = vpack.c.bf16 %v243_v22, %v241_v21  ;;  %v906_v34 = vpack.c.bf16 %v120_v25, %v118_v23  ;;  %v257_v7 = vld [vmem:[%s2075_s1 + $0x740] sm:$0xff]  ;;  %v259_v9 = vld [vmem:[%s2075_s1 + $0x750] sm:$0xff]  ;;  %v136_v11 = vld [vmem:[%s2075_s1 + $0x378] sm:$0xff] }
  0x4b   :  { %1015 = vmatprep.subr.bf16.mxu0 %v1014_v37  ;;  %v1034_v37 = vpack.c.bf16 %v248_v29, %v246_v28  ;;  %472 = vmatprep.mubr.f32.mxu1 %v330_v30  ;;  %v262_v12 = vld [vmem:[%s2075_s1 + $0x768] sm:$0xff]  ;;  %v264_v13 = vld [vmem:[%s2075_s1 + $0x778] sm:$0xff]  ;;  %v1048_v15 = vpack.c.bf16 %v259_v9, %v257_v7  ;;  %v922_v17 = vpack.c.bf16 %v136_v11, %v134_v10  ;;  %v261_v21 = vld [vmem:[%s2075_s1 + $0x760] sm:$0xff] }
  0x4c   :  { %v1050_v22 = vpack.c.bf16 %v264_v13, %v262_v12  ;;  %v263_v23 = vld [vmem:[%s2075_s1 + $0x770] sm:$0xff]  ;;  %v140_v25 = vld [vmem:[%s2075_s1 + $0x398] sm:$0xff]  ;;  %v266_v28 = vld [vmem:[%s2075_s1 + $0x788] sm:$0xff] }
  0x4d   :  { %889 = vmatpush1.bf16.msra.mxu1 %v888_v42  ;;  %v908_v42 = vpack.c.bf16 %v119_v35, %v117_v16  ;;  %v268_v29 = vld [vmem:[%s2075_s1 + $0x798] sm:$0xff]  ;;  %v1052_v31 = vpack.c.bf16 %v263_v23, %v261_v21  ;;  %v265_v16 = vld [vmem:[%s2075_s1 + $0x780] sm:$0xff]  ;;  %v279_v7 = vld [vmem:[%s2075_s1 + $0x7f0] sm:$0xff] }
  0x4e   :  { %1017 = vmatpush1.bf16.msra.mxu0 %v1016_v43  ;;  %891 = vmatprep.subr.bf16.mxu1 %v890_v44  ;;  %v1036_v43 = vpack.c.bf16 %v247_v20, %v245_v36  ;;  %v910_v44 = vpack.c.bf16 %v124_v39, %v122_v38  ;;  %v1054_v35 = vpack.c.bf16 %v268_v29, %v266_v28  ;;  %v267_v36 = vld [vmem:[%s2075_s1 + $0x790] sm:$0xff]  ;;  %v144_v20 = vld [vmem:[%s2075_s1 + $0x3b8] sm:$0xff]  ;;  %v270_v38 = vld [vmem:[%s2075_s1 + $0x7a8] sm:$0xff]  ;;  %v1122_v28 = vmov 0.0  }
  0x4f   :  { %1019 = vmatprep.subr.bf16.mxu0 %v1018_v48  ;;  %v1038_v48 = vpack.c.bf16 %v252_v41, %v250_v40  ;;  %v272_v39 = vld [vmem:[%s2075_s1 + $0x7b8] sm:$0xff]  ;;  %v1056_v41 = vpack.c.bf16 %v267_v36, %v265_v16  ;;  %v281_v13 = vld [vmem:[%s2075_s1 + $0x800] sm:$0xff]  ;;  %v290_v23 = vld [vmem:[%s2075_s1 + $0x848] sm:$0xff] }
  0x50   :  { %v284_v9 = vld [vmem:[%s2075_s1 + $0x818] sm:$0xff]  ;;  %v285_v21 = vld [vmem:[%s2075_s1 + $0x820] sm:$0xff]  ;;  %v295_v16 = vld [vmem:[%s2075_s1 + $0x870] sm:$0xff] }
  0x51   :  { %893 = vmatpush1.bf16.msra.mxu1 %v892_v54  ;;  %v912_v54 = vpack.c.bf16 %v123_v46, %v121_v45  ;;  %v269_v45 = vld [vmem:[%s2075_s1 + $0x7a0] sm:$0xff]  ;;  %v1058_v46 = vpack.c.bf16 %v272_v39, %v270_v38  ;;  %v300_v36 = vld [vmem:[%s2075_s1 + $0x898] sm:$0xff]  ;;  %v299_v39 = vld [vmem:[%s2075_s1 + $0x890] sm:$0xff] }
  0x52   :  { %1021 = vmatpush1.bf16.msra.mxu0 %v1020_v55  ;;  %895 = vmatprep.subr.bf16.mxu1 %v894_v56  ;;  %v1040_v55 = vpack.c.bf16 %v251_v49, %v249_v47  ;;  %v914_v56 = vpack.c.bf16 %v128_v51, %v126_v50  ;;  %v271_v47 = vld [vmem:[%s2075_s1 + $0x7b0] sm:$0xff]  ;;  %v148_v49 = vld [vmem:[%s2075_s1 + $0x3d8] sm:$0xff]  ;;  %v274_v50 = vld [vmem:[%s2075_s1 + $0x7c8] sm:$0xff] }
  0x53   :  { %1023 = vmatprep.subr.bf16.mxu0 %v1022_v60  ;;  %v1042_v60 = vpack.c.bf16 %v256_v53, %v254_v52  ;;  %v276_v51 = vld [vmem:[%s2075_s1 + $0x7d8] sm:$0xff]  ;;  %v1060_v53 = vpack.c.bf16 %v271_v47, %v269_v45  ;;  %v297_v38 = vld [vmem:[%s2075_s1 + $0x880] sm:$0xff]  ;;  %v303_v45 = vld [vmem:[%s2075_s1 + $0x8b0] sm:$0xff] }
  0x54   :  { %v308_v47 = vld [vmem:[%s2075_s1 + $0x8d8] sm:$0xff] }
  0x55   :  { %897 = vmatpush1.bf16.msra.mxu1 %v896_v2  ;;  %v916_v2 = vpack.c.bf16 %v127_v58, %v125_v57  ;;  %v273_v57 = vld [vmem:[%s2075_s1 + $0x7c0] sm:$0xff]  ;;  %v1062_v58 = vpack.c.bf16 %v276_v51, %v274_v50  ;;  %v307_v51 = vld [vmem:[%s2075_s1 + $0x8d0] sm:$0xff] }
  0x56   :  { %1025 = vmatpush1.bf16.msra.mxu0 %v1024_v3  ;;  %899 = vmatprep.subr.bf16.mxu1 %v898_v4  ;;  %v1044_v3 = vpack.c.bf16 %v255_v61, %v253_v59  ;;  %v918_v4 = vpack.c.bf16 %v132_v63, %v130_v62  ;;  %v275_v59 = vld [vmem:[%s2075_s1 + $0x7d0] sm:$0xff]  ;;  %v152_v61 = vld [vmem:[%s2075_s1 + $0x3f8] sm:$0xff]  ;;  %v278_v62 = vld [vmem:[%s2075_s1 + $0x7e8] sm:$0xff] }
  0x57   :  { %1027 = vmatprep.subr.bf16.mxu0 %v1026_v8  ;;  %v1046_v8 = vpack.c.bf16 %v260_v1, %v258_v0  ;;  %v280_v63 = vld [vmem:[%s2075_s1 + $0x7f8] sm:$0xff]  ;;  %v1064_v1 = vpack.c.bf16 %v275_v59, %v273_v57  ;;  %v305_v50 = vld [vmem:[%s2075_s1 + $0x8c0] sm:$0xff]  ;;  %v311_v57 = vld [vmem:[%s2075_s1 + $0x8f0] sm:$0xff] }
  0x58   :  { %v24_v59 = vld [vmem:[%s2076_s0 + $0x20] sm:$0xf] }
  0x59   :  { %901 = vmatpush1.bf16.msra.mxu1 %v900_v14  ;;  %v920_v14 = vpack.c.bf16 %v131_v6, %v129_v5  ;;  %v1066_v5 = vpack.c.bf16 %v280_v63, %v278_v62  ;;  %v277_v6 = vld [vmem:[%s2075_s1 + $0x7e0] sm:$0xff]  ;;  %v315_v62 = vlaneseq }
  0x5a   :  { %1029 = vmatpush1.bf16.msra.mxu0 %v1028_v18  ;;  %903 = vmatprep.subr.bf16.mxu1 %v902_v19  ;;  %v133_v18 = vld [vmem:[%s2075_s1 + $0x360] sm:$0xff]  ;;  %v135_v19 = vld [vmem:[%s2075_s1 + $0x370] sm:$0xff]  ;;  %v1068_v11 = vpack.c.bf16 %v279_v7, %v277_v6 }
  0x5b   :  { %1031 = vmatprep.subr.bf16.mxu0 %v1030_v24  ;;  %v138_v24 = vld [vmem:[%s2075_s1 + $0x388] sm:$0xff]  ;;  %v924_v30 = vpack.c.bf16 %v135_v19, %v133_v18  ;;  %v316_v63 = vshrl.u32 %v315_v62, 7 }
  0x5d   :  { %905 = vmatpush1.bf16.msra.mxu1 %v904_v32  ;;  %v926_v32 = vpack.c.bf16 %v140_v25, %v138_v24  ;;  %v292_v24 = vld [vmem:[%s2075_s1 + $0x858] sm:$0xff] }
  0x5e   :  { %1033 = vmatpush1.bf16.msra.mxu0 %v1032_v33  ;;  %907 = vmatprep.subr.bf16.mxu1 %v906_v34  ;;  %v137_v33 = vld [vmem:[%s2075_s1 + $0x380] sm:$0xff]  ;;  %v139_v34 = vld [vmem:[%s2075_s1 + $0x390] sm:$0xff]  ;;  %v1078_v29 = vpack.c.bf16 %v292_v24, %v290_v23 }
  0x5f   :  { %1035 = vmatprep.subr.bf16.mxu0 %v1034_v37  ;;  %v142_v37 = vld [vmem:[%s2075_s1 + $0x3a8] sm:$0xff]  ;;  %v928_v40 = vpack.c.bf16 %v139_v34, %v137_v33  ;;  %v293_v34 = vld [vmem:[%s2075_s1 + $0x860] sm:$0xff] }
  0x61   :  { %909 = vmatpush1.bf16.msra.mxu1 %v908_v42  ;;  %v930_v42 = vpack.c.bf16 %v144_v20, %v142_v37  ;;  %v1084_v37 = vpack.c.bf16 %v295_v16, %v293_v34 }
  0x62   :  { %1037 = vmatpush1.bf16.msra.mxu0 %v1036_v43  ;;  %911 = vmatprep.subr.bf16.mxu1 %v910_v44  ;;  %v141_v43 = vld [vmem:[%s2075_s1 + $0x3a0] sm:$0xff]  ;;  %v143_v44 = vld [vmem:[%s2075_s1 + $0x3b0] sm:$0xff] }
  0x63   :  { %1039 = vmatprep.subr.bf16.mxu0 %v1038_v48  ;;  %v146_v48 = vld [vmem:[%s2075_s1 + $0x3c8] sm:$0xff]  ;;  %v932_v52 = vpack.c.bf16 %v143_v44, %v141_v43  ;;  %v301_v44 = vld [vmem:[%s2075_s1 + $0x8a0] sm:$0xff] }
  0x65   :  { %913 = vmatpush1.bf16.msra.mxu1 %v912_v54  ;;  %v934_v54 = vpack.c.bf16 %v148_v49, %v146_v48  ;;  %v1092_v48 = vpack.c.bf16 %v303_v45, %v301_v44 }
  0x66   :  { %1041 = vmatpush1.bf16.msra.mxu0 %v1040_v55  ;;  %915 = vmatprep.subr.bf16.mxu1 %v914_v56  ;;  %v145_v55 = vld [vmem:[%s2075_s1 + $0x3c0] sm:$0xff]  ;;  %v147_v56 = vld [vmem:[%s2075_s1 + $0x3d0] sm:$0xff] }
  0x67   :  { %1043 = vmatprep.subr.bf16.mxu0 %v1042_v60  ;;  %v150_v60 = vld [vmem:[%s2075_s1 + $0x3e8] sm:$0xff]  ;;  %v936_v0 = vpack.c.bf16 %v147_v56, %v145_v55  ;;  %v309_v56 = vld [vmem:[%s2075_s1 + $0x8e0] sm:$0xff] }
  0x69   :  { %917 = vmatpush1.bf16.msra.mxu1 %v916_v2  ;;  %v938_v2 = vpack.c.bf16 %v152_v61, %v150_v60 }
  0x6a   :  { %1045 = vmatpush1.bf16.msra.mxu0 %v1044_v3  ;;  %919 = vmatprep.subr.bf16.mxu1 %v918_v4  ;;  %v149_v3 = vld [vmem:[%s2075_s1 + $0x3e0] sm:$0xff]  ;;  %v151_v4 = vld [vmem:[%s2075_s1 + $0x3f0] sm:$0xff] }
  0x6b   :  { %1047 = vmatprep.subr.bf16.mxu0 %v1046_v8  ;;  %v282_v8 = vld [vmem:[%s2075_s1 + $0x808] sm:$0xff]  ;;  %v940_v10 = vpack.c.bf16 %v151_v4, %v149_v3 }
  0x6c   :  { %v1070_v12 = vpack.c.bf16 %v284_v9, %v282_v8 }
  0x6d   :  { %921 = vmatpush1.bf16.msra.mxu1 %v920_v14  ;;  %v283_v14 = vld [vmem:[%s2075_s1 + $0x810] sm:$0xff] }
  0x6e   :  { %1049 = vmatpush1.bf16.msra.mxu0 %v1048_v15  ;;  %923 = vmatprep.subr.bf16.mxu1 %v922_v17  ;;  %v286_v15 = vld [vmem:[%s2075_s1 + $0x828] sm:$0xff]  ;;  %v288_v17 = vld [vmem:[%s2075_s1 + $0x838] sm:$0xff]  ;;  %v1072_v18 = vpack.c.bf16 %v283_v14, %v281_v13 }
  0x6f   :  { %1051 = vmatprep.subr.bf16.mxu0 %v1050_v22  ;;  %v1074_v19 = vpack.c.bf16 %v288_v17, %v286_v15  ;;  %v287_v22 = vld [vmem:[%s2075_s1 + $0x830] sm:$0xff] }
  0x70   :  { %v1076_v25 = vpack.c.bf16 %v287_v22, %v285_v21 }
  0x71   :  { %925 = vmatpush1.bf16.msra.mxu1 %v924_v30  ;;  %v291_v30 = vld [vmem:[%s2075_s1 + $0x850] sm:$0xff] }
  0x72   :  { %1053 = vmatpush1.bf16.msra.mxu0 %v1052_v31  ;;  %927 = vmatprep.subr.bf16.mxu1 %v926_v32  ;;  %v294_v31 = vld [vmem:[%s2075_s1 + $0x868] sm:$0xff] }
  0x73   :  { %1055 = vmatprep.subr.bf16.mxu0 %v1054_v35  ;;  %v298_v35 = vld [vmem:[%s2075_s1 + $0x888] sm:$0xff] }
  0x74   :  { %v1086_v20 = vpack.c.bf16 %v300_v36, %v298_v35 }
  0x75   :  { %929 = vmatpush1.bf16.msra.mxu1 %v928_v40  ;;  %v302_v40 = vld [vmem:[%s2075_s1 + $0x8a8] sm:$0xff] }
  0x76   :  { %1057 = vmatpush1.bf16.msra.mxu0 %v1056_v41  ;;  %931 = vmatprep.subr.bf16.mxu1 %v930_v42  ;;  %v304_v41 = vld [vmem:[%s2075_s1 + $0x8b8] sm:$0xff]  ;;  %v1088_v42 = vpack.c.bf16 %v299_v39, %v297_v38 }
  0x77   :  { %1059 = vmatprep.subr.bf16.mxu0 %v1058_v46  ;;  %v1090_v43 = vpack.c.bf16 %v304_v41, %v302_v40  ;;  %v306_v46 = vld [vmem:[%s2075_s1 + $0x8c8] sm:$0xff] }
  0x78   :  { %v1094_v49 = vpack.c.bf16 %v308_v47, %v306_v46 }
  0x79   :  { %933 = vmatpush1.bf16.msra.mxu1 %v932_v52  ;;  %v310_v52 = vld [vmem:[%s2075_s1 + $0x8e8] sm:$0xff] }
  0x7a   :  { %1061 = vmatpush1.bf16.msra.mxu0 %v1060_v53  ;;  %935 = vmatprep.subr.bf16.mxu1 %v934_v54  ;;  %v312_v53 = vld [vmem:[%s2075_s1 + $0x8f8] sm:$0xff]  ;;  %v1096_v54 = vpack.c.bf16 %v307_v51, %v305_v50  ;;  %v1123_v51 = vmov 1966171168  }
  0x7b   :  { %1063 = vmatprep.subr.bf16.mxu0 %v1062_v58  ;;  %v1098_v55 = vpack.c.bf16 %v312_v53, %v310_v52  ;;  %v1100_v58 = vpack.c.bf16 %v311_v57, %v309_v56  ;;  %v740_v52 = vunpack.c.l.s4 %v1123_v51 }
  0x7d   :  { %937 = vmatpush1.bf16.msra.mxu1 %v936_v0  ;;  %v2053_v0 = vsub.s32 0, %v316_v63  ;;  %v741_v53 = vunpack.c.0.s8 %v740_v52 }
  0x7e   :  { %1065 = vmatpush1.bf16.msra.mxu0 %v1064_v1  ;;  %939 = vmatprep.subr.bf16.mxu1 %v938_v2  ;;  %v313_v1 = vld [vmem:[%s2077_s2] sm:$0x3]  ;;  %v2058_v2 = vsub.s32 1, %v316_v63 }
  0x7f   :  { %1067 = vmatprep.subr.bf16.mxu0 %v1066_v5  ;;  %v318_v3 = vrot.slane %v313_v1, %v2053_v0 }
  0x80   :  { %v322_v4 = vrot.slane %v313_v1, %v2058_v2 }
  0x81   :  { %941 = vmatpush1.bf16.msra.mxu1 %v940_v10 }
  0x82   :  { %1069 = vmatpush1.bf16.msra.mxu0 %v1068_v11 }
  0x83   :  { %1071 = vmatprep.subr.bf16.mxu0 %v1070_v12 }
  0x84   :  { %473 = vmatmul.mubr.f32.vlgmr.msra.gmra.mrb[0].mxu1 %v1731_v26  ;;  %v289_v26 = vld [vmem:[%s2075_s1 + $0x840] sm:$0xff] }
  0x85   :  { %615 = vmatmul.mubr.f32.vlgmr.msra.gmra.mrb[0].mxu0 %v1736_v27  ;;  %v296_v27 = vld [vmem:[%s2075_s1 + $0x878] sm:$0xff]  ;;  %v1080_v32 = vpack.c.bf16 %v291_v30, %v289_v26 }
  0x86   :  { %1073 = vmatpush1.bf16.msra.mxu0 %v1072_v18  ;;  %685 = vmatprep.mubr.f32.mxu0 %v1122_v28  ;;  %v1082_v33 = vpack.c.bf16 %v296_v27, %v294_v31 }
  0x87   :  { %1075 = vmatprep.subr.bf16.mxu0 %v1074_v19 }
  0x8a   :  { %1077 = vmatpush1.bf16.msra.mxu0 %v1076_v25 }
  0x8b   :  { %1079 = vmatprep.subr.bf16.mxu0 %v1078_v29 }
  0x8e   :  { %1081 = vmatpush1.bf16.msra.mxu0 %v1080_v32 }
  0x8f   :  { %1083 = vmatprep.subr.bf16.mxu0 %v1082_v33 }
  0x92   :  { %1085 = vmatpush1.bf16.msra.mxu0 %v1084_v37 }
  0x93   :  { %1087 = vmatprep.subr.bf16.mxu0 %v1086_v20 }
  0x96   :  { %1089 = vmatpush1.bf16.msra.mxu0 %v1088_v42 }
  0x97   :  { %1091 = vmatprep.subr.bf16.mxu0 %v1090_v43 }
  0x9a   :  { %1093 = vmatpush1.bf16.msra.mxu0 %v1092_v48 }
  0x9b   :  { %1095 = vmatprep.subr.bf16.mxu0 %v1094_v49 }
  0x9e   :  { %1097 = vmatpush1.bf16.msra.mxu0 %v1096_v54 }
  0x9f   :  { %1099 = vmatprep.subr.bf16.mxu0 %v1098_v55  ;;  %v744_v55 = vsub.s32 %v741_v53, %v316_v63  ;;  %v755_v63 = vld [vmem:[%s2079_s4] sm:$0x3] }
  0xa2   :  { %1101 = vmatpush1.bf16.msra.mxu0 %v1100_v58 }
  0xa5   :  { %686 = vmatmul.mubr.f32.vlgmr.msra.gmra.mrb[0].mxu0 %v24_v59  ;;  %v731_v59 = vld [vmem:[%s2078_s3] sm:$0x3] }
 0x157   :  { %v474_v60 = vpop.f32.mrb[0].mxu1 }
 0x158   :  { %v476_v61 = vpop.f32.mrb[1].mxu1  ;;  %v1102_v5 = vadd.f32 %v474_v60, %v318_v3 }
 0x159   :  { %v1104_v6 = vadd.f32 %v476_v61, %v322_v4 }
 0x178   :  { %v687_v7 = vpop.f32.mrb[0].mxu0 }
 0x179   :  { %v1103_v8 = vadd.f32 %v1102_v5, %v687_v7  ;;  %v689_v9 = vpop.f32.mrb[1].mxu0 }
 0x17a   :  { %v1105_v10 = vadd.f32 %v1104_v6, %v689_v9 }
 0x17b   :  { %v693_v11 = vsel %vm692_vm0, %v1103_v8, 0.0  ;;  %v709_v12 = vmul.f32 %v1103_v8, %v1103_v8 }
 0x17c   :  { %v694_v13 = vrot.slane %v693_v11, 4  ;;  %v700_v14 = vsel %vm692_vm0, %v1105_v10, 0.0  ;;  %v710_v15 = vmul.f32 %v1105_v10, %v1105_v10 }
 0x17d   :  { %v711_v17 = vsel %vm692_vm0, %v709_v12, 0.0  ;;  %v701_v18 = vrot.slane %v700_v14, 4 }
 0x17e   :  { %v695_v19 = vadd.f32 %v694_v13, %v693_v11  ;;  %v712_v21 = vrot.slane %v711_v17, 4  ;;  %v718_v22 = vsel %vm692_vm0, %v710_v15, 0.0 }
 0x17f   :  { %v702_v23 = vadd.f32 %v701_v18, %v700_v14  ;;  %v719_v24 = vrot.slane %v718_v22, 4 }
 0x180   :  { %v696_v25 = vrot.slane %v695_v19, 2  ;;  %v713_v28 = vadd.f32 %v712_v21, %v711_v17 }
 0x181   :  { %v703_v29 = vrot.slane %v702_v23, 2  ;;  %v720_v26 = vadd.f32 %v719_v24, %v718_v22 }
 0x182   :  { %v697_v30 = vadd.f32 %v696_v25, %v695_v19  ;;  %v714_v31 = vrot.slane %v713_v28, 2 }
 0x183   :  { %v704_v27 = vadd.f32 %v703_v29, %v702_v23  ;;  %v721_v32 = vrot.slane %v720_v26, 2 }
 0x184   :  { %v698_v33 = vrot.slane %v697_v30, 1  ;;  %v715_v34 = vadd.f32 %v714_v31, %v713_v28 }
 0x185   :  { %v705_v16 = vrot.slane %v704_v27, 1  ;;  %v722_v35 = vadd.f32 %v721_v32, %v720_v26 }
 0x186   :  { %v699_v36 = vadd.f32 %v698_v33, %v697_v30  ;;  %v716_v37 = vrot.slane %v715_v34, 1 }
 0x187   :  { %v706_v20 = vadd.f32 %v705_v16, %v704_v27  ;;  %v723_v38 = vrot.slane %v722_v35, 1 }
 0x188   :  { %v707_v39 = vmul.f32 0.25, %v699_v36  ;;  %v717_v40 = vadd.f32 %v716_v37, %v715_v34 }
 0x189   :  { %v708_v41 = vmul.f32 0.25, %v706_v20  ;;  %v724_v42 = vadd.f32 %v723_v38, %v722_v35 }
 0x18a   :  { %v725_v43 = vmul.f32 0.25, %v717_v40  ;;  %v727_v44 = vmul.f32 %v707_v39, %v707_v39 }
 0x18b   :  { %v726_v45 = vmul.f32 0.25, %v724_v42  ;;  %v728_v46 = vmul.f32 %v708_v41, %v708_v41 }
 0x18c   :  { %v729_v47 = vsub.f32 %v725_v43, %v727_v44 }
 0x18d   :  { %v730_v48 = vsub.f32 %v726_v45, %v728_v46 }
 0x18e   :  { %v732_v49 = vadd.f32 1e-05, %v729_v47 }
 0x18f   :  { %v733_v50 = vadd.f32 1e-05, %v730_v48 }
 0x190   :  { %1118 = vrsqrt.f32 %v732_v49 }
 0x191   :  { %1120 = vrsqrt.f32 %v733_v50 }
 0x19a   :  { %v1119_v54 = vpop.eup %1118 }
 0x19b   :  { %v1121_v56 = vpop.eup %1120 }
 0x19c   :  { %v738_v57 = vcombine.low %v1119_v54, %v1121_v56 }
 0x19e   :  { %v745_v58 = vrot.slane %v738_v57, %v744_v55 }
 0x1a0   :  { %v752_v60 = vrot.slane %v745_v58, %v744_v55 }
 0x1a2   :  { %v754_v61 = vmul.f32 %v752_v60, %v731_v59 }
 0x1a4   :  { %v760_v62 = vrot.slane %v754_v61, %v2053_v0  ;;  %v764_v1 = vrot.slane %v754_v61, %v2058_v2 }
 0x1a6   :  { %v767_v3 = vmul.f32 %v760_v62, %v707_v39  ;;  %v768_v4 = vmul.f32 %v764_v1, %v708_v41  ;;  %v788_v5 = vmul.f32 %v1103_v8, %v760_v62  ;;  %v789_v6 = vmul.f32 %v1105_v10, %v764_v1 }
 0x1a8   :  { %v771_v7 = vcombine.low %v767_v3, %v768_v4 }
 0x1aa   :  { %v778_v9 = vrot.slane %v771_v7, %v744_v55 }
 0x1ac   :  { %v785_v11 = vrot.slane %v778_v9, %v744_v55 }
 0x1ae   :  { %v787_v12 = vsub.f32 %v755_v63, %v785_v11 }
 0x1b0   :  { %v794_v13 = vrot.slane %v787_v12, %v2053_v0  ;;  %v798_v14 = vrot.slane %v787_v12, %v2058_v2 }
 0x1b2   :  { %v801_v15 = vadd.f32 %v794_v13, %v788_v5  ;;  %v802_v17 = vadd.f32 %v798_v14, %v789_v6 }
 0x1b4   :  { %v803_v18 = vmax.f32 %v801_v15, 0.0  ;;  %v804_v19 = vmax.f32 %v802_v17, 0.0 }
 0x1b6   :  { %v807_v21 = vcombine.low %v803_v18, %v804_v19 }
 0x1b8   :  { %809 = vst [vmem:[%s2080_s5] sm:$0xff] %v807_v21 }

// kernel: unet_forward.24
= control target key start
LH: loop header
LB: loop body
LE: loop exit
PB: predicated region body
PF: predicated region fallthrough
CT: control target
= control target key end

     0   :  { %vm1283_vm0 = vcmask 1043456   ;;  %s3866_s1 = inlined_call_operand.vmem [shape: f32[2304,256], index: 1, kind: input, shape index: {}]   ;;  %s3867_s0 = inlined_call_operand.vmem [shape: f32[4,2304], index: 0, kind: input, shape index: {}]   ;;  %s3868_s2 = inlined_call_operand.vmem [shape: f32[1,256], index: 2, kind: input, shape index: {}]   ;;  %s3869_s3 = inlined_call_operand.vmem [shape: f32[1,256], index: 3, kind: input, shape index: {}]   ;;  %s3870_s4 = inlined_call_operand.vmem [shape: f32[1,256], index: 4, kind: input, shape index: {}]   ;;  %s3871_s5 = inlined_call_operand.vmem [shape: f32[4,256], index: 5, kind: output, shape index: {}]  }
   0x1   :  { %v30_v0 = vld [vmem:[%s3866_s1 + $0x8] sm:$0xff]  ;;  %v32_v1 = vld [vmem:[%s3866_s1 + $0x18] sm:$0xff]  ;;  %v29_v5 = vld [vmem:[%s3866_s1] sm:$0xff] }
   0x2   :  { %v286_v2 = vld [vmem:[%s3866_s1 + $0x808] sm:$0xff]  ;;  %v1405_v3 = vpack.c.bf16 %v32_v1, %v30_v0  ;;  %v288_v4 = vld [vmem:[%s3866_s1 + $0x818] sm:$0xff]  ;;  %v31_v6 = vld [vmem:[%s3866_s1 + $0x10] sm:$0xff] }
   0x3   :  { %v1661_v7 = vpack.c.bf16 %v288_v4, %v286_v2  ;;  %v1407_v8 = vpack.c.bf16 %v31_v6, %v29_v5  ;;  %v285_v9 = vld [vmem:[%s3866_s1 + $0x800] sm:$0xff]  ;;  %v287_v10 = vld [vmem:[%s3866_s1 + $0x810] sm:$0xff]  ;;  %v34_v11 = vld [vmem:[%s3866_s1 + $0x28] sm:$0xff] }
   0x4   :  { %1406 = vmatprep.subr.bf16.mxu1 %v1405_v3  ;;  %v1663_v12 = vpack.c.bf16 %v287_v10, %v285_v9  ;;  %v36_v13 = vld [vmem:[%s3866_s1 + $0x38] sm:$0xff]  ;;  %v290_v14 = vld [vmem:[%s3866_s1 + $0x828] sm:$0xff]  ;;  %v33_v18 = vld [vmem:[%s3866_s1 + $0x20] sm:$0xff] }
   0x5   :  { %v292_v15 = vld [vmem:[%s3866_s1 + $0x838] sm:$0xff]  ;;  %1662 = vmatprep.subr.bf16.mxu0 %v1661_v7  ;;  %1408 = vmatpush1.bf16.msra.mxu1 %v1407_v8  ;;  %v1409_v16 = vpack.c.bf16 %v36_v13, %v34_v11  ;;  %v35_v19 = vld [vmem:[%s3866_s1 + $0x30] sm:$0xff]  ;;  %v289_v20 = vld [vmem:[%s3866_s1 + $0x820] sm:$0xff] }
   0x6   :  { %v1665_v17 = vpack.c.bf16 %v292_v15, %v290_v14  ;;  %1664 = vmatpush1.bf16.msra.mxu0 %v1663_v12  ;;  %v1411_v21 = vpack.c.bf16 %v35_v19, %v33_v18  ;;  %v291_v22 = vld [vmem:[%s3866_s1 + $0x830] sm:$0xff]  ;;  %v38_v23 = vld [vmem:[%s3866_s1 + $0x48] sm:$0xff]  ;;  %v40_v24 = vld [vmem:[%s3866_s1 + $0x58] sm:$0xff] }
   0x7   :  { %1410 = vmatprep.subr.bf16.mxu1 %v1409_v16  ;;  %v1667_v25 = vpack.c.bf16 %v291_v22, %v289_v20  ;;  %v1413_v26 = vpack.c.bf16 %v40_v24, %v38_v23  ;;  %v294_v27 = vld [vmem:[%s3866_s1 + $0x848] sm:$0xff]  ;;  %v296_v28 = vld [vmem:[%s3866_s1 + $0x858] sm:$0xff]  ;;  %v37_v29 = vld [vmem:[%s3866_s1 + $0x40] sm:$0xff] }
   0x8   :  { %1666 = vmatprep.subr.bf16.mxu0 %v1665_v17  ;;  %v1669_v30 = vpack.c.bf16 %v296_v28, %v294_v27  ;;  %v39_v31 = vld [vmem:[%s3866_s1 + $0x50] sm:$0xff]  ;;  %v293_v32 = vld [vmem:[%s3866_s1 + $0x840] sm:$0xff]  ;;  %v42_v35 = vld [vmem:[%s3866_s1 + $0x68] sm:$0xff] }
   0x9   :  { %v295_v33 = vld [vmem:[%s3866_s1 + $0x850] sm:$0xff]  ;;  %1412 = vmatpush1.bf16.msra.mxu1 %v1411_v21  ;;  %v1415_v34 = vpack.c.bf16 %v39_v31, %v37_v29  ;;  %v44_v36 = vld [vmem:[%s3866_s1 + $0x78] sm:$0xff]  ;;  %v298_v37 = vld [vmem:[%s3866_s1 + $0x868] sm:$0xff] }
   0xa   :  { %1668 = vmatpush1.bf16.msra.mxu0 %v1667_v25  ;;  %1414 = vmatprep.subr.bf16.mxu1 %v1413_v26  ;;  %v1671_v38 = vpack.c.bf16 %v295_v33, %v293_v32  ;;  %v1417_v39 = vpack.c.bf16 %v44_v36, %v42_v35  ;;  %v300_v40 = vld [vmem:[%s3866_s1 + $0x878] sm:$0xff]  ;;  %v41_v41 = vld [vmem:[%s3866_s1 + $0x60] sm:$0xff]  ;;  %v43_v42 = vld [vmem:[%s3866_s1 + $0x70] sm:$0xff] }
   0xb   :  { %1670 = vmatprep.subr.bf16.mxu0 %v1669_v30  ;;  %v1673_v43 = vpack.c.bf16 %v300_v40, %v298_v37  ;;  %v297_v44 = vld [vmem:[%s3866_s1 + $0x860] sm:$0xff]  ;;  %v299_v45 = vld [vmem:[%s3866_s1 + $0x870] sm:$0xff]  ;;  %v46_v46 = vld [vmem:[%s3866_s1 + $0x88] sm:$0xff]  ;;  %v1419_v50 = vpack.c.bf16 %v43_v42, %v41_v41 }
   0xc   :  { %v48_v47 = vld [vmem:[%s3866_s1 + $0x98] sm:$0xff]  ;;  %v302_v48 = vld [vmem:[%s3866_s1 + $0x888] sm:$0xff]  ;;  %v1675_v51 = vpack.c.bf16 %v299_v45, %v297_v44  ;;  %v45_v53 = vld [vmem:[%s3866_s1 + $0x80] sm:$0xff] }
   0xd   :  { %v304_v49 = vld [vmem:[%s3866_s1 + $0x898] sm:$0xff]  ;;  %1416 = vmatpush1.bf16.msra.mxu1 %v1415_v34  ;;  %v1421_v52 = vpack.c.bf16 %v48_v47, %v46_v46  ;;  %v47_v54 = vld [vmem:[%s3866_s1 + $0x90] sm:$0xff]  ;;  %v301_v55 = vld [vmem:[%s3866_s1 + $0x880] sm:$0xff] }
   0xe   :  { %1672 = vmatpush1.bf16.msra.mxu0 %v1671_v38  ;;  %1418 = vmatprep.subr.bf16.mxu1 %v1417_v39  ;;  %v1677_v56 = vpack.c.bf16 %v304_v49, %v302_v48  ;;  %v303_v57 = vld [vmem:[%s3866_s1 + $0x890] sm:$0xff]  ;;  %v50_v58 = vld [vmem:[%s3866_s1 + $0xa8] sm:$0xff]  ;;  %v52_v59 = vld [vmem:[%s3866_s1 + $0xb8] sm:$0xff]  ;;  %v1423_v62 = vpack.c.bf16 %v47_v54, %v45_v53 }
   0xf   :  { %1674 = vmatprep.subr.bf16.mxu0 %v1673_v43  ;;  %v306_v60 = vld [vmem:[%s3866_s1 + $0x8a8] sm:$0xff]  ;;  %v308_v61 = vld [vmem:[%s3866_s1 + $0x8b8] sm:$0xff]  ;;  %v1679_v63 = vpack.c.bf16 %v303_v57, %v301_v55  ;;  %v1425_v0 = vpack.c.bf16 %v52_v59, %v50_v58  ;;  %v49_v1 = vld [vmem:[%s3866_s1 + $0xa0] sm:$0xff] }
  0x10   :  { %v51_v2 = vld [vmem:[%s3866_s1 + $0xb0] sm:$0xff]  ;;  %v305_v3 = vld [vmem:[%s3866_s1 + $0x8a0] sm:$0xff]  ;;  %v1681_v4 = vpack.c.bf16 %v308_v61, %v306_v60  ;;  %v54_v6 = vld [vmem:[%s3866_s1 + $0xc8] sm:$0xff] }
  0x11   :  { %1420 = vmatpush1.bf16.msra.mxu1 %v1419_v50  ;;  %v307_v5 = vld [vmem:[%s3866_s1 + $0x8b0] sm:$0xff]  ;;  %v56_v7 = vld [vmem:[%s3866_s1 + $0xd8] sm:$0xff]  ;;  %v310_v8 = vld [vmem:[%s3866_s1 + $0x8c8] sm:$0xff]  ;;  %v1427_v10 = vpack.c.bf16 %v51_v2, %v49_v1 }
  0x12   :  { %1676 = vmatpush1.bf16.msra.mxu0 %v1675_v51  ;;  %1422 = vmatprep.subr.bf16.mxu1 %v1421_v52  ;;  %v312_v9 = vld [vmem:[%s3866_s1 + $0x8d8] sm:$0xff]  ;;  %v1683_v11 = vpack.c.bf16 %v307_v5, %v305_v3  ;;  %v1429_v12 = vpack.c.bf16 %v56_v7, %v54_v6  ;;  %v53_v13 = vld [vmem:[%s3866_s1 + $0xc0] sm:$0xff]  ;;  %v55_v14 = vld [vmem:[%s3866_s1 + $0xd0] sm:$0xff] }
  0x13   :  { %1678 = vmatprep.subr.bf16.mxu0 %v1677_v56  ;;  %v309_v15 = vld [vmem:[%s3866_s1 + $0x8c0] sm:$0xff]  ;;  %v1685_v16 = vpack.c.bf16 %v312_v9, %v310_v8  ;;  %v311_v17 = vld [vmem:[%s3866_s1 + $0x8d0] sm:$0xff]  ;;  %v58_v18 = vld [vmem:[%s3866_s1 + $0xe8] sm:$0xff]  ;;  %v1431_v22 = vpack.c.bf16 %v55_v14, %v53_v13 }
  0x14   :  { %v60_v19 = vld [vmem:[%s3866_s1 + $0xf8] sm:$0xff]  ;;  %v314_v20 = vld [vmem:[%s3866_s1 + $0x8e8] sm:$0xff]  ;;  %v1687_v23 = vpack.c.bf16 %v311_v17, %v309_v15  ;;  %v57_v25 = vld [vmem:[%s3866_s1 + $0xe0] sm:$0xff] }
  0x15   :  { %1424 = vmatpush1.bf16.msra.mxu1 %v1423_v62  ;;  %v316_v21 = vld [vmem:[%s3866_s1 + $0x8f8] sm:$0xff]  ;;  %v1433_v24 = vpack.c.bf16 %v60_v19, %v58_v18  ;;  %v59_v26 = vld [vmem:[%s3866_s1 + $0xf0] sm:$0xff]  ;;  %v313_v27 = vld [vmem:[%s3866_s1 + $0x8e0] sm:$0xff] }
  0x16   :  { %1680 = vmatpush1.bf16.msra.mxu0 %v1679_v63  ;;  %1426 = vmatprep.subr.bf16.mxu1 %v1425_v0  ;;  %v1689_v28 = vpack.c.bf16 %v316_v21, %v314_v20  ;;  %v315_v29 = vld [vmem:[%s3866_s1 + $0x8f0] sm:$0xff]  ;;  %v62_v30 = vld [vmem:[%s3866_s1 + $0x108] sm:$0xff]  ;;  %v64_v31 = vld [vmem:[%s3866_s1 + $0x118] sm:$0xff]  ;;  %v1435_v34 = vpack.c.bf16 %v59_v26, %v57_v25 }
  0x17   :  { %1682 = vmatprep.subr.bf16.mxu0 %v1681_v4  ;;  %v318_v32 = vld [vmem:[%s3866_s1 + $0x908] sm:$0xff]  ;;  %v320_v33 = vld [vmem:[%s3866_s1 + $0x918] sm:$0xff]  ;;  %v1691_v35 = vpack.c.bf16 %v315_v29, %v313_v27  ;;  %v1437_v36 = vpack.c.bf16 %v64_v31, %v62_v30  ;;  %v61_v37 = vld [vmem:[%s3866_s1 + $0x100] sm:$0xff] }
  0x18   :  { %v63_v38 = vld [vmem:[%s3866_s1 + $0x110] sm:$0xff]  ;;  %v317_v39 = vld [vmem:[%s3866_s1 + $0x900] sm:$0xff]  ;;  %v1693_v40 = vpack.c.bf16 %v320_v33, %v318_v32  ;;  %v66_v42 = vld [vmem:[%s3866_s1 + $0x128] sm:$0xff] }
  0x19   :  { %1428 = vmatpush1.bf16.msra.mxu1 %v1427_v10  ;;  %v319_v41 = vld [vmem:[%s3866_s1 + $0x910] sm:$0xff]  ;;  %v68_v43 = vld [vmem:[%s3866_s1 + $0x138] sm:$0xff]  ;;  %v322_v44 = vld [vmem:[%s3866_s1 + $0x928] sm:$0xff]  ;;  %v1439_v46 = vpack.c.bf16 %v63_v38, %v61_v37 }
  0x1a   :  { %1684 = vmatpush1.bf16.msra.mxu0 %v1683_v11  ;;  %1430 = vmatprep.subr.bf16.mxu1 %v1429_v12  ;;  %v324_v45 = vld [vmem:[%s3866_s1 + $0x938] sm:$0xff]  ;;  %v1695_v47 = vpack.c.bf16 %v319_v41, %v317_v39  ;;  %v1441_v48 = vpack.c.bf16 %v68_v43, %v66_v42  ;;  %v65_v49 = vld [vmem:[%s3866_s1 + $0x120] sm:$0xff]  ;;  %v67_v50 = vld [vmem:[%s3866_s1 + $0x130] sm:$0xff] }
  0x1b   :  { %1686 = vmatprep.subr.bf16.mxu0 %v1685_v16  ;;  %v321_v51 = vld [vmem:[%s3866_s1 + $0x920] sm:$0xff]  ;;  %v1697_v52 = vpack.c.bf16 %v324_v45, %v322_v44  ;;  %v323_v53 = vld [vmem:[%s3866_s1 + $0x930] sm:$0xff]  ;;  %v70_v54 = vld [vmem:[%s3866_s1 + $0x148] sm:$0xff]  ;;  %v1443_v58 = vpack.c.bf16 %v67_v50, %v65_v49 }
  0x1c   :  { %v72_v55 = vld [vmem:[%s3866_s1 + $0x158] sm:$0xff]  ;;  %v326_v56 = vld [vmem:[%s3866_s1 + $0x948] sm:$0xff]  ;;  %v1699_v59 = vpack.c.bf16 %v323_v53, %v321_v51  ;;  %v69_v61 = vld [vmem:[%s3866_s1 + $0x140] sm:$0xff] }
  0x1d   :  { %1432 = vmatpush1.bf16.msra.mxu1 %v1431_v22  ;;  %v328_v57 = vld [vmem:[%s3866_s1 + $0x958] sm:$0xff]  ;;  %v1445_v60 = vpack.c.bf16 %v72_v55, %v70_v54  ;;  %v71_v62 = vld [vmem:[%s3866_s1 + $0x150] sm:$0xff]  ;;  %v325_v63 = vld [vmem:[%s3866_s1 + $0x940] sm:$0xff] }
  0x1e   :  { %1688 = vmatpush1.bf16.msra.mxu0 %v1687_v23  ;;  %1434 = vmatprep.subr.bf16.mxu1 %v1433_v24  ;;  %v1701_v0 = vpack.c.bf16 %v328_v57, %v326_v56  ;;  %v327_v1 = vld [vmem:[%s3866_s1 + $0x950] sm:$0xff]  ;;  %v74_v2 = vld [vmem:[%s3866_s1 + $0x168] sm:$0xff]  ;;  %v76_v3 = vld [vmem:[%s3866_s1 + $0x178] sm:$0xff]  ;;  %v1447_v6 = vpack.c.bf16 %v71_v62, %v69_v61 }
  0x1f   :  { %1690 = vmatprep.subr.bf16.mxu0 %v1689_v28  ;;  %v330_v4 = vld [vmem:[%s3866_s1 + $0x968] sm:$0xff]  ;;  %v332_v5 = vld [vmem:[%s3866_s1 + $0x978] sm:$0xff]  ;;  %v73_v7 = vld [vmem:[%s3866_s1 + $0x160] sm:$0xff]  ;;  %v1703_v8 = vpack.c.bf16 %v327_v1, %v325_v63  ;;  %v1449_v9 = vpack.c.bf16 %v76_v3, %v74_v2 }
  0x20   :  { %v75_v10 = vld [vmem:[%s3866_s1 + $0x170] sm:$0xff]  ;;  %v329_v11 = vld [vmem:[%s3866_s1 + $0x960] sm:$0xff]  ;;  %v1705_v13 = vpack.c.bf16 %v332_v5, %v330_v4  ;;  %v78_v14 = vld [vmem:[%s3866_s1 + $0x188] sm:$0xff] }
  0x21   :  { %1436 = vmatpush1.bf16.msra.mxu1 %v1435_v34  ;;  %v331_v12 = vld [vmem:[%s3866_s1 + $0x970] sm:$0xff]  ;;  %v80_v15 = vld [vmem:[%s3866_s1 + $0x198] sm:$0xff]  ;;  %v2341_v16 = vld [vmem:[%s3867_s0] sm:$0xff]  ;;  %v1451_v21 = vpack.c.bf16 %v75_v10, %v73_v7 }
  0x22   :  { %1692 = vmatpush1.bf16.msra.mxu0 %v1691_v35  ;;  %1438 = vmatprep.subr.bf16.mxu1 %v1437_v36  ;;  %v334_v17 = vld [vmem:[%s3866_s1 + $0x988] sm:$0xff]  ;;  %v336_v18 = vld [vmem:[%s3866_s1 + $0x998] sm:$0xff]  ;;  %v626_v19 = vcombine.high %v2341_v16, %v2341_v16  ;;  %v2354_v20 = vld [vmem:[%s3867_s0 + $0x20] sm:$0xff]  ;;  %v1707_v23 = vpack.c.bf16 %v331_v12, %v329_v11  ;;  %v1453_v24 = vpack.c.bf16 %v80_v15, %v78_v14 }
  0x23   :  { %1694 = vmatprep.subr.bf16.mxu0 %v1693_v40  ;;  %v630_v22 = vcombine.high %v2354_v20, %v2354_v20  ;;  %v77_v25 = vld [vmem:[%s3866_s1 + $0x180] sm:$0xff]  ;;  %v79_v26 = vld [vmem:[%s3866_s1 + $0x190] sm:$0xff]  ;;  %v1709_v28 = vpack.c.bf16 %v336_v18, %v334_v17  ;;  %v82_v30 = vld [vmem:[%s3866_s1 + $0x1a8] sm:$0xff] }
  0x24   :  { %v333_v27 = vld [vmem:[%s3866_s1 + $0x980] sm:$0xff]  ;;  %v335_v29 = vld [vmem:[%s3866_s1 + $0x990] sm:$0xff]  ;;  %v84_v31 = vld [vmem:[%s3866_s1 + $0x1b8] sm:$0xff]  ;;  %708 = vmatprep.mubr.f32.mxu1 %v626_v19  ;;  %v1455_v34 = vpack.c.bf16 %v79_v26, %v77_v25 }
  0x25   :  { %1440 = vmatpush1.bf16.msra.mxu1 %v1439_v46  ;;  %v338_v32 = vld [vmem:[%s3866_s1 + $0x9a8] sm:$0xff]  ;;  %v340_v33 = vld [vmem:[%s3866_s1 + $0x9b8] sm:$0xff]  ;;  %992 = vmatprep.mubr.f32.mxu0 %v630_v22  ;;  %v1711_v35 = vpack.c.bf16 %v335_v29, %v333_v27  ;;  %v1457_v36 = vpack.c.bf16 %v84_v31, %v82_v30  ;;  %v81_v37 = vld [vmem:[%s3866_s1 + $0x1a0] sm:$0xff] }
  0x26   :  { %1696 = vmatpush1.bf16.msra.mxu0 %v1695_v47  ;;  %1442 = vmatprep.subr.bf16.mxu1 %v1441_v48  ;;  %v83_v38 = vld [vmem:[%s3866_s1 + $0x1b0] sm:$0xff]  ;;  %v337_v39 = vld [vmem:[%s3866_s1 + $0x9a0] sm:$0xff]  ;;  %v1713_v40 = vpack.c.bf16 %v340_v33, %v338_v32  ;;  %v86_v42 = vld [vmem:[%s3866_s1 + $0x1c8] sm:$0xff] }
  0x27   :  { %1698 = vmatprep.subr.bf16.mxu0 %v1697_v52  ;;  %v339_v41 = vld [vmem:[%s3866_s1 + $0x9b0] sm:$0xff]  ;;  %v88_v43 = vld [vmem:[%s3866_s1 + $0x1d8] sm:$0xff]  ;;  %v342_v44 = vld [vmem:[%s3866_s1 + $0x9c8] sm:$0xff]  ;;  %v1459_v46 = vpack.c.bf16 %v83_v38, %v81_v37 }
  0x28   :  { %v344_v45 = vld [vmem:[%s3866_s1 + $0x9d8] sm:$0xff]  ;;  %v1715_v47 = vpack.c.bf16 %v339_v41, %v337_v39  ;;  %v1461_v48 = vpack.c.bf16 %v88_v43, %v86_v42  ;;  %v85_v49 = vld [vmem:[%s3866_s1 + $0x1c0] sm:$0xff]  ;;  %v87_v50 = vld [vmem:[%s3866_s1 + $0x1d0] sm:$0xff] }
  0x29   :  { %1444 = vmatpush1.bf16.msra.mxu1 %v1443_v58  ;;  %v341_v51 = vld [vmem:[%s3866_s1 + $0x9c0] sm:$0xff]  ;;  %v1717_v52 = vpack.c.bf16 %v344_v45, %v342_v44  ;;  %v343_v53 = vld [vmem:[%s3866_s1 + $0x9d0] sm:$0xff]  ;;  %v90_v54 = vld [vmem:[%s3866_s1 + $0x1e8] sm:$0xff]  ;;  %v1463_v58 = vpack.c.bf16 %v87_v50, %v85_v49 }
  0x2a   :  { %1700 = vmatpush1.bf16.msra.mxu0 %v1699_v59  ;;  %1446 = vmatprep.subr.bf16.mxu1 %v1445_v60  ;;  %v92_v55 = vld [vmem:[%s3866_s1 + $0x1f8] sm:$0xff]  ;;  %v346_v56 = vld [vmem:[%s3866_s1 + $0x9e8] sm:$0xff]  ;;  %v1719_v59 = vpack.c.bf16 %v343_v53, %v341_v51  ;;  %v89_v61 = vld [vmem:[%s3866_s1 + $0x1e0] sm:$0xff] }
  0x2b   :  { %1702 = vmatprep.subr.bf16.mxu0 %v1701_v0  ;;  %v348_v57 = vld [vmem:[%s3866_s1 + $0x9f8] sm:$0xff]  ;;  %v1465_v60 = vpack.c.bf16 %v92_v55, %v90_v54  ;;  %v91_v62 = vld [vmem:[%s3866_s1 + $0x1f0] sm:$0xff]  ;;  %v345_v63 = vld [vmem:[%s3866_s1 + $0x9e0] sm:$0xff] }
  0x2c   :  { %v1721_v0 = vpack.c.bf16 %v348_v57, %v346_v56  ;;  %v347_v1 = vld [vmem:[%s3866_s1 + $0x9f0] sm:$0xff]  ;;  %v94_v2 = vld [vmem:[%s3866_s1 + $0x208] sm:$0xff]  ;;  %v96_v3 = vld [vmem:[%s3866_s1 + $0x218] sm:$0xff] }
  0x2d   :  { %1448 = vmatpush1.bf16.msra.mxu1 %v1447_v6  ;;  %v350_v4 = vld [vmem:[%s3866_s1 + $0xa08] sm:$0xff]  ;;  %v352_v5 = vld [vmem:[%s3866_s1 + $0xa18] sm:$0xff]  ;;  %v1467_v6 = vpack.c.bf16 %v91_v62, %v89_v61  ;;  %v1723_v7 = vpack.c.bf16 %v347_v1, %v345_v63  ;;  %v95_v10 = vld [vmem:[%s3866_s1 + $0x210] sm:$0xff] }
  0x2e   :  { %1704 = vmatpush1.bf16.msra.mxu0 %v1703_v8  ;;  %1450 = vmatprep.subr.bf16.mxu1 %v1449_v9  ;;  %v1469_v8 = vpack.c.bf16 %v96_v3, %v94_v2  ;;  %v93_v9 = vld [vmem:[%s3866_s1 + $0x200] sm:$0xff]  ;;  %v1725_v12 = vpack.c.bf16 %v352_v5, %v350_v4  ;;  %v98_v14 = vld [vmem:[%s3866_s1 + $0x228] sm:$0xff]  ;;  %v100_v15 = vld [vmem:[%s3866_s1 + $0x238] sm:$0xff] }
  0x2f   :  { %1706 = vmatprep.subr.bf16.mxu0 %v1705_v13  ;;  %v349_v11 = vld [vmem:[%s3866_s1 + $0xa00] sm:$0xff]  ;;  %v351_v13 = vld [vmem:[%s3866_s1 + $0xa10] sm:$0xff]  ;;  %v354_v17 = vld [vmem:[%s3866_s1 + $0xa28] sm:$0xff]  ;;  %v1471_v19 = vpack.c.bf16 %v95_v10, %v93_v9  ;;  %v1473_v22 = vpack.c.bf16 %v100_v15, %v98_v14 }
  0x30   :  { %v356_v18 = vld [vmem:[%s3866_s1 + $0xa38] sm:$0xff]  ;;  %v353_v25 = vld [vmem:[%s3866_s1 + $0xa20] sm:$0xff]  ;;  %v355_v27 = vld [vmem:[%s3866_s1 + $0xa30] sm:$0xff] }
  0x31   :  { %1452 = vmatpush1.bf16.msra.mxu1 %v1451_v21  ;;  %v1727_v21 = vpack.c.bf16 %v351_v13, %v349_v11  ;;  %v1729_v26 = vpack.c.bf16 %v356_v18, %v354_v17  ;;  %v104_v29 = vld [vmem:[%s3866_s1 + $0x258] sm:$0xff]  ;;  %v358_v30 = vld [vmem:[%s3866_s1 + $0xa48] sm:$0xff]  ;;  %v1731_v33 = vpack.c.bf16 %v355_v27, %v353_v25  ;;  %v105_v45 = vld [vmem:[%s3866_s1 + $0x260] sm:$0xff] }
  0x32   :  { %1708 = vmatpush1.bf16.msra.mxu0 %v1707_v23  ;;  %1454 = vmatprep.subr.bf16.mxu1 %v1453_v24  ;;  %v97_v23 = vld [vmem:[%s3866_s1 + $0x220] sm:$0xff]  ;;  %v99_v24 = vld [vmem:[%s3866_s1 + $0x230] sm:$0xff]  ;;  %v360_v31 = vld [vmem:[%s3866_s1 + $0xa58] sm:$0xff] }
  0x33   :  { %1710 = vmatprep.subr.bf16.mxu0 %v1709_v28  ;;  %v102_v28 = vld [vmem:[%s3866_s1 + $0x248] sm:$0xff]  ;;  %v1475_v32 = vpack.c.bf16 %v99_v24, %v97_v23  ;;  %v1733_v37 = vpack.c.bf16 %v360_v31, %v358_v30  ;;  %v108_v39 = vld [vmem:[%s3866_s1 + $0x278] sm:$0xff]  ;;  %v363_v49 = vld [vmem:[%s3866_s1 + $0xa70] sm:$0xff] }
  0x34   :  { %v106_v38 = vld [vmem:[%s3866_s1 + $0x268] sm:$0xff]  ;;  %v364_v41 = vld [vmem:[%s3866_s1 + $0xa78] sm:$0xff]  ;;  %v109_v57 = vld [vmem:[%s3866_s1 + $0x280] sm:$0xff] }
  0x35   :  { %1456 = vmatpush1.bf16.msra.mxu1 %v1455_v34  ;;  %v1477_v34 = vpack.c.bf16 %v104_v29, %v102_v28  ;;  %v1481_v44 = vpack.c.bf16 %v108_v39, %v106_v38  ;;  %v110_v50 = vld [vmem:[%s3866_s1 + $0x288] sm:$0xff]  ;;  %v112_v51 = vld [vmem:[%s3866_s1 + $0x298] sm:$0xff]  ;;  %v367_v61 = vld [vmem:[%s3866_s1 + $0xa90] sm:$0xff] }
  0x36   :  { %1712 = vmatpush1.bf16.msra.mxu0 %v1711_v35  ;;  %1458 = vmatprep.subr.bf16.mxu1 %v1457_v36  ;;  %v103_v35 = vld [vmem:[%s3866_s1 + $0x250] sm:$0xff]  ;;  %v357_v36 = vld [vmem:[%s3866_s1 + $0xa40] sm:$0xff]  ;;  %v368_v53 = vld [vmem:[%s3866_s1 + $0xa98] sm:$0xff]  ;;  %v1485_v56 = vpack.c.bf16 %v112_v51, %v110_v50 }
  0x37   :  { %1714 = vmatprep.subr.bf16.mxu0 %v1713_v40  ;;  %v362_v40 = vld [vmem:[%s3866_s1 + $0xa68] sm:$0xff]  ;;  %v116_v63 = vld [vmem:[%s3866_s1 + $0x2b8] sm:$0xff]  ;;  %v113_v5 = vld [vmem:[%s3866_s1 + $0x2a0] sm:$0xff] }
  0x38   :  { %v114_v62 = vld [vmem:[%s3866_s1 + $0x2a8] sm:$0xff]  ;;  %v372_v1 = vld [vmem:[%s3866_s1 + $0xab8] sm:$0xff]  ;;  %v371_v9 = vld [vmem:[%s3866_s1 + $0xab0] sm:$0xff] }
  0x39   :  { %1460 = vmatpush1.bf16.msra.mxu1 %v1459_v46  ;;  %v107_v46 = vld [vmem:[%s3866_s1 + $0x270] sm:$0xff]  ;;  %v1489_v4 = vpack.c.bf16 %v116_v63, %v114_v62  ;;  %v118_v10 = vld [vmem:[%s3866_s1 + $0x2c8] sm:$0xff]  ;;  %v120_v11 = vld [vmem:[%s3866_s1 + $0x2d8] sm:$0xff] }
  0x3a   :  { %1716 = vmatpush1.bf16.msra.mxu0 %v1715_v47  ;;  %1462 = vmatprep.subr.bf16.mxu1 %v1461_v48  ;;  %v361_v47 = vld [vmem:[%s3866_s1 + $0xa60] sm:$0xff]  ;;  %v1737_v48 = vpack.c.bf16 %v364_v41, %v362_v40  ;;  %v1483_v54 = vpack.c.bf16 %v107_v46, %v105_v45  ;;  %v376_v13 = vld [vmem:[%s3866_s1 + $0xad8] sm:$0xff]  ;;  %v1493_v18 = vpack.c.bf16 %v120_v11, %v118_v10  ;;  %v122_v24 = vld [vmem:[%s3866_s1 + $0x2e8] sm:$0xff] }
  0x3b   :  { %1718 = vmatprep.subr.bf16.mxu0 %v1717_v52  ;;  %v366_v52 = vld [vmem:[%s3866_s1 + $0xa88] sm:$0xff]  ;;  %v1739_v55 = vpack.c.bf16 %v363_v49, %v361_v47  ;;  %v117_v15 = vld [vmem:[%s3866_s1 + $0x2c0] sm:$0xff]  ;;  %v124_v25 = vld [vmem:[%s3866_s1 + $0x2f8] sm:$0xff] }
  0x3c   :  { %v378_v27 = vld [vmem:[%s3866_s1 + $0xae8] sm:$0xff]  ;;  %v380_v28 = vld [vmem:[%s3866_s1 + $0xaf8] sm:$0xff]  ;;  %v125_v45 = vld [vmem:[%s3866_s1 + $0x300] sm:$0xff] }
  0x3d   :  { %1464 = vmatpush1.bf16.msra.mxu1 %v1463_v58  ;;  %v111_v58 = vld [vmem:[%s3866_s1 + $0x290] sm:$0xff]  ;;  %v2634_v30 = vld [vmem:[%s3867_s0 + $0x28] sm:$0xff]  ;;  %v128_v39 = vld [vmem:[%s3866_s1 + $0x318] sm:$0xff] }
  0x3e   :  { %1720 = vmatpush1.bf16.msra.mxu0 %v1719_v59  ;;  %1466 = vmatprep.subr.bf16.mxu1 %v1465_v60  ;;  %v365_v59 = vld [vmem:[%s3866_s1 + $0xa80] sm:$0xff]  ;;  %v1741_v60 = vpack.c.bf16 %v368_v53, %v366_v52  ;;  %v1487_v2 = vpack.c.bf16 %v111_v58, %v109_v57  ;;  %v126_v38 = vld [vmem:[%s3866_s1 + $0x308] sm:$0xff]  ;;  %v384_v41 = vld [vmem:[%s3866_s1 + $0xb18] sm:$0xff] }
  0x3f   :  { %1722 = vmatprep.subr.bf16.mxu0 %v1721_v0  ;;  %v370_v0 = vld [vmem:[%s3866_s1 + $0xaa8] sm:$0xff]  ;;  %v1743_v3 = vpack.c.bf16 %v367_v61, %v365_v59  ;;  %v127_v46 = vld [vmem:[%s3866_s1 + $0x310] sm:$0xff]  ;;  %v381_v47 = vld [vmem:[%s3866_s1 + $0xb00] sm:$0xff] }
  0x40   :  { %v382_v40 = vld [vmem:[%s3866_s1 + $0xb08] sm:$0xff]  ;;  %v383_v49 = vld [vmem:[%s3866_s1 + $0xb10] sm:$0xff]  ;;  %v132_v51 = vld [vmem:[%s3866_s1 + $0x338] sm:$0xff] }
  0x41   :  { %1468 = vmatpush1.bf16.msra.mxu1 %v1467_v6  ;;  %v115_v6 = vld [vmem:[%s3866_s1 + $0x2b0] sm:$0xff]  ;;  %v130_v50 = vld [vmem:[%s3866_s1 + $0x328] sm:$0xff]  ;;  %v388_v53 = vld [vmem:[%s3866_s1 + $0xb38] sm:$0xff] }
  0x42   :  { %1724 = vmatpush1.bf16.msra.mxu0 %v1723_v7  ;;  %1470 = vmatprep.subr.bf16.mxu1 %v1469_v8  ;;  %v369_v7 = vld [vmem:[%s3866_s1 + $0xaa0] sm:$0xff]  ;;  %v1745_v8 = vpack.c.bf16 %v372_v1, %v370_v0  ;;  %v1491_v14 = vpack.c.bf16 %v115_v6, %v113_v5  ;;  %v386_v52 = vld [vmem:[%s3866_s1 + $0xb28] sm:$0xff]  ;;  %v131_v58 = vld [vmem:[%s3866_s1 + $0x330] sm:$0xff] }
  0x43   :  { %1726 = vmatprep.subr.bf16.mxu0 %v1725_v12  ;;  %v374_v12 = vld [vmem:[%s3866_s1 + $0xac8] sm:$0xff]  ;;  %v1747_v17 = vpack.c.bf16 %v371_v9, %v369_v7  ;;  %v129_v57 = vld [vmem:[%s3866_s1 + $0x320] sm:$0xff]  ;;  %v387_v61 = vld [vmem:[%s3866_s1 + $0xb30] sm:$0xff] }
  0x44   :  { %709 = vmatmul.mubr.f32.vlgmr.msra.gmra.mrb[0].mxu1 %v2341_v16  ;;  %v101_v16 = vld [vmem:[%s3866_s1 + $0x240] sm:$0xff]  ;;  %v1749_v23 = vpack.c.bf16 %v376_v13, %v374_v12  ;;  %v134_v62 = vld [vmem:[%s3866_s1 + $0x348] sm:$0xff]  ;;  %v136_v63 = vld [vmem:[%s3866_s1 + $0x358] sm:$0xff] }
  0x45   :  { %1472 = vmatpush1.bf16.msra.mxu1 %v1471_v19  ;;  %993 = vmatmul.mubr.f32.vlgmr.msra.gmra.mrb[0].mxu0 %v2354_v20  ;;  %v359_v20 = vld [vmem:[%s3866_s1 + $0xa50] sm:$0xff]  ;;  %v1479_v42 = vpack.c.bf16 %v103_v35, %v101_v16  ;;  %v121_v16 = vld [vmem:[%s3866_s1 + $0x2e0] sm:$0xff]  ;;  %v390_v0 = vld [vmem:[%s3866_s1 + $0xb48] sm:$0xff] }
  0x46   :  { %1728 = vmatpush1.bf16.msra.mxu0 %v1727_v21  ;;  %1474 = vmatprep.subr.bf16.mxu1 %v1473_v22  ;;  %v1735_v43 = vpack.c.bf16 %v359_v20, %v357_v36  ;;  %v119_v19 = vld [vmem:[%s3866_s1 + $0x2d0] sm:$0xff]  ;;  %v373_v21 = vld [vmem:[%s3866_s1 + $0xac0] sm:$0xff]  ;;  %v392_v1 = vld [vmem:[%s3866_s1 + $0xb58] sm:$0xff] }
  0x47   :  { %1730 = vmatprep.subr.bf16.mxu0 %v1729_v26  ;;  %v375_v22 = vld [vmem:[%s3866_s1 + $0xad0] sm:$0xff]  ;;  %v2621_v26 = vld [vmem:[%s3867_s0 + $0x8] sm:$0xff]  ;;  %v1495_v31 = vpack.c.bf16 %v119_v19, %v117_v15  ;;  %v377_v36 = vld [vmem:[%s3866_s1 + $0xae0] sm:$0xff] }
  0x48   :  { %v627_v29 = vcombine.high %v2621_v26, %v2621_v26  ;;  %v123_v35 = vld [vmem:[%s3866_s1 + $0x2f0] sm:$0xff]  ;;  %v385_v59 = vld [vmem:[%s3866_s1 + $0xb20] sm:$0xff]  ;;  %v138_v10 = vld [vmem:[%s3866_s1 + $0x368] sm:$0xff] }
  0x49   :  { %1476 = vmatpush1.bf16.msra.mxu1 %v1475_v32  ;;  %v631_v32 = vcombine.high %v2634_v30, %v2634_v30  ;;  %v379_v20 = vld [vmem:[%s3866_s1 + $0xaf0] sm:$0xff]  ;;  %v133_v5 = vld [vmem:[%s3866_s1 + $0x340] sm:$0xff]  ;;  %v140_v11 = vld [vmem:[%s3866_s1 + $0x378] sm:$0xff] }
  0x4a   :  { %1732 = vmatpush1.bf16.msra.mxu0 %v1731_v33  ;;  %1478 = vmatprep.subr.bf16.mxu1 %v1477_v34  ;;  %v1751_v33 = vpack.c.bf16 %v375_v22, %v373_v21  ;;  %v1497_v34 = vpack.c.bf16 %v124_v25, %v122_v24  ;;  %v135_v6 = vld [vmem:[%s3866_s1 + $0x350] sm:$0xff]  ;;  %v389_v7 = vld [vmem:[%s3866_s1 + $0xb40] sm:$0xff]  ;;  %v394_v12 = vld [vmem:[%s3866_s1 + $0xb68] sm:$0xff] }
  0x4b   :  { %1734 = vmatprep.subr.bf16.mxu0 %v1733_v37  ;;  %v1753_v37 = vpack.c.bf16 %v380_v28, %v378_v27  ;;  %779 = vmatprep.mubr.f32.mxu1 %v627_v29  ;;  %v391_v9 = vld [vmem:[%s3866_s1 + $0xb50] sm:$0xff]  ;;  %v396_v13 = vld [vmem:[%s3866_s1 + $0xb78] sm:$0xff]  ;;  %v393_v21 = vld [vmem:[%s3866_s1 + $0xb60] sm:$0xff] }
  0x4c   :  { %1063 = vmatprep.mubr.f32.mxu0 %v631_v32  ;;  %v1767_v15 = vpack.c.bf16 %v391_v9, %v389_v7  ;;  %v139_v19 = vld [vmem:[%s3866_s1 + $0x370] sm:$0xff]  ;;  %v1769_v22 = vpack.c.bf16 %v396_v13, %v394_v12  ;;  %v142_v24 = vld [vmem:[%s3866_s1 + $0x388] sm:$0xff]  ;;  %v144_v25 = vld [vmem:[%s3866_s1 + $0x398] sm:$0xff] }
  0x4d   :  { %1480 = vmatpush1.bf16.msra.mxu1 %v1479_v42  ;;  %v1499_v42 = vpack.c.bf16 %v123_v35, %v121_v16  ;;  %v398_v27 = vld [vmem:[%s3866_s1 + $0xb88] sm:$0xff]  ;;  %v400_v28 = vld [vmem:[%s3866_s1 + $0xb98] sm:$0xff]  ;;  %v1517_v32 = vpack.c.bf16 %v144_v25, %v142_v24  ;;  %v397_v16 = vld [vmem:[%s3866_s1 + $0xb80] sm:$0xff] }
  0x4e   :  { %1736 = vmatpush1.bf16.msra.mxu0 %v1735_v43  ;;  %1482 = vmatprep.subr.bf16.mxu1 %v1481_v44  ;;  %v1755_v43 = vpack.c.bf16 %v379_v20, %v377_v36  ;;  %v1501_v44 = vpack.c.bf16 %v128_v39, %v126_v38  ;;  %v1773_v35 = vpack.c.bf16 %v400_v28, %v398_v27  ;;  %v399_v36 = vld [vmem:[%s3866_s1 + $0xb90] sm:$0xff]  ;;  %v148_v20 = vld [vmem:[%s3866_s1 + $0x3b8] sm:$0xff]  ;;  %v402_v38 = vld [vmem:[%s3866_s1 + $0xba8] sm:$0xff] }
  0x4f   :  { %1738 = vmatprep.subr.bf16.mxu0 %v1737_v48  ;;  %v1757_v48 = vpack.c.bf16 %v384_v41, %v382_v40  ;;  %v404_v39 = vld [vmem:[%s3866_s1 + $0xbb8] sm:$0xff]  ;;  %v1775_v41 = vpack.c.bf16 %v399_v36, %v397_v16  ;;  %v411_v7 = vld [vmem:[%s3866_s1 + $0xbf0] sm:$0xff]  ;;  %v418_v24 = vld [vmem:[%s3866_s1 + $0xc28] sm:$0xff] }
  0x50   :  { %v160_v9 = vld [vmem:[%s3866_s1 + $0x418] sm:$0xff]  ;;  %v161_v28 = vld [vmem:[%s3866_s1 + $0x420] sm:$0xff]  ;;  %v2893_v16 = vld [vmem:[%s3867_s0 + $0x10] sm:$0xff] }
  0x51   :  { %1484 = vmatpush1.bf16.msra.mxu1 %v1483_v54  ;;  %v1503_v54 = vpack.c.bf16 %v127_v46, %v125_v45  ;;  %v401_v45 = vld [vmem:[%s3866_s1 + $0xba0] sm:$0xff]  ;;  %v1777_v46 = vpack.c.bf16 %v404_v39, %v402_v38  ;;  %v420_v25 = vld [vmem:[%s3866_s1 + $0xc38] sm:$0xff]  ;;  %v166_v36 = vld [vmem:[%s3866_s1 + $0x448] sm:$0xff] }
  0x52   :  { %1740 = vmatpush1.bf16.msra.mxu0 %v1739_v55  ;;  %1486 = vmatprep.subr.bf16.mxu1 %v1485_v56  ;;  %v1759_v55 = vpack.c.bf16 %v383_v49, %v381_v47  ;;  %v1505_v56 = vpack.c.bf16 %v132_v51, %v130_v50  ;;  %v403_v47 = vld [vmem:[%s3866_s1 + $0xbb0] sm:$0xff]  ;;  %v152_v49 = vld [vmem:[%s3866_s1 + $0x3d8] sm:$0xff]  ;;  %v406_v50 = vld [vmem:[%s3866_s1 + $0xbc8] sm:$0xff] }
  0x53   :  { %1742 = vmatprep.subr.bf16.mxu0 %v1741_v60  ;;  %v1761_v60 = vpack.c.bf16 %v388_v53, %v386_v52  ;;  %v408_v51 = vld [vmem:[%s3866_s1 + $0xbd8] sm:$0xff]  ;;  %v1779_v53 = vpack.c.bf16 %v403_v47, %v401_v45  ;;  %v2906_v38 = vld [vmem:[%s3867_s0 + $0x30] sm:$0xff]  ;;  %v422_v39 = vld [vmem:[%s3866_s1 + $0xc48] sm:$0xff] }
  0x54   :  { %v167_v45 = vld [vmem:[%s3866_s1 + $0x450] sm:$0xff] }
  0x55   :  { %1488 = vmatpush1.bf16.msra.mxu1 %v1487_v2  ;;  %v1507_v2 = vpack.c.bf16 %v131_v58, %v129_v57  ;;  %v405_v57 = vld [vmem:[%s3866_s1 + $0xbc0] sm:$0xff]  ;;  %v1781_v58 = vpack.c.bf16 %v408_v51, %v406_v50  ;;  %v426_v50 = vld [vmem:[%s3866_s1 + $0xc68] sm:$0xff]  ;;  %v428_v51 = vld [vmem:[%s3866_s1 + $0xc78] sm:$0xff] }
  0x56   :  { %1744 = vmatpush1.bf16.msra.mxu0 %v1743_v3  ;;  %1490 = vmatprep.subr.bf16.mxu1 %v1489_v4  ;;  %v1763_v3 = vpack.c.bf16 %v387_v61, %v385_v59  ;;  %v1509_v4 = vpack.c.bf16 %v136_v63, %v134_v62  ;;  %v407_v59 = vld [vmem:[%s3866_s1 + $0xbd0] sm:$0xff]  ;;  %v156_v61 = vld [vmem:[%s3866_s1 + $0x3f8] sm:$0xff]  ;;  %v410_v62 = vld [vmem:[%s3866_s1 + $0xbe8] sm:$0xff] }
  0x57   :  { %1746 = vmatprep.subr.bf16.mxu0 %v1745_v8  ;;  %v1765_v8 = vpack.c.bf16 %v392_v1, %v390_v0  ;;  %v412_v63 = vld [vmem:[%s3866_s1 + $0xbf8] sm:$0xff]  ;;  %v1783_v1 = vpack.c.bf16 %v407_v59, %v405_v57  ;;  %v425_v57 = vld [vmem:[%s3866_s1 + $0xc60] sm:$0xff]  ;;  %v427_v59 = vld [vmem:[%s3866_s1 + $0xc70] sm:$0xff] }
  0x59   :  { %1492 = vmatpush1.bf16.msra.mxu1 %v1491_v14  ;;  %v1511_v14 = vpack.c.bf16 %v135_v6, %v133_v5  ;;  %v409_v5 = vld [vmem:[%s3866_s1 + $0xbe0] sm:$0xff]  ;;  %v1785_v6 = vpack.c.bf16 %v412_v63, %v410_v62  ;;  %v430_v62 = vld [vmem:[%s3866_s1 + $0xc88] sm:$0xff]  ;;  %v432_v63 = vld [vmem:[%s3866_s1 + $0xc98] sm:$0xff] }
  0x5a   :  { %1748 = vmatpush1.bf16.msra.mxu0 %v1747_v17  ;;  %1494 = vmatprep.subr.bf16.mxu1 %v1493_v18  ;;  %v1513_v17 = vpack.c.bf16 %v140_v11, %v138_v10  ;;  %v137_v18 = vld [vmem:[%s3866_s1 + $0x360] sm:$0xff]  ;;  %v414_v10 = vld [vmem:[%s3866_s1 + $0xc08] sm:$0xff]  ;;  %v416_v11 = vld [vmem:[%s3866_s1 + $0xc18] sm:$0xff]  ;;  %v1787_v13 = vpack.c.bf16 %v411_v7, %v409_v5 }
  0x5b   :  { %1750 = vmatprep.subr.bf16.mxu0 %v1749_v23  ;;  %v395_v23 = vld [vmem:[%s3866_s1 + $0xb70] sm:$0xff]  ;;  %v1515_v29 = vpack.c.bf16 %v139_v19, %v137_v18  ;;  %v413_v18 = vld [vmem:[%s3866_s1 + $0xc00] sm:$0xff]  ;;  %v1789_v19 = vpack.c.bf16 %v416_v11, %v414_v10  ;;  %v434_v10 = vld [vmem:[%s3866_s1 + $0xca8] sm:$0xff] }
  0x5c   :  { %v429_v5 = vld [vmem:[%s3866_s1 + $0xc80] sm:$0xff]  ;;  %v431_v7 = vld [vmem:[%s3866_s1 + $0xc90] sm:$0xff]  ;;  %v436_v11 = vld [vmem:[%s3866_s1 + $0xcb8] sm:$0xff] }
  0x5d   :  { %1496 = vmatpush1.bf16.msra.mxu1 %v1495_v31  ;;  %v1771_v31 = vpack.c.bf16 %v395_v23, %v393_v21  ;;  %v415_v21 = vld [vmem:[%s3866_s1 + $0xc10] sm:$0xff]  ;;  %v164_v23 = vld [vmem:[%s3866_s1 + $0x438] sm:$0xff] }
  0x5e   :  { %1752 = vmatpush1.bf16.msra.mxu0 %v1751_v33  ;;  %1498 = vmatprep.subr.bf16.mxu1 %v1497_v34  ;;  %v141_v33 = vld [vmem:[%s3866_s1 + $0x380] sm:$0xff]  ;;  %v143_v34 = vld [vmem:[%s3866_s1 + $0x390] sm:$0xff] }
  0x5f   :  { %1754 = vmatprep.subr.bf16.mxu0 %v1753_v37  ;;  %v146_v37 = vld [vmem:[%s3866_s1 + $0x3a8] sm:$0xff]  ;;  %v1519_v40 = vpack.c.bf16 %v143_v34, %v141_v33  ;;  %v417_v33 = vld [vmem:[%s3866_s1 + $0xc20] sm:$0xff]  ;;  %v419_v34 = vld [vmem:[%s3866_s1 + $0xc30] sm:$0xff] }
  0x61   :  { %1500 = vmatpush1.bf16.msra.mxu1 %v1499_v42  ;;  %v1521_v42 = vpack.c.bf16 %v148_v20, %v146_v37  ;;  %v168_v37 = vld [vmem:[%s3866_s1 + $0x458] sm:$0xff]  ;;  %v628_v20 = vcombine.high %v2893_v16, %v2893_v16 }
  0x62   :  { %1756 = vmatpush1.bf16.msra.mxu0 %v1755_v43  ;;  %1502 = vmatprep.subr.bf16.mxu1 %v1501_v44  ;;  %v145_v43 = vld [vmem:[%s3866_s1 + $0x3a0] sm:$0xff]  ;;  %v147_v44 = vld [vmem:[%s3866_s1 + $0x3b0] sm:$0xff] }
  0x63   :  { %1758 = vmatprep.subr.bf16.mxu0 %v1757_v48  ;;  %v150_v48 = vld [vmem:[%s3866_s1 + $0x3c8] sm:$0xff]  ;;  %v1523_v52 = vpack.c.bf16 %v147_v44, %v145_v43  ;;  %v1795_v43 = vpack.c.bf16 %v419_v34, %v417_v33  ;;  %v1541_v44 = vpack.c.bf16 %v168_v37, %v166_v36  ;;  %v437_v33 = vld [vmem:[%s3866_s1 + $0xcc0] sm:$0xff]  ;;  %v188_v37 = vld [vmem:[%s3866_s1 + $0x4f8] sm:$0xff] }
  0x64   :  { %v186_v36 = vld [vmem:[%s3866_s1 + $0x4e8] sm:$0xff] }
  0x65   :  { %1504 = vmatpush1.bf16.msra.mxu1 %v1503_v54  ;;  %v1525_v54 = vpack.c.bf16 %v152_v49, %v150_v48  ;;  %v170_v48 = vld [vmem:[%s3866_s1 + $0x468] sm:$0xff]  ;;  %v172_v49 = vld [vmem:[%s3866_s1 + $0x478] sm:$0xff] }
  0x66   :  { %1760 = vmatpush1.bf16.msra.mxu0 %v1759_v55  ;;  %1506 = vmatprep.subr.bf16.mxu1 %v1505_v56  ;;  %v149_v55 = vld [vmem:[%s3866_s1 + $0x3c0] sm:$0xff]  ;;  %v151_v56 = vld [vmem:[%s3866_s1 + $0x3d0] sm:$0xff] }
  0x67   :  { %1762 = vmatprep.subr.bf16.mxu0 %v1761_v60  ;;  %v154_v60 = vld [vmem:[%s3866_s1 + $0x3e8] sm:$0xff]  ;;  %v1527_v0 = vpack.c.bf16 %v151_v56, %v149_v55  ;;  %v169_v55 = vld [vmem:[%s3866_s1 + $0x460] sm:$0xff]  ;;  %v171_v56 = vld [vmem:[%s3866_s1 + $0x470] sm:$0xff] }
  0x69   :  { %1508 = vmatpush1.bf16.msra.mxu1 %v1507_v2  ;;  %v1529_v2 = vpack.c.bf16 %v156_v61, %v154_v60  ;;  %v174_v60 = vld [vmem:[%s3866_s1 + $0x488] sm:$0xff]  ;;  %v176_v61 = vld [vmem:[%s3866_s1 + $0x498] sm:$0xff] }
  0x6a   :  { %1764 = vmatpush1.bf16.msra.mxu0 %v1763_v3  ;;  %1510 = vmatprep.subr.bf16.mxu1 %v1509_v4  ;;  %v153_v3 = vld [vmem:[%s3866_s1 + $0x3e0] sm:$0xff]  ;;  %v155_v4 = vld [vmem:[%s3866_s1 + $0x3f0] sm:$0xff] }
  0x6b   :  { %1766 = vmatprep.subr.bf16.mxu0 %v1765_v8  ;;  %v158_v8 = vld [vmem:[%s3866_s1 + $0x408] sm:$0xff]  ;;  %v1531_v12 = vpack.c.bf16 %v155_v4, %v153_v3  ;;  %v173_v3 = vld [vmem:[%s3866_s1 + $0x480] sm:$0xff]  ;;  %v175_v4 = vld [vmem:[%s3866_s1 + $0x490] sm:$0xff] }
  0x6d   :  { %1512 = vmatpush1.bf16.msra.mxu1 %v1511_v14  ;;  %v1533_v14 = vpack.c.bf16 %v160_v9, %v158_v8  ;;  %v178_v8 = vld [vmem:[%s3866_s1 + $0x4a8] sm:$0xff]  ;;  %v180_v9 = vld [vmem:[%s3866_s1 + $0x4b8] sm:$0xff] }
  0x6e   :  { %1768 = vmatpush1.bf16.msra.mxu0 %v1767_v15  ;;  %1514 = vmatprep.subr.bf16.mxu1 %v1513_v17  ;;  %v157_v15 = vld [vmem:[%s3866_s1 + $0x400] sm:$0xff]  ;;  %v159_v17 = vld [vmem:[%s3866_s1 + $0x410] sm:$0xff] }
  0x6f   :  { %1770 = vmatprep.subr.bf16.mxu0 %v1769_v22  ;;  %v162_v22 = vld [vmem:[%s3866_s1 + $0x428] sm:$0xff]  ;;  %v1535_v27 = vpack.c.bf16 %v159_v17, %v157_v15  ;;  %v177_v15 = vld [vmem:[%s3866_s1 + $0x4a0] sm:$0xff]  ;;  %v179_v17 = vld [vmem:[%s3866_s1 + $0x4b0] sm:$0xff] }
  0x71   :  { %1516 = vmatpush1.bf16.msra.mxu1 %v1515_v29  ;;  %v163_v29 = vld [vmem:[%s3866_s1 + $0x430] sm:$0xff] }
  0x72   :  { %1772 = vmatpush1.bf16.msra.mxu0 %v1771_v31  ;;  %1518 = vmatprep.subr.bf16.mxu1 %v1517_v32  ;;  %v1791_v31 = vpack.c.bf16 %v415_v21, %v413_v18  ;;  %v1537_v32 = vpack.c.bf16 %v164_v23, %v162_v22  ;;  %v433_v18 = vld [vmem:[%s3866_s1 + $0xca0] sm:$0xff]  ;;  %v435_v21 = vld [vmem:[%s3866_s1 + $0xcb0] sm:$0xff]  ;;  %v182_v22 = vld [vmem:[%s3866_s1 + $0x4c8] sm:$0xff] }
  0x73   :  { %1774 = vmatprep.subr.bf16.mxu0 %v1773_v35  ;;  %v1793_v35 = vpack.c.bf16 %v420_v25, %v418_v24  ;;  %v184_v23 = vld [vmem:[%s3866_s1 + $0x4d8] sm:$0xff]  ;;  %v438_v24 = vld [vmem:[%s3866_s1 + $0xcc8] sm:$0xff] }
  0x74   :  { %v440_v25 = vld [vmem:[%s3866_s1 + $0xcd8] sm:$0xff] }
  0x75   :  { %1520 = vmatpush1.bf16.msra.mxu1 %v1519_v40  ;;  %v424_v40 = vld [vmem:[%s3866_s1 + $0xc58] sm:$0xff]  ;;  %v1813_v34 = vpack.c.bf16 %v440_v25, %v438_v24 }
  0x76   :  { %1776 = vmatpush1.bf16.msra.mxu0 %v1775_v41  ;;  %1522 = vmatprep.subr.bf16.mxu1 %v1521_v42  ;;  %v632_v41 = vcombine.high %v2906_v38, %v2906_v38  ;;  %v1539_v42 = vpack.c.bf16 %v163_v29, %v161_v28  ;;  %v1797_v47 = vpack.c.bf16 %v424_v40, %v422_v39  ;;  %v444_v39 = vld [vmem:[%s3866_s1 + $0xcf8] sm:$0xff] }
  0x77   :  { %1778 = vmatprep.subr.bf16.mxu0 %v1777_v46  ;;  %v421_v46 = vld [vmem:[%s3866_s1 + $0xc40] sm:$0xff]  ;;  %v1811_v28 = vpack.c.bf16 %v435_v21, %v433_v18  ;;  %v1557_v29 = vpack.c.bf16 %v184_v23, %v182_v22  ;;  %v455_v18 = vld [vmem:[%s3866_s1 + $0xd50] sm:$0xff]  ;;  %v204_v21 = vld [vmem:[%s3866_s1 + $0x578] sm:$0xff] }
  0x78   :  { %v458_v22 = vld [vmem:[%s3866_s1 + $0xd68] sm:$0xff]  ;;  %v460_v23 = vld [vmem:[%s3866_s1 + $0xd78] sm:$0xff] }
  0x79   :  { %1524 = vmatpush1.bf16.msra.mxu1 %v1523_v52 }
  0x7a   :  { %1780 = vmatpush1.bf16.msra.mxu0 %v1779_v53  ;;  %1526 = vmatprep.subr.bf16.mxu1 %v1525_v54  ;;  %v1545_v54 = vpack.c.bf16 %v172_v49, %v170_v48  ;;  %v446_v48 = vld [vmem:[%s3866_s1 + $0xd08] sm:$0xff]  ;;  %v448_v49 = vld [vmem:[%s3866_s1 + $0xd18] sm:$0xff] }
  0x7b   :  { %1782 = vmatprep.subr.bf16.mxu0 %v1781_v58  ;;  %v1801_v58 = vpack.c.bf16 %v428_v51, %v426_v50 }
  0x7d   :  { %1528 = vmatpush1.bf16.msra.mxu1 %v1527_v0  ;;  %v1547_v0 = vpack.c.bf16 %v171_v56, %v169_v55  ;;  %v445_v55 = vld [vmem:[%s3866_s1 + $0xd00] sm:$0xff]  ;;  %v1821_v56 = vpack.c.bf16 %v448_v49, %v446_v48 }
  0x7e   :  { %1784 = vmatpush1.bf16.msra.mxu0 %v1783_v1  ;;  %1530 = vmatprep.subr.bf16.mxu1 %v1529_v2  ;;  %v1803_v1 = vpack.c.bf16 %v427_v59, %v425_v57  ;;  %v1549_v2 = vpack.c.bf16 %v176_v61, %v174_v60  ;;  %v447_v57 = vld [vmem:[%s3866_s1 + $0xd10] sm:$0xff]  ;;  %v196_v59 = vld [vmem:[%s3866_s1 + $0x538] sm:$0xff]  ;;  %v450_v60 = vld [vmem:[%s3866_s1 + $0xd28] sm:$0xff] }
  0x7f   :  { %1786 = vmatprep.subr.bf16.mxu0 %v1785_v6  ;;  %v1805_v6 = vpack.c.bf16 %v432_v63, %v430_v62  ;;  %v452_v61 = vld [vmem:[%s3866_s1 + $0xd38] sm:$0xff]  ;;  %v1823_v63 = vpack.c.bf16 %v447_v57, %v445_v55  ;;  %v467_v55 = vld [vmem:[%s3866_s1 + $0xdb0] sm:$0xff] }
  0x80   :  { %v216_v57 = vld [vmem:[%s3866_s1 + $0x5d8] sm:$0xff] }
  0x81   :  { %1532 = vmatpush1.bf16.msra.mxu1 %v1531_v12  ;;  %v1551_v12 = vpack.c.bf16 %v175_v4, %v173_v3  ;;  %v449_v3 = vld [vmem:[%s3866_s1 + $0xd20] sm:$0xff]  ;;  %v1825_v4 = vpack.c.bf16 %v452_v61, %v450_v60 }
  0x82   :  { %1788 = vmatpush1.bf16.msra.mxu0 %v1787_v13  ;;  %1534 = vmatprep.subr.bf16.mxu1 %v1533_v14  ;;  %v1807_v13 = vpack.c.bf16 %v431_v7, %v429_v5  ;;  %v1553_v14 = vpack.c.bf16 %v180_v9, %v178_v8  ;;  %v451_v5 = vld [vmem:[%s3866_s1 + $0xd30] sm:$0xff]  ;;  %v200_v7 = vld [vmem:[%s3866_s1 + $0x558] sm:$0xff]  ;;  %v454_v8 = vld [vmem:[%s3866_s1 + $0xd48] sm:$0xff] }
  0x83   :  { %1790 = vmatprep.subr.bf16.mxu0 %v1789_v19  ;;  %v1809_v19 = vpack.c.bf16 %v436_v11, %v434_v10  ;;  %v456_v9 = vld [vmem:[%s3866_s1 + $0xd58] sm:$0xff]  ;;  %v1827_v11 = vpack.c.bf16 %v451_v5, %v449_v3  ;;  %v471_v3 = vld [vmem:[%s3866_s1 + $0xdd0] sm:$0xff] }
  0x84   :  { %780 = vmatmul.mubr.f32.vlgmr.msra.gmra.mrb[0].mxu1 %v2621_v26  ;;  %v165_v26 = vld [vmem:[%s3866_s1 + $0x440] sm:$0xff]  ;;  %v220_v5 = vld [vmem:[%s3866_s1 + $0x5f8] sm:$0xff] }
  0x85   :  { %1536 = vmatpush1.bf16.msra.mxu1 %v1535_v27  ;;  %1064 = vmatmul.mubr.f32.vlgmr.msra.gmra.mrb[0].mxu0 %v2634_v30  ;;  %v423_v30 = vld [vmem:[%s3866_s1 + $0xc50] sm:$0xff]  ;;  %v1543_v52 = vpack.c.bf16 %v167_v45, %v165_v26  ;;  %v1555_v27 = vpack.c.bf16 %v179_v17, %v177_v15  ;;  %v441_v26 = vld [vmem:[%s3866_s1 + $0xce0] sm:$0xff]  ;;  %v1829_v17 = vpack.c.bf16 %v456_v9, %v454_v8 }
  0x86   :  { %1792 = vmatpush1.bf16.msra.mxu0 %v1791_v31  ;;  %1538 = vmatprep.subr.bf16.mxu1 %v1537_v32  ;;  %v1799_v53 = vpack.c.bf16 %v423_v30, %v421_v46  ;;  %v181_v31 = vld [vmem:[%s3866_s1 + $0x4c0] sm:$0xff]  ;;  %v183_v32 = vld [vmem:[%s3866_s1 + $0x4d0] sm:$0xff]  ;;  %v192_v30 = vld [vmem:[%s3866_s1 + $0x518] sm:$0xff] }
  0x87   :  { %1794 = vmatprep.subr.bf16.mxu0 %v1793_v35  ;;  %850 = vmatprep.mubr.f32.mxu1 %v628_v20  ;;  %v439_v35 = vld [vmem:[%s3866_s1 + $0xcd0] sm:$0xff]  ;;  %v442_v20 = vld [vmem:[%s3866_s1 + $0xce8] sm:$0xff]  ;;  %v1559_v40 = vpack.c.bf16 %v183_v32, %v181_v31  ;;  %v453_v15 = vld [vmem:[%s3866_s1 + $0xd40] sm:$0xff]  ;;  %v1833_v32 = vpack.c.bf16 %v460_v23, %v458_v22 }
  0x88   :  { %1134 = vmatprep.mubr.f32.mxu0 %v632_v41  ;;  %v1815_v41 = vpack.c.bf16 %v439_v35, %v437_v33  ;;  %v1817_v45 = vpack.c.bf16 %v444_v39, %v442_v20  ;;  %v443_v46 = vld [vmem:[%s3866_s1 + $0xcf0] sm:$0xff]  ;;  %v1831_v25 = vpack.c.bf16 %v455_v18, %v453_v15  ;;  %v457_v31 = vld [vmem:[%s3866_s1 + $0xd60] sm:$0xff]  ;;  %v208_v35 = vld [vmem:[%s3866_s1 + $0x598] sm:$0xff] }
  0x89   :  { %1540 = vmatpush1.bf16.msra.mxu1 %v1539_v42  ;;  %v1561_v42 = vpack.c.bf16 %v188_v37, %v186_v36  ;;  %v1819_v51 = vpack.c.bf16 %v443_v46, %v441_v26  ;;  %v459_v33 = vld [vmem:[%s3866_s1 + $0xd70] sm:$0xff]  ;;  %v462_v36 = vld [vmem:[%s3866_s1 + $0xd88] sm:$0xff]  ;;  %v464_v37 = vld [vmem:[%s3866_s1 + $0xd98] sm:$0xff] }
  0x8a   :  { %1796 = vmatpush1.bf16.msra.mxu0 %v1795_v43  ;;  %1542 = vmatprep.subr.bf16.mxu1 %v1541_v44  ;;  %v185_v43 = vld [vmem:[%s3866_s1 + $0x4e0] sm:$0xff]  ;;  %v187_v44 = vld [vmem:[%s3866_s1 + $0x4f0] sm:$0xff]  ;;  %v1835_v39 = vpack.c.bf16 %v459_v33, %v457_v31  ;;  %v212_v46 = vld [vmem:[%s3866_s1 + $0x5b8] sm:$0xff] }
  0x8b   :  { %1798 = vmatprep.subr.bf16.mxu0 %v1797_v47  ;;  %v190_v47 = vld [vmem:[%s3866_s1 + $0x508] sm:$0xff]  ;;  %v1563_v50 = vpack.c.bf16 %v187_v44, %v185_v43  ;;  %v461_v43 = vld [vmem:[%s3866_s1 + $0xd80] sm:$0xff]  ;;  %v1837_v44 = vpack.c.bf16 %v464_v37, %v462_v36  ;;  %v463_v26 = vld [vmem:[%s3866_s1 + $0xd90] sm:$0xff] }
  0x8c   :  { %v1839_v49 = vpack.c.bf16 %v463_v26, %v461_v43  ;;  %v475_v15 = vld [vmem:[%s3866_s1 + $0xdf0] sm:$0xff]  ;;  %v224_v18 = vld [vmem:[%s3866_s1 + $0x618] sm:$0xff]  ;;  %v481_v43 = vld [vmem:[%s3866_s1 + $0xe20] sm:$0xff] }
  0x8d   :  { %1544 = vmatpush1.bf16.msra.mxu1 %v1543_v52  ;;  %v1565_v52 = vpack.c.bf16 %v192_v30, %v190_v47  ;;  %v466_v47 = vld [vmem:[%s3866_s1 + $0xda8] sm:$0xff]  ;;  %v468_v30 = vld [vmem:[%s3866_s1 + $0xdb8] sm:$0xff]  ;;  %v479_v31 = vld [vmem:[%s3866_s1 + $0xe10] sm:$0xff] }
  0x8e   :  { %1800 = vmatpush1.bf16.msra.mxu0 %v1799_v53  ;;  %1546 = vmatprep.subr.bf16.mxu1 %v1545_v54  ;;  %v189_v53 = vld [vmem:[%s3866_s1 + $0x500] sm:$0xff]  ;;  %v191_v54 = vld [vmem:[%s3866_s1 + $0x510] sm:$0xff]  ;;  %v228_v33 = vld [vmem:[%s3866_s1 + $0x638] sm:$0xff] }
  0x8f   :  { %1802 = vmatprep.subr.bf16.mxu0 %v1801_v58  ;;  %v194_v58 = vld [vmem:[%s3866_s1 + $0x528] sm:$0xff]  ;;  %v1567_v62 = vpack.c.bf16 %v191_v54, %v189_v53  ;;  %v465_v53 = vld [vmem:[%s3866_s1 + $0xda0] sm:$0xff]  ;;  %v1841_v54 = vpack.c.bf16 %v468_v30, %v466_v47  ;;  %v3281_v36 = vld [vmem:[%s3867_s0 + $0x18] sm:$0xff] }
  0x90   :  { %v1843_v61 = vpack.c.bf16 %v467_v55, %v465_v53  ;;  %v483_v26 = vld [vmem:[%s3866_s1 + $0xe30] sm:$0xff]  ;;  %v629_v47 = vcombine.high %v3281_v36, %v3281_v36  ;;  %v486_v30 = vld [vmem:[%s3866_s1 + $0xe48] sm:$0xff] }
  0x91   :  { %1548 = vmatpush1.bf16.msra.mxu1 %v1547_v0  ;;  %v1569_v0 = vpack.c.bf16 %v196_v59, %v194_v58  ;;  %v470_v58 = vld [vmem:[%s3866_s1 + $0xdc8] sm:$0xff]  ;;  %v472_v59 = vld [vmem:[%s3866_s1 + $0xdd8] sm:$0xff]  ;;  %v231_v53 = vld [vmem:[%s3866_s1 + $0x650] sm:$0xff] }
  0x92   :  { %1804 = vmatpush1.bf16.msra.mxu0 %v1803_v1  ;;  %1550 = vmatprep.subr.bf16.mxu1 %v1549_v2  ;;  %v193_v1 = vld [vmem:[%s3866_s1 + $0x520] sm:$0xff]  ;;  %v195_v2 = vld [vmem:[%s3866_s1 + $0x530] sm:$0xff] }
  0x93   :  { %1806 = vmatprep.subr.bf16.mxu0 %v1805_v6  ;;  %v198_v6 = vld [vmem:[%s3866_s1 + $0x548] sm:$0xff]  ;;  %v1571_v10 = vpack.c.bf16 %v195_v2, %v193_v1  ;;  %v469_v1 = vld [vmem:[%s3866_s1 + $0xdc0] sm:$0xff]  ;;  %v1845_v2 = vpack.c.bf16 %v472_v59, %v470_v58  ;;  %v492_v59 = vld [vmem:[%s3866_s1 + $0xe78] sm:$0xff] }
  0x94   :  { %v1847_v9 = vpack.c.bf16 %v471_v3, %v469_v1  ;;  %v490_v58 = vld [vmem:[%s3866_s1 + $0xe68] sm:$0xff]  ;;  %v489_v1 = vld [vmem:[%s3866_s1 + $0xe60] sm:$0xff]  ;;  %v491_v3 = vld [vmem:[%s3866_s1 + $0xe70] sm:$0xff] }
  0x95   :  { %1552 = vmatpush1.bf16.msra.mxu1 %v1551_v12  ;;  %v1573_v12 = vpack.c.bf16 %v200_v7, %v198_v6  ;;  %v474_v6 = vld [vmem:[%s3866_s1 + $0xde8] sm:$0xff]  ;;  %v476_v7 = vld [vmem:[%s3866_s1 + $0xdf8] sm:$0xff] }
  0x96   :  { %1808 = vmatpush1.bf16.msra.mxu0 %v1807_v13  ;;  %1554 = vmatprep.subr.bf16.mxu1 %v1553_v14  ;;  %v197_v13 = vld [vmem:[%s3866_s1 + $0x540] sm:$0xff]  ;;  %v199_v14 = vld [vmem:[%s3866_s1 + $0x550] sm:$0xff] }
  0x97   :  { %1810 = vmatprep.subr.bf16.mxu0 %v1809_v19  ;;  %v202_v19 = vld [vmem:[%s3866_s1 + $0x568] sm:$0xff]  ;;  %v1575_v24 = vpack.c.bf16 %v199_v14, %v197_v13  ;;  %v473_v13 = vld [vmem:[%s3866_s1 + $0xde0] sm:$0xff]  ;;  %v1849_v14 = vpack.c.bf16 %v476_v7, %v474_v6  ;;  %v496_v7 = vld [vmem:[%s3866_s1 + $0xe98] sm:$0xff] }
  0x98   :  { %v1851_v23 = vpack.c.bf16 %v475_v15, %v473_v13  ;;  %v494_v6 = vld [vmem:[%s3866_s1 + $0xe88] sm:$0xff]  ;;  %v493_v13 = vld [vmem:[%s3866_s1 + $0xe80] sm:$0xff]  ;;  %v495_v15 = vld [vmem:[%s3866_s1 + $0xe90] sm:$0xff] }
  0x99   :  { %1556 = vmatpush1.bf16.msra.mxu1 %v1555_v27  ;;  %v1577_v27 = vpack.c.bf16 %v204_v21, %v202_v19  ;;  %v478_v19 = vld [vmem:[%s3866_s1 + $0xe08] sm:$0xff]  ;;  %v480_v21 = vld [vmem:[%s3866_s1 + $0xe18] sm:$0xff] }
  0x9a   :  { %1812 = vmatpush1.bf16.msra.mxu0 %v1811_v28  ;;  %1558 = vmatprep.subr.bf16.mxu1 %v1557_v29  ;;  %v201_v28 = vld [vmem:[%s3866_s1 + $0x560] sm:$0xff]  ;;  %v203_v29 = vld [vmem:[%s3866_s1 + $0x570] sm:$0xff] }
  0x9b   :  { %1814 = vmatprep.subr.bf16.mxu0 %v1813_v34  ;;  %v206_v34 = vld [vmem:[%s3866_s1 + $0x588] sm:$0xff]  ;;  %v1579_v20 = vpack.c.bf16 %v203_v29, %v201_v28  ;;  %v477_v28 = vld [vmem:[%s3866_s1 + $0xe00] sm:$0xff]  ;;  %v1853_v29 = vpack.c.bf16 %v480_v21, %v478_v19  ;;  %v500_v21 = vld [vmem:[%s3866_s1 + $0xeb8] sm:$0xff] }
  0x9c   :  { %v498_v19 = vld [vmem:[%s3866_s1 + $0xea8] sm:$0xff] }
  0x9d   :  { %1560 = vmatpush1.bf16.msra.mxu1 %v1559_v40  ;;  %v1581_v40 = vpack.c.bf16 %v208_v35, %v206_v34  ;;  %v482_v34 = vld [vmem:[%s3866_s1 + $0xe28] sm:$0xff]  ;;  %v484_v35 = vld [vmem:[%s3866_s1 + $0xe38] sm:$0xff] }
  0x9e   :  { %1816 = vmatpush1.bf16.msra.mxu0 %v1815_v41  ;;  %1562 = vmatprep.subr.bf16.mxu1 %v1561_v42  ;;  %v205_v41 = vld [vmem:[%s3866_s1 + $0x580] sm:$0xff]  ;;  %v207_v42 = vld [vmem:[%s3866_s1 + $0x590] sm:$0xff] }
  0x9f   :  { %1818 = vmatprep.subr.bf16.mxu0 %v1817_v45  ;;  %v210_v45 = vld [vmem:[%s3866_s1 + $0x5a8] sm:$0xff]  ;;  %v1583_v48 = vpack.c.bf16 %v207_v42, %v205_v41  ;;  %v225_v41 = vld [vmem:[%s3866_s1 + $0x620] sm:$0xff]  ;;  %v227_v42 = vld [vmem:[%s3866_s1 + $0x630] sm:$0xff] }
  0xa1   :  { %1564 = vmatpush1.bf16.msra.mxu1 %v1563_v50  ;;  %v1585_v50 = vpack.c.bf16 %v212_v46, %v210_v45  ;;  %v230_v45 = vld [vmem:[%s3866_s1 + $0x648] sm:$0xff]  ;;  %v232_v46 = vld [vmem:[%s3866_s1 + $0x658] sm:$0xff] }
  0xa2   :  { %1820 = vmatpush1.bf16.msra.mxu0 %v1819_v51  ;;  %1566 = vmatprep.subr.bf16.mxu1 %v1565_v52  ;;  %v209_v51 = vld [vmem:[%s3866_s1 + $0x5a0] sm:$0xff]  ;;  %v211_v52 = vld [vmem:[%s3866_s1 + $0x5b0] sm:$0xff] }
  0xa3   :  { %1822 = vmatprep.subr.bf16.mxu0 %v1821_v56  ;;  %v214_v56 = vld [vmem:[%s3866_s1 + $0x5c8] sm:$0xff]  ;;  %v1587_v60 = vpack.c.bf16 %v211_v52, %v209_v51  ;;  %v1859_v51 = vpack.c.bf16 %v483_v26, %v481_v43  ;;  %v1605_v52 = vpack.c.bf16 %v232_v46, %v230_v45  ;;  %v501_v43 = vld [vmem:[%s3866_s1 + $0xec0] sm:$0xff]  ;;  %v503_v26 = vld [vmem:[%s3866_s1 + $0xed0] sm:$0xff] }
  0xa4   :  { %v250_v45 = vld [vmem:[%s3866_s1 + $0x6e8] sm:$0xff]  ;;  %v252_v46 = vld [vmem:[%s3866_s1 + $0x6f8] sm:$0xff] }
  0xa5   :  { %1568 = vmatpush1.bf16.msra.mxu1 %v1567_v62  ;;  %v1589_v62 = vpack.c.bf16 %v216_v57, %v214_v56  ;;  %v234_v56 = vld [vmem:[%s3866_s1 + $0x668] sm:$0xff]  ;;  %v236_v57 = vld [vmem:[%s3866_s1 + $0x678] sm:$0xff] }
  0xa6   :  { %1824 = vmatpush1.bf16.msra.mxu0 %v1823_v63  ;;  %1570 = vmatprep.subr.bf16.mxu1 %v1569_v0  ;;  %v213_v63 = vld [vmem:[%s3866_s1 + $0x5c0] sm:$0xff]  ;;  %v215_v0 = vld [vmem:[%s3866_s1 + $0x5d0] sm:$0xff] }
  0xa7   :  { %1826 = vmatprep.subr.bf16.mxu0 %v1825_v4  ;;  %v218_v4 = vld [vmem:[%s3866_s1 + $0x5e8] sm:$0xff]  ;;  %v1591_v8 = vpack.c.bf16 %v215_v0, %v213_v63  ;;  %v233_v63 = vld [vmem:[%s3866_s1 + $0x660] sm:$0xff]  ;;  %v235_v0 = vld [vmem:[%s3866_s1 + $0x670] sm:$0xff] }
  0xa9   :  { %1572 = vmatpush1.bf16.msra.mxu1 %v1571_v10  ;;  %v1593_v10 = vpack.c.bf16 %v220_v5, %v218_v4  ;;  %v238_v4 = vld [vmem:[%s3866_s1 + $0x688] sm:$0xff]  ;;  %v240_v5 = vld [vmem:[%s3866_s1 + $0x698] sm:$0xff] }
  0xaa   :  { %1828 = vmatpush1.bf16.msra.mxu0 %v1827_v11  ;;  %1574 = vmatprep.subr.bf16.mxu1 %v1573_v12  ;;  %v217_v11 = vld [vmem:[%s3866_s1 + $0x5e0] sm:$0xff]  ;;  %v219_v12 = vld [vmem:[%s3866_s1 + $0x5f0] sm:$0xff] }
  0xab   :  { %1830 = vmatprep.subr.bf16.mxu0 %v1829_v17  ;;  %v222_v17 = vld [vmem:[%s3866_s1 + $0x608] sm:$0xff]  ;;  %v1595_v22 = vpack.c.bf16 %v219_v12, %v217_v11  ;;  %v237_v11 = vld [vmem:[%s3866_s1 + $0x680] sm:$0xff]  ;;  %v239_v12 = vld [vmem:[%s3866_s1 + $0x690] sm:$0xff] }
  0xad   :  { %1576 = vmatpush1.bf16.msra.mxu1 %v1575_v24  ;;  %v1597_v24 = vpack.c.bf16 %v224_v18, %v222_v17  ;;  %v242_v17 = vld [vmem:[%s3866_s1 + $0x6a8] sm:$0xff]  ;;  %v244_v18 = vld [vmem:[%s3866_s1 + $0x6b8] sm:$0xff] }
  0xae   :  { %1832 = vmatpush1.bf16.msra.mxu0 %v1831_v25  ;;  %1578 = vmatprep.subr.bf16.mxu1 %v1577_v27  ;;  %v221_v25 = vld [vmem:[%s3866_s1 + $0x600] sm:$0xff]  ;;  %v223_v27 = vld [vmem:[%s3866_s1 + $0x610] sm:$0xff] }
  0xaf   :  { %1834 = vmatprep.subr.bf16.mxu0 %v1833_v32  ;;  %v226_v32 = vld [vmem:[%s3866_s1 + $0x628] sm:$0xff]  ;;  %v1599_v37 = vpack.c.bf16 %v223_v27, %v221_v25  ;;  %v241_v25 = vld [vmem:[%s3866_s1 + $0x6a0] sm:$0xff]  ;;  %v243_v27 = vld [vmem:[%s3866_s1 + $0x6b0] sm:$0xff] }
  0xb1   :  { %1580 = vmatpush1.bf16.msra.mxu1 %v1579_v20  ;;  %v3286_v20 = vld [vmem:[%s3867_s0 + $0x38] sm:$0xff] }
  0xb2   :  { %1836 = vmatpush1.bf16.msra.mxu0 %v1835_v39  ;;  %1582 = vmatprep.subr.bf16.mxu1 %v1581_v40  ;;  %v1855_v39 = vpack.c.bf16 %v479_v31, %v477_v28  ;;  %v1601_v40 = vpack.c.bf16 %v228_v33, %v226_v32  ;;  %v497_v28 = vld [vmem:[%s3866_s1 + $0xea0] sm:$0xff]  ;;  %v499_v31 = vld [vmem:[%s3866_s1 + $0xeb0] sm:$0xff]  ;;  %v246_v32 = vld [vmem:[%s3866_s1 + $0x6c8] sm:$0xff] }
  0xb3   :  { %1838 = vmatprep.subr.bf16.mxu0 %v1837_v44  ;;  %v1857_v44 = vpack.c.bf16 %v484_v35, %v482_v34  ;;  %v248_v33 = vld [vmem:[%s3866_s1 + $0x6d8] sm:$0xff]  ;;  %v502_v34 = vld [vmem:[%s3866_s1 + $0xec8] sm:$0xff] }
  0xb4   :  { %v504_v35 = vld [vmem:[%s3866_s1 + $0xed8] sm:$0xff] }
  0xb5   :  { %1584 = vmatpush1.bf16.msra.mxu1 %v1583_v48  ;;  %v488_v48 = vld [vmem:[%s3866_s1 + $0xe58] sm:$0xff] }
  0xb6   :  { %1840 = vmatpush1.bf16.msra.mxu0 %v1839_v49  ;;  %1586 = vmatprep.subr.bf16.mxu1 %v1585_v50  ;;  %v633_v49 = vcombine.high %v3286_v20, %v3286_v20  ;;  %v1603_v50 = vpack.c.bf16 %v227_v42, %v225_v41  ;;  %v1861_v55 = vpack.c.bf16 %v488_v48, %v486_v30  ;;  %v245_v41 = vld [vmem:[%s3866_s1 + $0x6c0] sm:$0xff]  ;;  %v247_v42 = vld [vmem:[%s3866_s1 + $0x6d0] sm:$0xff]  ;;  %v508_v30 = vld [vmem:[%s3866_s1 + $0xef8] sm:$0xff] }
  0xb7   :  { %1842 = vmatprep.subr.bf16.mxu0 %v1841_v54  ;;  %v485_v54 = vld [vmem:[%s3866_s1 + $0xe40] sm:$0xff]  ;;  %v1623_v48 = vpack.c.bf16 %v247_v42, %v245_v41 }
  0xb8   :  { %v521_v41 = vld [vmem:[%s3866_s1 + $0xf60] sm:$0xff] }
  0xb9   :  { %1588 = vmatpush1.bf16.msra.mxu1 %v1587_v60 }
  0xba   :  { %1844 = vmatpush1.bf16.msra.mxu0 %v1843_v61  ;;  %1590 = vmatprep.subr.bf16.mxu1 %v1589_v62  ;;  %v1609_v62 = vpack.c.bf16 %v236_v57, %v234_v56  ;;  %v510_v56 = vld [vmem:[%s3866_s1 + $0xf08] sm:$0xff]  ;;  %v512_v57 = vld [vmem:[%s3866_s1 + $0xf18] sm:$0xff] }
  0xbb   :  { %1846 = vmatprep.subr.bf16.mxu0 %v1845_v2  ;;  %v1865_v2 = vpack.c.bf16 %v492_v59, %v490_v58 }
  0xbd   :  { %1592 = vmatpush1.bf16.msra.mxu1 %v1591_v8  ;;  %v1611_v8 = vpack.c.bf16 %v235_v0, %v233_v63  ;;  %v509_v63 = vld [vmem:[%s3866_s1 + $0xf00] sm:$0xff]  ;;  %v1885_v0 = vpack.c.bf16 %v512_v57, %v510_v56 }
  0xbe   :  { %1848 = vmatpush1.bf16.msra.mxu0 %v1847_v9  ;;  %1594 = vmatprep.subr.bf16.mxu1 %v1593_v10  ;;  %v1867_v9 = vpack.c.bf16 %v491_v3, %v489_v1  ;;  %v1613_v10 = vpack.c.bf16 %v240_v5, %v238_v4  ;;  %v511_v1 = vld [vmem:[%s3866_s1 + $0xf10] sm:$0xff]  ;;  %v260_v3 = vld [vmem:[%s3866_s1 + $0x738] sm:$0xff]  ;;  %v514_v4 = vld [vmem:[%s3866_s1 + $0xf28] sm:$0xff] }
  0xbf   :  { %1850 = vmatprep.subr.bf16.mxu0 %v1849_v14  ;;  %v1869_v14 = vpack.c.bf16 %v496_v7, %v494_v6  ;;  %v516_v5 = vld [vmem:[%s3866_s1 + $0xf38] sm:$0xff]  ;;  %v1887_v7 = vpack.c.bf16 %v511_v1, %v509_v63  ;;  %v531_v63 = vld [vmem:[%s3866_s1 + $0xfb0] sm:$0xff] }
  0xc0   :  { %v280_v1 = vld [vmem:[%s3866_s1 + $0x7d8] sm:$0xff] }
  0xc1   :  { %1596 = vmatpush1.bf16.msra.mxu1 %v1595_v22  ;;  %v1615_v22 = vpack.c.bf16 %v239_v12, %v237_v11  ;;  %v513_v11 = vld [vmem:[%s3866_s1 + $0xf20] sm:$0xff]  ;;  %v1889_v12 = vpack.c.bf16 %v516_v5, %v514_v4 }
  0xc2   :  { %1852 = vmatpush1.bf16.msra.mxu0 %v1851_v23  ;;  %1598 = vmatprep.subr.bf16.mxu1 %v1597_v24  ;;  %v1871_v23 = vpack.c.bf16 %v495_v15, %v493_v13  ;;  %v1617_v24 = vpack.c.bf16 %v244_v18, %v242_v17  ;;  %v515_v13 = vld [vmem:[%s3866_s1 + $0xf30] sm:$0xff]  ;;  %v264_v15 = vld [vmem:[%s3866_s1 + $0x758] sm:$0xff]  ;;  %v518_v17 = vld [vmem:[%s3866_s1 + $0xf48] sm:$0xff] }
  0xc3   :  { %1854 = vmatprep.subr.bf16.mxu0 %v1853_v29  ;;  %v1873_v29 = vpack.c.bf16 %v500_v21, %v498_v19  ;;  %v520_v18 = vld [vmem:[%s3866_s1 + $0xf58] sm:$0xff]  ;;  %v1891_v21 = vpack.c.bf16 %v515_v13, %v513_v11  ;;  %v535_v11 = vld [vmem:[%s3866_s1 + $0xfd0] sm:$0xff] }
  0xc4   :  { %851 = vmatmul.mubr.f32.vlgmr.msra.gmra.mrb[0].mxu1 %v2893_v16  ;;  %v229_v16 = vld [vmem:[%s3866_s1 + $0x640] sm:$0xff]  ;;  %v284_v13 = vld [vmem:[%s3866_s1 + $0x7f8] sm:$0xff] }
  0xc5   :  { %1600 = vmatpush1.bf16.msra.mxu1 %v1599_v37  ;;  %1135 = vmatmul.mubr.f32.vlgmr.msra.gmra.mrb[0].mxu0 %v2906_v38  ;;  %v487_v38 = vld [vmem:[%s3866_s1 + $0xe50] sm:$0xff]  ;;  %v1607_v60 = vpack.c.bf16 %v231_v53, %v229_v16  ;;  %v1619_v37 = vpack.c.bf16 %v243_v27, %v241_v25  ;;  %v505_v16 = vld [vmem:[%s3866_s1 + $0xee0] sm:$0xff]  ;;  %v1893_v27 = vpack.c.bf16 %v520_v18, %v518_v17 }
  0xc6   :  { %1856 = vmatpush1.bf16.msra.mxu0 %v1855_v39  ;;  %1602 = vmatprep.subr.bf16.mxu1 %v1601_v40  ;;  %v1863_v61 = vpack.c.bf16 %v487_v38, %v485_v54  ;;  %v1875_v39 = vpack.c.bf16 %v499_v31, %v497_v28  ;;  %v1621_v40 = vpack.c.bf16 %v248_v33, %v246_v32  ;;  %v507_v54 = vld [vmem:[%s3866_s1 + $0xef0] sm:$0xff]  ;;  %v256_v38 = vld [vmem:[%s3866_s1 + $0x718] sm:$0xff]  ;;  %v517_v25 = vld [vmem:[%s3866_s1 + $0xf40] sm:$0xff] }
  0xc7   :  { %1858 = vmatprep.subr.bf16.mxu0 %v1857_v44  ;;  %921 = vmatprep.mubr.f32.mxu1 %v629_v47  ;;  %v1877_v44 = vpack.c.bf16 %v504_v35, %v502_v34  ;;  %v506_v47 = vld [vmem:[%s3866_s1 + $0xee8] sm:$0xff]  ;;  %v1883_v59 = vpack.c.bf16 %v507_v54, %v505_v16  ;;  %v519_v28 = vld [vmem:[%s3866_s1 + $0xf50] sm:$0xff]  ;;  %v268_v31 = vld [vmem:[%s3866_s1 + $0x778] sm:$0xff] }
  0xc8   :  { %1205 = vmatprep.mubr.f32.mxu0 %v633_v49  ;;  %v1879_v49 = vpack.c.bf16 %v503_v26, %v501_v43  ;;  %v1881_v53 = vpack.c.bf16 %v508_v30, %v506_v47  ;;  %v522_v32 = vld [vmem:[%s3866_s1 + $0xf68] sm:$0xff]  ;;  %v524_v33 = vld [vmem:[%s3866_s1 + $0xf78] sm:$0xff]  ;;  %v1895_v35 = vpack.c.bf16 %v519_v28, %v517_v25  ;;  %v523_v43 = vld [vmem:[%s3866_s1 + $0xf70] sm:$0xff] }
  0xc9   :  { %1604 = vmatpush1.bf16.msra.mxu1 %v1603_v50  ;;  %v1625_v50 = vpack.c.bf16 %v252_v46, %v250_v45  ;;  %v1897_v42 = vpack.c.bf16 %v524_v33, %v522_v32  ;;  %v272_v26 = vld [vmem:[%s3866_s1 + $0x798] sm:$0xff]  ;;  %v526_v45 = vld [vmem:[%s3866_s1 + $0xf88] sm:$0xff]  ;;  %v1899_v30 = vpack.c.bf16 %v523_v43, %v521_v41  ;;  %v527_v16 = vld [vmem:[%s3866_s1 + $0xf90] sm:$0xff] }
  0xca   :  { %1860 = vmatpush1.bf16.msra.mxu0 %v1859_v51  ;;  %1606 = vmatprep.subr.bf16.mxu1 %v1605_v52  ;;  %v249_v51 = vld [vmem:[%s3866_s1 + $0x6e0] sm:$0xff]  ;;  %v251_v52 = vld [vmem:[%s3866_s1 + $0x6f0] sm:$0xff]  ;;  %v528_v46 = vld [vmem:[%s3866_s1 + $0xf98] sm:$0xff] }
  0xcb   :  { %1862 = vmatprep.subr.bf16.mxu0 %v1861_v55  ;;  %v254_v55 = vld [vmem:[%s3866_s1 + $0x708] sm:$0xff]  ;;  %v1627_v58 = vpack.c.bf16 %v251_v52, %v249_v51  ;;  %v525_v51 = vld [vmem:[%s3866_s1 + $0xf80] sm:$0xff]  ;;  %v1901_v52 = vpack.c.bf16 %v528_v46, %v526_v45  ;;  %v276_v54 = vld [vmem:[%s3866_s1 + $0x7b8] sm:$0xff] }
  0xcc   :  { %v1903_v57 = vpack.c.bf16 %v527_v16, %v525_v51  ;;  %v539_v25 = vld [vmem:[%s3866_s1 + $0xff0] sm:$0xff]  ;;  %v544_v28 = vld [vmem:[%s3866_s1 + $0x1018] sm:$0xff]  ;;  %v541_v33 = vld [vmem:[%s3866_s1 + $0x1000] sm:$0xff] }
  0xcd   :  { %1608 = vmatpush1.bf16.msra.mxu1 %v1607_v60  ;;  %v1629_v60 = vpack.c.bf16 %v256_v38, %v254_v55  ;;  %v530_v55 = vld [vmem:[%s3866_s1 + $0xfa8] sm:$0xff]  ;;  %v532_v38 = vld [vmem:[%s3866_s1 + $0xfb8] sm:$0xff]  ;;  %v545_v43 = vld [vmem:[%s3866_s1 + $0x1020] sm:$0xff] }
  0xce   :  { %1864 = vmatpush1.bf16.msra.mxu0 %v1863_v61  ;;  %1610 = vmatprep.subr.bf16.mxu1 %v1609_v62  ;;  %v253_v61 = vld [vmem:[%s3866_s1 + $0x700] sm:$0xff]  ;;  %v255_v62 = vld [vmem:[%s3866_s1 + $0x710] sm:$0xff]  ;;  %v552_v45 = vld [vmem:[%s3866_s1 + $0x1058] sm:$0xff] }
  0xcf   :  { %1866 = vmatprep.subr.bf16.mxu0 %v1865_v2  ;;  %v258_v2 = vld [vmem:[%s3866_s1 + $0x728] sm:$0xff]  ;;  %v1631_v6 = vpack.c.bf16 %v255_v62, %v253_v61  ;;  %v529_v61 = vld [vmem:[%s3866_s1 + $0xfa0] sm:$0xff]  ;;  %v1905_v62 = vpack.c.bf16 %v532_v38, %v530_v55 }
  0xd0   :  { %v1907_v5 = vpack.c.bf16 %v531_v63, %v529_v61  ;;  %v553_v51 = vld [vmem:[%s3866_s1 + $0x1060] sm:$0xff]  ;;  %v558_v16 = vld [vmem:[%s3866_s1 + $0x1088] sm:$0xff] }
  0xd1   :  { %1612 = vmatpush1.bf16.msra.mxu1 %v1611_v8  ;;  %v1633_v8 = vpack.c.bf16 %v260_v3, %v258_v2  ;;  %v534_v2 = vld [vmem:[%s3866_s1 + $0xfc8] sm:$0xff]  ;;  %v536_v3 = vld [vmem:[%s3866_s1 + $0xfd8] sm:$0xff]  ;;  %v557_v38 = vld [vmem:[%s3866_s1 + $0x1080] sm:$0xff] }
  0xd2   :  { %1868 = vmatpush1.bf16.msra.mxu0 %v1867_v9  ;;  %1614 = vmatprep.subr.bf16.mxu1 %v1613_v10  ;;  %v257_v9 = vld [vmem:[%s3866_s1 + $0x720] sm:$0xff]  ;;  %v259_v10 = vld [vmem:[%s3866_s1 + $0x730] sm:$0xff]  ;;  %v566_v63 = vld [vmem:[%s3866_s1 + $0x10c8] sm:$0xff] }
  0xd3   :  { %1870 = vmatprep.subr.bf16.mxu0 %v1869_v14  ;;  %v262_v14 = vld [vmem:[%s3866_s1 + $0x748] sm:$0xff]  ;;  %v1635_v19 = vpack.c.bf16 %v259_v10, %v257_v9  ;;  %v533_v9 = vld [vmem:[%s3866_s1 + $0xfc0] sm:$0xff]  ;;  %v1909_v10 = vpack.c.bf16 %v536_v3, %v534_v2 }
  0xd4   :  { %v1911_v18 = vpack.c.bf16 %v535_v11, %v533_v9  ;;  %v561_v61 = vld [vmem:[%s3866_s1 + $0x10a0] sm:$0xff]  ;;  %v574_v11 = vld [vmem:[%s3866_s1 + $0x1108] sm:$0xff] }
  0xd5   :  { %1616 = vmatpush1.bf16.msra.mxu1 %v1615_v22  ;;  %v1637_v22 = vpack.c.bf16 %v264_v15, %v262_v14  ;;  %v538_v14 = vld [vmem:[%s3866_s1 + $0xfe8] sm:$0xff]  ;;  %v540_v15 = vld [vmem:[%s3866_s1 + $0xff8] sm:$0xff]  ;;  %v565_v3 = vld [vmem:[%s3866_s1 + $0x10c0] sm:$0xff] }
  0xd6   :  { %1872 = vmatpush1.bf16.msra.mxu0 %v1871_v23  ;;  %1618 = vmatprep.subr.bf16.mxu1 %v1617_v24  ;;  %v261_v23 = vld [vmem:[%s3866_s1 + $0x740] sm:$0xff]  ;;  %v263_v24 = vld [vmem:[%s3866_s1 + $0x750] sm:$0xff] }
  0xd7   :  { %1874 = vmatprep.subr.bf16.mxu0 %v1873_v29  ;;  %v266_v29 = vld [vmem:[%s3866_s1 + $0x768] sm:$0xff]  ;;  %v1639_v34 = vpack.c.bf16 %v263_v24, %v261_v23  ;;  %v1913_v23 = vpack.c.bf16 %v540_v15, %v538_v14  ;;  %v537_v24 = vld [vmem:[%s3866_s1 + $0xfe0] sm:$0xff] }
  0xd8   :  { %v569_v9 = vld [vmem:[%s3866_s1 + $0x10e0] sm:$0xff] }
  0xd9   :  { %1620 = vmatpush1.bf16.msra.mxu1 %v1619_v37  ;;  %v1641_v37 = vpack.c.bf16 %v268_v31, %v266_v29  ;;  %v1915_v31 = vpack.c.bf16 %v539_v25, %v537_v24  ;;  %v573_v15 = vld [vmem:[%s3866_s1 + $0x1100] sm:$0xff]  ;;  %v579_v24 = vld [vmem:[%s3866_s1 + $0x1130] sm:$0xff]  ;;  %v582_v25 = vld [vmem:[%s3866_s1 + $0x1148] sm:$0xff] }
  0xda   :  { %1876 = vmatpush1.bf16.msra.mxu0 %v1875_v39  ;;  %1622 = vmatprep.subr.bf16.mxu1 %v1621_v40  ;;  %v265_v39 = vld [vmem:[%s3866_s1 + $0x760] sm:$0xff]  ;;  %v267_v40 = vld [vmem:[%s3866_s1 + $0x770] sm:$0xff] }
  0xdb   :  { %1878 = vmatprep.subr.bf16.mxu0 %v1877_v44  ;;  %v270_v44 = vld [vmem:[%s3866_s1 + $0x788] sm:$0xff]  ;;  %v1643_v47 = vpack.c.bf16 %v267_v40, %v265_v39  ;;  %v548_v39 = vld [vmem:[%s3866_s1 + $0x1038] sm:$0xff] }
  0xdd   :  { %1624 = vmatpush1.bf16.msra.mxu1 %v1623_v48  ;;  %v1645_v48 = vpack.c.bf16 %v272_v26, %v270_v44  ;;  %v547_v44 = vld [vmem:[%s3866_s1 + $0x1030] sm:$0xff]  ;;  %v550_v26 = vld [vmem:[%s3866_s1 + $0x1048] sm:$0xff] }
  0xde   :  { %1880 = vmatpush1.bf16.msra.mxu0 %v1879_v49  ;;  %1626 = vmatprep.subr.bf16.mxu1 %v1625_v50  ;;  %v269_v49 = vld [vmem:[%s3866_s1 + $0x780] sm:$0xff]  ;;  %v271_v50 = vld [vmem:[%s3866_s1 + $0x790] sm:$0xff]  ;;  %v1923_v46 = vpack.c.bf16 %v547_v44, %v545_v43  ;;  %v592_v43 = vld [vmem:[%s3866_s1 + $0x1198] sm:$0xff] }
  0xdf   :  { %1882 = vmatprep.subr.bf16.mxu0 %v1881_v53  ;;  %v274_v53 = vld [vmem:[%s3866_s1 + $0x7a8] sm:$0xff]  ;;  %v1647_v56 = vpack.c.bf16 %v271_v50, %v269_v49 }
  0xe1   :  { %1628 = vmatpush1.bf16.msra.mxu1 %v1627_v58  ;;  %v1649_v58 = vpack.c.bf16 %v276_v54, %v274_v53  ;;  %v560_v53 = vld [vmem:[%s3866_s1 + $0x1098] sm:$0xff] }
  0xe2   :  { %1884 = vmatpush1.bf16.msra.mxu0 %v1883_v59  ;;  %1630 = vmatprep.subr.bf16.mxu1 %v1629_v60  ;;  %v273_v59 = vld [vmem:[%s3866_s1 + $0x7a0] sm:$0xff]  ;;  %v275_v60 = vld [vmem:[%s3866_s1 + $0x7b0] sm:$0xff]  ;;  %v1933_v55 = vpack.c.bf16 %v560_v53, %v558_v16 }
  0xe3   :  { %1886 = vmatprep.subr.bf16.mxu0 %v1885_v0  ;;  %v278_v0 = vld [vmem:[%s3866_s1 + $0x7c8] sm:$0xff]  ;;  %v1651_v4 = vpack.c.bf16 %v275_v60, %v273_v59  ;;  %v597_v53 = vld [vmem:[%s3866_s1 + $0x11c0] sm:$0xff] }
  0xe5   :  { %1632 = vmatpush1.bf16.msra.mxu1 %v1631_v6  ;;  %v1653_v6 = vpack.c.bf16 %v280_v1, %v278_v0  ;;  %v568_v0 = vld [vmem:[%s3866_s1 + $0x10d8] sm:$0xff] }
  0xe6   :  { %1888 = vmatpush1.bf16.msra.mxu0 %v1887_v7  ;;  %1634 = vmatprep.subr.bf16.mxu1 %v1633_v8  ;;  %v277_v7 = vld [vmem:[%s3866_s1 + $0x7c0] sm:$0xff]  ;;  %v279_v8 = vld [vmem:[%s3866_s1 + $0x7d0] sm:$0xff]  ;;  %v1941_v2 = vpack.c.bf16 %v568_v0, %v566_v63  ;;  %v607_v63 = vlaneseq }
  0xe7   :  { %1890 = vmatprep.subr.bf16.mxu0 %v1889_v12  ;;  %v282_v12 = vld [vmem:[%s3866_s1 + $0x7e8] sm:$0xff]  ;;  %v1655_v17 = vpack.c.bf16 %v279_v8, %v277_v7 }
  0xe8   :  { %v608_v0 = vshrl.u32 %v607_v63, 7 }
  0xe9   :  { %1636 = vmatpush1.bf16.msra.mxu1 %v1635_v19  ;;  %v1657_v19 = vpack.c.bf16 %v284_v13, %v282_v12  ;;  %v576_v12 = vld [vmem:[%s3866_s1 + $0x1118] sm:$0xff] }
  0xea   :  { %1892 = vmatpush1.bf16.msra.mxu0 %v1891_v21  ;;  %1638 = vmatprep.subr.bf16.mxu1 %v1637_v22  ;;  %v281_v21 = vld [vmem:[%s3866_s1 + $0x7e0] sm:$0xff]  ;;  %v283_v22 = vld [vmem:[%s3866_s1 + $0x7f0] sm:$0xff]  ;;  %v1949_v14 = vpack.c.bf16 %v576_v12, %v574_v11 }
  0xeb   :  { %1894 = vmatprep.subr.bf16.mxu0 %v1893_v27  ;;  %v542_v27 = vld [vmem:[%s3866_s1 + $0x1008] sm:$0xff]  ;;  %v1659_v29 = vpack.c.bf16 %v283_v22, %v281_v21 }
  0xec   :  { %v1917_v32 = vpack.c.bf16 %v544_v28, %v542_v27  ;;  %v584_v27 = vld [vmem:[%s3866_s1 + $0x1158] sm:$0xff] }
  0xed   :  { %1640 = vmatpush1.bf16.msra.mxu1 %v1639_v34  ;;  %v543_v34 = vld [vmem:[%s3866_s1 + $0x1010] sm:$0xff] }
  0xee   :  { %1896 = vmatpush1.bf16.msra.mxu0 %v1895_v35  ;;  %1642 = vmatprep.subr.bf16.mxu1 %v1641_v37  ;;  %v3657_v35 = vld [vmem:[%s3867_s0 + $0x40] sm:$0xff]  ;;  %v546_v37 = vld [vmem:[%s3866_s1 + $0x1028] sm:$0xff]  ;;  %v1919_v40 = vpack.c.bf16 %v543_v34, %v541_v33  ;;  %v588_v34 = vld [vmem:[%s3866_s1 + $0x1178] sm:$0xff] }
  0xef   :  { %1898 = vmatprep.subr.bf16.mxu0 %v1897_v42  ;;  %v634_v41 = vcombine.high %v3657_v35, %v3657_v35  ;;  %v1921_v42 = vpack.c.bf16 %v548_v39, %v546_v37  ;;  %v586_v33 = vld [vmem:[%s3866_s1 + $0x1168] sm:$0xff] }
  0xf0   :  { %v1961_v39 = vpack.c.bf16 %v588_v34, %v586_v33 }
  0xf1   :  { %1644 = vmatpush1.bf16.msra.mxu1 %v1643_v47  ;;  %v1925_v47 = vpack.c.bf16 %v552_v45, %v550_v26  ;;  %v589_v45 = vld [vmem:[%s3866_s1 + $0x1180] sm:$0xff] }
  0xf2   :  { %1900 = vmatpush1.bf16.msra.mxu0 %v1899_v30  ;;  %1646 = vmatprep.subr.bf16.mxu1 %v1645_v48  ;;  %v549_v30 = vld [vmem:[%s3866_s1 + $0x1040] sm:$0xff]  ;;  %v554_v48 = vld [vmem:[%s3866_s1 + $0x1068] sm:$0xff] }
  0xf3   :  { %1902 = vmatprep.subr.bf16.mxu0 %v1901_v52  ;;  %v555_v52 = vld [vmem:[%s3866_s1 + $0x1070] sm:$0xff] }
  0xf4   :  { %v1931_v54 = vpack.c.bf16 %v555_v52, %v553_v51  ;;  %v600_v51 = vld [vmem:[%s3866_s1 + $0x11d8] sm:$0xff] }
  0xf5   :  { %1648 = vmatpush1.bf16.msra.mxu1 %v1647_v56  ;;  %v559_v56 = vld [vmem:[%s3866_s1 + $0x1090] sm:$0xff] }
  0xf6   :  { %1904 = vmatpush1.bf16.msra.mxu0 %v1903_v57  ;;  %1650 = vmatprep.subr.bf16.mxu1 %v1649_v58  ;;  %v562_v57 = vld [vmem:[%s3866_s1 + $0x10a8] sm:$0xff]  ;;  %v564_v58 = vld [vmem:[%s3866_s1 + $0x10b8] sm:$0xff]  ;;  %v1935_v59 = vpack.c.bf16 %v559_v56, %v557_v38 }
  0xf7   :  { %1906 = vmatprep.subr.bf16.mxu0 %v1905_v62  ;;  %v1937_v60 = vpack.c.bf16 %v564_v58, %v562_v57  ;;  %v563_v62 = vld [vmem:[%s3866_s1 + $0x10b0] sm:$0xff]  ;;  %v604_v38 = vld [vmem:[%s3866_s1 + $0x11f8] sm:$0xff]  ;;  %v601_v58 = vld [vmem:[%s3866_s1 + $0x11e0] sm:$0xff] }
  0xf8   :  { %v1939_v1 = vpack.c.bf16 %v563_v62, %v561_v61 }
  0xf9   :  { %1652 = vmatpush1.bf16.msra.mxu1 %v1651_v4  ;;  %v567_v4 = vld [vmem:[%s3866_s1 + $0x10d0] sm:$0xff] }
  0xfa   :  { %1908 = vmatpush1.bf16.msra.mxu0 %v1907_v5  ;;  %1654 = vmatprep.subr.bf16.mxu1 %v1653_v6  ;;  %v570_v5 = vld [vmem:[%s3866_s1 + $0x10e8] sm:$0xff]  ;;  %v572_v6 = vld [vmem:[%s3866_s1 + $0x10f8] sm:$0xff]  ;;  %v1943_v7 = vpack.c.bf16 %v567_v4, %v565_v3  ;;  %v3849_v3 = vsub.s32 1, %v608_v0 }
  0xfb   :  { %1910 = vmatprep.subr.bf16.mxu0 %v1909_v10  ;;  %v1945_v8 = vpack.c.bf16 %v572_v6, %v570_v5  ;;  %v571_v10 = vld [vmem:[%s3866_s1 + $0x10f0] sm:$0xff] }
  0xfc   :  { %v1947_v13 = vpack.c.bf16 %v571_v10, %v569_v9 }
  0xfd   :  { %1656 = vmatpush1.bf16.msra.mxu1 %v1655_v17  ;;  %v575_v17 = vld [vmem:[%s3866_s1 + $0x1110] sm:$0xff] }
  0xfe   :  { %1912 = vmatpush1.bf16.msra.mxu0 %v1911_v18  ;;  %1658 = vmatprep.subr.bf16.mxu1 %v1657_v19  ;;  %v578_v18 = vld [vmem:[%s3866_s1 + $0x1128] sm:$0xff]  ;;  %v580_v19 = vld [vmem:[%s3866_s1 + $0x1138] sm:$0xff]  ;;  %v1951_v21 = vpack.c.bf16 %v575_v17, %v573_v15 }
  0xff   :  { %1914 = vmatprep.subr.bf16.mxu0 %v1913_v23  ;;  %v1953_v22 = vpack.c.bf16 %v580_v19, %v578_v18  ;;  %v577_v23 = vld [vmem:[%s3866_s1 + $0x1120] sm:$0xff] }
 0x100   :  { %v1955_v28 = vpack.c.bf16 %v579_v24, %v577_v23 }
 0x101   :  { %1660 = vmatpush1.bf16.msra.mxu1 %v1659_v29  ;;  %v1957_v29 = vpack.c.bf16 %v584_v27, %v582_v25 }
 0x102   :  { %1916 = vmatpush1.bf16.msra.mxu0 %v1915_v31  ;;  %v581_v31 = vld [vmem:[%s3866_s1 + $0x1140] sm:$0xff] }
 0x103   :  { %1918 = vmatprep.subr.bf16.mxu0 %v1917_v32  ;;  %v583_v32 = vld [vmem:[%s3866_s1 + $0x1150] sm:$0xff] }
 0x104   :  { %922 = vmatmul.mubr.f32.vlgmr.msra.gmra.mrb[0].mxu1 %v3281_v36  ;;  %v551_v36 = vld [vmem:[%s3866_s1 + $0x1050] sm:$0xff]  ;;  %v1959_v37 = vpack.c.bf16 %v583_v32, %v581_v31 }
 0x105   :  { %1206 = vmatmul.mubr.f32.vlgmr.msra.gmra.mrb[0].mxu0 %v3286_v20  ;;  %v556_v20 = vld [vmem:[%s3866_s1 + $0x1078] sm:$0xff]  ;;  %v1927_v49 = vpack.c.bf16 %v551_v36, %v549_v30 }
 0x106   :  { %1920 = vmatpush1.bf16.msra.mxu0 %v1919_v40  ;;  %1276 = vmatprep.mubr.f32.mxu0 %v634_v41  ;;  %v1929_v50 = vpack.c.bf16 %v556_v20, %v554_v48  ;;  %v585_v40 = vld [vmem:[%s3866_s1 + $0x1160] sm:$0xff]  ;;  %v587_v41 = vld [vmem:[%s3866_s1 + $0x1170] sm:$0xff]  ;;  %v596_v30 = vld [vmem:[%s3866_s1 + $0x11b8] sm:$0xff] }
 0x107   :  { %1922 = vmatprep.subr.bf16.mxu0 %v1921_v42  ;;  %v590_v42 = vld [vmem:[%s3866_s1 + $0x1188] sm:$0xff]  ;;  %v1963_v44 = vpack.c.bf16 %v587_v41, %v585_v40  ;;  %v593_v20 = vld [vmem:[%s3866_s1 + $0x11a0] sm:$0xff] }
 0x108   :  { %v1965_v26 = vpack.c.bf16 %v592_v43, %v590_v42 }
 0x10a   :  { %1924 = vmatpush1.bf16.msra.mxu0 %v1923_v46  ;;  %v591_v46 = vld [vmem:[%s3866_s1 + $0x1190] sm:$0xff] }
 0x10b   :  { %1926 = vmatprep.subr.bf16.mxu0 %v1925_v47  ;;  %v594_v47 = vld [vmem:[%s3866_s1 + $0x11a8] sm:$0xff]  ;;  %v1967_v36 = vpack.c.bf16 %v591_v46, %v589_v45 }
 0x10c   :  { %v1969_v48 = vpack.c.bf16 %v596_v30, %v594_v47 }
 0x10e   :  { %1928 = vmatpush1.bf16.msra.mxu0 %v1927_v49  ;;  %v595_v49 = vld [vmem:[%s3866_s1 + $0x11b0] sm:$0xff] }
 0x10f   :  { %1930 = vmatprep.subr.bf16.mxu0 %v1929_v50  ;;  %v598_v50 = vld [vmem:[%s3866_s1 + $0x11c8] sm:$0xff]  ;;  %v1971_v52 = vpack.c.bf16 %v595_v49, %v593_v20 }
 0x110   :  { %v1973_v16 = vpack.c.bf16 %v600_v51, %v598_v50 }
 0x112   :  { %1932 = vmatpush1.bf16.msra.mxu0 %v1931_v54  ;;  %v599_v54 = vld [vmem:[%s3866_s1 + $0x11d0] sm:$0xff] }
 0x113   :  { %1934 = vmatprep.subr.bf16.mxu0 %v1933_v55  ;;  %v602_v55 = vld [vmem:[%s3866_s1 + $0x11e8] sm:$0xff]  ;;  %v1975_v56 = vpack.c.bf16 %v599_v54, %v597_v53  ;;  %v2013_v53 = vmov 1966171168  }
 0x114   :  { %v1977_v57 = vpack.c.bf16 %v604_v38, %v602_v55  ;;  %v1331_v54 = vunpack.c.l.s4 %v2013_v53 }
 0x116   :  { %1936 = vmatpush1.bf16.msra.mxu0 %v1935_v59  ;;  %v603_v59 = vld [vmem:[%s3866_s1 + $0x11f0] sm:$0xff]  ;;  %v1332_v55 = vunpack.c.0.s8 %v1331_v54 }
 0x117   :  { %1938 = vmatprep.subr.bf16.mxu0 %v1937_v60  ;;  %v1979_v60 = vpack.c.bf16 %v603_v59, %v601_v58 }
 0x11a   :  { %1940 = vmatpush1.bf16.msra.mxu0 %v1939_v1  ;;  %v3844_v1 = vsub.s32 0, %v608_v0 }
 0x11b   :  { %1942 = vmatprep.subr.bf16.mxu0 %v1941_v2  ;;  %v605_v2 = vld [vmem:[%s3868_s2] sm:$0x3] }
 0x11c   :  { %v610_v4 = vrot.slane %v605_v2, %v3844_v1  ;;  %v614_v5 = vrot.slane %v605_v2, %v3849_v3 }
 0x11e   :  { %1944 = vmatpush1.bf16.msra.mxu0 %v1943_v7 }
 0x11f   :  { %1946 = vmatprep.subr.bf16.mxu0 %v1945_v8 }
 0x122   :  { %1948 = vmatpush1.bf16.msra.mxu0 %v1947_v13 }
 0x123   :  { %1950 = vmatprep.subr.bf16.mxu0 %v1949_v14 }
 0x126   :  { %1952 = vmatpush1.bf16.msra.mxu0 %v1951_v21 }
 0x127   :  { %1954 = vmatprep.subr.bf16.mxu0 %v1953_v22 }
 0x12a   :  { %1956 = vmatpush1.bf16.msra.mxu0 %v1955_v28 }
 0x12b   :  { %1958 = vmatprep.subr.bf16.mxu0 %v1957_v29 }
 0x12e   :  { %1960 = vmatpush1.bf16.msra.mxu0 %v1959_v37 }
 0x12f   :  { %1962 = vmatprep.subr.bf16.mxu0 %v1961_v39 }
 0x132   :  { %1964 = vmatpush1.bf16.msra.mxu0 %v1963_v44 }
 0x133   :  { %1966 = vmatprep.subr.bf16.mxu0 %v1965_v26 }
 0x136   :  { %1968 = vmatpush1.bf16.msra.mxu0 %v1967_v36 }
 0x137   :  { %1970 = vmatprep.subr.bf16.mxu0 %v1969_v48 }
 0x13a   :  { %1972 = vmatpush1.bf16.msra.mxu0 %v1971_v52 }
 0x13b   :  { %1974 = vmatprep.subr.bf16.mxu0 %v1973_v16 }
 0x13e   :  { %1976 = vmatpush1.bf16.msra.mxu0 %v1975_v56  ;;  %v1335_v56 = vsub.s32 %v1332_v55, %v608_v0  ;;  %v1346_v0 = vld [vmem:[%s3870_s4] sm:$0x3] }
 0x13f   :  { %1978 = vmatprep.subr.bf16.mxu0 %v1977_v57 }
 0x142   :  { %1980 = vmatpush1.bf16.msra.mxu0 %v1979_v60  ;;  %v1322_v60 = vld [vmem:[%s3869_s3] sm:$0x3] }
 0x145   :  { %1277 = vmatmul.mubr.f32.vlgmr.msra.gmra.mrb[0].mxu0 %v3657_v35 }
 0x1d7   :  { %v923_v61 = vpop.f32.mrb[0].mxu1 }
 0x1d8   :  { %v925_v62 = vpop.f32.mrb[1].mxu1  ;;  %v1981_v6 = vadd.f32 %v923_v61, %v610_v4 }
 0x1d9   :  { %v1983_v7 = vadd.f32 %v925_v62, %v614_v5 }
 0x218   :  { %v1278_v8 = vpop.f32.mrb[0].mxu0 }
 0x219   :  { %v1982_v35 = vadd.f32 %v1981_v6, %v1278_v8  ;;  %v1280_v9 = vpop.f32.mrb[1].mxu0 }
 0x21a   :  { %v1984_v10 = vadd.f32 %v1983_v7, %v1280_v9 }
 0x21b   :  { %v1284_v11 = vsel %vm1283_vm0, %v1982_v35, 0.0  ;;  %v1300_v12 = vmul.f32 %v1982_v35, %v1982_v35 }
 0x21c   :  { %v1285_v13 = vrot.slane %v1284_v11, 4  ;;  %v1291_v14 = vsel %vm1283_vm0, %v1984_v10, 0.0  ;;  %v1301_v15 = vmul.f32 %v1984_v10, %v1984_v10 }
 0x21d   :  { %v1302_v17 = vsel %vm1283_vm0, %v1300_v12, 0.0  ;;  %v1292_v18 = vrot.slane %v1291_v14, 4 }
 0x21e   :  { %v1286_v19 = vadd.f32 %v1285_v13, %v1284_v11  ;;  %v1303_v21 = vrot.slane %v1302_v17, 4  ;;  %v1309_v22 = vsel %vm1283_vm0, %v1301_v15, 0.0 }
 0x21f   :  { %v1293_v23 = vadd.f32 %v1292_v18, %v1291_v14  ;;  %v1310_v24 = vrot.slane %v1309_v22, 4 }
 0x220   :  { %v1287_v25 = vrot.slane %v1286_v19, 2  ;;  %v1304_v27 = vadd.f32 %v1303_v21, %v1302_v17 }
 0x221   :  { %v1294_v28 = vrot.slane %v1293_v23, 2  ;;  %v1311_v29 = vadd.f32 %v1310_v24, %v1309_v22 }
 0x222   :  { %v1288_v31 = vadd.f32 %v1287_v25, %v1286_v19  ;;  %v1305_v32 = vrot.slane %v1304_v27, 2 }
 0x223   :  { %v1295_v33 = vadd.f32 %v1294_v28, %v1293_v23  ;;  %v1312_v34 = vrot.slane %v1311_v29, 2 }
 0x224   :  { %v1289_v37 = vrot.slane %v1288_v31, 1  ;;  %v1306_v39 = vadd.f32 %v1305_v32, %v1304_v27 }
 0x225   :  { %v1296_v40 = vrot.slane %v1295_v33, 1  ;;  %v1313_v41 = vadd.f32 %v1312_v34, %v1311_v29 }
 0x226   :  { %v1290_v42 = vadd.f32 %v1289_v37, %v1288_v31  ;;  %v1307_v43 = vrot.slane %v1306_v39, 1 }
 0x227   :  { %v1297_v44 = vadd.f32 %v1296_v40, %v1295_v33  ;;  %v1314_v26 = vrot.slane %v1313_v41, 1 }
 0x228   :  { %v1298_v45 = vmul.f32 0.25, %v1290_v42  ;;  %v1308_v46 = vadd.f32 %v1307_v43, %v1306_v39 }
 0x229   :  { %v1299_v47 = vmul.f32 0.25, %v1297_v44  ;;  %v1315_v30 = vadd.f32 %v1314_v26, %v1313_v41 }
 0x22a   :  { %v1316_v36 = vmul.f32 0.25, %v1308_v46  ;;  %v1318_v48 = vmul.f32 %v1298_v45, %v1298_v45 }
 0x22b   :  { %v1317_v20 = vmul.f32 0.25, %v1315_v30  ;;  %v1319_v49 = vmul.f32 %v1299_v47, %v1299_v47 }
 0x22c   :  { %v1320_v50 = vsub.f32 %v1316_v36, %v1318_v48 }
 0x22d   :  { %v1321_v51 = vsub.f32 %v1317_v20, %v1319_v49 }
 0x22e   :  { %v1323_v52 = vadd.f32 1e-05, %v1320_v50 }
 0x22f   :  { %v1324_v16 = vadd.f32 1e-05, %v1321_v51 }
 0x230   :  { %2009 = vrsqrt.f32 %v1323_v52 }
 0x231   :  { %2011 = vrsqrt.f32 %v1324_v16 }
 0x23a   :  { %v2010_v38 = vpop.eup %2009 }
 0x23b   :  { %v2012_v57 = vpop.eup %2011 }
 0x23c   :  { %v1329_v58 = vcombine.low %v2010_v38, %v2012_v57 }
 0x23e   :  { %v1336_v59 = vrot.slane %v1329_v58, %v1335_v56 }
 0x240   :  { %v1343_v61 = vrot.slane %v1336_v59, %v1335_v56 }
 0x242   :  { %v1345_v62 = vmul.f32 %v1343_v61, %v1322_v60 }
 0x244   :  { %v1351_v63 = vrot.slane %v1345_v62, %v3844_v1  ;;  %v1355_v2 = vrot.slane %v1345_v62, %v3849_v3 }
 0x246   :  { %v1358_v4 = vmul.f32 %v1351_v63, %v1298_v45  ;;  %v1359_v5 = vmul.f32 %v1355_v2, %v1299_v47  ;;  %v1379_v6 = vmul.f32 %v1982_v35, %v1351_v63  ;;  %v1380_v7 = vmul.f32 %v1984_v10, %v1355_v2 }
 0x248   :  { %v1362_v8 = vcombine.low %v1358_v4, %v1359_v5 }
 0x24a   :  { %v1369_v9 = vrot.slane %v1362_v8, %v1335_v56 }
 0x24c   :  { %v1376_v11 = vrot.slane %v1369_v9, %v1335_v56 }
 0x24e   :  { %v1378_v12 = vsub.f32 %v1346_v0, %v1376_v11 }
 0x250   :  { %v1385_v13 = vrot.slane %v1378_v12, %v3844_v1  ;;  %v1389_v14 = vrot.slane %v1378_v12, %v3849_v3 }
 0x252   :  { %v1392_v15 = vadd.f32 %v1385_v13, %v1379_v6  ;;  %v1393_v17 = vadd.f32 %v1389_v14, %v1380_v7 }
 0x254   :  { %v1394_v18 = vmax.f32 %v1392_v15, 0.0  ;;  %v1395_v19 = vmax.f32 %v1393_v17, 0.0 }
 0x256   :  { %v1398_v21 = vcombine.low %v1394_v18, %v1395_v19 }
 0x258   :  { %1400 = vst [vmem:[%s3871_s5] sm:$0xff] %v1398_v21 }

// kernel: unet_forward.27
= control target key start
LH: loop header
LB: loop body
LE: loop exit
PB: predicated region body
PF: predicated region fallthrough
CT: control target
= control target key end

     0   :  { %s2897_s1 = inlined_call_operand.vmem [shape: f32[2304,128], index: 1, kind: input, shape index: {}]   ;;  %s2898_s0 = inlined_call_operand.vmem [shape: f32[24,2304], index: 0, kind: input, shape index: {}]   ;;  %s2899_s2 = inlined_call_operand.vmem [shape: f32[1,128], index: 2, kind: input, shape index: {}]   ;;  %s2900_s3 = inlined_call_operand.vmem [shape: f32[1,128], index: 3, kind: input, shape index: {}]   ;;  %s2901_s4 = inlined_call_operand.vmem [shape: f32[1,128], index: 4, kind: input, shape index: {}]   ;;  %s2902_s5 = inlined_call_operand.vmem [shape: f32[24,128], index: 5, kind: output, shape index: {}]  }
   0x1   :  { %v90_v0 = vld [vmem:[%s2897_s1 + $0x80] sm:$0xff]  ;;  %v91_v1 = vld [vmem:[%s2897_s1 + $0x88] sm:$0xff]  ;;  %v92_v11 = vld [vmem:[%s2897_s1 + $0x90] sm:$0xff] }
   0x2   :  { %v122_v2 = vld [vmem:[%s2897_s1 + $0x180] sm:$0xff]  ;;  %v1517_v3 = vpack.c.bf16 %v91_v1, %v90_v0  ;;  %v123_v4 = vld [vmem:[%s2897_s1 + $0x188] sm:$0xff]  ;;  %v93_v13 = vld [vmem:[%s2897_s1 + $0x98] sm:$0xff] }
   0x3   :  { %v74_v5 = vld [vmem:[%s2897_s1] sm:$0xff]  ;;  %v75_v6 = vld [vmem:[%s2897_s1 + $0x8] sm:$0xff]  ;;  %v1549_v7 = vpack.c.bf16 %v123_v4, %v122_v2  ;;  %v124_v14 = vld [vmem:[%s2897_s1 + $0x190] sm:$0xff]  ;;  %v1521_v16 = vpack.c.bf16 %v93_v13, %v92_v11 }
   0x4   :  { %v1519_v8 = vpack.c.bf16 %v75_v6, %v74_v5  ;;  %v106_v9 = vld [vmem:[%s2897_s1 + $0x100] sm:$0xff]  ;;  %v107_v10 = vld [vmem:[%s2897_s1 + $0x108] sm:$0xff]  ;;  %1518 = vmatprep.subr.bf16.mxu0 %v1517_v3  ;;  %v125_v15 = vld [vmem:[%s2897_s1 + $0x198] sm:$0xff] }
   0x5   :  { %v1551_v12 = vpack.c.bf16 %v107_v10, %v106_v9  ;;  %1550 = vmatprep.subr.bf16.mxu1 %v1549_v7  ;;  %v1553_v17 = vpack.c.bf16 %v125_v15, %v124_v14  ;;  %v76_v18 = vld [vmem:[%s2897_s1 + $0x10] sm:$0xff]  ;;  %v77_v19 = vld [vmem:[%s2897_s1 + $0x18] sm:$0xff]  ;;  %v94_v23 = vld [vmem:[%s2897_s1 + $0xa0] sm:$0xff] }
   0x6   :  { %1520 = vmatpush3.bf16.msra.mxu0 %v1519_v8  ;;  %v108_v20 = vld [vmem:[%s2897_s1 + $0x110] sm:$0xff]  ;;  %v1523_v21 = vpack.c.bf16 %v77_v19, %v76_v18  ;;  %v109_v22 = vld [vmem:[%s2897_s1 + $0x118] sm:$0xff]  ;;  %v95_v24 = vld [vmem:[%s2897_s1 + $0xa8] sm:$0xff] }
   0x7   :  { %1552 = vmatpush3.bf16.msra.mxu1 %v1551_v12  ;;  %1522 = vmatprep.subr.bf16.mxu0 %v1521_v16  ;;  %v1555_v25 = vpack.c.bf16 %v109_v22, %v108_v20  ;;  %v1525_v26 = vpack.c.bf16 %v95_v24, %v94_v23  ;;  %v126_v27 = vld [vmem:[%s2897_s1 + $0x1a0] sm:$0xff]  ;;  %v127_v28 = vld [vmem:[%s2897_s1 + $0x1a8] sm:$0xff]  ;;  %v96_v35 = vld [vmem:[%s2897_s1 + $0xb0] sm:$0xff] }
   0x8   :  { %1554 = vmatprep.subr.bf16.mxu1 %v1553_v17  ;;  %v78_v29 = vld [vmem:[%s2897_s1 + $0x20] sm:$0xff]  ;;  %v1557_v30 = vpack.c.bf16 %v127_v28, %v126_v27  ;;  %v79_v31 = vld [vmem:[%s2897_s1 + $0x28] sm:$0xff]  ;;  %v97_v36 = vld [vmem:[%s2897_s1 + $0xb8] sm:$0xff] }
   0x9   :  { %v110_v32 = vld [vmem:[%s2897_s1 + $0x120] sm:$0xff]  ;;  %v111_v33 = vld [vmem:[%s2897_s1 + $0x128] sm:$0xff]  ;;  %v1527_v34 = vpack.c.bf16 %v79_v31, %v78_v29  ;;  %v128_v37 = vld [vmem:[%s2897_s1 + $0x1b0] sm:$0xff]  ;;  %v1529_v39 = vpack.c.bf16 %v97_v36, %v96_v35 }
   0xa   :  { %1524 = vmatpush3.bf16.msra.mxu0 %v1523_v21  ;;  %v1559_v38 = vpack.c.bf16 %v111_v33, %v110_v32  ;;  %v129_v40 = vld [vmem:[%s2897_s1 + $0x1b8] sm:$0xff]  ;;  %v80_v41 = vld [vmem:[%s2897_s1 + $0x30] sm:$0xff]  ;;  %v98_v46 = vld [vmem:[%s2897_s1 + $0xc0] sm:$0xff] }
   0xb   :  { %1556 = vmatpush3.bf16.msra.mxu1 %v1555_v25  ;;  %1526 = vmatprep.subr.bf16.mxu0 %v1525_v26  ;;  %v81_v42 = vld [vmem:[%s2897_s1 + $0x38] sm:$0xff]  ;;  %v1561_v43 = vpack.c.bf16 %v129_v40, %v128_v37  ;;  %v112_v44 = vld [vmem:[%s2897_s1 + $0x130] sm:$0xff]  ;;  %v99_v47 = vld [vmem:[%s2897_s1 + $0xc8] sm:$0xff] }
   0xc   :  { %1558 = vmatprep.subr.bf16.mxu1 %v1557_v30  ;;  %v113_v45 = vld [vmem:[%s2897_s1 + $0x138] sm:$0xff]  ;;  %v130_v48 = vld [vmem:[%s2897_s1 + $0x1c0] sm:$0xff]  ;;  %v131_v49 = vld [vmem:[%s2897_s1 + $0x1c8] sm:$0xff]  ;;  %v1531_v50 = vpack.c.bf16 %v81_v42, %v80_v41  ;;  %v1533_v52 = vpack.c.bf16 %v99_v47, %v98_v46 }
   0xd   :  { %v1563_v51 = vpack.c.bf16 %v113_v45, %v112_v44  ;;  %v82_v53 = vld [vmem:[%s2897_s1 + $0x40] sm:$0xff]  ;;  %v83_v54 = vld [vmem:[%s2897_s1 + $0x48] sm:$0xff]  ;;  %v1565_v56 = vpack.c.bf16 %v131_v49, %v130_v48  ;;  %v100_v58 = vld [vmem:[%s2897_s1 + $0xd0] sm:$0xff] }
   0xe   :  { %1528 = vmatpush3.bf16.msra.mxu0 %v1527_v34  ;;  %v114_v55 = vld [vmem:[%s2897_s1 + $0x140] sm:$0xff]  ;;  %v115_v57 = vld [vmem:[%s2897_s1 + $0x148] sm:$0xff]  ;;  %v101_v59 = vld [vmem:[%s2897_s1 + $0xd8] sm:$0xff]  ;;  %v1535_v62 = vpack.c.bf16 %v83_v54, %v82_v53 }
   0xf   :  { %1560 = vmatpush3.bf16.msra.mxu1 %v1559_v38  ;;  %1530 = vmatprep.subr.bf16.mxu0 %v1529_v39  ;;  %v132_v60 = vld [vmem:[%s2897_s1 + $0x1d0] sm:$0xff]  ;;  %v133_v61 = vld [vmem:[%s2897_s1 + $0x1d8] sm:$0xff]  ;;  %v1567_v63 = vpack.c.bf16 %v115_v57, %v114_v55  ;;  %v1537_v0 = vpack.c.bf16 %v101_v59, %v100_v58  ;;  %v102_v6 = vld [vmem:[%s2897_s1 + $0xe0] sm:$0xff] }
  0x10   :  { %1562 = vmatprep.subr.bf16.mxu1 %v1561_v43  ;;  %v84_v1 = vld [vmem:[%s2897_s1 + $0x50] sm:$0xff]  ;;  %v85_v2 = vld [vmem:[%s2897_s1 + $0x58] sm:$0xff]  ;;  %v1569_v4 = vpack.c.bf16 %v133_v61, %v132_v60  ;;  %v103_v7 = vld [vmem:[%s2897_s1 + $0xe8] sm:$0xff] }
  0x11   :  { %v116_v3 = vld [vmem:[%s2897_s1 + $0x150] sm:$0xff]  ;;  %v117_v5 = vld [vmem:[%s2897_s1 + $0x158] sm:$0xff]  ;;  %v134_v8 = vld [vmem:[%s2897_s1 + $0x1e0] sm:$0xff]  ;;  %v1539_v10 = vpack.c.bf16 %v85_v2, %v84_v1  ;;  %v1541_v14 = vpack.c.bf16 %v103_v7, %v102_v6 }
  0x12   :  { %1532 = vmatpush3.bf16.msra.mxu0 %v1531_v50  ;;  %v135_v9 = vld [vmem:[%s2897_s1 + $0x1e8] sm:$0xff]  ;;  %v86_v11 = vld [vmem:[%s2897_s1 + $0x60] sm:$0xff]  ;;  %v1571_v13 = vpack.c.bf16 %v117_v5, %v116_v3  ;;  %v23_v17 = vld [vmem:[%s2898_s0 + $0x18] sm:$0xff] }
  0x13   :  { %1564 = vmatpush3.bf16.msra.mxu1 %v1563_v51  ;;  %1534 = vmatprep.subr.bf16.mxu0 %v1533_v52  ;;  %v87_v12 = vld [vmem:[%s2897_s1 + $0x68] sm:$0xff]  ;;  %v118_v15 = vld [vmem:[%s2897_s1 + $0x160] sm:$0xff]  ;;  %v1573_v18 = vpack.c.bf16 %v135_v9, %v134_v8  ;;  %v104_v20 = vld [vmem:[%s2897_s1 + $0xf0] sm:$0xff] }
  0x14   :  { %1566 = vmatprep.subr.bf16.mxu1 %v1565_v56  ;;  %v21_v16 = vld [vmem:[%s2898_s0 + $0x8] sm:$0xff]  ;;  %v105_v21 = vld [vmem:[%s2897_s1 + $0xf8] sm:$0xff]  ;;  %v136_v22 = vld [vmem:[%s2897_s1 + $0x1f0] sm:$0xff]  ;;  %513 = vmatprep.mubr.f32.mxu1 %v23_v17  ;;  %v1543_v24 = vpack.c.bf16 %v87_v12, %v86_v11 }
  0x15   :  { %v119_v19 = vld [vmem:[%s2897_s1 + $0x168] sm:$0xff]  ;;  %433 = vmatprep.mubr.f32.mxu0 %v21_v16  ;;  %v137_v23 = vld [vmem:[%s2897_s1 + $0x1f8] sm:$0xff]  ;;  %v1545_v26 = vpack.c.bf16 %v105_v21, %v104_v20  ;;  %v88_v27 = vld [vmem:[%s2897_s1 + $0x70] sm:$0xff] }
  0x16   :  { %1536 = vmatpush3.bf16.msra.mxu0 %v1535_v62  ;;  %v1575_v25 = vpack.c.bf16 %v119_v19, %v118_v15  ;;  %v89_v28 = vld [vmem:[%s2897_s1 + $0x78] sm:$0xff]  ;;  %v120_v29 = vld [vmem:[%s2897_s1 + $0x170] sm:$0xff]  ;;  %v1577_v30 = vpack.c.bf16 %v137_v23, %v136_v22  ;;  %v154_v32 = vld [vmem:[%s2897_s1 + $0x280] sm:$0xff] }
  0x17   :  { %1568 = vmatpush3.bf16.msra.mxu1 %v1567_v63  ;;  %1538 = vmatprep.subr.bf16.mxu0 %v1537_v0  ;;  %v121_v31 = vld [vmem:[%s2897_s1 + $0x178] sm:$0xff]  ;;  %v155_v33 = vld [vmem:[%s2897_s1 + $0x288] sm:$0xff]  ;;  %v186_v34 = vld [vmem:[%s2897_s1 + $0x380] sm:$0xff]  ;;  %v1547_v36 = vpack.c.bf16 %v89_v28, %v88_v27 }
  0x18   :  { %1570 = vmatprep.subr.bf16.mxu1 %v1569_v4  ;;  %v187_v35 = vld [vmem:[%s2897_s1 + $0x388] sm:$0xff]  ;;  %v1579_v37 = vpack.c.bf16 %v121_v31, %v120_v29  ;;  %v1581_v38 = vpack.c.bf16 %v155_v33, %v154_v32  ;;  %v138_v39 = vld [vmem:[%s2897_s1 + $0x200] sm:$0xff]  ;;  %v156_v44 = vld [vmem:[%s2897_s1 + $0x290] sm:$0xff] }
  0x19   :  { %v139_v40 = vld [vmem:[%s2897_s1 + $0x208] sm:$0xff]  ;;  %v170_v41 = vld [vmem:[%s2897_s1 + $0x300] sm:$0xff]  ;;  %v1613_v42 = vpack.c.bf16 %v187_v35, %v186_v34  ;;  %v157_v45 = vld [vmem:[%s2897_s1 + $0x298] sm:$0xff] }
  0x1a   :  { %1540 = vmatpush3.bf16.msra.mxu0 %v1539_v10  ;;  %v171_v43 = vld [vmem:[%s2897_s1 + $0x308] sm:$0xff]  ;;  %v188_v46 = vld [vmem:[%s2897_s1 + $0x390] sm:$0xff]  ;;  %v189_v47 = vld [vmem:[%s2897_s1 + $0x398] sm:$0xff]  ;;  %v1583_v50 = vpack.c.bf16 %v139_v40, %v138_v39  ;;  %v1585_v52 = vpack.c.bf16 %v157_v45, %v156_v44 }
  0x1b   :  { %1572 = vmatpush3.bf16.msra.mxu1 %v1571_v13  ;;  %1542 = vmatprep.subr.bf16.mxu0 %v1541_v14  ;;  %v20_v48 = vld [vmem:[%s2898_s0] sm:$0xff]  ;;  %v22_v49 = vld [vmem:[%s2898_s0 + $0x10] sm:$0xff]  ;;  %v1615_v51 = vpack.c.bf16 %v171_v43, %v170_v41  ;;  %v141_v54 = vld [vmem:[%s2897_s1 + $0x218] sm:$0xff]  ;;  %v1617_v56 = vpack.c.bf16 %v189_v47, %v188_v46 }
  0x1c   :  { %1574 = vmatprep.subr.bf16.mxu1 %v1573_v18  ;;  %v140_v53 = vld [vmem:[%s2897_s1 + $0x210] sm:$0xff]  ;;  %v173_v57 = vld [vmem:[%s2897_s1 + $0x318] sm:$0xff]  ;;  %v158_v58 = vld [vmem:[%s2897_s1 + $0x2a0] sm:$0xff] }
  0x1d   :  { %v172_v55 = vld [vmem:[%s2897_s1 + $0x310] sm:$0xff]  ;;  %v159_v59 = vld [vmem:[%s2897_s1 + $0x2a8] sm:$0xff]  ;;  %v190_v60 = vld [vmem:[%s2897_s1 + $0x3a0] sm:$0xff]  ;;  %v1587_v62 = vpack.c.bf16 %v141_v54, %v140_v53 }
  0x1e   :  { %1544 = vmatpush3.bf16.msra.mxu0 %v1543_v24  ;;  %v191_v61 = vld [vmem:[%s2897_s1 + $0x3a8] sm:$0xff]  ;;  %v142_v63 = vld [vmem:[%s2897_s1 + $0x220] sm:$0xff]  ;;  %v1619_v1 = vpack.c.bf16 %v173_v57, %v172_v55  ;;  %v1589_v2 = vpack.c.bf16 %v159_v59, %v158_v58  ;;  %v39_v5 = vld [vmem:[%s2898_s0 + $0x98] sm:$0xff] }
  0x1f   :  { %1576 = vmatpush3.bf16.msra.mxu1 %v1575_v25  ;;  %1546 = vmatprep.subr.bf16.mxu0 %v1545_v26  ;;  %v143_v0 = vld [vmem:[%s2897_s1 + $0x228] sm:$0xff]  ;;  %v174_v3 = vld [vmem:[%s2897_s1 + $0x320] sm:$0xff]  ;;  %v1621_v6 = vpack.c.bf16 %v191_v61, %v190_v60  ;;  %v160_v7 = vld [vmem:[%s2897_s1 + $0x2b0] sm:$0xff] }
  0x20   :  { %1578 = vmatprep.subr.bf16.mxu1 %v1577_v30  ;;  %v175_v4 = vld [vmem:[%s2897_s1 + $0x328] sm:$0xff]  ;;  %v161_v8 = vld [vmem:[%s2897_s1 + $0x2b8] sm:$0xff]  ;;  %v192_v9 = vld [vmem:[%s2897_s1 + $0x3b0] sm:$0xff]  ;;  %v1591_v13 = vpack.c.bf16 %v143_v0, %v142_v63 }
  0x21   :  { %v193_v10 = vld [vmem:[%s2897_s1 + $0x3b8] sm:$0xff]  ;;  %v38_v11 = vld [vmem:[%s2898_s0 + $0x90] sm:$0xff]  ;;  %v41_v12 = vld [vmem:[%s2898_s0 + $0xa8] sm:$0xff]  ;;  %v1623_v17 = vpack.c.bf16 %v175_v4, %v174_v3  ;;  %v1593_v18 = vpack.c.bf16 %v161_v8, %v160_v7 }
  0x22   :  { %1548 = vmatpush3.bf16.msra.mxu0 %v1547_v36  ;;  %v144_v14 = vld [vmem:[%s2897_s1 + $0x230] sm:$0xff]  ;;  %v145_v15 = vld [vmem:[%s2897_s1 + $0x238] sm:$0xff]  ;;  %v40_v16 = vld [vmem:[%s2898_s0 + $0xa0] sm:$0xff]  ;;  %v1625_v22 = vpack.c.bf16 %v193_v10, %v192_v9 }
  0x23   :  { %1580 = vmatpush3.bf16.msra.mxu1 %v1579_v37  ;;  %1582 = vmatprep.subr.bf16.mxu0 %v1581_v38  ;;  %v176_v19 = vld [vmem:[%s2897_s1 + $0x330] sm:$0xff]  ;;  %v177_v20 = vld [vmem:[%s2897_s1 + $0x338] sm:$0xff]  ;;  %v57_v21 = vld [vmem:[%s2898_s0 + $0x128] sm:$0xff]  ;;  %v1595_v29 = vpack.c.bf16 %v145_v15, %v144_v14 }
  0x24   :  { %1614 = vmatprep.subr.bf16.mxu1 %v1613_v42  ;;  %v162_v23 = vld [vmem:[%s2897_s1 + $0x2c0] sm:$0xff]  ;;  %v163_v24 = vld [vmem:[%s2897_s1 + $0x2c8] sm:$0xff]  ;;  %v59_v28 = vld [vmem:[%s2898_s0 + $0x138] sm:$0xff]  ;;  %v1627_v32 = vpack.c.bf16 %v177_v20, %v176_v19 }
  0x25   :  { %434 = vmatmul.mubr.f32.vlgmr.msra.gmra.mrb[0].mxu0 %v20_v48  ;;  %v194_v25 = vld [vmem:[%s2897_s1 + $0x3c0] sm:$0xff]  ;;  %v195_v26 = vld [vmem:[%s2897_s1 + $0x3c8] sm:$0xff]  ;;  %v58_v31 = vld [vmem:[%s2898_s0 + $0x130] sm:$0xff]  ;;  %v1597_v33 = vpack.c.bf16 %v163_v24, %v162_v23 }
  0x26   :  { %514 = vmatmul.mubr.f32.vlgmr.msra.gmra.mrb[0].mxu1 %v22_v49  ;;  %1584 = vmatpush3.bf16.msra.mxu0 %v1583_v50  ;;  %v56_v27 = vld [vmem:[%s2898_s0 + $0x120] sm:$0xff]  ;;  %v147_v34 = vld [vmem:[%s2897_s1 + $0x248] sm:$0xff]  ;;  %v1629_v37 = vpack.c.bf16 %v195_v26, %v194_v25  ;;  %v164_v38 = vld [vmem:[%s2897_s1 + $0x2d0] sm:$0xff] }
  0x27   :  { %1616 = vmatpush3.bf16.msra.mxu1 %v1615_v51  ;;  %1586 = vmatprep.subr.bf16.mxu0 %v1585_v52  ;;  %v146_v30 = vld [vmem:[%s2897_s1 + $0x240] sm:$0xff]  ;;  %v179_v36 = vld [vmem:[%s2897_s1 + $0x348] sm:$0xff]  ;;  %v165_v39 = vld [vmem:[%s2897_s1 + $0x2d8] sm:$0xff] }
  0x28   :  { %1618 = vmatprep.subr.bf16.mxu1 %v1617_v56  ;;  %438 = vmatprep.mubr.f32.mxu0 %v39_v5  ;;  %v178_v35 = vld [vmem:[%s2897_s1 + $0x340] sm:$0xff]  ;;  %v25_v40 = vld [vmem:[%s2898_s0 + $0x28] sm:$0xff]  ;;  %v196_v41 = vld [vmem:[%s2897_s1 + $0x3d0] sm:$0xff]  ;;  %v1599_v44 = vpack.c.bf16 %v147_v34, %v146_v30  ;;  %v1601_v46 = vpack.c.bf16 %v165_v39, %v164_v38 }
  0x29   :  { %518 = vmatprep.mubr.f32.mxu1 %v41_v12  ;;  %439 = vmatmul.mubr.f32.gmra.mrb[2].mxu0 %v38_v11  ;;  %v197_v42 = vld [vmem:[%s2897_s1 + $0x3d8] sm:$0xff]  ;;  %v1631_v45 = vpack.c.bf16 %v179_v36, %v178_v35  ;;  %v148_v47 = vld [vmem:[%s2897_s1 + $0x250] sm:$0xff]  ;;  %v166_v52 = vld [vmem:[%s2897_s1 + $0x2e0] sm:$0xff] }
  0x2a   :  { %1588 = vmatpush3.bf16.msra.mxu0 %v1587_v62  ;;  %519 = vmatmul.mubr.f32.gmra.mrb[2].mxu1 %v40_v16  ;;  %v27_v43 = vld [vmem:[%s2898_s0 + $0x38] sm:$0xff]  ;;  %v180_v49 = vld [vmem:[%s2897_s1 + $0x350] sm:$0xff]  ;;  %v1633_v50 = vpack.c.bf16 %v197_v42, %v196_v41  ;;  %v167_v53 = vld [vmem:[%s2897_s1 + $0x2e8] sm:$0xff] }
  0x2b   :  { %1620 = vmatpush3.bf16.msra.mxu1 %v1619_v1  ;;  %1590 = vmatprep.subr.bf16.mxu0 %v1589_v2  ;;  %v149_v48 = vld [vmem:[%s2897_s1 + $0x258] sm:$0xff]  ;;  %v198_v54 = vld [vmem:[%s2897_s1 + $0x3e0] sm:$0xff]  ;;  %v199_v55 = vld [vmem:[%s2897_s1 + $0x3e8] sm:$0xff]  ;;  %v1605_v58 = vpack.c.bf16 %v167_v53, %v166_v52 }
  0x2c   :  { %1622 = vmatprep.subr.bf16.mxu1 %v1621_v6  ;;  %443 = vmatprep.mubr.f32.mxu0 %v57_v21  ;;  %v181_v51 = vld [vmem:[%s2897_s1 + $0x358] sm:$0xff]  ;;  %v1603_v56 = vpack.c.bf16 %v149_v48, %v148_v47  ;;  %v150_v59 = vld [vmem:[%s2897_s1 + $0x260] sm:$0xff]  ;;  %v151_v60 = vld [vmem:[%s2897_s1 + $0x268] sm:$0xff]  ;;  %v1637_v62 = vpack.c.bf16 %v199_v55, %v198_v54 }
  0x2d   :  { %523 = vmatprep.mubr.f32.mxu1 %v59_v28  ;;  %444 = vmatmul.mubr.f32.gmra.mrb[4].mxu0 %v56_v27  ;;  %v1635_v57 = vpack.c.bf16 %v181_v51, %v180_v49  ;;  %v182_v61 = vld [vmem:[%s2897_s1 + $0x360] sm:$0xff]  ;;  %v183_v63 = vld [vmem:[%s2897_s1 + $0x368] sm:$0xff]  ;;  %v168_v0 = vld [vmem:[%s2897_s1 + $0x2f0] sm:$0xff]  ;;  %v1607_v4 = vpack.c.bf16 %v151_v60, %v150_v59 }
  0x2e   :  { %1592 = vmatpush3.bf16.msra.mxu0 %v1591_v13  ;;  %524 = vmatmul.mubr.f32.gmra.mrb[4].mxu1 %v58_v31  ;;  %v169_v1 = vld [vmem:[%s2897_s1 + $0x2f8] sm:$0xff]  ;;  %v200_v2 = vld [vmem:[%s2897_s1 + $0x3f0] sm:$0xff]  ;;  %v1639_v5 = vpack.c.bf16 %v183_v63, %v182_v61  ;;  %v218_v12 = vld [vmem:[%s2897_s1 + $0x480] sm:$0xff] }
  0x2f   :  { %1624 = vmatpush3.bf16.msra.mxu1 %v1623_v17  ;;  %1594 = vmatprep.subr.bf16.mxu0 %v1593_v18  ;;  %v201_v3 = vld [vmem:[%s2897_s1 + $0x3f8] sm:$0xff]  ;;  %v1609_v6 = vpack.c.bf16 %v169_v1, %v168_v0  ;;  %v152_v7 = vld [vmem:[%s2897_s1 + $0x270] sm:$0xff]  ;;  %v219_v13 = vld [vmem:[%s2897_s1 + $0x488] sm:$0xff] }
  0x30   :  { %1626 = vmatprep.subr.bf16.mxu1 %v1625_v22  ;;  %593 = vmatprep.mubr.f32.mxu0 %v25_v40  ;;  %v153_v8 = vld [vmem:[%s2897_s1 + $0x278] sm:$0xff]  ;;  %v184_v9 = vld [vmem:[%s2897_s1 + $0x370] sm:$0xff]  ;;  %v1641_v10 = vpack.c.bf16 %v201_v3, %v200_v2  ;;  %v250_v14 = vld [vmem:[%s2897_s1 + $0x580] sm:$0xff]  ;;  %v1645_v18 = vpack.c.bf16 %v219_v13, %v218_v12 }
  0x31   :  { %673 = vmatprep.mubr.f32.mxu1 %v27_v43  ;;  %v185_v11 = vld [vmem:[%s2897_s1 + $0x378] sm:$0xff]  ;;  %v251_v15 = vld [vmem:[%s2897_s1 + $0x588] sm:$0xff]  ;;  %v1611_v16 = vpack.c.bf16 %v153_v8, %v152_v7  ;;  %v202_v19 = vld [vmem:[%s2897_s1 + $0x400] sm:$0xff] }
  0x32   :  { %1596 = vmatpush3.bf16.msra.mxu0 %v1595_v29  ;;  %v1643_v17 = vpack.c.bf16 %v185_v11, %v184_v9  ;;  %v203_v20 = vld [vmem:[%s2897_s1 + $0x408] sm:$0xff]  ;;  %v1677_v21 = vpack.c.bf16 %v251_v15, %v250_v14  ;;  %v234_v22 = vld [vmem:[%s2897_s1 + $0x500] sm:$0xff]  ;;  %v220_v24 = vld [vmem:[%s2897_s1 + $0x490] sm:$0xff] }
  0x33   :  { %1628 = vmatpush3.bf16.msra.mxu1 %v1627_v32  ;;  %1598 = vmatprep.subr.bf16.mxu0 %v1597_v33  ;;  %v235_v23 = vld [vmem:[%s2897_s1 + $0x508] sm:$0xff]  ;;  %v221_v25 = vld [vmem:[%s2897_s1 + $0x498] sm:$0xff]  ;;  %v252_v26 = vld [vmem:[%s2897_s1 + $0x590] sm:$0xff]  ;;  %v1647_v30 = vpack.c.bf16 %v203_v20, %v202_v19 }
  0x34   :  { %1630 = vmatprep.subr.bf16.mxu1 %v1629_v37  ;;  %v253_v27 = vld [vmem:[%s2897_s1 + $0x598] sm:$0xff]  ;;  %v24_v28 = vld [vmem:[%s2898_s0 + $0x20] sm:$0xff]  ;;  %v26_v29 = vld [vmem:[%s2898_s0 + $0x30] sm:$0xff]  ;;  %v1679_v31 = vpack.c.bf16 %v235_v23, %v234_v22  ;;  %v1649_v36 = vpack.c.bf16 %v221_v25, %v220_v24 }
  0x35   :  { %v43_v32 = vld [vmem:[%s2898_s0 + $0xb8] sm:$0xff]  ;;  %v204_v33 = vld [vmem:[%s2897_s1 + $0x410] sm:$0xff]  ;;  %v1681_v37 = vpack.c.bf16 %v253_v27, %v252_v26  ;;  %v222_v40 = vld [vmem:[%s2897_s1 + $0x4a0] sm:$0xff] }
  0x36   :  { %1600 = vmatpush3.bf16.msra.mxu0 %v1599_v44  ;;  %v205_v34 = vld [vmem:[%s2897_s1 + $0x418] sm:$0xff]  ;;  %v42_v35 = vld [vmem:[%s2898_s0 + $0xb0] sm:$0xff]  ;;  %v223_v41 = vld [vmem:[%s2897_s1 + $0x4a8] sm:$0xff] }
  0x37   :  { %1632 = vmatpush3.bf16.msra.mxu1 %v1631_v45  ;;  %1602 = vmatprep.subr.bf16.mxu0 %v1601_v46  ;;  %v236_v38 = vld [vmem:[%s2897_s1 + $0x510] sm:$0xff]  ;;  %v237_v39 = vld [vmem:[%s2897_s1 + $0x518] sm:$0xff]  ;;  %v254_v42 = vld [vmem:[%s2897_s1 + $0x5a0] sm:$0xff]  ;;  %v1651_v45 = vpack.c.bf16 %v205_v34, %v204_v33  ;;  %v1653_v52 = vpack.c.bf16 %v223_v41, %v222_v40 }
  0x38   :  { %1634 = vmatprep.subr.bf16.mxu1 %v1633_v50  ;;  %v255_v43 = vld [vmem:[%s2897_s1 + $0x5a8] sm:$0xff]  ;;  %v44_v46 = vld [vmem:[%s2898_s0 + $0xc0] sm:$0xff]  ;;  %v1683_v48 = vpack.c.bf16 %v237_v39, %v236_v38  ;;  %v224_v55 = vld [vmem:[%s2897_s1 + $0x4b0] sm:$0xff] }
  0x39   :  { %v45_v44 = vld [vmem:[%s2898_s0 + $0xc8] sm:$0xff]  ;;  %v206_v49 = vld [vmem:[%s2897_s1 + $0x420] sm:$0xff]  ;;  %v1685_v53 = vpack.c.bf16 %v255_v43, %v254_v42  ;;  %v63_v60 = vld [vmem:[%s2898_s0 + $0x158] sm:$0xff] }
  0x3a   :  { %1604 = vmatpush3.bf16.msra.mxu0 %v1603_v56  ;;  %v61_v47 = vld [vmem:[%s2898_s0 + $0x148] sm:$0xff]  ;;  %v238_v51 = vld [vmem:[%s2897_s1 + $0x520] sm:$0xff]  ;;  %v225_v56 = vld [vmem:[%s2897_s1 + $0x4b8] sm:$0xff] }
  0x3b   :  { %1636 = vmatpush3.bf16.msra.mxu1 %v1635_v57  ;;  %1606 = vmatprep.subr.bf16.mxu0 %v1605_v58  ;;  %v207_v50 = vld [vmem:[%s2897_s1 + $0x428] sm:$0xff]  ;;  %v256_v57 = vld [vmem:[%s2897_s1 + $0x5b0] sm:$0xff]  ;;  %v257_v58 = vld [vmem:[%s2897_s1 + $0x5b8] sm:$0xff]  ;;  %v1657_v0 = vpack.c.bf16 %v225_v56, %v224_v55 }
  0x3c   :  { %1638 = vmatprep.subr.bf16.mxu1 %v1637_v62  ;;  %v239_v54 = vld [vmem:[%s2897_s1 + $0x528] sm:$0xff]  ;;  %v60_v59 = vld [vmem:[%s2898_s0 + $0x140] sm:$0xff]  ;;  %v1655_v61 = vpack.c.bf16 %v207_v50, %v206_v49  ;;  %v62_v62 = vld [vmem:[%s2898_s0 + $0x150] sm:$0xff] }
  0x3d   :  { %v1687_v63 = vpack.c.bf16 %v239_v54, %v238_v51  ;;  %v208_v1 = vld [vmem:[%s2897_s1 + $0x430] sm:$0xff]  ;;  %v209_v2 = vld [vmem:[%s2897_s1 + $0x438] sm:$0xff]  ;;  %v227_v7 = vld [vmem:[%s2897_s1 + $0x4c8] sm:$0xff] }
  0x3e   :  { %1608 = vmatpush3.bf16.msra.mxu0 %v1607_v4  ;;  %v240_v3 = vld [vmem:[%s2897_s1 + $0x530] sm:$0xff]  ;;  %v1689_v4 = vpack.c.bf16 %v257_v58, %v256_v57  ;;  %v258_v8 = vld [vmem:[%s2897_s1 + $0x5c0] sm:$0xff]  ;;  %v259_v9 = vld [vmem:[%s2897_s1 + $0x5c8] sm:$0xff]  ;;  %v1659_v11 = vpack.c.bf16 %v209_v2, %v208_v1 }
  0x3f   :  { %1640 = vmatpush3.bf16.msra.mxu1 %v1639_v5  ;;  %1610 = vmatprep.subr.bf16.mxu0 %v1609_v6  ;;  %v241_v5 = vld [vmem:[%s2897_s1 + $0x538] sm:$0xff]  ;;  %v226_v6 = vld [vmem:[%s2897_s1 + $0x4c0] sm:$0xff]  ;;  %v243_v19 = vld [vmem:[%s2897_s1 + $0x548] sm:$0xff] }
  0x40   :  { %1642 = vmatprep.subr.bf16.mxu1 %v1641_v10  ;;  %v29_v10 = vld [vmem:[%s2898_s0 + $0x48] sm:$0xff]  ;;  %v31_v12 = vld [vmem:[%s2898_s0 + $0x58] sm:$0xff]  ;;  %v1691_v13 = vpack.c.bf16 %v241_v5, %v240_v3  ;;  %v1661_v14 = vpack.c.bf16 %v227_v7, %v226_v6  ;;  %v210_v15 = vld [vmem:[%s2897_s1 + $0x440] sm:$0xff] }
  0x41   :  { %v228_v20 = vld [vmem:[%s2897_s1 + $0x4d0] sm:$0xff]  ;;  %v261_v23 = vld [vmem:[%s2897_s1 + $0x5d8] sm:$0xff]  ;;  %v231_v33 = vld [vmem:[%s2897_s1 + $0x4e8] sm:$0xff] }
  0x42   :  { %1612 = vmatpush3.bf16.msra.mxu0 %v1611_v16  ;;  %v211_v16 = vld [vmem:[%s2897_s1 + $0x448] sm:$0xff]  ;;  %v260_v22 = vld [vmem:[%s2897_s1 + $0x5d0] sm:$0xff]  ;;  %v262_v34 = vld [vmem:[%s2897_s1 + $0x5e0] sm:$0xff] }
  0x43   :  { %1644 = vmatpush3.bf16.msra.mxu1 %v1643_v17  ;;  %1646 = vmatprep.subr.bf16.mxu0 %v1645_v18  ;;  %v242_v17 = vld [vmem:[%s2897_s1 + $0x540] sm:$0xff]  ;;  %v1693_v18 = vpack.c.bf16 %v259_v9, %v258_v8  ;;  %v1663_v24 = vpack.c.bf16 %v211_v16, %v210_v15  ;;  %v212_v27 = vld [vmem:[%s2897_s1 + $0x450] sm:$0xff]  ;;  %v215_v40 = vld [vmem:[%s2897_s1 + $0x468] sm:$0xff] }
  0x44   :  { %1678 = vmatprep.subr.bf16.mxu1 %v1677_v21  ;;  %v229_v21 = vld [vmem:[%s2897_s1 + $0x4d8] sm:$0xff]  ;;  %v1695_v25 = vpack.c.bf16 %v243_v19, %v242_v17  ;;  %v214_v39 = vld [vmem:[%s2897_s1 + $0x460] sm:$0xff]  ;;  %v247_v43 = vld [vmem:[%s2897_s1 + $0x568] sm:$0xff] }
  0x45   :  { %594 = vmatmul.mubr.f32.vlgmr.msra.gmra.mrb[6].mxu0 %v24_v28  ;;  %v1665_v26 = vpack.c.bf16 %v229_v21, %v228_v20  ;;  %v213_v28 = vld [vmem:[%s2897_s1 + $0x458] sm:$0xff]  ;;  %v246_v41 = vld [vmem:[%s2897_s1 + $0x560] sm:$0xff]  ;;  %v216_v51 = vld [vmem:[%s2897_s1 + $0x470] sm:$0xff] }
  0x46   :  { %674 = vmatmul.mubr.f32.vlgmr.msra.gmra.mrb[6].mxu1 %v26_v29  ;;  %1648 = vmatpush3.bf16.msra.mxu0 %v1647_v30  ;;  %v244_v29 = vld [vmem:[%s2897_s1 + $0x550] sm:$0xff]  ;;  %v1697_v30 = vpack.c.bf16 %v261_v23, %v260_v22  ;;  %v1703_v49 = vpack.c.bf16 %v247_v43, %v246_v41  ;;  %v249_v55 = vld [vmem:[%s2897_s1 + $0x578] sm:$0xff]  ;;  %v282_v56 = vld [vmem:[%s2897_s1 + $0x680] sm:$0xff] }
  0x47   :  { %1680 = vmatpush3.bf16.msra.mxu1 %v1679_v31  ;;  %598 = vmatprep.mubr.f32.mxu0 %v43_v32  ;;  %v245_v31 = vld [vmem:[%s2897_s1 + $0x558] sm:$0xff]  ;;  %v230_v32 = vld [vmem:[%s2897_s1 + $0x4e0] sm:$0xff]  ;;  %v283_v57 = vld [vmem:[%s2897_s1 + $0x688] sm:$0xff] }
  0x48   :  { %1650 = vmatprep.subr.bf16.mxu0 %v1649_v36  ;;  %1682 = vmatprep.subr.bf16.mxu1 %v1681_v37  ;;  %v1667_v36 = vpack.c.bf16 %v213_v28, %v212_v27  ;;  %v1699_v37 = vpack.c.bf16 %v245_v31, %v244_v29  ;;  %v1669_v38 = vpack.c.bf16 %v231_v33, %v230_v32  ;;  %v314_v58 = vld [vmem:[%s2897_s1 + $0x780] sm:$0xff]  ;;  %v299_v3 = vld [vmem:[%s2897_s1 + $0x708] sm:$0xff]  ;;  %v285_v5 = vld [vmem:[%s2897_s1 + $0x698] sm:$0xff] }
  0x49   :  { %599 = vmatmul.mubr.f32.gmra.mrb[8].mxu0 %v42_v35  ;;  %678 = vmatprep.mubr.f32.mxu1 %v45_v44  ;;  %v263_v35 = vld [vmem:[%s2897_s1 + $0x5e8] sm:$0xff]  ;;  %v232_v44 = vld [vmem:[%s2897_s1 + $0x4f0] sm:$0xff]  ;;  %v298_v2 = vld [vmem:[%s2897_s1 + $0x700] sm:$0xff] }
  0x4a   :  { %1652 = vmatpush3.bf16.msra.mxu0 %v1651_v45  ;;  %679 = vmatmul.mubr.f32.gmra.mrb[8].mxu1 %v44_v46  ;;  %v1701_v42 = vpack.c.bf16 %v263_v35, %v262_v34  ;;  %v233_v45 = vld [vmem:[%s2897_s1 + $0x4f8] sm:$0xff]  ;;  %v264_v46 = vld [vmem:[%s2897_s1 + $0x5f0] sm:$0xff]  ;;  %v28_v8 = vld [vmem:[%s2898_s0 + $0x40] sm:$0xff] }
  0x4b   :  { %1684 = vmatpush3.bf16.msra.mxu1 %v1683_v48  ;;  %603 = vmatprep.mubr.f32.mxu0 %v61_v47  ;;  %v265_v47 = vld [vmem:[%s2897_s1 + $0x5f8] sm:$0xff]  ;;  %v1671_v48 = vpack.c.bf16 %v215_v40, %v214_v39  ;;  %v1673_v50 = vpack.c.bf16 %v233_v45, %v232_v44  ;;  %v316_v6 = vld [vmem:[%s2897_s1 + $0x790] sm:$0xff]  ;;  %v286_v20 = vld [vmem:[%s2897_s1 + $0x6a0] sm:$0xff] }
  0x4c   :  { %1654 = vmatprep.subr.bf16.mxu0 %v1653_v52  ;;  %1686 = vmatprep.subr.bf16.mxu1 %v1685_v53  ;;  %v217_v52 = vld [vmem:[%s2897_s1 + $0x478] sm:$0xff]  ;;  %v248_v53 = vld [vmem:[%s2897_s1 + $0x570] sm:$0xff]  ;;  %v1705_v54 = vpack.c.bf16 %v265_v47, %v264_v46  ;;  %v287_v21 = vld [vmem:[%s2897_s1 + $0x6a8] sm:$0xff] }
  0x4d   :  { %604 = vmatmul.mubr.f32.gmra.mrb[10].mxu0 %v60_v59  ;;  %683 = vmatprep.mubr.f32.mxu1 %v63_v60  ;;  %v315_v59 = vld [vmem:[%s2897_s1 + $0x788] sm:$0xff]  ;;  %v1675_v60 = vpack.c.bf16 %v217_v52, %v216_v51  ;;  %v317_v7 = vld [vmem:[%s2897_s1 + $0x798] sm:$0xff]  ;;  %v30_v9 = vld [vmem:[%s2898_s0 + $0x50] sm:$0xff]  ;;  %v1717_v32 = vpack.c.bf16 %v287_v21, %v286_v20 }
  0x4e   :  { %1656 = vmatpush3.bf16.msra.mxu0 %v1655_v61  ;;  %684 = vmatmul.mubr.f32.gmra.mrb[10].mxu1 %v62_v62  ;;  %v1707_v61 = vpack.c.bf16 %v249_v55, %v248_v53  ;;  %v1709_v62 = vpack.c.bf16 %v283_v57, %v282_v56  ;;  %v1741_v1 = vpack.c.bf16 %v315_v59, %v314_v58  ;;  %v46_v15 = vld [vmem:[%s2898_s0 + $0xd0] sm:$0xff]  ;;  %v301_v19 = vld [vmem:[%s2897_s1 + $0x718] sm:$0xff]  ;;  %v318_v22 = vld [vmem:[%s2897_s1 + $0x7a0] sm:$0xff] }
  0x4f   :  { %1688 = vmatpush3.bf16.msra.mxu1 %v1687_v63  ;;  %1658 = vmatprep.subr.bf16.mxu0 %v1657_v0  ;;  %v266_v63 = vld [vmem:[%s2897_s1 + $0x600] sm:$0xff]  ;;  %v267_v0 = vld [vmem:[%s2897_s1 + $0x608] sm:$0xff]  ;;  %v1745_v17 = vpack.c.bf16 %v317_v7, %v316_v6  ;;  %v288_v35 = vld [vmem:[%s2897_s1 + $0x6b0] sm:$0xff] }
  0x50   :  { %1690 = vmatprep.subr.bf16.mxu1 %v1689_v4  ;;  %753 = vmatprep.mubr.f32.mxu0 %v29_v10  ;;  %v284_v4 = vld [vmem:[%s2897_s1 + $0x690] sm:$0xff]  ;;  %v1711_v10 = vpack.c.bf16 %v267_v0, %v266_v63  ;;  %v319_v23 = vld [vmem:[%s2897_s1 + $0x7a8] sm:$0xff]  ;;  %v270_v29 = vld [vmem:[%s2897_s1 + $0x620] sm:$0xff] }
  0x51   :  { %833 = vmatprep.mubr.f32.mxu1 %v31_v12  ;;  %v47_v12 = vld [vmem:[%s2898_s0 + $0xd8] sm:$0xff]  ;;  %v1713_v16 = vpack.c.bf16 %v285_v5, %v284_v4  ;;  %v65_v27 = vld [vmem:[%s2898_s0 + $0x168] sm:$0xff]  ;;  %v302_v31 = vld [vmem:[%s2897_s1 + $0x720] sm:$0xff]  ;;  %v1749_v33 = vpack.c.bf16 %v319_v23, %v318_v22 }
  0x52   :  { %1660 = vmatpush3.bf16.msra.mxu0 %v1659_v11  ;;  %v1743_v11 = vpack.c.bf16 %v299_v3, %v298_v2  ;;  %v303_v34 = vld [vmem:[%s2897_s1 + $0x728] sm:$0xff]  ;;  %v64_v39 = vld [vmem:[%s2898_s0 + $0x160] sm:$0xff]  ;;  %v67_v40 = vld [vmem:[%s2898_s0 + $0x178] sm:$0xff] }
  0x53   :  { %1692 = vmatpush3.bf16.msra.mxu1 %v1691_v13  ;;  %1662 = vmatprep.subr.bf16.mxu0 %v1661_v14  ;;  %v268_v13 = vld [vmem:[%s2897_s1 + $0x610] sm:$0xff]  ;;  %v269_v14 = vld [vmem:[%s2897_s1 + $0x618] sm:$0xff]  ;;  %v1751_v43 = vpack.c.bf16 %v303_v34, %v302_v31  ;;  %v291_v51 = vld [vmem:[%s2897_s1 + $0x6c8] sm:$0xff] }
  0x54   :  { %1694 = vmatprep.subr.bf16.mxu1 %v1693_v18  ;;  %v300_v18 = vld [vmem:[%s2897_s1 + $0x710] sm:$0xff]  ;;  %v273_v46 = vld [vmem:[%s2897_s1 + $0x638] sm:$0xff]  ;;  %v322_v52 = vld [vmem:[%s2897_s1 + $0x7c0] sm:$0xff] }
  0x55   :  { %v1747_v28 = vpack.c.bf16 %v301_v19, %v300_v18  ;;  %v272_v45 = vld [vmem:[%s2897_s1 + $0x630] sm:$0xff]  ;;  %v323_v53 = vld [vmem:[%s2897_s1 + $0x7c8] sm:$0xff]  ;;  %v35_v56 = vld [vmem:[%s2898_s0 + $0x78] sm:$0xff] }
  0x56   :  { %1664 = vmatpush3.bf16.msra.mxu0 %v1663_v24  ;;  %v49_v24 = vld [vmem:[%s2898_s0 + $0xe8] sm:$0xff]  ;;  %v304_v47 = vld [vmem:[%s2897_s1 + $0x730] sm:$0xff]  ;;  %v1723_v55 = vpack.c.bf16 %v273_v46, %v272_v45  ;;  %v274_v59 = vld [vmem:[%s2897_s1 + $0x640] sm:$0xff] }
  0x57   :  { %1696 = vmatpush3.bf16.msra.mxu1 %v1695_v25  ;;  %1666 = vmatprep.subr.bf16.mxu0 %v1665_v26  ;;  %v1715_v25 = vpack.c.bf16 %v269_v14, %v268_v13  ;;  %v48_v26 = vld [vmem:[%s2898_s0 + $0xe0] sm:$0xff]  ;;  %v307_v63 = vld [vmem:[%s2897_s1 + $0x748] sm:$0xff]  ;;  %v292_v0 = vld [vmem:[%s2897_s1 + $0x6d0] sm:$0xff] }
  0x58   :  { %1698 = vmatprep.subr.bf16.mxu1 %v1697_v30  ;;  %v271_v30 = vld [vmem:[%s2897_s1 + $0x628] sm:$0xff]  ;;  %v324_v2 = vld [vmem:[%s2897_s1 + $0x7d0] sm:$0xff]  ;;  %v325_v3 = vld [vmem:[%s2897_s1 + $0x7d8] sm:$0xff] }
  0x59   :  { %v1719_v41 = vpack.c.bf16 %v271_v30, %v270_v29  ;;  %v276_v7 = vld [vmem:[%s2897_s1 + $0x650] sm:$0xff]  ;;  %v295_v13 = vld [vmem:[%s2897_s1 + $0x6e8] sm:$0xff]  ;;  %v326_v14 = vld [vmem:[%s2897_s1 + $0x7e0] sm:$0xff] }
  0x5a   :  { %1668 = vmatpush3.bf16.msra.mxu0 %v1667_v36  ;;  %v289_v36 = vld [vmem:[%s2897_s1 + $0x6b8] sm:$0xff]  ;;  %v278_v19 = vld [vmem:[%s2897_s1 + $0x660] sm:$0xff]  ;;  %v279_v20 = vld [vmem:[%s2897_s1 + $0x668] sm:$0xff] }
  0x5b   :  { %1700 = vmatpush3.bf16.msra.mxu1 %v1699_v37  ;;  %1670 = vmatprep.subr.bf16.mxu0 %v1669_v38  ;;  %v320_v37 = vld [vmem:[%s2897_s1 + $0x7b0] sm:$0xff]  ;;  %v321_v38 = vld [vmem:[%s2897_s1 + $0x7b8] sm:$0xff]  ;;  %v1721_v44 = vpack.c.bf16 %v289_v36, %v288_v35  ;;  %v310_v21 = vld [vmem:[%s2897_s1 + $0x760] sm:$0xff] }
  0x5c   :  { %1702 = vmatprep.subr.bf16.mxu1 %v1701_v42  ;;  %v66_v42 = vld [vmem:[%s2898_s0 + $0x170] sm:$0xff]  ;;  %v311_v23 = vld [vmem:[%s2897_s1 + $0x768] sm:$0xff]  ;;  %v313_v35 = vld [vmem:[%s2897_s1 + $0x778] sm:$0xff] }
  0x5d   :  { %v1767_v29 = vpack.c.bf16 %v311_v23, %v310_v21  ;;  %v280_v31 = vld [vmem:[%s2897_s1 + $0x670] sm:$0xff]  ;;  %v346_v36 = vld [vmem:[%s2897_s1 + $0x880] sm:$0xff] }
  0x5e   :  { %1672 = vmatpush3.bf16.msra.mxu0 %v1671_v48  ;;  %v1753_v48 = vpack.c.bf16 %v321_v38, %v320_v37  ;;  %v347_v37 = vld [vmem:[%s2897_s1 + $0x888] sm:$0xff]  ;;  %v32_v45 = vld [vmem:[%s2898_s0 + $0x60] sm:$0xff] }
  0x5f   :  { %1704 = vmatpush3.bf16.msra.mxu1 %v1703_v49  ;;  %1674 = vmatprep.subr.bf16.mxu0 %v1673_v50  ;;  %v305_v49 = vld [vmem:[%s2897_s1 + $0x738] sm:$0xff]  ;;  %v290_v50 = vld [vmem:[%s2897_s1 + $0x6c0] sm:$0xff] }
  0x60   :  { %1706 = vmatprep.subr.bf16.mxu1 %v1705_v54  ;;  %v33_v54 = vld [vmem:[%s2898_s0 + $0x68] sm:$0xff]  ;;  %v1755_v57 = vpack.c.bf16 %v305_v49, %v304_v47  ;;  %v1725_v58 = vpack.c.bf16 %v291_v51, %v290_v50  ;;  %v34_v47 = vld [vmem:[%s2898_s0 + $0x70] sm:$0xff]  ;;  %v333_v49 = vld [vmem:[%s2897_s1 + $0x818] sm:$0xff] }
  0x61   :  { %v51_v50 = vld [vmem:[%s2898_s0 + $0xf8] sm:$0xff]  ;;  %v358_v21 = vld [vmem:[%s2897_s1 + $0x8e0] sm:$0xff] }
  0x62   :  { %1676 = vmatpush3.bf16.msra.mxu0 %v1675_v60  ;;  %v275_v60 = vld [vmem:[%s2897_s1 + $0x648] sm:$0xff] }
  0x63   :  { %1708 = vmatpush3.bf16.msra.mxu1 %v1707_v61  ;;  %1710 = vmatprep.subr.bf16.mxu0 %v1709_v62  ;;  %v306_v61 = vld [vmem:[%s2897_s1 + $0x740] sm:$0xff]  ;;  %v1757_v62 = vpack.c.bf16 %v323_v53, %v322_v52  ;;  %v1727_v4 = vpack.c.bf16 %v275_v60, %v274_v59  ;;  %v351_v53 = vld [vmem:[%s2897_s1 + $0x8a8] sm:$0xff] }
  0x64   :  { %1742 = vmatprep.subr.bf16.mxu1 %v1741_v1  ;;  %v293_v1 = vld [vmem:[%s2897_s1 + $0x6d8] sm:$0xff]  ;;  %v1759_v5 = vpack.c.bf16 %v307_v63, %v306_v61  ;;  %v350_v52 = vld [vmem:[%s2897_s1 + $0x8a0] sm:$0xff]  ;;  %v335_v59 = vld [vmem:[%s2897_s1 + $0x828] sm:$0xff] }
  0x65   :  { %754 = vmatmul.mubr.f32.vlgmr.msra.gmra.mrb[12].mxu0 %v28_v8  ;;  %v1729_v6 = vpack.c.bf16 %v293_v1, %v292_v0  ;;  %v277_v8 = vld [vmem:[%s2897_s1 + $0x658] sm:$0xff]  ;;  %v69_v60 = vld [vmem:[%s2898_s0 + $0x188] sm:$0xff]  ;;  %v1781_v61 = vpack.c.bf16 %v351_v53, %v350_v52  ;;  %v68_v0 = vld [vmem:[%s2898_s0 + $0x180] sm:$0xff] }
  0x66   :  { %834 = vmatmul.mubr.f32.vlgmr.msra.gmra.mrb[12].mxu1 %v30_v9  ;;  %1712 = vmatpush3.bf16.msra.mxu0 %v1711_v10  ;;  %v308_v9 = vld [vmem:[%s2897_s1 + $0x750] sm:$0xff]  ;;  %v1761_v10 = vpack.c.bf16 %v325_v3, %v324_v2  ;;  %v353_v63 = vld [vmem:[%s2897_s1 + $0x8b8] sm:$0xff] }
  0x67   :  { %1744 = vmatpush3.bf16.msra.mxu1 %v1743_v11  ;;  %758 = vmatprep.mubr.f32.mxu0 %v47_v12  ;;  %v309_v11 = vld [vmem:[%s2897_s1 + $0x758] sm:$0xff]  ;;  %v294_v12 = vld [vmem:[%s2897_s1 + $0x6e0] sm:$0xff]  ;;  %v70_v3 = vld [vmem:[%s2898_s0 + $0x190] sm:$0xff] }
  0x68   :  { %1714 = vmatprep.subr.bf16.mxu0 %v1713_v16  ;;  %1746 = vmatprep.subr.bf16.mxu1 %v1745_v17  ;;  %v1731_v16 = vpack.c.bf16 %v277_v8, %v276_v7  ;;  %v1763_v17 = vpack.c.bf16 %v309_v11, %v308_v9  ;;  %v1733_v18 = vpack.c.bf16 %v295_v13, %v294_v12  ;;  %v71_v1 = vld [vmem:[%s2898_s0 + $0x198] sm:$0xff]  ;;  %v354_v7 = vld [vmem:[%s2897_s1 + $0x8c0] sm:$0xff]  ;;  %v355_v8 = vld [vmem:[%s2897_s1 + $0x8c8] sm:$0xff] }
  0x69   :  { %759 = vmatmul.mubr.f32.gmra.mrb[14].mxu0 %v46_v15  ;;  %838 = vmatprep.mubr.f32.mxu1 %v49_v24  ;;  %v327_v15 = vld [vmem:[%s2897_s1 + $0x7e8] sm:$0xff]  ;;  %v296_v24 = vld [vmem:[%s2897_s1 + $0x6f0] sm:$0xff]  ;;  %v55_v11 = vld [vmem:[%s2898_s0 + $0x118] sm:$0xff]  ;;  %v1789_v12 = vpack.c.bf16 %v355_v8, %v354_v7 }
  0x6a   :  { %1716 = vmatpush3.bf16.msra.mxu0 %v1715_v25  ;;  %839 = vmatmul.mubr.f32.gmra.mrb[14].mxu1 %v48_v26  ;;  %v1765_v22 = vpack.c.bf16 %v327_v15, %v326_v14  ;;  %v297_v25 = vld [vmem:[%s2897_s1 + $0x6f8] sm:$0xff]  ;;  %v328_v26 = vld [vmem:[%s2897_s1 + $0x7f0] sm:$0xff]  ;;  %v37_v9 = vld [vmem:[%s2898_s0 + $0x88] sm:$0xff] }
  0x6b   :  { %1748 = vmatpush3.bf16.msra.mxu1 %v1747_v28  ;;  %763 = vmatprep.mubr.f32.mxu0 %v65_v27  ;;  %v329_v27 = vld [vmem:[%s2897_s1 + $0x7f8] sm:$0xff]  ;;  %v1735_v28 = vpack.c.bf16 %v279_v20, %v278_v19  ;;  %v1737_v30 = vpack.c.bf16 %v297_v25, %v296_v24  ;;  %v338_v13 = vld [vmem:[%s2897_s1 + $0x840] sm:$0xff]  ;;  %v339_v14 = vld [vmem:[%s2897_s1 + $0x848] sm:$0xff] }
  0x6c   :  { %1718 = vmatprep.subr.bf16.mxu0 %v1717_v32  ;;  %1750 = vmatprep.subr.bf16.mxu1 %v1749_v33  ;;  %v281_v32 = vld [vmem:[%s2897_s1 + $0x678] sm:$0xff]  ;;  %v312_v33 = vld [vmem:[%s2897_s1 + $0x770] sm:$0xff]  ;;  %v1769_v34 = vpack.c.bf16 %v329_v27, %v328_v26  ;;  %v342_v25 = vld [vmem:[%s2897_s1 + $0x860] sm:$0xff] }
  0x6d   :  { %764 = vmatmul.mubr.f32.gmra.mrb[16].mxu0 %v64_v39  ;;  %843 = vmatprep.mubr.f32.mxu1 %v67_v40  ;;  %v1739_v38 = vpack.c.bf16 %v281_v32, %v280_v31  ;;  %v1771_v39 = vpack.c.bf16 %v313_v35, %v312_v33  ;;  %v1773_v40 = vpack.c.bf16 %v347_v37, %v346_v36  ;;  %v356_v15 = vld [vmem:[%s2897_s1 + $0x8d0] sm:$0xff]  ;;  %v341_v20 = vld [vmem:[%s2897_s1 + $0x858] sm:$0xff]  ;;  %v343_v26 = vld [vmem:[%s2897_s1 + $0x868] sm:$0xff] }
  0x6e   :  { %1720 = vmatpush3.bf16.msra.mxu0 %v1719_v41  ;;  %844 = vmatmul.mubr.f32.gmra.mrb[16].mxu1 %v66_v42  ;;  %v330_v41 = vld [vmem:[%s2897_s1 + $0x800] sm:$0xff]  ;;  %v331_v42 = vld [vmem:[%s2897_s1 + $0x808] sm:$0xff]  ;;  %v340_v19 = vld [vmem:[%s2897_s1 + $0x850] sm:$0xff] }
  0x6f   :  { %1752 = vmatpush3.bf16.msra.mxu1 %v1751_v43  ;;  %1722 = vmatprep.subr.bf16.mxu0 %v1721_v44  ;;  %v348_v43 = vld [vmem:[%s2897_s1 + $0x890] sm:$0xff]  ;;  %v349_v44 = vld [vmem:[%s2897_s1 + $0x898] sm:$0xff]  ;;  %v1775_v46 = vpack.c.bf16 %v331_v42, %v330_v41  ;;  %v1795_v23 = vpack.c.bf16 %v341_v20, %v340_v19  ;;  %v73_v36 = vld [vmem:[%s2898_s0 + $0x1a8] sm:$0xff] }
  0x70   :  { %1754 = vmatprep.subr.bf16.mxu1 %v1753_v48  ;;  %913 = vmatprep.mubr.f32.mxu0 %v33_v54  ;;  %v332_v48 = vld [vmem:[%s2897_s1 + $0x810] sm:$0xff]  ;;  %v1777_v51 = vpack.c.bf16 %v349_v44, %v348_v43  ;;  %v345_v32 = vld [vmem:[%s2897_s1 + $0x878] sm:$0xff]  ;;  %v72_v37 = vld [vmem:[%s2898_s0 + $0x1a0] sm:$0xff] }
  0x71   :  { %993 = vmatprep.mubr.f32.mxu1 %v35_v56  ;;  %v50_v54 = vld [vmem:[%s2898_s0 + $0xf0] sm:$0xff]  ;;  %v1779_v56 = vpack.c.bf16 %v333_v49, %v332_v48 }
  0x72   :  { %1724 = vmatpush3.bf16.msra.mxu0 %v1723_v55  ;;  %v53_v55 = vld [vmem:[%s2898_s0 + $0x108] sm:$0xff]  ;;  %v360_v27 = vld [vmem:[%s2897_s1 + $0x8f0] sm:$0xff] }
  0x73   :  { %1756 = vmatpush3.bf16.msra.mxu1 %v1755_v57  ;;  %1726 = vmatprep.subr.bf16.mxu0 %v1725_v58  ;;  %v52_v57 = vld [vmem:[%s2898_s0 + $0x100] sm:$0xff]  ;;  %v344_v31 = vld [vmem:[%s2897_s1 + $0x870] sm:$0xff] }
  0x74   :  { %1758 = vmatprep.subr.bf16.mxu1 %v1757_v62  ;;  %v334_v58 = vld [vmem:[%s2897_s1 + $0x820] sm:$0xff]  ;;  %v352_v62 = vld [vmem:[%s2897_s1 + $0x8b0] sm:$0xff]  ;;  %v1803_v33 = vpack.c.bf16 %v345_v32, %v344_v31 }
  0x75   :  { %v1783_v2 = vpack.c.bf16 %v335_v59, %v334_v58  ;;  %v54_v35 = vld [vmem:[%s2898_s0 + $0x110] sm:$0xff] }
  0x76   :  { %1728 = vmatpush3.bf16.msra.mxu0 %v1727_v4  ;;  %v1785_v4 = vpack.c.bf16 %v353_v63, %v352_v62 }
  0x77   :  { %1760 = vmatpush3.bf16.msra.mxu1 %v1759_v5  ;;  %1730 = vmatprep.subr.bf16.mxu0 %v1729_v6  ;;  %v336_v5 = vld [vmem:[%s2897_s1 + $0x830] sm:$0xff]  ;;  %v337_v6 = vld [vmem:[%s2897_s1 + $0x838] sm:$0xff] }
  0x78   :  { %1762 = vmatprep.subr.bf16.mxu1 %v1761_v10  ;;  %v1787_v10 = vpack.c.bf16 %v337_v6, %v336_v5 }
  0x7a   :  { %1732 = vmatpush3.bf16.msra.mxu0 %v1731_v16  ;;  %v357_v16 = vld [vmem:[%s2897_s1 + $0x8d8] sm:$0xff] }
  0x7b   :  { %1764 = vmatpush3.bf16.msra.mxu1 %v1763_v17  ;;  %1734 = vmatprep.subr.bf16.mxu0 %v1733_v18  ;;  %v1791_v17 = vpack.c.bf16 %v339_v14, %v338_v13  ;;  %v1793_v18 = vpack.c.bf16 %v357_v16, %v356_v15 }
  0x7c   :  { %1766 = vmatprep.subr.bf16.mxu1 %v1765_v22  ;;  %v359_v22 = vld [vmem:[%s2897_s1 + $0x8e8] sm:$0xff] }
  0x7d   :  { %v1797_v24 = vpack.c.bf16 %v359_v22, %v358_v21 }
  0x7e   :  { %1736 = vmatpush3.bf16.msra.mxu0 %v1735_v28  ;;  %v361_v28 = vld [vmem:[%s2897_s1 + $0x8f8] sm:$0xff] }
  0x7f   :  { %1768 = vmatpush3.bf16.msra.mxu1 %v1767_v29  ;;  %1738 = vmatprep.subr.bf16.mxu0 %v1737_v30  ;;  %v1799_v29 = vpack.c.bf16 %v343_v26, %v342_v25  ;;  %v1801_v30 = vpack.c.bf16 %v361_v28, %v360_v27 }
  0x80   :  { %1770 = vmatprep.subr.bf16.mxu1 %v1769_v34  ;;  %v36_v34 = vld [vmem:[%s2898_s0 + $0x80] sm:$0xff] }
  0x82   :  { %1740 = vmatpush3.bf16.msra.mxu0 %v1739_v38 }
  0x83   :  { %1772 = vmatpush3.bf16.msra.mxu1 %v1771_v39  ;;  %1774 = vmatprep.subr.bf16.mxu0 %v1773_v40 }
  0x84   :  { %1805 = vmatprep.subr.bf16.mxu1 %v1773_v40  ;;  %v1147_v40 = vld [vmem:[%s2899_s2] ss:$0 sm:$0xff] }
  0x85   :  { %914 = vmatmul.mubr.f32.vlgmr.msra.gmra.mrb[18].mxu0 %v32_v45 }
  0x86   :  { %994 = vmatmul.mubr.f32.vlgmr.msra.gmra.mrb[18].mxu1 %v34_v47  ;;  %1776 = vmatpush3.bf16.msra.mxu0 %v1775_v46 }
  0x87   :  { %1813 = vmatpush3.bf16.msra.mxu1 %v1775_v46  ;;  %918 = vmatprep.mubr.f32.mxu0 %v51_v50 }
  0x88   :  { %1778 = vmatprep.subr.bf16.mxu0 %v1777_v51  ;;  %1806 = vmatprep.subr.bf16.mxu1 %v1777_v51 }
  0x89   :  { %919 = vmatmul.mubr.f32.gmra.mrb[20].mxu0 %v50_v54  ;;  %998 = vmatprep.mubr.f32.mxu1 %v53_v55 }
  0x8a   :  { %1780 = vmatpush3.bf16.msra.mxu0 %v1779_v56  ;;  %999 = vmatmul.mubr.f32.gmra.mrb[20].mxu1 %v52_v57 }
  0x8b   :  { %1814 = vmatpush3.bf16.msra.mxu1 %v1779_v56  ;;  %923 = vmatprep.mubr.f32.mxu0 %v69_v60 }
  0x8c   :  { %1782 = vmatprep.subr.bf16.mxu0 %v1781_v61  ;;  %1807 = vmatprep.subr.bf16.mxu1 %v1781_v61 }
  0x8d   :  { %924 = vmatmul.mubr.f32.gmra.mrb[22].mxu0 %v68_v0  ;;  %1003 = vmatprep.mubr.f32.mxu1 %v71_v1 }
  0x8e   :  { %1784 = vmatpush3.bf16.msra.mxu0 %v1783_v2  ;;  %1004 = vmatmul.mubr.f32.gmra.mrb[22].mxu1 %v70_v3 }
  0x8f   :  { %1815 = vmatpush3.bf16.msra.mxu1 %v1783_v2  ;;  %1786 = vmatprep.subr.bf16.mxu0 %v1785_v4 }
  0x90   :  { %1808 = vmatprep.subr.bf16.mxu1 %v1785_v4  ;;  %1073 = vmatprep.mubr.f32.mxu0 %v37_v9 }
  0x91   :  { %1078 = vmatprep.mubr.f32.mxu1 %v55_v11 }
  0x92   :  { %1788 = vmatpush3.bf16.msra.mxu0 %v1787_v10 }
  0x93   :  { %1816 = vmatpush3.bf16.msra.mxu1 %v1787_v10  ;;  %1790 = vmatprep.subr.bf16.mxu0 %v1789_v12 }
  0x94   :  { %1809 = vmatprep.subr.bf16.mxu1 %v1789_v12 }
  0x96   :  { %1792 = vmatpush3.bf16.msra.mxu0 %v1791_v17 }
  0x97   :  { %1817 = vmatpush3.bf16.msra.mxu1 %v1791_v17  ;;  %1794 = vmatprep.subr.bf16.mxu0 %v1793_v18 }
  0x98   :  { %1810 = vmatprep.subr.bf16.mxu1 %v1793_v18 }
  0x9a   :  { %1796 = vmatpush3.bf16.msra.mxu0 %v1795_v23 }
  0x9b   :  { %1818 = vmatpush3.bf16.msra.mxu1 %v1795_v23  ;;  %1798 = vmatprep.subr.bf16.mxu0 %v1797_v24 }
  0x9c   :  { %1811 = vmatprep.subr.bf16.mxu1 %v1797_v24 }
  0x9e   :  { %1800 = vmatpush3.bf16.msra.mxu0 %v1799_v29 }
  0x9f   :  { %1819 = vmatpush3.bf16.msra.mxu1 %v1799_v29  ;;  %1802 = vmatprep.subr.bf16.mxu0 %v1801_v30 }
  0xa0   :  { %1812 = vmatprep.subr.bf16.mxu1 %v1801_v30 }
  0xa2   :  { %1804 = vmatpush3.bf16.msra.mxu0 %v1803_v33 }
  0xa3   :  { %1820 = vmatpush3.bf16.msra.mxu1 %v1803_v33 }
  0xa5   :  { %1074 = vmatmul.mubr.f32.vlgmr.msra.gmra.mrb[24].mxu0 %v36_v34 }
  0xa6   :  { %1079 = vmatmul.mubr.f32.vlgmr.msra.gmra.mrb[24].mxu1 %v54_v35 }
  0xa7   :  { %1083 = vmatprep.mubr.f32.mxu1 %v73_v36 }
  0xaa   :  { %1084 = vmatmul.mubr.f32.gmra.mrb[26].mxu1 %v72_v37 }
  0xf8   :  { %v1180_v38 = vpop.f32.mrb[0].mxu0 }
  0xf9   :  { %v1221_v39 = vpop.f32.mrb[0].mxu1  ;;  %v1181_v41 = vpop.f32.mrb[1].mxu0 }
  0xfa   :  { %v1182_v42 = vadd.f32 %v1181_v41, %v1180_v38  ;;  %v1222_v43 = vpop.f32.mrb[1].mxu1 }
  0xfb   :  { %v1223_v44 = vadd.f32 %v1222_v43, %v1221_v39 }
  0xfc   :  { %v436_v45 = vadd.f32 %v1182_v42, %v1147_v40  ;;  %v1183_v47 = vpop.f32.mrb[2].mxu0 }
  0xfd   :  { %v1184_v48 = vpop.f32.mrb[3].mxu0  ;;  %v1224_v49 = vpop.f32.mrb[2].mxu1 }
  0xfe   :  { %v516_v46 = vadd.f32 %v1223_v44, %v436_v45  ;;  %v1185_v50 = vadd.f32 %v1184_v48, %v1183_v47  ;;  %v1225_v51 = vpop.f32.mrb[3].mxu1 }
  0xff   :  { %v1226_v52 = vadd.f32 %v1225_v51, %v1224_v49 }
 0x100   :  { %v441_v53 = vadd.f32 %v1185_v50, %v1147_v40  ;;  %v1186_v54 = vpop.f32.mrb[4].mxu0 }
 0x101   :  { %v1187_v55 = vpop.f32.mrb[5].mxu0  ;;  %v1227_v56 = vpop.f32.mrb[4].mxu1 }
 0x102   :  { %v521_v57 = vadd.f32 %v1226_v52, %v441_v53  ;;  %v1188_v58 = vadd.f32 %v1187_v55, %v1186_v54  ;;  %v1228_v59 = vpop.f32.mrb[5].mxu1 }
 0x103   :  { %v1229_v60 = vadd.f32 %v1228_v59, %v1227_v56 }
 0x104   :  { %v446_v61 = vadd.f32 %v1188_v58, %v1147_v40 }
 0x106   :  { %v526_v62 = vadd.f32 %v1229_v60, %v446_v61 }
 0x118   :  { %v1262_v63 = vpop.f32.mrb[6].mxu0 }
 0x119   :  { %v1303_v0 = vpop.f32.mrb[6].mxu1  ;;  %v1263_v1 = vpop.f32.mrb[7].mxu0 }
 0x11a   :  { %v1264_v2 = vadd.f32 %v1263_v1, %v1262_v63  ;;  %v1304_v3 = vpop.f32.mrb[7].mxu1 }
 0x11b   :  { %v1305_v4 = vadd.f32 %v1304_v3, %v1303_v0 }
 0x11c   :  { %v596_v5 = vadd.f32 %v1264_v2, %v516_v46  ;;  %v1265_v6 = vpop.f32.mrb[8].mxu0 }
 0x11d   :  { %v1266_v7 = vpop.f32.mrb[9].mxu0  ;;  %v1306_v8 = vpop.f32.mrb[8].mxu1 }
 0x11e   :  { %v676_v9 = vadd.f32 %v1305_v4, %v596_v5  ;;  %v1267_v10 = vadd.f32 %v1266_v7, %v1265_v6  ;;  %v1307_v11 = vpop.f32.mrb[9].mxu1 }
 0x11f   :  { %v1308_v12 = vadd.f32 %v1307_v11, %v1306_v8 }
 0x120   :  { %v601_v13 = vadd.f32 %v1267_v10, %v521_v57  ;;  %v1268_v14 = vpop.f32.mrb[10].mxu0 }
 0x121   :  { %v1269_v15 = vpop.f32.mrb[11].mxu0  ;;  %v1309_v16 = vpop.f32.mrb[10].mxu1 }
 0x122   :  { %v681_v17 = vadd.f32 %v1308_v12, %v601_v13  ;;  %v1270_v18 = vadd.f32 %v1269_v15, %v1268_v14  ;;  %v1310_v19 = vpop.f32.mrb[11].mxu1 }
 0x123   :  { %v1311_v20 = vadd.f32 %v1310_v19, %v1309_v16 }
 0x124   :  { %v606_v21 = vadd.f32 %v1270_v18, %v526_v62 }
 0x126   :  { %v686_v22 = vadd.f32 %v1311_v20, %v606_v21 }
 0x138   :  { %v1344_v23 = vpop.f32.mrb[12].mxu0 }
 0x139   :  { %v1385_v24 = vpop.f32.mrb[12].mxu1  ;;  %v1345_v25 = vpop.f32.mrb[13].mxu0 }
 0x13a   :  { %v1346_v26 = vadd.f32 %v1345_v25, %v1344_v23  ;;  %v1386_v27 = vpop.f32.mrb[13].mxu1 }
 0x13b   :  { %v1387_v28 = vadd.f32 %v1386_v27, %v1385_v24 }
 0x13c   :  { %v756_v29 = vadd.f32 %v1346_v26, %v676_v9  ;;  %v1347_v30 = vpop.f32.mrb[14].mxu0 }
 0x13d   :  { %v1348_v31 = vpop.f32.mrb[15].mxu0  ;;  %v1388_v32 = vpop.f32.mrb[14].mxu1 }
 0x13e   :  { %v836_v33 = vadd.f32 %v1387_v28, %v756_v29  ;;  %v1349_v34 = vadd.f32 %v1348_v31, %v1347_v30  ;;  %v1389_v35 = vpop.f32.mrb[15].mxu1 }
 0x13f   :  { %v1390_v36 = vadd.f32 %v1389_v35, %v1388_v32 }
 0x140   :  { %v761_v37 = vadd.f32 %v1349_v34, %v681_v17  ;;  %v1350_v38 = vpop.f32.mrb[16].mxu0 }
 0x141   :  { %v1351_v39 = vpop.f32.mrb[17].mxu0  ;;  %v1391_v40 = vpop.f32.mrb[16].mxu1 }
 0x142   :  { %v841_v41 = vadd.f32 %v1390_v36, %v761_v37  ;;  %v1352_v42 = vadd.f32 %v1351_v39, %v1350_v38  ;;  %v1392_v43 = vpop.f32.mrb[17].mxu1 }
 0x143   :  { %v1393_v44 = vadd.f32 %v1392_v43, %v1391_v40  ;;  %v1120_v43 = vlaneseq }
 0x144   :  { %v766_v45 = vadd.f32 %v1352_v42, %v686_v22 }
 0x146   :  { %v846_v46 = vadd.f32 %v1393_v44, %v766_v45  ;;  %v1121_v44 = vshrl.u32 %v1120_v43, 7  ;;  %v1112_v45 = vld [vmem:[%s2900_s3] sm:$0x1] }
 0x158   :  { %v1426_v47 = vpop.f32.mrb[18].mxu0 }
 0x159   :  { %v1467_v48 = vpop.f32.mrb[18].mxu1  ;;  %v1427_v49 = vpop.f32.mrb[19].mxu0 }
 0x15a   :  { %v1428_v50 = vadd.f32 %v1427_v49, %v1426_v47  ;;  %v1468_v51 = vpop.f32.mrb[19].mxu1  ;;  %v1116_v49 = vld [vmem:[%s2901_s4] sm:$0x1] }
 0x15b   :  { %v1469_v52 = vadd.f32 %v1468_v51, %v1467_v48 }
 0x15c   :  { %v916_v53 = vadd.f32 %v1428_v50, %v836_v33  ;;  %v1429_v54 = vpop.f32.mrb[20].mxu0 }
 0x15d   :  { %v1430_v55 = vpop.f32.mrb[21].mxu0  ;;  %v1470_v56 = vpop.f32.mrb[20].mxu1 }
 0x15e   :  { %v996_v57 = vadd.f32 %v1469_v52, %v916_v53  ;;  %v1431_v58 = vadd.f32 %v1430_v55, %v1429_v54  ;;  %v1471_v59 = vpop.f32.mrb[21].mxu1 }
 0x15f   :  { %v1472_v60 = vadd.f32 %v1471_v59, %v1470_v56 }
 0x160   :  { %v921_v61 = vadd.f32 %v1431_v58, %v841_v41  ;;  %v1432_v62 = vpop.f32.mrb[22].mxu0 }
 0x161   :  { %v1433_v63 = vpop.f32.mrb[23].mxu0  ;;  %v1473_v0 = vpop.f32.mrb[22].mxu1 }
 0x162   :  { %v1001_v1 = vadd.f32 %v1472_v60, %v921_v61  ;;  %v1434_v2 = vadd.f32 %v1433_v63, %v1432_v62  ;;  %v1474_v3 = vpop.f32.mrb[23].mxu1 }
 0x163   :  { %v1475_v4 = vadd.f32 %v1474_v3, %v1473_v0 }
 0x164   :  { %v926_v5 = vadd.f32 %v1434_v2, %v846_v46  ;;  %v1122_v46 = vsub.s32 0, %v1121_v44 }
 0x166   :  { %v1006_v6 = vadd.f32 %v1475_v4, %v926_v5 }
 0x178   :  { %v1508_v7 = vpop.f32.mrb[24].mxu0 }
 0x179   :  { %v1511_v8 = vpop.f32.mrb[24].mxu1  ;;  %v1509_v9 = vpop.f32.mrb[25].mxu0 }
 0x17a   :  { %v1510_v10 = vadd.f32 %v1509_v9, %v1508_v7  ;;  %v1512_v11 = vpop.f32.mrb[25].mxu1 }
 0x17b   :  { %v1513_v12 = vadd.f32 %v1512_v11, %v1511_v8 }
 0x17c   :  { %v1076_v13 = vadd.f32 %v1510_v10, %v996_v57 }
 0x17d   :  { %v1081_v14 = vadd.f32 %v1513_v12, %v1001_v1  ;;  %v1514_v15 = vpop.f32.mrb[26].mxu1 }
 0x17e   :  { %v1098_v16 = vmul.f32 %v1076_v13, %v1076_v13  ;;  %v1515_v17 = vpop.f32.mrb[27].mxu1 }
 0x17f   :  { %v1089_v18 = vadd.f32 %v1081_v14, %v1076_v13  ;;  %v1099_v19 = vmul.f32 %v1081_v14, %v1081_v14  ;;  %v1516_v20 = vadd.f32 %v1515_v17, %v1514_v15 }
 0x181   :  { %v1101_v21 = vadd.f32 %v1099_v19, %v1098_v16  ;;  %v1086_v22 = vadd.f32 %v1516_v20, %v1006_v6 }
 0x183   :  { %v1090_v23 = vadd.f32 %v1089_v18, %v1086_v22  ;;  %v1100_v24 = vmul.f32 %v1086_v22, %v1086_v22 }
 0x185   :  { %v1091_v25 = vrot.slane %v1090_v23, 4  ;;  %v1102_v26 = vadd.f32 %v1101_v21, %v1100_v24 }
 0x187   :  { %v1092_v27 = vadd.f32 %v1091_v25, %v1090_v23  ;;  %v1103_v28 = vrot.slane %v1102_v26, 4 }
 0x189   :  { %v1093_v29 = vrot.slane %v1092_v27, 2  ;;  %v1104_v30 = vadd.f32 %v1103_v28, %v1102_v26 }
 0x18b   :  { %v1094_v31 = vadd.f32 %v1093_v29, %v1092_v27  ;;  %v1105_v32 = vrot.slane %v1104_v30, 2 }
 0x18d   :  { %v1095_v33 = vrot.slane %v1094_v31, 1  ;;  %v1106_v34 = vadd.f32 %v1105_v32, %v1104_v30 }
 0x18f   :  { %v1096_v35 = vadd.f32 %v1095_v33, %v1094_v31  ;;  %v1107_v36 = vrot.slane %v1106_v34, 1 }
 0x191   :  { %v1097_v37 = vmul.f32 0.041666668, %v1096_v35  ;;  %v1108_v38 = vadd.f32 %v1107_v36, %v1106_v34 }
 0x193   :  { %v1109_v39 = vmul.f32 0.041666668, %v1108_v38  ;;  %v1110_v40 = vmul.f32 %v1097_v37, %v1097_v37 }
 0x195   :  { %v1111_v41 = vsub.f32 %v1109_v39, %v1110_v40 }
 0x197   :  { %v1113_v42 = vadd.f32 1e-05, %v1111_v41 }
 0x199   :  { %1821 = vrsqrt.f32 %v1113_v42 }
 0x1a3   :  { %v1822_v47 = vpop.eup %1821 }
 0x1a4   :  { %v1115_v48 = vmul.f32 %v1822_v47, %v1112_v45 }
 0x1a6   :  { %v1117_v50 = vmul.f32 %v1115_v48, %v1097_v37  ;;  %v1123_v51 = vrot.slane %v1115_v48, %v1122_v46 }
 0x1a8   :  { %v1118_v52 = vsub.f32 %v1116_v49, %v1117_v50  ;;  %v1125_v53 = vmul.f32 %v1123_v51, %v1076_v13  ;;  %v1126_v54 = vmul.f32 %v1123_v51, %v1081_v14  ;;  %v1127_v55 = vmul.f32 %v1123_v51, %v1086_v22 }
 0x1aa   :  { %v1132_v56 = vrot.slane %v1118_v52, %v1122_v46 }
 0x1ac   :  { %v1134_v57 = vadd.f32 %v1132_v56, %v1125_v53  ;;  %v1135_v58 = vadd.f32 %v1132_v56, %v1126_v54  ;;  %v1136_v59 = vadd.f32 %v1132_v56, %v1127_v55 }
 0x1ae   :  { %v1137_v60 = vmax.f32 %v1134_v57, 0.0  ;;  %v1138_v61 = vmax.f32 %v1135_v58, 0.0  ;;  %v1139_v62 = vmax.f32 %v1136_v59, 0.0 }
 0x1b0   :  { %1140 = vst [vmem:[%s2902_s5] sm:$0xff] %v1137_v60  ;;  %1141 = vst [vmem:[%s2902_s5 + $0x8] sm:$0xff] %v1138_v61 }
 0x1b1   :  { %1142 = vst [vmem:[%s2902_s5 + $0x10] sm:$0xff] %v1139_v62 }

// kernel: unet_forward.33
= control target key start
LH: loop header
LB: loop body
LE: loop exit
PB: predicated region body
PF: predicated region fallthrough
CT: control target
= control target key end

     0   :  { %vm45_vm0 = vcmask 523264   ;;  %vm239_vm1 = vcmask 252928   ;;  %vm255_vm2 = vcmask 250880   ;;  %s540_s1 = inlined_call_operand.vmem [shape: f32[64,31], index: 1, kind: input, shape index: {}]   ;;  %s541_s0 = inlined_call_operand.vmem [shape: f32[126,64], index: 0, kind: input, shape index: {}]   ;;  %s542_s2 = inlined_call_operand.vmem [shape: f32[1,31], index: 2, kind: input, shape index: {}]   ;;  %s543_s3 = inlined_call_operand.vmem [shape: f32[126,31], index: 3, kind: output, shape index: {}]  }
   0x1   :  { %v30_v0 = vld [vmem:[%s540_s1] sm:$0xff]  ;;  %v31_v1 = vld [vmem:[%s540_s1 + $0x8] sm:$0xff]  ;;  %v32_v2 = vld [vmem:[%s540_s1 + $0x10] sm:$0xff] }
   0x2   :  { %v342_v3 = vpack.c.bf16 %v31_v1, %v30_v0  ;;  %v33_v4 = vld [vmem:[%s540_s1 + $0x18] sm:$0xff]  ;;  %v34_v6 = vld [vmem:[%s540_s1 + $0x20] sm:$0xff]  ;;  %v35_v7 = vld [vmem:[%s540_s1 + $0x28] sm:$0xff] }
   0x3   :  { %v346_v5 = vpack.c.bf16 %v33_v4, %v32_v2  ;;  %v14_v8 = vld [vmem:[%s541_s0] sm:$0xff]  ;;  %v350_v10 = vpack.c.bf16 %v35_v7, %v34_v6  ;;  %v36_v11 = vld [vmem:[%s540_s1 + $0x30] sm:$0xff]  ;;  %v37_v12 = vld [vmem:[%s540_s1 + $0x38] sm:$0xff] }
   0x4   :  { %343 = vmatprep.subr.bf16.mxu0 %v342_v3  ;;  %358 = vmatprep.subr.bf16.mxu1 %v342_v3  ;;  %v22_v9 = vld [vmem:[%s541_s0 + $0x40] sm:$0xff]  ;;  %v354_v13 = vpack.c.bf16 %v37_v12, %v36_v11  ;;  %v15_v14 = vld [vmem:[%s541_s0 + $0x8] sm:$0xff]  ;;  %v16_v16 = vld [vmem:[%s541_s0 + $0x10] sm:$0xff] }
   0x5   :  { %345 = vmatpush3.bf16.msra.mxu0 %v342_v3  ;;  %362 = vmatpush3.bf16.msra.mxu1 %v342_v3  ;;  %v23_v15 = vld [vmem:[%s541_s0 + $0x48] sm:$0xff]  ;;  %v24_v17 = vld [vmem:[%s541_s0 + $0x50] sm:$0xff]  ;;  %v17_v18 = vld [vmem:[%s541_s0 + $0x18] sm:$0xff] }
   0x6   :  { %347 = vmatprep.subr.bf16.mxu0 %v346_v5  ;;  %359 = vmatprep.subr.bf16.mxu1 %v346_v5  ;;  %v25_v19 = vld [vmem:[%s541_s0 + $0x58] sm:$0xff]  ;;  %v18_v20 = vld [vmem:[%s541_s0 + $0x20] sm:$0xff]  ;;  %v19_v22 = vld [vmem:[%s541_s0 + $0x28] sm:$0xff] }
   0x7   :  { %318 = vmatprep.mubr.msk.f32.mxu0 %vm45_vm0, %v14_v8  ;;  %330 = vmatprep.mubr.msk.f32.mxu1 %vm45_vm0, %v22_v9  ;;  %v26_v21 = vld [vmem:[%s541_s0 + $0x60] sm:$0xff]  ;;  %v27_v23 = vld [vmem:[%s541_s0 + $0x68] sm:$0xff]  ;;  %v20_v24 = vld [vmem:[%s541_s0 + $0x30] sm:$0xff] }
   0x8   :  { %v28_v25 = vld [vmem:[%s541_s0 + $0x70] sm:$0xff]  ;;  %v21_v26 = vld [vmem:[%s541_s0 + $0x38] sm:$0xff]  ;;  %v261_v28 = vld [vmem:[%s542_s2] ss:$0 sm:$0xff] }
   0x9   :  { %349 = vmatpush3.bf16.msra.mxu0 %v346_v5  ;;  %363 = vmatpush3.bf16.msra.mxu1 %v346_v5  ;;  %v29_v27 = vld [vmem:[%s541_s0 + $0x78] sm:$0x3f] }
   0xa   :  { %351 = vmatprep.subr.bf16.mxu0 %v350_v10  ;;  %360 = vmatprep.subr.bf16.mxu1 %v350_v10 }
   0xd   :  { %353 = vmatpush3.bf16.msra.mxu0 %v350_v10  ;;  %364 = vmatpush3.bf16.msra.mxu1 %v350_v10 }
   0xe   :  { %355 = vmatprep.subr.bf16.mxu0 %v354_v13  ;;  %361 = vmatprep.subr.bf16.mxu1 %v354_v13 }
  0x11   :  { %357 = vmatpush3.bf16.msra.mxu0 %v354_v13  ;;  %365 = vmatpush3.bf16.msra.mxu1 %v354_v13 }
  0x14   :  { %319 = vmatmul.mubr.msk.f32.vlgmr.msra.gmra.mrb[0].mxu0 %vm45_vm0, %v15_v14  ;;  %331 = vmatmul.mubr.msk.f32.vlgmr.msra.gmra.mrb[0].mxu1 %vm45_vm0, %v23_v15 }
  0x15   :  { %321 = vmatprep.mubr.msk.f32.mxu0 %vm45_vm0, %v16_v16  ;;  %333 = vmatprep.mubr.msk.f32.mxu1 %vm45_vm0, %v24_v17 }
  0x18   :  { %322 = vmatmul.mubr.msk.f32.gmra.mrb[2].mxu0 %vm45_vm0, %v17_v18  ;;  %334 = vmatmul.mubr.msk.f32.gmra.mrb[2].mxu1 %vm45_vm0, %v25_v19 }
  0x19   :  { %324 = vmatprep.mubr.msk.f32.mxu0 %vm45_vm0, %v18_v20  ;;  %336 = vmatprep.mubr.msk.f32.mxu1 %vm45_vm0, %v26_v21 }
  0x1c   :  { %325 = vmatmul.mubr.msk.f32.gmra.mrb[4].mxu0 %vm45_vm0, %v19_v22  ;;  %337 = vmatmul.mubr.msk.f32.gmra.mrb[4].mxu1 %vm45_vm0, %v27_v23 }
  0x1d   :  { %327 = vmatprep.mubr.msk.f32.mxu0 %vm45_vm0, %v20_v24  ;;  %339 = vmatprep.mubr.msk.f32.mxu1 %vm45_vm0, %v28_v25 }
  0x20   :  { %328 = vmatmul.mubr.msk.f32.gmra.mrb[6].mxu0 %vm45_vm0, %v21_v26  ;;  %340 = vmatmul.mubr.msk.f32.gmra.mrb[6].mxu1 %vm45_vm0, %v29_v27 }
  0xe7   :  { %v320_v29 = vpop.f32.mrb[0].mxu0  ;;  %v332_v30 = vpop.f32.mrb[0].mxu1 }
  0xe8   :  { %v166_v31 = vadd.f32 %v320_v29, %v261_v28  ;;  %v206_v32 = vadd.f32 %v332_v30, %v261_v28  ;;  %v160_v33 = vpop.f32.mrb[1].mxu0  ;;  %v200_v34 = vpop.f32.mrb[1].mxu1 }
  0xe9   :  { %v161_v35 = vadd.f32 %v261_v28, %v160_v33  ;;  %v201_v36 = vadd.f32 %v261_v28, %v200_v34 }
  0xea   :  { %241 = vst.msk [vmem:[%s543_s3 + $0x8] sm:$0xff] %vm239_vm1, %v166_v31  ;;  %249 = vst.msk [vmem:[%s543_s3 + $0x48] sm:$0xff] %vm239_vm1, %v206_v32 }
  0xeb   :  { %240 = vst.msk [vmem:[%s543_s3] sm:$0xff] %vm239_vm1, %v161_v35  ;;  %248 = vst.msk [vmem:[%s543_s3 + $0x40] sm:$0xff] %vm239_vm1, %v201_v36  ;;  %v323_v37 = vpop.f32.mrb[2].mxu0  ;;  %v335_v38 = vpop.f32.mrb[2].mxu1 }
  0xec   :  { %v176_v39 = vadd.f32 %v323_v37, %v261_v28  ;;  %v216_v40 = vadd.f32 %v335_v38, %v261_v28  ;;  %v170_v41 = vpop.f32.mrb[3].mxu0  ;;  %v210_v42 = vpop.f32.mrb[3].mxu1 }
  0xed   :  { %v171_v43 = vadd.f32 %v261_v28, %v170_v41  ;;  %v211_v44 = vadd.f32 %v261_v28, %v210_v42 }
  0xee   :  { %243 = vst.msk [vmem:[%s543_s3 + $0x18] sm:$0xff] %vm239_vm1, %v176_v39  ;;  %251 = vst.msk [vmem:[%s543_s3 + $0x58] sm:$0xff] %vm239_vm1, %v216_v40 }
  0xef   :  { %242 = vst.msk [vmem:[%s543_s3 + $0x10] sm:$0xff] %vm239_vm1, %v171_v43  ;;  %250 = vst.msk [vmem:[%s543_s3 + $0x50] sm:$0xff] %vm239_vm1, %v211_v44  ;;  %v326_v45 = vpop.f32.mrb[4].mxu0  ;;  %v338_v46 = vpop.f32.mrb[4].mxu1 }
  0xf0   :  { %v186_v47 = vadd.f32 %v326_v45, %v261_v28  ;;  %v226_v48 = vadd.f32 %v338_v46, %v261_v28  ;;  %v180_v49 = vpop.f32.mrb[5].mxu0  ;;  %v220_v50 = vpop.f32.mrb[5].mxu1 }
  0xf1   :  { %v181_v51 = vadd.f32 %v261_v28, %v180_v49  ;;  %v221_v52 = vadd.f32 %v261_v28, %v220_v50 }
  0xf2   :  { %245 = vst.msk [vmem:[%s543_s3 + $0x28] sm:$0xff] %vm239_vm1, %v186_v47  ;;  %253 = vst.msk [vmem:[%s543_s3 + $0x68] sm:$0xff] %vm239_vm1, %v226_v48 }
  0xf3   :  { %244 = vst.msk [vmem:[%s543_s3 + $0x20] sm:$0xff] %vm239_vm1, %v181_v51  ;;  %252 = vst.msk [vmem:[%s543_s3 + $0x60] sm:$0xff] %vm239_vm1, %v221_v52  ;;  %v329_v53 = vpop.f32.mrb[6].mxu0  ;;  %v341_v54 = vpop.f32.mrb[6].mxu1 }
  0xf4   :  { %v196_v55 = vadd.f32 %v329_v53, %v261_v28  ;;  %v236_v56 = vadd.f32 %v341_v54, %v261_v28  ;;  %v190_v57 = vpop.f32.mrb[7].mxu0  ;;  %v230_v58 = vpop.f32.mrb[7].mxu1 }
  0xf5   :  { %v191_v59 = vadd.f32 %v261_v28, %v190_v57  ;;  %v231_v60 = vadd.f32 %v261_v28, %v230_v58 }
  0xf6   :  { %247 = vst.msk [vmem:[%s543_s3 + $0x38] sm:$0xff] %vm239_vm1, %v196_v55 }
  0xf7   :  { %256 = vst.msk [vmem:[%s543_s3 + $0x78] sm:$0x3f] %vm255_vm2, %v236_v56 }
  0xf8   :  { %246 = vst.msk [vmem:[%s543_s3 + $0x30] sm:$0xff] %vm239_vm1, %v191_v59  ;;  %254 = vst.msk [vmem:[%s543_s3 + $0x70] sm:$0xff] %vm239_vm1, %v231_v60 }

// kernel: unet_forward.30
= control target key start
LH: loop header
LB: loop body
LE: loop exit
PB: predicated region body
PF: predicated region fallthrough
CT: control target
= control target key end

     0   :  { %vm1040_vm0 = vcmask 523264   ;;  %vm1070_vm1 = vcmask 521216   ;;  %s3007_s1 = inlined_call_operand.vmem [shape: f32[1152,64], index: 1, kind: input, shape index: {}]   ;;  %s3008_s0 = inlined_call_operand.vmem [shape: f32[126,1152], index: 0, kind: input, shape index: {}]   ;;  %s3009_s2 = inlined_call_operand.vmem [shape: f32[1,64], index: 2, kind: input, shape index: {}]   ;;  %s3010_s3 = inlined_call_operand.vmem [shape: f32[1,64], index: 3, kind: input, shape index: {}]   ;;  %s3011_s4 = inlined_call_operand.vmem [shape: f32[1,64], index: 4, kind: input, shape index: {}]   ;;  %s3012_s5 = inlined_call_operand.vmem [shape: f32[126,64], index: 5, kind: output, shape index: {}]  }
   0x1   :  { %v180_v0 = vld [vmem:[%s3007_s1 + $0x80] sm:$0xff]  ;;  %v181_v1 = vld [vmem:[%s3007_s1 + $0x88] sm:$0xff]  ;;  %v182_v11 = vld [vmem:[%s3007_s1 + $0x90] sm:$0xff] }
   0x2   :  { %v212_v2 = vld [vmem:[%s3007_s1 + $0x180] sm:$0xff]  ;;  %v1632_v3 = vpack.c.bf16 %v181_v1, %v180_v0  ;;  %v213_v4 = vld [vmem:[%s3007_s1 + $0x188] sm:$0xff]  ;;  %v183_v13 = vld [vmem:[%s3007_s1 + $0x98] sm:$0xff] }
   0x3   :  { %v164_v5 = vld [vmem:[%s3007_s1] sm:$0xff]  ;;  %v165_v6 = vld [vmem:[%s3007_s1 + $0x8] sm:$0xff]  ;;  %v1664_v7 = vpack.c.bf16 %v213_v4, %v212_v2  ;;  %v214_v14 = vld [vmem:[%s3007_s1 + $0x190] sm:$0xff]  ;;  %v1636_v16 = vpack.c.bf16 %v183_v13, %v182_v11 }
   0x4   :  { %v1634_v8 = vpack.c.bf16 %v165_v6, %v164_v5  ;;  %v196_v9 = vld [vmem:[%s3007_s1 + $0x100] sm:$0xff]  ;;  %v197_v10 = vld [vmem:[%s3007_s1 + $0x108] sm:$0xff]  ;;  %1633 = vmatprep.subr.bf16.mxu0 %v1632_v3  ;;  %v215_v15 = vld [vmem:[%s3007_s1 + $0x198] sm:$0xff] }
   0x5   :  { %v1666_v12 = vpack.c.bf16 %v197_v10, %v196_v9  ;;  %1665 = vmatprep.subr.bf16.mxu1 %v1664_v7  ;;  %v1668_v17 = vpack.c.bf16 %v215_v15, %v214_v14  ;;  %v166_v18 = vld [vmem:[%s3007_s1 + $0x10] sm:$0xff]  ;;  %v167_v19 = vld [vmem:[%s3007_s1 + $0x18] sm:$0xff]  ;;  %v184_v23 = vld [vmem:[%s3007_s1 + $0xa0] sm:$0xff] }
   0x6   :  { %1635 = vmatpush3.bf16.msra.mxu0 %v1634_v8  ;;  %v198_v20 = vld [vmem:[%s3007_s1 + $0x110] sm:$0xff]  ;;  %v1638_v21 = vpack.c.bf16 %v167_v19, %v166_v18  ;;  %v199_v22 = vld [vmem:[%s3007_s1 + $0x118] sm:$0xff]  ;;  %v185_v24 = vld [vmem:[%s3007_s1 + $0xa8] sm:$0xff] }
   0x7   :  { %1667 = vmatpush3.bf16.msra.mxu1 %v1666_v12  ;;  %1637 = vmatprep.subr.bf16.mxu0 %v1636_v16  ;;  %v1670_v25 = vpack.c.bf16 %v199_v22, %v198_v20  ;;  %v1640_v26 = vpack.c.bf16 %v185_v24, %v184_v23  ;;  %v216_v27 = vld [vmem:[%s3007_s1 + $0x1a0] sm:$0xff]  ;;  %v217_v28 = vld [vmem:[%s3007_s1 + $0x1a8] sm:$0xff]  ;;  %v186_v35 = vld [vmem:[%s3007_s1 + $0xb0] sm:$0xff] }
   0x8   :  { %1669 = vmatprep.subr.bf16.mxu1 %v1668_v17  ;;  %v168_v29 = vld [vmem:[%s3007_s1 + $0x20] sm:$0xff]  ;;  %v1672_v30 = vpack.c.bf16 %v217_v28, %v216_v27  ;;  %v169_v31 = vld [vmem:[%s3007_s1 + $0x28] sm:$0xff]  ;;  %v187_v36 = vld [vmem:[%s3007_s1 + $0xb8] sm:$0xff] }
   0x9   :  { %v200_v32 = vld [vmem:[%s3007_s1 + $0x120] sm:$0xff]  ;;  %v201_v33 = vld [vmem:[%s3007_s1 + $0x128] sm:$0xff]  ;;  %v1642_v34 = vpack.c.bf16 %v169_v31, %v168_v29  ;;  %v218_v37 = vld [vmem:[%s3007_s1 + $0x1b0] sm:$0xff]  ;;  %v1644_v39 = vpack.c.bf16 %v187_v36, %v186_v35 }
   0xa   :  { %1639 = vmatpush3.bf16.msra.mxu0 %v1638_v21  ;;  %v1674_v38 = vpack.c.bf16 %v201_v33, %v200_v32  ;;  %v219_v40 = vld [vmem:[%s3007_s1 + $0x1b8] sm:$0xff]  ;;  %v170_v41 = vld [vmem:[%s3007_s1 + $0x30] sm:$0xff]  ;;  %v188_v46 = vld [vmem:[%s3007_s1 + $0xc0] sm:$0xff] }
   0xb   :  { %1671 = vmatpush3.bf16.msra.mxu1 %v1670_v25  ;;  %1641 = vmatprep.subr.bf16.mxu0 %v1640_v26  ;;  %v171_v42 = vld [vmem:[%s3007_s1 + $0x38] sm:$0xff]  ;;  %v1676_v43 = vpack.c.bf16 %v219_v40, %v218_v37  ;;  %v202_v44 = vld [vmem:[%s3007_s1 + $0x130] sm:$0xff]  ;;  %v189_v47 = vld [vmem:[%s3007_s1 + $0xc8] sm:$0xff] }
   0xc   :  { %1673 = vmatprep.subr.bf16.mxu1 %v1672_v30  ;;  %v203_v45 = vld [vmem:[%s3007_s1 + $0x138] sm:$0xff]  ;;  %v220_v48 = vld [vmem:[%s3007_s1 + $0x1c0] sm:$0xff]  ;;  %v221_v49 = vld [vmem:[%s3007_s1 + $0x1c8] sm:$0xff]  ;;  %v1646_v50 = vpack.c.bf16 %v171_v42, %v170_v41  ;;  %v1648_v52 = vpack.c.bf16 %v189_v47, %v188_v46 }
   0xd   :  { %v1678_v51 = vpack.c.bf16 %v203_v45, %v202_v44  ;;  %v172_v53 = vld [vmem:[%s3007_s1 + $0x40] sm:$0xff]  ;;  %v173_v54 = vld [vmem:[%s3007_s1 + $0x48] sm:$0xff]  ;;  %v1680_v56 = vpack.c.bf16 %v221_v49, %v220_v48  ;;  %v190_v58 = vld [vmem:[%s3007_s1 + $0xd0] sm:$0xff] }
   0xe   :  { %1643 = vmatpush3.bf16.msra.mxu0 %v1642_v34  ;;  %v204_v55 = vld [vmem:[%s3007_s1 + $0x140] sm:$0xff]  ;;  %v205_v57 = vld [vmem:[%s3007_s1 + $0x148] sm:$0xff]  ;;  %v191_v59 = vld [vmem:[%s3007_s1 + $0xd8] sm:$0xff]  ;;  %v1650_v62 = vpack.c.bf16 %v173_v54, %v172_v53 }
   0xf   :  { %1675 = vmatpush3.bf16.msra.mxu1 %v1674_v38  ;;  %1645 = vmatprep.subr.bf16.mxu0 %v1644_v39  ;;  %v222_v60 = vld [vmem:[%s3007_s1 + $0x1d0] sm:$0xff]  ;;  %v223_v61 = vld [vmem:[%s3007_s1 + $0x1d8] sm:$0xff]  ;;  %v1682_v63 = vpack.c.bf16 %v205_v57, %v204_v55  ;;  %v1652_v0 = vpack.c.bf16 %v191_v59, %v190_v58  ;;  %v192_v6 = vld [vmem:[%s3007_s1 + $0xe0] sm:$0xff] }
  0x10   :  { %1677 = vmatprep.subr.bf16.mxu1 %v1676_v43  ;;  %v174_v1 = vld [vmem:[%s3007_s1 + $0x50] sm:$0xff]  ;;  %v175_v2 = vld [vmem:[%s3007_s1 + $0x58] sm:$0xff]  ;;  %v1684_v4 = vpack.c.bf16 %v223_v61, %v222_v60  ;;  %v193_v7 = vld [vmem:[%s3007_s1 + $0xe8] sm:$0xff] }
  0x11   :  { %v206_v3 = vld [vmem:[%s3007_s1 + $0x150] sm:$0xff]  ;;  %v207_v5 = vld [vmem:[%s3007_s1 + $0x158] sm:$0xff]  ;;  %v224_v8 = vld [vmem:[%s3007_s1 + $0x1e0] sm:$0xff]  ;;  %v1654_v10 = vpack.c.bf16 %v175_v2, %v174_v1  ;;  %v1656_v14 = vpack.c.bf16 %v193_v7, %v192_v6 }
  0x12   :  { %1647 = vmatpush3.bf16.msra.mxu0 %v1646_v50  ;;  %v225_v9 = vld [vmem:[%s3007_s1 + $0x1e8] sm:$0xff]  ;;  %v176_v11 = vld [vmem:[%s3007_s1 + $0x60] sm:$0xff]  ;;  %v1686_v13 = vpack.c.bf16 %v207_v5, %v206_v3  ;;  %v23_v17 = vld [vmem:[%s3008_s0 + $0x18] sm:$0xff] }
  0x13   :  { %1679 = vmatpush3.bf16.msra.mxu1 %v1678_v51  ;;  %1649 = vmatprep.subr.bf16.mxu0 %v1648_v52  ;;  %v177_v12 = vld [vmem:[%s3007_s1 + $0x68] sm:$0xff]  ;;  %v208_v15 = vld [vmem:[%s3007_s1 + $0x160] sm:$0xff]  ;;  %v1688_v18 = vpack.c.bf16 %v225_v9, %v224_v8  ;;  %v194_v20 = vld [vmem:[%s3007_s1 + $0xf0] sm:$0xff] }
  0x14   :  { %1681 = vmatprep.subr.bf16.mxu1 %v1680_v56  ;;  %v21_v16 = vld [vmem:[%s3008_s0 + $0x8] sm:$0xff]  ;;  %v195_v21 = vld [vmem:[%s3007_s1 + $0xf8] sm:$0xff]  ;;  %v226_v22 = vld [vmem:[%s3007_s1 + $0x1f0] sm:$0xff]  ;;  %524 = vmatprep.mubr.f32.mxu1 %v23_v17  ;;  %v1658_v24 = vpack.c.bf16 %v177_v12, %v176_v11 }
  0x15   :  { %v209_v19 = vld [vmem:[%s3007_s1 + $0x168] sm:$0xff]  ;;  %379 = vmatprep.mubr.f32.mxu0 %v21_v16  ;;  %v227_v23 = vld [vmem:[%s3007_s1 + $0x1f8] sm:$0xff]  ;;  %v1660_v26 = vpack.c.bf16 %v195_v21, %v194_v20  ;;  %v178_v27 = vld [vmem:[%s3007_s1 + $0x70] sm:$0xff] }
  0x16   :  { %1651 = vmatpush3.bf16.msra.mxu0 %v1650_v62  ;;  %v1690_v25 = vpack.c.bf16 %v209_v19, %v208_v15  ;;  %v179_v28 = vld [vmem:[%s3007_s1 + $0x78] sm:$0xff]  ;;  %v210_v29 = vld [vmem:[%s3007_s1 + $0x170] sm:$0xff]  ;;  %v1692_v30 = vpack.c.bf16 %v227_v23, %v226_v22  ;;  %v244_v32 = vld [vmem:[%s3007_s1 + $0x280] sm:$0xff] }
  0x17   :  { %1683 = vmatpush3.bf16.msra.mxu1 %v1682_v63  ;;  %1653 = vmatprep.subr.bf16.mxu0 %v1652_v0  ;;  %v211_v31 = vld [vmem:[%s3007_s1 + $0x178] sm:$0xff]  ;;  %v245_v33 = vld [vmem:[%s3007_s1 + $0x288] sm:$0xff]  ;;  %v1662_v34 = vpack.c.bf16 %v179_v28, %v178_v27  ;;  %v228_v37 = vld [vmem:[%s3007_s1 + $0x200] sm:$0xff] }
  0x18   :  { %1685 = vmatprep.subr.bf16.mxu1 %v1684_v4  ;;  %v1694_v35 = vpack.c.bf16 %v211_v31, %v210_v29  ;;  %v1696_v36 = vpack.c.bf16 %v245_v33, %v244_v32  ;;  %v229_v38 = vld [vmem:[%s3007_s1 + $0x208] sm:$0xff]  ;;  %v246_v39 = vld [vmem:[%s3007_s1 + $0x290] sm:$0xff]  ;;  %v247_v40 = vld [vmem:[%s3007_s1 + $0x298] sm:$0xff] }
  0x19   :  { %v276_v41 = vld [vmem:[%s3007_s1 + $0x380] sm:$0xff]  ;;  %v277_v42 = vld [vmem:[%s3007_s1 + $0x388] sm:$0xff]  ;;  %v1698_v44 = vpack.c.bf16 %v229_v38, %v228_v37  ;;  %v22_v47 = vld [vmem:[%s3008_s0 + $0x10] sm:$0xff]  ;;  %v1700_v51 = vpack.c.bf16 %v247_v40, %v246_v39 }
  0x1a   :  { %1655 = vmatpush3.bf16.msra.mxu0 %v1654_v10  ;;  %v20_v43 = vld [vmem:[%s3008_s0] sm:$0xff]  ;;  %v1728_v45 = vpack.c.bf16 %v277_v42, %v276_v41  ;;  %v30_v48 = vld [vmem:[%s3008_s0 + $0x50] sm:$0xff]  ;;  %v261_v49 = vld [vmem:[%s3007_s1 + $0x308] sm:$0xff] }
  0x1b   :  { %1687 = vmatpush3.bf16.msra.mxu1 %v1686_v13  ;;  %1657 = vmatprep.subr.bf16.mxu0 %v1656_v14  ;;  %v260_v46 = vld [vmem:[%s3007_s1 + $0x300] sm:$0xff]  ;;  %v230_v52 = vld [vmem:[%s3007_s1 + $0x210] sm:$0xff]  ;;  %v231_v53 = vld [vmem:[%s3007_s1 + $0x218] sm:$0xff] }
  0x1c   :  { %1689 = vmatprep.subr.bf16.mxu1 %v1688_v18  ;;  %v32_v50 = vld [vmem:[%s3008_s0 + $0x60] sm:$0xff]  ;;  %v1730_v54 = vpack.c.bf16 %v261_v49, %v260_v46  ;;  %v29_v55 = vld [vmem:[%s3008_s0 + $0x48] sm:$0xff]  ;;  %v31_v58 = vld [vmem:[%s3008_s0 + $0x58] sm:$0xff]  ;;  %v1702_v62 = vpack.c.bf16 %v231_v53, %v230_v52 }
  0x1d   :  { %v248_v56 = vld [vmem:[%s3007_s1 + $0x2a0] sm:$0xff]  ;;  %v249_v57 = vld [vmem:[%s3007_s1 + $0x2a8] sm:$0xff]  ;;  %v39_v59 = vld [vmem:[%s3008_s0 + $0x98] sm:$0xff] }
  0x1e   :  { %1659 = vmatpush3.bf16.msra.mxu0 %v1658_v24  ;;  %v278_v60 = vld [vmem:[%s3007_s1 + $0x390] sm:$0xff]  ;;  %v41_v61 = vld [vmem:[%s3008_s0 + $0xa8] sm:$0xff]  ;;  %v232_v63 = vld [vmem:[%s3007_s1 + $0x220] sm:$0xff]  ;;  %v1704_v1 = vpack.c.bf16 %v249_v57, %v248_v56 }
  0x1f   :  { %1691 = vmatpush3.bf16.msra.mxu1 %v1690_v25  ;;  %1661 = vmatprep.subr.bf16.mxu0 %v1660_v26  ;;  %v279_v0 = vld [vmem:[%s3007_s1 + $0x398] sm:$0xff]  ;;  %v233_v2 = vld [vmem:[%s3007_s1 + $0x228] sm:$0xff]  ;;  %v262_v4 = vld [vmem:[%s3007_s1 + $0x310] sm:$0xff] }
  0x20   :  { %1693 = vmatprep.subr.bf16.mxu1 %v1692_v30  ;;  %v1732_v3 = vpack.c.bf16 %v279_v0, %v278_v60  ;;  %v263_v5 = vld [vmem:[%s3007_s1 + $0x318] sm:$0xff]  ;;  %v250_v6 = vld [vmem:[%s3007_s1 + $0x2b0] sm:$0xff]  ;;  %v40_v10 = vld [vmem:[%s3008_s0 + $0xa0] sm:$0xff]  ;;  %v1706_v13 = vpack.c.bf16 %v233_v2, %v232_v63 }
  0x21   :  { %v251_v7 = vld [vmem:[%s3007_s1 + $0x2b8] sm:$0xff]  ;;  %v1734_v8 = vpack.c.bf16 %v263_v5, %v262_v4  ;;  %v38_v9 = vld [vmem:[%s3008_s0 + $0x90] sm:$0xff]  ;;  %v48_v11 = vld [vmem:[%s3008_s0 + $0xe0] sm:$0xff] }
  0x22   :  { %1663 = vmatpush3.bf16.msra.mxu0 %v1662_v34  ;;  %v50_v12 = vld [vmem:[%s3008_s0 + $0xf0] sm:$0xff]  ;;  %v235_v15 = vld [vmem:[%s3007_s1 + $0x238] sm:$0xff]  ;;  %v1708_v16 = vpack.c.bf16 %v251_v7, %v250_v6  ;;  %v252_v17 = vld [vmem:[%s3007_s1 + $0x2c0] sm:$0xff] }
  0x23   :  { %1695 = vmatpush3.bf16.msra.mxu1 %v1694_v35  ;;  %1697 = vmatprep.subr.bf16.mxu0 %v1696_v36  ;;  %v234_v14 = vld [vmem:[%s3007_s1 + $0x230] sm:$0xff]  ;;  %v280_v18 = vld [vmem:[%s3007_s1 + $0x3a0] sm:$0xff]  ;;  %v281_v19 = vld [vmem:[%s3007_s1 + $0x3a8] sm:$0xff] }
  0x24   :  { %1729 = vmatprep.subr.bf16.mxu1 %v1728_v45  ;;  %v253_v20 = vld [vmem:[%s3007_s1 + $0x2c8] sm:$0xff]  ;;  %v1736_v21 = vpack.c.bf16 %v281_v19, %v280_v18  ;;  %v264_v22 = vld [vmem:[%s3007_s1 + $0x320] sm:$0xff]  ;;  %v47_v24 = vld [vmem:[%s3008_s0 + $0xd8] sm:$0xff]  ;;  %v1710_v29 = vpack.c.bf16 %v235_v15, %v234_v14 }
  0x25   :  { %380 = vmatmul.mubr.f32.vlgmr.msra.gmra.mrb[0].mxu0 %v20_v43  ;;  %v265_v23 = vld [vmem:[%s3007_s1 + $0x328] sm:$0xff]  ;;  %v59_v28 = vld [vmem:[%s3008_s0 + $0x138] sm:$0xff]  ;;  %v1712_v30 = vpack.c.bf16 %v253_v20, %v252_v17  ;;  %v236_v31 = vld [vmem:[%s3007_s1 + $0x240] sm:$0xff] }
  0x26   :  { %525 = vmatmul.mubr.f32.vlgmr.msra.gmra.mrb[0].mxu1 %v22_v47  ;;  %1699 = vmatpush3.bf16.msra.mxu0 %v1698_v44  ;;  %v1738_v25 = vpack.c.bf16 %v265_v23, %v264_v22  ;;  %v49_v26 = vld [vmem:[%s3008_s0 + $0xe8] sm:$0xff]  ;;  %v254_v33 = vld [vmem:[%s3007_s1 + $0x2d0] sm:$0xff]  ;;  %v255_v34 = vld [vmem:[%s3007_s1 + $0x2d8] sm:$0xff] }
  0x27   :  { %384 = vmatprep.mubr.f32.mxu0 %v30_v48  ;;  %529 = vmatprep.mubr.f32.mxu1 %v32_v50  ;;  %v57_v27 = vld [vmem:[%s3008_s0 + $0x128] sm:$0xff]  ;;  %v282_v35 = vld [vmem:[%s3007_s1 + $0x3b0] sm:$0xff]  ;;  %v283_v36 = vld [vmem:[%s3007_s1 + $0x3b8] sm:$0xff]  ;;  %v1716_v45 = vpack.c.bf16 %v255_v34, %v254_v33 }
  0x28   :  { %1701 = vmatprep.subr.bf16.mxu0 %v1700_v51  ;;  %1731 = vmatpush3.bf16.msra.mxu1 %v1730_v54  ;;  %v237_v32 = vld [vmem:[%s3007_s1 + $0x248] sm:$0xff]  ;;  %v56_v37 = vld [vmem:[%s3008_s0 + $0x120] sm:$0xff]  ;;  %v1740_v38 = vpack.c.bf16 %v283_v36, %v282_v35  ;;  %v266_v39 = vld [vmem:[%s3007_s1 + $0x330] sm:$0xff] }
  0x29   :  { %385 = vmatmul.mubr.f32.gmra.mrb[2].mxu0 %v29_v55  ;;  %1733 = vmatprep.subr.bf16.mxu1 %v1732_v3  ;;  %v58_v40 = vld [vmem:[%s3008_s0 + $0x130] sm:$0xff]  ;;  %v1714_v42 = vpack.c.bf16 %v237_v32, %v236_v31  ;;  %v267_v43 = vld [vmem:[%s3007_s1 + $0x338] sm:$0xff]  ;;  %v68_v44 = vld [vmem:[%s3008_s0 + $0x180] sm:$0xff] }
  0x2a   :  { %530 = vmatmul.mubr.f32.gmra.mrb[2].mxu1 %v31_v58  ;;  %389 = vmatprep.mubr.f32.mxu0 %v39_v59  ;;  %v66_v41 = vld [vmem:[%s3008_s0 + $0x170] sm:$0xff]  ;;  %v239_v47 = vld [vmem:[%s3007_s1 + $0x258] sm:$0xff]  ;;  %v1742_v48 = vpack.c.bf16 %v267_v43, %v266_v39  ;;  %v65_v49 = vld [vmem:[%s3008_s0 + $0x168] sm:$0xff] }
  0x2b   :  { %534 = vmatprep.mubr.f32.mxu1 %v41_v61  ;;  %1703 = vmatpush3.bf16.msra.mxu0 %v1702_v62  ;;  %v238_v46 = vld [vmem:[%s3007_s1 + $0x250] sm:$0xff]  ;;  %v67_v50 = vld [vmem:[%s3008_s0 + $0x178] sm:$0xff]  ;;  %v256_v52 = vld [vmem:[%s3007_s1 + $0x2e0] sm:$0xff] }
  0x2c   :  { %1705 = vmatprep.subr.bf16.mxu0 %v1704_v1  ;;  %1735 = vmatpush3.bf16.msra.mxu1 %v1734_v8  ;;  %v75_v51 = vld [vmem:[%s3008_s0 + $0x1b8] sm:$0xff]  ;;  %v257_v53 = vld [vmem:[%s3007_s1 + $0x2e8] sm:$0xff]  ;;  %v284_v54 = vld [vmem:[%s3007_s1 + $0x3c0] sm:$0xff]  ;;  %v1718_v56 = vpack.c.bf16 %v239_v47, %v238_v46 }
  0x2d   :  { %390 = vmatmul.mubr.f32.gmra.mrb[4].mxu0 %v38_v9  ;;  %1737 = vmatprep.subr.bf16.mxu1 %v1736_v21  ;;  %v77_v55 = vld [vmem:[%s3008_s0 + $0x1c8] sm:$0xff]  ;;  %v240_v58 = vld [vmem:[%s3007_s1 + $0x260] sm:$0xff]  ;;  %v1720_v59 = vpack.c.bf16 %v257_v53, %v256_v52  ;;  %v74_v0 = vld [vmem:[%s3008_s0 + $0x1b0] sm:$0xff] }
  0x2e   :  { %535 = vmatmul.mubr.f32.gmra.mrb[4].mxu1 %v40_v10  ;;  %394 = vmatprep.mubr.f32.mxu0 %v48_v11  ;;  %v285_v57 = vld [vmem:[%s3007_s1 + $0x3c8] sm:$0xff]  ;;  %v268_v62 = vld [vmem:[%s3007_s1 + $0x340] sm:$0xff]  ;;  %v286_v2 = vld [vmem:[%s3007_s1 + $0x3d0] sm:$0xff] }
  0x2f   :  { %539 = vmatprep.mubr.f32.mxu1 %v50_v12  ;;  %1707 = vmatpush3.bf16.msra.mxu0 %v1706_v13  ;;  %v1744_v60 = vpack.c.bf16 %v285_v57, %v284_v54  ;;  %v241_v61 = vld [vmem:[%s3007_s1 + $0x268] sm:$0xff]  ;;  %v287_v3 = vld [vmem:[%s3007_s1 + $0x3d8] sm:$0xff]  ;;  %v270_v4 = vld [vmem:[%s3007_s1 + $0x350] sm:$0xff] }
  0x30   :  { %1709 = vmatprep.subr.bf16.mxu0 %v1708_v16  ;;  %1739 = vmatpush3.bf16.msra.mxu1 %v1738_v25  ;;  %v269_v63 = vld [vmem:[%s3007_s1 + $0x348] sm:$0xff]  ;;  %v76_v5 = vld [vmem:[%s3008_s0 + $0x1c0] sm:$0xff]  ;;  %v1722_v7 = vpack.c.bf16 %v241_v61, %v240_v58  ;;  %v271_v8 = vld [vmem:[%s3007_s1 + $0x358] sm:$0xff]  ;;  %v1748_v11 = vpack.c.bf16 %v287_v3, %v286_v2 }
  0x31   :  { %395 = vmatmul.mubr.f32.gmra.mrb[6].mxu0 %v47_v24  ;;  %1741 = vmatprep.subr.bf16.mxu1 %v1740_v38  ;;  %v1746_v1 = vpack.c.bf16 %v269_v63, %v268_v62  ;;  %v84_v6 = vld [vmem:[%s3008_s0 + $0x200] sm:$0xff]  ;;  %v86_v9 = vld [vmem:[%s3008_s0 + $0x210] sm:$0xff]  ;;  %v83_v10 = vld [vmem:[%s3008_s0 + $0x1f8] sm:$0xff]  ;;  %v1750_v13 = vpack.c.bf16 %v271_v8, %v270_v4 }
  0x32   :  { %540 = vmatmul.mubr.f32.gmra.mrb[6].mxu1 %v49_v26  ;;  %399 = vmatprep.mubr.f32.mxu0 %v57_v27  ;;  %v258_v12 = vld [vmem:[%s3007_s1 + $0x2f0] sm:$0xff]  ;;  %v259_v14 = vld [vmem:[%s3007_s1 + $0x2f8] sm:$0xff]  ;;  %v288_v15 = vld [vmem:[%s3007_s1 + $0x3e0] sm:$0xff] }
  0x33   :  { %544 = vmatprep.mubr.f32.mxu1 %v59_v28  ;;  %1711 = vmatpush3.bf16.msra.mxu0 %v1710_v29  ;;  %v289_v16 = vld [vmem:[%s3007_s1 + $0x3e8] sm:$0xff]  ;;  %v1724_v17 = vpack.c.bf16 %v259_v14, %v258_v12  ;;  %v242_v18 = vld [vmem:[%s3007_s1 + $0x270] sm:$0xff]  ;;  %v243_v19 = vld [vmem:[%s3007_s1 + $0x278] sm:$0xff] }
  0x34   :  { %1713 = vmatprep.subr.bf16.mxu0 %v1712_v30  ;;  %1743 = vmatpush3.bf16.msra.mxu1 %v1742_v48  ;;  %v272_v20 = vld [vmem:[%s3007_s1 + $0x360] sm:$0xff]  ;;  %v85_v21 = vld [vmem:[%s3008_s0 + $0x208] sm:$0xff]  ;;  %v1752_v23 = vpack.c.bf16 %v289_v16, %v288_v15  ;;  %v95_v25 = vld [vmem:[%s3008_s0 + $0x258] sm:$0xff]  ;;  %v1726_v26 = vpack.c.bf16 %v243_v19, %v242_v18 }
  0x35   :  { %400 = vmatmul.mubr.f32.gmra.mrb[8].mxu0 %v56_v37  ;;  %1745 = vmatprep.subr.bf16.mxu1 %v1744_v60  ;;  %v93_v22 = vld [vmem:[%s3008_s0 + $0x248] sm:$0xff]  ;;  %v290_v27 = vld [vmem:[%s3007_s1 + $0x3f0] sm:$0xff]  ;;  %v92_v28 = vld [vmem:[%s3008_s0 + $0x240] sm:$0xff] }
  0x36   :  { %545 = vmatmul.mubr.f32.gmra.mrb[8].mxu1 %v58_v40  ;;  %404 = vmatprep.mubr.f32.mxu0 %v66_v41  ;;  %v273_v24 = vld [vmem:[%s3007_s1 + $0x368] sm:$0xff]  ;;  %v291_v30 = vld [vmem:[%s3007_s1 + $0x3f8] sm:$0xff]  ;;  %v94_v31 = vld [vmem:[%s3008_s0 + $0x250] sm:$0xff] }
  0x37   :  { %549 = vmatprep.mubr.f32.mxu1 %v68_v44  ;;  %1715 = vmatpush3.bf16.msra.mxu0 %v1714_v42  ;;  %v1754_v29 = vpack.c.bf16 %v273_v24, %v272_v20  ;;  %v274_v32 = vld [vmem:[%s3007_s1 + $0x370] sm:$0xff]  ;;  %v275_v33 = vld [vmem:[%s3007_s1 + $0x378] sm:$0xff]  ;;  %v1756_v35 = vpack.c.bf16 %v291_v30, %v290_v27  ;;  %v292_v36 = vld [vmem:[%s3007_s1 + $0x400] sm:$0xff] }
  0x38   :  { %1717 = vmatprep.subr.bf16.mxu0 %v1716_v45  ;;  %1747 = vmatpush3.bf16.msra.mxu1 %v1746_v1  ;;  %v102_v34 = vld [vmem:[%s3008_s0 + $0x290] sm:$0xff]  ;;  %v293_v37 = vld [vmem:[%s3007_s1 + $0x408] sm:$0xff]  ;;  %v104_v38 = vld [vmem:[%s3008_s0 + $0x2a0] sm:$0xff]  ;;  %v1758_v40 = vpack.c.bf16 %v275_v33, %v274_v32 }
  0x39   :  { %405 = vmatmul.mubr.f32.gmra.mrb[10].mxu0 %v65_v49  ;;  %1749 = vmatprep.subr.bf16.mxu1 %v1748_v11  ;;  %v2344_v39 = vpack.c.bf16 %v293_v37, %v292_v36  ;;  %v101_v41 = vld [vmem:[%s3008_s0 + $0x288] sm:$0xff]  ;;  %v103_v42 = vld [vmem:[%s3008_s0 + $0x298] sm:$0xff]  ;;  %v110_v45 = vld [vmem:[%s3008_s0 + $0x2d0] sm:$0xff] }
  0x3a   :  { %550 = vmatmul.mubr.f32.gmra.mrb[10].mxu1 %v67_v50  ;;  %409 = vmatprep.mubr.f32.mxu0 %v75_v51  ;;  %v111_v43 = vld [vmem:[%s3008_s0 + $0x2d8] sm:$0xff]  ;;  %v113_v44 = vld [vmem:[%s3008_s0 + $0x2e8] sm:$0xff]  ;;  %v112_v46 = vld [vmem:[%s3008_s0 + $0x2e0] sm:$0xff] }
  0x3b   :  { %554 = vmatprep.mubr.f32.mxu1 %v77_v55  ;;  %1719 = vmatpush3.bf16.msra.mxu0 %v1718_v56  ;;  %v120_v47 = vld [vmem:[%s3008_s0 + $0x320] sm:$0xff]  ;;  %v122_v48 = vld [vmem:[%s3008_s0 + $0x330] sm:$0xff]  ;;  %v119_v49 = vld [vmem:[%s3008_s0 + $0x318] sm:$0xff] }
  0x3c   :  { %1721 = vmatprep.subr.bf16.mxu0 %v1720_v59  ;;  %1751 = vmatpush3.bf16.msra.mxu1 %v1750_v13  ;;  %v121_v50 = vld [vmem:[%s3008_s0 + $0x328] sm:$0xff]  ;;  %v131_v52 = vld [vmem:[%s3008_s0 + $0x378] sm:$0xff]  ;;  %v128_v53 = vld [vmem:[%s3008_s0 + $0x360] sm:$0xff] }
  0x3d   :  { %410 = vmatmul.mubr.f32.gmra.mrb[12].mxu0 %v74_v0  ;;  %1753 = vmatprep.subr.bf16.mxu1 %v1752_v23  ;;  %v129_v51 = vld [vmem:[%s3008_s0 + $0x368] sm:$0xff]  ;;  %v130_v54 = vld [vmem:[%s3008_s0 + $0x370] sm:$0xff]  ;;  %v140_v56 = vld [vmem:[%s3008_s0 + $0x3c0] sm:$0xff] }
  0x3e   :  { %555 = vmatmul.mubr.f32.gmra.mrb[12].mxu1 %v76_v5  ;;  %414 = vmatprep.mubr.f32.mxu0 %v84_v6  ;;  %v138_v55 = vld [vmem:[%s3008_s0 + $0x3b0] sm:$0xff]  ;;  %v137_v57 = vld [vmem:[%s3008_s0 + $0x3a8] sm:$0xff]  ;;  %v139_v58 = vld [vmem:[%s3008_s0 + $0x3b8] sm:$0xff] }
  0x3f   :  { %559 = vmatprep.mubr.f32.mxu1 %v86_v9  ;;  %1723 = vmatpush3.bf16.msra.mxu0 %v1722_v7  ;;  %v147_v59 = vld [vmem:[%s3008_s0 + $0x3f8] sm:$0xff]  ;;  %v149_v60 = vld [vmem:[%s3008_s0 + $0x408] sm:$0xff]  ;;  %v146_v61 = vld [vmem:[%s3008_s0 + $0x3f0] sm:$0xff] }
  0x40   :  { %1725 = vmatprep.subr.bf16.mxu0 %v1724_v17  ;;  %1755 = vmatpush3.bf16.msra.mxu1 %v1754_v29  ;;  %v148_v62 = vld [vmem:[%s3008_s0 + $0x400] sm:$0xff]  ;;  %v158_v0 = vld [vmem:[%s3008_s0 + $0x450] sm:$0x3f]  ;;  %v155_v1 = vld [vmem:[%s3008_s0 + $0x438] sm:$0x3f] }
  0x41   :  { %415 = vmatmul.mubr.f32.gmra.mrb[14].mxu0 %v83_v10  ;;  %1757 = vmatprep.subr.bf16.mxu1 %v1756_v35  ;;  %v156_v63 = vld [vmem:[%s3008_s0 + $0x440] sm:$0x3f]  ;;  %v157_v2 = vld [vmem:[%s3008_s0 + $0x448] sm:$0x3f]  ;;  %v27_v4 = vld [vmem:[%s3008_s0 + $0x38] sm:$0xff] }
  0x42   :  { %560 = vmatmul.mubr.f32.gmra.mrb[14].mxu1 %v85_v21  ;;  %419 = vmatprep.mubr.f32.mxu0 %v93_v22  ;;  %v25_v3 = vld [vmem:[%s3008_s0 + $0x28] sm:$0xff]  ;;  %v294_v5 = vld [vmem:[%s3007_s1 + $0x410] sm:$0xff]  ;;  %v295_v6 = vld [vmem:[%s3007_s1 + $0x418] sm:$0xff] }
  0x43   :  { %564 = vmatprep.mubr.f32.mxu1 %v95_v25  ;;  %1727 = vmatpush3.bf16.msra.mxu0 %v1726_v26  ;;  %v24_v7 = vld [vmem:[%s3008_s0 + $0x20] sm:$0xff]  ;;  %v26_v8 = vld [vmem:[%s3008_s0 + $0x30] sm:$0xff]  ;;  %v1764_v11 = vpack.c.bf16 %v295_v6, %v294_v5  ;;  %v297_v13 = vld [vmem:[%s3007_s1 + $0x428] sm:$0xff] }
  0x44   :  { %1761 = vmatprep.subr.bf16.mxu0 %v2344_v39  ;;  %1759 = vmatpush3.bf16.msra.mxu1 %v1758_v40  ;;  %v34_v9 = vld [vmem:[%s3008_s0 + $0x70] sm:$0xff]  ;;  %v36_v10 = vld [vmem:[%s3008_s0 + $0x80] sm:$0xff]  ;;  %v33_v14 = vld [vmem:[%s3008_s0 + $0x68] sm:$0xff] }
  0x45   :  { %420 = vmatmul.mubr.f32.gmra.mrb[16].mxu0 %v92_v28  ;;  %1792 = vmatprep.subr.bf16.mxu1 %v2344_v39  ;;  %v296_v12 = vld [vmem:[%s3007_s1 + $0x420] sm:$0xff]  ;;  %v35_v15 = vld [vmem:[%s3008_s0 + $0x78] sm:$0xff]  ;;  %v45_v17 = vld [vmem:[%s3008_s0 + $0xc8] sm:$0xff] }
  0x46   :  { %565 = vmatmul.mubr.f32.gmra.mrb[16].mxu1 %v94_v31  ;;  %424 = vmatprep.mubr.f32.mxu0 %v102_v34  ;;  %v43_v16 = vld [vmem:[%s3008_s0 + $0xb8] sm:$0xff]  ;;  %v1768_v18 = vpack.c.bf16 %v297_v13, %v296_v12  ;;  %v298_v19 = vld [vmem:[%s3007_s1 + $0x430] sm:$0xff]  ;;  %v44_v22 = vld [vmem:[%s3008_s0 + $0xc0] sm:$0xff] }
  0x47   :  { %569 = vmatprep.mubr.f32.mxu1 %v104_v38  ;;  %v299_v20 = vld [vmem:[%s3007_s1 + $0x438] sm:$0xff]  ;;  %v42_v21 = vld [vmem:[%s3008_s0 + $0xb0] sm:$0xff]  ;;  %v52_v23 = vld [vmem:[%s3008_s0 + $0x100] sm:$0xff] }
  0x48   :  { %v54_v24 = vld [vmem:[%s3008_s0 + $0x110] sm:$0xff]  ;;  %v1772_v25 = vpack.c.bf16 %v299_v20, %v298_v19  ;;  %v300_v26 = vld [vmem:[%s3007_s1 + $0x440] sm:$0xff]  ;;  %v301_v27 = vld [vmem:[%s3007_s1 + $0x448] sm:$0xff] }
  0x49   :  { %425 = vmatmul.mubr.f32.gmra.mrb[18].mxu0 %v101_v41  ;;  %v51_v28 = vld [vmem:[%s3008_s0 + $0xf8] sm:$0xff]  ;;  %v53_v29 = vld [vmem:[%s3008_s0 + $0x108] sm:$0xff]  ;;  %v1776_v32 = vpack.c.bf16 %v301_v27, %v300_v26  ;;  %v302_v33 = vld [vmem:[%s3007_s1 + $0x450] sm:$0xff] }
  0x4a   :  { %570 = vmatmul.mubr.f32.gmra.mrb[18].mxu1 %v103_v42  ;;  %429 = vmatprep.mubr.f32.mxu0 %v111_v43  ;;  %v61_v30 = vld [vmem:[%s3008_s0 + $0x148] sm:$0xff]  ;;  %v63_v31 = vld [vmem:[%s3008_s0 + $0x158] sm:$0xff]  ;;  %v60_v35 = vld [vmem:[%s3008_s0 + $0x140] sm:$0xff] }
  0x4b   :  { %574 = vmatprep.mubr.f32.mxu1 %v113_v44  ;;  %v303_v34 = vld [vmem:[%s3007_s1 + $0x458] sm:$0xff]  ;;  %v62_v36 = vld [vmem:[%s3008_s0 + $0x150] sm:$0xff]  ;;  %v72_v38 = vld [vmem:[%s3008_s0 + $0x1a0] sm:$0xff] }
  0x4c   :  { %v70_v37 = vld [vmem:[%s3008_s0 + $0x190] sm:$0xff]  ;;  %v304_v40 = vld [vmem:[%s3007_s1 + $0x460] sm:$0xff]  ;;  %v305_v41 = vld [vmem:[%s3007_s1 + $0x468] sm:$0xff] }
  0x4d   :  { %430 = vmatmul.mubr.f32.gmra.mrb[20].mxu0 %v110_v45  ;;  %v69_v42 = vld [vmem:[%s3008_s0 + $0x188] sm:$0xff]  ;;  %v71_v43 = vld [vmem:[%s3008_s0 + $0x198] sm:$0xff]  ;;  %v126_v5 = vld [vmem:[%s3008_s0 + $0x350] sm:$0xff] }
  0x4e   :  { %575 = vmatmul.mubr.f32.gmra.mrb[20].mxu1 %v112_v46  ;;  %434 = vmatprep.mubr.f32.mxu0 %v120_v47  ;;  %v79_v44 = vld [vmem:[%s3008_s0 + $0x1d8] sm:$0xff]  ;;  %v81_v45 = vld [vmem:[%s3008_s0 + $0x1e8] sm:$0xff]  ;;  %v1784_v46 = vpack.c.bf16 %v305_v41, %v304_v40  ;;  %v306_v47 = vld [vmem:[%s3007_s1 + $0x470] sm:$0xff] }
  0x4f   :  { %579 = vmatprep.mubr.f32.mxu1 %v122_v48  ;;  %v307_v48 = vld [vmem:[%s3007_s1 + $0x478] sm:$0xff]  ;;  %v142_v12 = vld [vmem:[%s3008_s0 + $0x3d0] sm:$0xff]  ;;  %v144_v13 = vld [vmem:[%s3008_s0 + $0x3e0] sm:$0xff] }
  0x50   :  { %v123_v6 = vld [vmem:[%s3008_s0 + $0x338] sm:$0xff]  ;;  %v152_v19 = vld [vmem:[%s3008_s0 + $0x420] sm:$0xff]  ;;  %v37_v26 = vld [vmem:[%s3008_s0 + $0x88] sm:$0xff] }
  0x51   :  { %435 = vmatmul.mubr.f32.gmra.mrb[22].mxu0 %v119_v49  ;;  %v78_v49 = vld [vmem:[%s3008_s0 + $0x1d0] sm:$0xff]  ;;  %v160_v20 = vld [vmem:[%s3008_s0 + $0x460] sm:$0x3f]  ;;  %v109_v27 = vld [vmem:[%s3008_s0 + $0x2c8] sm:$0xff] }
  0x52   :  { %580 = vmatmul.mubr.f32.gmra.mrb[22].mxu1 %v121_v50  ;;  %439 = vmatprep.mubr.f32.mxu0 %v129_v51  ;;  %v80_v50 = vld [vmem:[%s3008_s0 + $0x1e0] sm:$0xff] }
  0x53   :  { %584 = vmatprep.mubr.f32.mxu1 %v131_v52  ;;  %v88_v51 = vld [vmem:[%s3008_s0 + $0x220] sm:$0xff]  ;;  %v90_v52 = vld [vmem:[%s3008_s0 + $0x230] sm:$0xff] }
  0x54   :  { %v2713_v41 = vld [vmem:[%s3009_s2] ss:$0 sm:$0xff] }
  0x55   :  { %440 = vmatmul.mubr.f32.gmra.mrb[24].mxu0 %v128_v53  ;;  %v1788_v53 = vpack.c.bf16 %v307_v48, %v306_v47 }
  0x56   :  { %585 = vmatmul.mubr.f32.gmra.mrb[24].mxu1 %v130_v54  ;;  %444 = vmatprep.mubr.f32.mxu0 %v138_v55  ;;  %v87_v54 = vld [vmem:[%s3008_s0 + $0x218] sm:$0xff]  ;;  %v89_v55 = vld [vmem:[%s3008_s0 + $0x228] sm:$0xff] }
  0x57   :  { %589 = vmatprep.mubr.f32.mxu1 %v140_v56  ;;  %v97_v56 = vld [vmem:[%s3008_s0 + $0x268] sm:$0xff] }
  0x59   :  { %445 = vmatmul.mubr.f32.gmra.mrb[26].mxu0 %v137_v57  ;;  %v99_v57 = vld [vmem:[%s3008_s0 + $0x278] sm:$0xff] }
  0x5a   :  { %590 = vmatmul.mubr.f32.gmra.mrb[26].mxu1 %v139_v58  ;;  %449 = vmatprep.mubr.f32.mxu0 %v147_v59  ;;  %v96_v58 = vld [vmem:[%s3008_s0 + $0x260] sm:$0xff]  ;;  %v98_v59 = vld [vmem:[%s3008_s0 + $0x270] sm:$0xff] }
  0x5b   :  { %594 = vmatprep.mubr.f32.mxu1 %v149_v60  ;;  %v106_v60 = vld [vmem:[%s3008_s0 + $0x2b0] sm:$0xff] }
  0x5d   :  { %450 = vmatmul.mubr.f32.gmra.mrb[28].mxu0 %v146_v61  ;;  %v108_v61 = vld [vmem:[%s3008_s0 + $0x2c0] sm:$0xff] }
  0x5e   :  { %595 = vmatmul.mubr.f32.gmra.mrb[28].mxu1 %v148_v62  ;;  %454 = vmatprep.mubr.f32.mxu0 %v156_v63  ;;  %v105_v62 = vld [vmem:[%s3008_s0 + $0x2a8] sm:$0xff]  ;;  %v107_v63 = vld [vmem:[%s3008_s0 + $0x2b8] sm:$0xff] }
  0x5f   :  { %599 = vmatprep.mubr.f32.mxu1 %v158_v0  ;;  %v115_v0 = vld [vmem:[%s3008_s0 + $0x2f8] sm:$0xff] }
  0x61   :  { %455 = vmatmul.mubr.f32.gmra.mrb[30].mxu0 %v155_v1  ;;  %v117_v1 = vld [vmem:[%s3008_s0 + $0x308] sm:$0xff] }
  0x62   :  { %600 = vmatmul.mubr.f32.gmra.mrb[30].mxu1 %v157_v2  ;;  %669 = vmatprep.mubr.f32.mxu0 %v25_v3  ;;  %v114_v2 = vld [vmem:[%s3008_s0 + $0x2f0] sm:$0xff]  ;;  %v116_v3 = vld [vmem:[%s3008_s0 + $0x300] sm:$0xff] }
  0x63   :  { %814 = vmatprep.mubr.f32.mxu1 %v27_v4  ;;  %v124_v4 = vld [vmem:[%s3008_s0 + $0x340] sm:$0xff] }
  0x65   :  { %670 = vmatmul.mubr.f32.vlgmr.msra.gmra.mrb[32].mxu0 %v24_v7  ;;  %v125_v7 = vld [vmem:[%s3008_s0 + $0x348] sm:$0xff] }
  0x66   :  { %815 = vmatmul.mubr.f32.vlgmr.msra.gmra.mrb[32].mxu1 %v26_v8  ;;  %1763 = vmatpush3.bf16.msra.mxu0 %v2344_v39  ;;  %v133_v8 = vld [vmem:[%s3008_s0 + $0x388] sm:$0xff] }
  0x67   :  { %674 = vmatprep.mubr.f32.mxu0 %v34_v9  ;;  %819 = vmatprep.mubr.f32.mxu1 %v36_v10  ;;  %v135_v9 = vld [vmem:[%s3008_s0 + $0x398] sm:$0xff]  ;;  %v132_v10 = vld [vmem:[%s3008_s0 + $0x380] sm:$0xff] }
  0x68   :  { %1765 = vmatprep.subr.bf16.mxu0 %v1764_v11  ;;  %1800 = vmatpush3.bf16.msra.mxu1 %v2344_v39  ;;  %v1780_v39 = vpack.c.bf16 %v303_v34, %v302_v33  ;;  %v136_v33 = vld [vmem:[%s3008_s0 + $0x3a0] sm:$0xff]  ;;  %v73_v34 = vld [vmem:[%s3008_s0 + $0x1a8] sm:$0xff] }
  0x69   :  { %675 = vmatmul.mubr.f32.gmra.mrb[34].mxu0 %v33_v14  ;;  %1793 = vmatprep.subr.bf16.mxu1 %v1764_v11  ;;  %v141_v14 = vld [vmem:[%s3008_s0 + $0x3c8] sm:$0xff] }
  0x6a   :  { %820 = vmatmul.mubr.f32.gmra.mrb[34].mxu1 %v35_v15  ;;  %679 = vmatprep.mubr.f32.mxu0 %v43_v16  ;;  %v143_v15 = vld [vmem:[%s3008_s0 + $0x3d8] sm:$0xff] }
  0x6b   :  { %824 = vmatprep.mubr.f32.mxu1 %v45_v17  ;;  %1767 = vmatpush3.bf16.msra.mxu0 %v1764_v11  ;;  %v151_v16 = vld [vmem:[%s3008_s0 + $0x418] sm:$0xff]  ;;  %v153_v17 = vld [vmem:[%s3008_s0 + $0x428] sm:$0xff] }
  0x6c   :  { %1769 = vmatprep.subr.bf16.mxu0 %v1768_v18  ;;  %1801 = vmatpush3.bf16.msra.mxu1 %v1764_v11  ;;  %v134_v11 = vld [vmem:[%s3008_s0 + $0x390] sm:$0xff] }
  0x6d   :  { %680 = vmatmul.mubr.f32.gmra.mrb[36].mxu0 %v42_v21  ;;  %1794 = vmatprep.subr.bf16.mxu1 %v1768_v18  ;;  %v162_v21 = vld [vmem:[%s3008_s0 + $0x470] sm:$0x3f] }
  0x6e   :  { %825 = vmatmul.mubr.f32.gmra.mrb[36].mxu1 %v44_v22  ;;  %684 = vmatprep.mubr.f32.mxu0 %v52_v23  ;;  %v159_v22 = vld [vmem:[%s3008_s0 + $0x458] sm:$0x3f]  ;;  %v161_v23 = vld [vmem:[%s3008_s0 + $0x468] sm:$0x3f] }
  0x6f   :  { %829 = vmatprep.mubr.f32.mxu1 %v54_v24  ;;  %1771 = vmatpush3.bf16.msra.mxu0 %v1768_v18  ;;  %v28_v24 = vld [vmem:[%s3008_s0 + $0x40] sm:$0xff] }
  0x70   :  { %1773 = vmatprep.subr.bf16.mxu0 %v1772_v25  ;;  %1802 = vmatpush3.bf16.msra.mxu1 %v1768_v18  ;;  %v150_v18 = vld [vmem:[%s3008_s0 + $0x410] sm:$0xff] }
  0x71   :  { %685 = vmatmul.mubr.f32.gmra.mrb[38].mxu0 %v51_v28  ;;  %1795 = vmatprep.subr.bf16.mxu1 %v1772_v25  ;;  %v46_v28 = vld [vmem:[%s3008_s0 + $0xd0] sm:$0xff] }
  0x72   :  { %830 = vmatmul.mubr.f32.gmra.mrb[38].mxu1 %v53_v29  ;;  %689 = vmatprep.mubr.f32.mxu0 %v61_v30  ;;  %v118_v29 = vld [vmem:[%s3008_s0 + $0x310] sm:$0xff]  ;;  %v55_v30 = vld [vmem:[%s3008_s0 + $0x118] sm:$0xff] }
  0x73   :  { %834 = vmatprep.mubr.f32.mxu1 %v63_v31  ;;  %1775 = vmatpush3.bf16.msra.mxu0 %v1772_v25  ;;  %v127_v31 = vld [vmem:[%s3008_s0 + $0x358] sm:$0xff] }
  0x74   :  { %1777 = vmatprep.subr.bf16.mxu0 %v1776_v32  ;;  %1803 = vmatpush3.bf16.msra.mxu1 %v1772_v25  ;;  %v100_v25 = vld [vmem:[%s3008_s0 + $0x280] sm:$0xff] }
  0x75   :  { %690 = vmatmul.mubr.f32.gmra.mrb[40].mxu0 %v60_v35  ;;  %1796 = vmatprep.subr.bf16.mxu1 %v1776_v32  ;;  %v145_v35 = vld [vmem:[%s3008_s0 + $0x3e8] sm:$0xff] }
  0x76   :  { %835 = vmatmul.mubr.f32.gmra.mrb[40].mxu1 %v62_v36  ;;  %694 = vmatprep.mubr.f32.mxu0 %v70_v37  ;;  %v82_v36 = vld [vmem:[%s3008_s0 + $0x1f0] sm:$0xff] }
  0x77   :  { %839 = vmatprep.mubr.f32.mxu1 %v72_v38  ;;  %1779 = vmatpush3.bf16.msra.mxu0 %v1776_v32  ;;  %v154_v37 = vld [vmem:[%s3008_s0 + $0x430] sm:$0xff]  ;;  %v91_v38 = vld [vmem:[%s3008_s0 + $0x238] sm:$0xff] }
  0x78   :  { %1781 = vmatprep.subr.bf16.mxu0 %v1780_v39  ;;  %1804 = vmatpush3.bf16.msra.mxu1 %v1776_v32  ;;  %v64_v32 = vld [vmem:[%s3008_s0 + $0x160] sm:$0xff] }
  0x79   :  { %695 = vmatmul.mubr.f32.gmra.mrb[42].mxu0 %v69_v42  ;;  %1797 = vmatprep.subr.bf16.mxu1 %v1780_v39 }
  0x7a   :  { %840 = vmatmul.mubr.f32.gmra.mrb[42].mxu1 %v71_v43  ;;  %699 = vmatprep.mubr.f32.mxu0 %v79_v44 }
  0x7b   :  { %844 = vmatprep.mubr.f32.mxu1 %v81_v45  ;;  %1783 = vmatpush3.bf16.msra.mxu0 %v1780_v39 }
  0x7c   :  { %1785 = vmatprep.subr.bf16.mxu0 %v1784_v46  ;;  %1805 = vmatpush3.bf16.msra.mxu1 %v1780_v39  ;;  %v163_v39 = vld [vmem:[%s3008_s0 + $0x478] sm:$0x3f] }
  0x7d   :  { %700 = vmatmul.mubr.f32.gmra.mrb[44].mxu0 %v78_v49  ;;  %1798 = vmatprep.subr.bf16.mxu1 %v1784_v46 }
  0x7e   :  { %845 = vmatmul.mubr.f32.gmra.mrb[44].mxu1 %v80_v50  ;;  %704 = vmatprep.mubr.f32.mxu0 %v88_v51 }
  0x7f   :  { %849 = vmatprep.mubr.f32.mxu1 %v90_v52  ;;  %1787 = vmatpush3.bf16.msra.mxu0 %v1784_v46 }
  0x80   :  { %1789 = vmatprep.subr.bf16.mxu0 %v1788_v53  ;;  %1806 = vmatpush3.bf16.msra.mxu1 %v1784_v46 }
  0x81   :  { %705 = vmatmul.mubr.f32.gmra.mrb[46].mxu0 %v87_v54  ;;  %1799 = vmatprep.subr.bf16.mxu1 %v1788_v53 }
  0x82   :  { %850 = vmatmul.mubr.f32.gmra.mrb[46].mxu1 %v89_v55  ;;  %709 = vmatprep.mubr.f32.mxu0 %v97_v56 }
  0x83   :  { %854 = vmatprep.mubr.f32.mxu1 %v99_v57  ;;  %1791 = vmatpush3.bf16.msra.mxu0 %v1788_v53 }
  0x84   :  { %1807 = vmatpush3.bf16.msra.mxu1 %v1788_v53 }
  0x85   :  { %710 = vmatmul.mubr.f32.gmra.mrb[48].mxu0 %v96_v58 }
  0x86   :  { %855 = vmatmul.mubr.f32.gmra.mrb[48].mxu1 %v98_v59  ;;  %714 = vmatprep.mubr.f32.mxu0 %v106_v60 }
  0x87   :  { %859 = vmatprep.mubr.f32.mxu1 %v108_v61 }
  0x89   :  { %715 = vmatmul.mubr.f32.gmra.mrb[50].mxu0 %v105_v62 }
  0x8a   :  { %860 = vmatmul.mubr.f32.gmra.mrb[50].mxu1 %v107_v63  ;;  %719 = vmatprep.mubr.f32.mxu0 %v115_v0 }
  0x8b   :  { %864 = vmatprep.mubr.f32.mxu1 %v117_v1 }
  0x8d   :  { %720 = vmatmul.mubr.f32.gmra.mrb[52].mxu0 %v114_v2 }
  0x8e   :  { %865 = vmatmul.mubr.f32.gmra.mrb[52].mxu1 %v116_v3  ;;  %724 = vmatprep.mubr.f32.mxu0 %v124_v4 }
  0x8f   :  { %869 = vmatprep.mubr.f32.mxu1 %v126_v5 }
  0x91   :  { %725 = vmatmul.mubr.f32.gmra.mrb[54].mxu0 %v123_v6 }
  0x92   :  { %870 = vmatmul.mubr.f32.gmra.mrb[54].mxu1 %v125_v7  ;;  %729 = vmatprep.mubr.f32.mxu0 %v133_v8 }
  0x93   :  { %874 = vmatprep.mubr.f32.mxu1 %v135_v9 }
  0x95   :  { %730 = vmatmul.mubr.f32.gmra.mrb[56].mxu0 %v132_v10 }
  0x96   :  { %875 = vmatmul.mubr.f32.gmra.mrb[56].mxu1 %v134_v11  ;;  %734 = vmatprep.mubr.f32.mxu0 %v142_v12 }
  0x97   :  { %879 = vmatprep.mubr.f32.mxu1 %v144_v13 }
  0x99   :  { %735 = vmatmul.mubr.f32.gmra.mrb[58].mxu0 %v141_v14 }
  0x9a   :  { %880 = vmatmul.mubr.f32.gmra.mrb[58].mxu1 %v143_v15  ;;  %739 = vmatprep.mubr.f32.mxu0 %v151_v16 }
  0x9b   :  { %884 = vmatprep.mubr.f32.mxu1 %v153_v17 }
  0x9d   :  { %740 = vmatmul.mubr.f32.gmra.mrb[60].mxu0 %v150_v18 }
  0x9e   :  { %885 = vmatmul.mubr.f32.gmra.mrb[60].mxu1 %v152_v19  ;;  %744 = vmatprep.mubr.f32.mxu0 %v160_v20 }
  0x9f   :  { %889 = vmatprep.mubr.f32.mxu1 %v162_v21 }
  0xa1   :  { %745 = vmatmul.mubr.f32.gmra.mrb[62].mxu0 %v159_v22 }
  0xa2   :  { %890 = vmatmul.mubr.f32.gmra.mrb[62].mxu1 %v161_v23  ;;  %1608 = vmatprep.mubr.f32.mxu0 %v28_v24 }
  0xa3   :  { %1620 = vmatprep.mubr.f32.mxu1 %v100_v25 }
  0xa5   :  { %1609 = vmatmul.mubr.f32.vlgmr.msra.gmra.mrb[64].mxu0 %v37_v26 }
  0xa6   :  { %1621 = vmatmul.mubr.f32.vlgmr.msra.gmra.mrb[64].mxu1 %v109_v27  ;;  %1611 = vmatprep.mubr.f32.mxu0 %v46_v28 }
  0xa7   :  { %1623 = vmatprep.mubr.f32.mxu1 %v118_v29 }
  0xa9   :  { %1612 = vmatmul.mubr.f32.gmra.mrb[66].mxu0 %v55_v30 }
  0xaa   :  { %1624 = vmatmul.mubr.f32.gmra.mrb[66].mxu1 %v127_v31  ;;  %1614 = vmatprep.mubr.f32.mxu0 %v64_v32 }
  0xab   :  { %1626 = vmatprep.mubr.f32.mxu1 %v136_v33 }
  0xad   :  { %1615 = vmatmul.mubr.f32.gmra.mrb[68].mxu0 %v73_v34 }
  0xae   :  { %1627 = vmatmul.mubr.f32.gmra.mrb[68].mxu1 %v145_v35  ;;  %1617 = vmatprep.mubr.f32.mxu0 %v82_v36 }
  0xaf   :  { %1629 = vmatprep.mubr.f32.mxu1 %v154_v37 }
  0xb1   :  { %1618 = vmatmul.mubr.f32.gmra.mrb[70].mxu0 %v91_v38 }
  0xb2   :  { %1630 = vmatmul.mubr.f32.gmra.mrb[70].mxu1 %v163_v39 }
  0xf8   :  { %v1256_v40 = vpop.f32.mrb[0].mxu0 }
  0xf9   :  { %v1257_v42 = vpop.f32.mrb[1].mxu0  ;;  %v1336_v43 = vpop.f32.mrb[0].mxu1 }
  0xfa   :  { %v1258_v44 = vadd.f32 %v1257_v42, %v1256_v40  ;;  %v1337_v45 = vpop.f32.mrb[1].mxu1 }
  0xfb   :  { %v1338_v46 = vadd.f32 %v1337_v45, %v1336_v43 }
  0xfc   :  { %v382_v47 = vadd.f32 %v1258_v44, %v2713_v41  ;;  %v1259_v48 = vpop.f32.mrb[2].mxu0 }
  0xfd   :  { %v1260_v49 = vpop.f32.mrb[3].mxu0  ;;  %v1339_v50 = vpop.f32.mrb[2].mxu1 }
  0xfe   :  { %v2716_v51 = vadd.f32 %v1338_v46, %v382_v47  ;;  %v1261_v52 = vadd.f32 %v1260_v49, %v1259_v48  ;;  %v1340_v53 = vpop.f32.mrb[3].mxu1 }
  0xff   :  { %v1341_v54 = vadd.f32 %v1340_v53, %v1339_v50 }
 0x100   :  { %v387_v55 = vadd.f32 %v1261_v52, %v2713_v41  ;;  %v1262_v56 = vpop.f32.mrb[4].mxu0 }
 0x101   :  { %v1263_v57 = vpop.f32.mrb[5].mxu0  ;;  %v1342_v58 = vpop.f32.mrb[4].mxu1 }
 0x102   :  { %v2719_v59 = vadd.f32 %v1341_v54, %v387_v55  ;;  %v1264_v60 = vadd.f32 %v1263_v57, %v1262_v56  ;;  %v1343_v61 = vpop.f32.mrb[5].mxu1 }
 0x103   :  { %v1344_v62 = vadd.f32 %v1343_v61, %v1342_v58 }
 0x104   :  { %v392_v63 = vadd.f32 %v1264_v60, %v2713_v41  ;;  %v1265_v0 = vpop.f32.mrb[6].mxu0 }
 0x105   :  { %v1266_v1 = vpop.f32.mrb[7].mxu0  ;;  %v1345_v2 = vpop.f32.mrb[6].mxu1 }
 0x106   :  { %v2722_v3 = vadd.f32 %v1344_v62, %v392_v63  ;;  %v1267_v4 = vadd.f32 %v1266_v1, %v1265_v0  ;;  %v1346_v5 = vpop.f32.mrb[7].mxu1 }
 0x107   :  { %v1347_v6 = vadd.f32 %v1346_v5, %v1345_v2 }
 0x108   :  { %v397_v7 = vadd.f32 %v1267_v4, %v2713_v41  ;;  %v1268_v8 = vpop.f32.mrb[8].mxu0 }
 0x109   :  { %v1269_v9 = vpop.f32.mrb[9].mxu0  ;;  %v1348_v10 = vpop.f32.mrb[8].mxu1 }
 0x10a   :  { %v2725_v11 = vadd.f32 %v1347_v6, %v397_v7  ;;  %v1270_v12 = vadd.f32 %v1269_v9, %v1268_v8  ;;  %v1349_v13 = vpop.f32.mrb[9].mxu1 }
 0x10b   :  { %v1350_v14 = vadd.f32 %v1349_v13, %v1348_v10 }
 0x10c   :  { %v402_v15 = vadd.f32 %v1270_v12, %v2713_v41  ;;  %v1271_v16 = vpop.f32.mrb[10].mxu0 }
 0x10d   :  { %v1272_v17 = vpop.f32.mrb[11].mxu0  ;;  %v1351_v18 = vpop.f32.mrb[10].mxu1 }
 0x10e   :  { %v2728_v19 = vadd.f32 %v1350_v14, %v402_v15  ;;  %v1273_v20 = vadd.f32 %v1272_v17, %v1271_v16  ;;  %v1352_v21 = vpop.f32.mrb[11].mxu1 }
 0x10f   :  { %v1353_v22 = vadd.f32 %v1352_v21, %v1351_v18 }
 0x110   :  { %v407_v23 = vadd.f32 %v1273_v20, %v2713_v41  ;;  %v1274_v24 = vpop.f32.mrb[12].mxu0 }
 0x111   :  { %v1275_v25 = vpop.f32.mrb[13].mxu0  ;;  %v1354_v26 = vpop.f32.mrb[12].mxu1 }
 0x112   :  { %v2731_v27 = vadd.f32 %v1353_v22, %v407_v23  ;;  %v1276_v28 = vadd.f32 %v1275_v25, %v1274_v24  ;;  %v1355_v29 = vpop.f32.mrb[13].mxu1 }
 0x113   :  { %v1356_v30 = vadd.f32 %v1355_v29, %v1354_v26 }
 0x114   :  { %v412_v31 = vadd.f32 %v1276_v28, %v2713_v41  ;;  %v1277_v32 = vpop.f32.mrb[14].mxu0 }
 0x115   :  { %v1278_v33 = vpop.f32.mrb[15].mxu0  ;;  %v1357_v34 = vpop.f32.mrb[14].mxu1 }
 0x116   :  { %v2734_v35 = vadd.f32 %v1356_v30, %v412_v31  ;;  %v1279_v36 = vadd.f32 %v1278_v33, %v1277_v32  ;;  %v1358_v37 = vpop.f32.mrb[15].mxu1 }
 0x117   :  { %v1359_v38 = vadd.f32 %v1358_v37, %v1357_v34 }
 0x118   :  { %v417_v39 = vadd.f32 %v1279_v36, %v2713_v41  ;;  %v1280_v40 = vpop.f32.mrb[16].mxu0 }
 0x119   :  { %v1281_v42 = vpop.f32.mrb[17].mxu0  ;;  %v1360_v43 = vpop.f32.mrb[16].mxu1 }
 0x11a   :  { %v2737_v44 = vadd.f32 %v1359_v38, %v417_v39  ;;  %v1282_v45 = vadd.f32 %v1281_v42, %v1280_v40  ;;  %v1361_v46 = vpop.f32.mrb[17].mxu1 }
 0x11b   :  { %v1362_v47 = vadd.f32 %v1361_v46, %v1360_v43 }
 0x11c   :  { %v422_v48 = vadd.f32 %v1282_v45, %v2713_v41  ;;  %v1283_v49 = vpop.f32.mrb[18].mxu0 }
 0x11d   :  { %v1284_v50 = vpop.f32.mrb[19].mxu0  ;;  %v1363_v52 = vpop.f32.mrb[18].mxu1 }
 0x11e   :  { %v2740_v53 = vadd.f32 %v1362_v47, %v422_v48  ;;  %v1285_v54 = vadd.f32 %v1284_v50, %v1283_v49  ;;  %v1364_v55 = vpop.f32.mrb[19].mxu1 }
 0x11f   :  { %v1365_v56 = vadd.f32 %v1364_v55, %v1363_v52 }
 0x120   :  { %v427_v57 = vadd.f32 %v1285_v54, %v2713_v41  ;;  %v1286_v58 = vpop.f32.mrb[20].mxu0 }
 0x121   :  { %v1287_v60 = vpop.f32.mrb[21].mxu0  ;;  %v1366_v61 = vpop.f32.mrb[20].mxu1 }
 0x122   :  { %v2743_v62 = vadd.f32 %v1365_v56, %v427_v57  ;;  %v1288_v63 = vadd.f32 %v1287_v60, %v1286_v58  ;;  %v1367_v0 = vpop.f32.mrb[21].mxu1 }
 0x123   :  { %v1368_v1 = vadd.f32 %v1367_v0, %v1366_v61 }
 0x124   :  { %v432_v2 = vadd.f32 %v1288_v63, %v2713_v41  ;;  %v1289_v4 = vpop.f32.mrb[22].mxu0 }
 0x125   :  { %v1290_v5 = vpop.f32.mrb[23].mxu0  ;;  %v1369_v6 = vpop.f32.mrb[22].mxu1 }
 0x126   :  { %v2746_v7 = vadd.f32 %v1368_v1, %v432_v2  ;;  %v1291_v8 = vadd.f32 %v1290_v5, %v1289_v4  ;;  %v1370_v9 = vpop.f32.mrb[23].mxu1 }
 0x127   :  { %v1371_v10 = vadd.f32 %v1370_v9, %v1369_v6 }
 0x128   :  { %v437_v12 = vadd.f32 %v1291_v8, %v2713_v41  ;;  %v1292_v13 = vpop.f32.mrb[24].mxu0 }
 0x129   :  { %v1293_v14 = vpop.f32.mrb[25].mxu0  ;;  %v1372_v15 = vpop.f32.mrb[24].mxu1 }
 0x12a   :  { %v2749_v16 = vadd.f32 %v1371_v10, %v437_v12  ;;  %v1294_v17 = vadd.f32 %v1293_v14, %v1292_v13  ;;  %v1373_v18 = vpop.f32.mrb[25].mxu1 }
 0x12b   :  { %v1374_v20 = vadd.f32 %v1373_v18, %v1372_v15 }
 0x12c   :  { %v442_v21 = vadd.f32 %v1294_v17, %v2713_v41  ;;  %v1295_v22 = vpop.f32.mrb[26].mxu0 }
 0x12d   :  { %v1296_v23 = vpop.f32.mrb[27].mxu0  ;;  %v1375_v24 = vpop.f32.mrb[26].mxu1 }
 0x12e   :  { %v2752_v25 = vadd.f32 %v1374_v20, %v442_v21  ;;  %v1297_v26 = vadd.f32 %v1296_v23, %v1295_v22  ;;  %v1376_v28 = vpop.f32.mrb[27].mxu1 }
 0x12f   :  { %v1377_v29 = vadd.f32 %v1376_v28, %v1375_v24 }
 0x130   :  { %v447_v30 = vadd.f32 %v1297_v26, %v2713_v41  ;;  %v1298_v31 = vpop.f32.mrb[28].mxu0 }
 0x131   :  { %v1299_v32 = vpop.f32.mrb[29].mxu0  ;;  %v1378_v33 = vpop.f32.mrb[28].mxu1 }
 0x132   :  { %v2755_v34 = vadd.f32 %v1377_v29, %v447_v30  ;;  %v1300_v36 = vadd.f32 %v1299_v32, %v1298_v31  ;;  %v1379_v37 = vpop.f32.mrb[29].mxu1 }
 0x133   :  { %v1380_v38 = vadd.f32 %v1379_v37, %v1378_v33 }
 0x134   :  { %v452_v39 = vadd.f32 %v1300_v36, %v2713_v41  ;;  %v1301_v40 = vpop.f32.mrb[30].mxu0 }
 0x135   :  { %v1302_v42 = vpop.f32.mrb[31].mxu0  ;;  %v1381_v43 = vpop.f32.mrb[30].mxu1 }
 0x136   :  { %v2758_v45 = vadd.f32 %v1380_v38, %v452_v39  ;;  %v1303_v46 = vadd.f32 %v1302_v42, %v1301_v40  ;;  %v1382_v47 = vpop.f32.mrb[31].mxu1 }
 0x137   :  { %v1383_v48 = vadd.f32 %v1382_v47, %v1381_v43 }
 0x138   :  { %v457_v49 = vadd.f32 %v1303_v46, %v2713_v41  ;;  %v1416_v50 = vpop.f32.mrb[32].mxu0 }
 0x139   :  { %v1417_v52 = vpop.f32.mrb[33].mxu0  ;;  %v1496_v54 = vpop.f32.mrb[32].mxu1 }
 0x13a   :  { %v2761_v55 = vadd.f32 %v1383_v48, %v457_v49  ;;  %v1418_v56 = vadd.f32 %v1417_v52, %v1416_v50  ;;  %v1497_v57 = vpop.f32.mrb[33].mxu1 }
 0x13b   :  { %v1498_v58 = vadd.f32 %v1497_v57, %v1496_v54 }
 0x13c   :  { %v672_v60 = vadd.f32 %v1418_v56, %v2716_v51  ;;  %v1419_v61 = vpop.f32.mrb[34].mxu0 }
 0x13d   :  { %v1420_v63 = vpop.f32.mrb[35].mxu0  ;;  %v1499_v0 = vpop.f32.mrb[34].mxu1 }
 0x13e   :  { %v1421_v1 = vadd.f32 %v1420_v63, %v1419_v61  ;;  %v1500_v2 = vpop.f32.mrb[35].mxu1  ;;  %v2764_v4 = vadd.f32 %v1498_v58, %v672_v60 }
 0x13f   :  { %v1501_v5 = vadd.f32 %v1500_v2, %v1499_v0 }
 0x140   :  { %v677_v41 = vadd.f32 %v1421_v1, %v2719_v59  ;;  %v1422_v6 = vpop.f32.mrb[36].mxu0 }
 0x141   :  { %v1423_v8 = vpop.f32.mrb[37].mxu0  ;;  %v1502_v9 = vpop.f32.mrb[36].mxu1 }
 0x142   :  { %v1424_v10 = vadd.f32 %v1423_v8, %v1422_v6  ;;  %v1503_v12 = vpop.f32.mrb[37].mxu1  ;;  %v2767_v13 = vadd.f32 %v1501_v5, %v677_v41 }
 0x143   :  { %v1504_v14 = vadd.f32 %v1503_v12, %v1502_v9 }
 0x144   :  { %v682_v51 = vadd.f32 %v1424_v10, %v2722_v3  ;;  %v1425_v15 = vpop.f32.mrb[38].mxu0 }
 0x145   :  { %v1426_v17 = vpop.f32.mrb[39].mxu0  ;;  %v1505_v18 = vpop.f32.mrb[38].mxu1 }
 0x146   :  { %v1427_v20 = vadd.f32 %v1426_v17, %v1425_v15  ;;  %v1506_v21 = vpop.f32.mrb[39].mxu1  ;;  %v2770_v22 = vadd.f32 %v1504_v14, %v682_v51 }
 0x147   :  { %v1507_v23 = vadd.f32 %v1506_v21, %v1505_v18 }
 0x148   :  { %v687_v59 = vadd.f32 %v1427_v20, %v2725_v11  ;;  %v1428_v24 = vpop.f32.mrb[40].mxu0 }
 0x149   :  { %v1429_v26 = vpop.f32.mrb[41].mxu0  ;;  %v1508_v28 = vpop.f32.mrb[40].mxu1 }
 0x14a   :  { %v1430_v29 = vadd.f32 %v1429_v26, %v1428_v24  ;;  %v1509_v30 = vpop.f32.mrb[41].mxu1  ;;  %v2773_v31 = vadd.f32 %v1507_v23, %v687_v59 }
 0x14b   :  { %v1510_v32 = vadd.f32 %v1509_v30, %v1508_v28 }
 0x14c   :  { %v692_v3 = vadd.f32 %v1430_v29, %v2728_v19  ;;  %v1431_v33 = vpop.f32.mrb[42].mxu0 }
 0x14d   :  { %v1432_v36 = vpop.f32.mrb[43].mxu0  ;;  %v1511_v37 = vpop.f32.mrb[42].mxu1 }
 0x14e   :  { %v1433_v38 = vadd.f32 %v1432_v36, %v1431_v33  ;;  %v1512_v39 = vpop.f32.mrb[43].mxu1  ;;  %v2776_v40 = vadd.f32 %v1510_v32, %v692_v3 }
 0x14f   :  { %v1513_v42 = vadd.f32 %v1512_v39, %v1511_v37 }
 0x150   :  { %v697_v11 = vadd.f32 %v1433_v38, %v2731_v27  ;;  %v1434_v43 = vpop.f32.mrb[44].mxu0 }
 0x151   :  { %v1435_v46 = vpop.f32.mrb[45].mxu0  ;;  %v1514_v47 = vpop.f32.mrb[44].mxu1 }
 0x152   :  { %v1436_v48 = vadd.f32 %v1435_v46, %v1434_v43  ;;  %v1515_v49 = vpop.f32.mrb[45].mxu1  ;;  %v2779_v50 = vadd.f32 %v1513_v42, %v697_v11 }
 0x153   :  { %v1516_v52 = vadd.f32 %v1515_v49, %v1514_v47 }
 0x154   :  { %v702_v19 = vadd.f32 %v1436_v48, %v2734_v35  ;;  %v1437_v54 = vpop.f32.mrb[46].mxu0 }
 0x155   :  { %v1438_v56 = vpop.f32.mrb[47].mxu0  ;;  %v1517_v57 = vpop.f32.mrb[46].mxu1 }
 0x156   :  { %v1439_v58 = vadd.f32 %v1438_v56, %v1437_v54  ;;  %v1518_v60 = vpop.f32.mrb[47].mxu1  ;;  %v2782_v61 = vadd.f32 %v1516_v52, %v702_v19 }
 0x157   :  { %v1519_v63 = vadd.f32 %v1518_v60, %v1517_v57 }
 0x158   :  { %v707_v27 = vadd.f32 %v1439_v58, %v2737_v44  ;;  %v1440_v0 = vpop.f32.mrb[48].mxu0 }
 0x159   :  { %v1441_v1 = vpop.f32.mrb[49].mxu0  ;;  %v1520_v2 = vpop.f32.mrb[48].mxu1 }
 0x15a   :  { %v1442_v5 = vadd.f32 %v1441_v1, %v1440_v0  ;;  %v1521_v41 = vpop.f32.mrb[49].mxu1  ;;  %v2785_v6 = vadd.f32 %v1519_v63, %v707_v27 }
 0x15b   :  { %v1522_v8 = vadd.f32 %v1521_v41, %v1520_v2 }
 0x15c   :  { %v712_v35 = vadd.f32 %v1442_v5, %v2740_v53  ;;  %v1443_v9 = vpop.f32.mrb[50].mxu0 }
 0x15d   :  { %v1444_v10 = vpop.f32.mrb[51].mxu0  ;;  %v1523_v12 = vpop.f32.mrb[50].mxu1 }
 0x15e   :  { %v1445_v14 = vadd.f32 %v1444_v10, %v1443_v9  ;;  %v1524_v51 = vpop.f32.mrb[51].mxu1  ;;  %v857_v15 = vadd.f32 %v1522_v8, %v712_v35 }
 0x15f   :  { %v1525_v17 = vadd.f32 %v1524_v51, %v1523_v12 }
 0x160   :  { %v717_v18 = vadd.f32 %v1445_v14, %v2743_v62  ;;  %v1446_v44 = vpop.f32.mrb[52].mxu0 }
 0x161   :  { %v1447_v20 = vpop.f32.mrb[53].mxu0  ;;  %v1526_v21 = vpop.f32.mrb[52].mxu1 }
 0x162   :  { %v1448_v23 = vadd.f32 %v1447_v20, %v1446_v44  ;;  %v1527_v59 = vpop.f32.mrb[53].mxu1  ;;  %v862_v24 = vadd.f32 %v1525_v17, %v717_v18 }
 0x163   :  { %v1528_v26 = vadd.f32 %v1527_v59, %v1526_v21 }
 0x164   :  { %v722_v28 = vadd.f32 %v1448_v23, %v2746_v7  ;;  %v1449_v29 = vpop.f32.mrb[54].mxu0 }
 0x165   :  { %v1450_v53 = vpop.f32.mrb[55].mxu0  ;;  %v1529_v30 = vpop.f32.mrb[54].mxu1 }
 0x166   :  { %v1451_v32 = vadd.f32 %v1450_v53, %v1449_v29  ;;  %v1530_v3 = vpop.f32.mrb[55].mxu1  ;;  %v867_v33 = vadd.f32 %v1528_v26, %v722_v28 }
 0x167   :  { %v1531_v36 = vadd.f32 %v1530_v3, %v1529_v30 }
 0x168   :  { %v727_v37 = vadd.f32 %v1451_v32, %v2749_v16  ;;  %v1452_v38 = vpop.f32.mrb[56].mxu0 }
 0x169   :  { %v1453_v62 = vpop.f32.mrb[57].mxu0  ;;  %v1532_v39 = vpop.f32.mrb[56].mxu1 }
 0x16a   :  { %v1454_v42 = vadd.f32 %v1453_v62, %v1452_v38  ;;  %v1533_v11 = vpop.f32.mrb[57].mxu1  ;;  %v872_v43 = vadd.f32 %v1531_v36, %v727_v37 }
 0x16b   :  { %v1534_v46 = vadd.f32 %v1533_v11, %v1532_v39 }
 0x16c   :  { %v732_v47 = vadd.f32 %v1454_v42, %v2752_v25  ;;  %v1455_v48 = vpop.f32.mrb[58].mxu0 }
 0x16d   :  { %v1456_v7 = vpop.f32.mrb[59].mxu0  ;;  %v1535_v49 = vpop.f32.mrb[58].mxu1 }
 0x16e   :  { %v1457_v52 = vadd.f32 %v1456_v7, %v1455_v48  ;;  %v1536_v19 = vpop.f32.mrb[59].mxu1  ;;  %v2792_v54 = vadd.f32 %v1534_v46, %v732_v47 }
 0x16f   :  { %v1537_v56 = vadd.f32 %v1536_v19, %v1535_v49 }
 0x170   :  { %v737_v57 = vadd.f32 %v1457_v52, %v2755_v34  ;;  %v1458_v16 = vpop.f32.mrb[60].mxu0 }
 0x171   :  { %v1459_v58 = vpop.f32.mrb[61].mxu0  ;;  %v1538_v60 = vpop.f32.mrb[60].mxu1 }
 0x172   :  { %v1460_v63 = vadd.f32 %v1459_v58, %v1458_v16  ;;  %v1539_v27 = vpop.f32.mrb[61].mxu1  ;;  %v882_v0 = vadd.f32 %v1537_v56, %v737_v57 }
 0x173   :  { %v1540_v1 = vadd.f32 %v1539_v27, %v1538_v60 }
 0x174   :  { %v742_v2 = vadd.f32 %v1460_v63, %v2758_v45  ;;  %v1461_v25 = vpop.f32.mrb[62].mxu0 }
 0x175   :  { %v1462_v5 = vpop.f32.mrb[63].mxu0  ;;  %v1541_v41 = vpop.f32.mrb[62].mxu1 }
 0x176   :  { %v1463_v8 = vadd.f32 %v1462_v5, %v1461_v25  ;;  %v1542_v35 = vpop.f32.mrb[63].mxu1  ;;  %v2796_v9 = vadd.f32 %v1540_v1, %v742_v2 }
 0x177   :  { %v1543_v10 = vadd.f32 %v1542_v35, %v1541_v41 }
 0x178   :  { %v747_v12 = vadd.f32 %v1463_v8, %v2761_v55  ;;  %v1610_v34 = vpop.f32.mrb[64].mxu0 }
 0x179   :  { %v2800_v14 = vadd.f32 %v1610_v34, %v2767_v13  ;;  %v1622_v51 = vpop.f32.mrb[64].mxu1  ;;  %v961_v17 = vpop.f32.mrb[65].mxu0 }
 0x17a   :  { %v2802_v18 = vadd.f32 %v1622_v51, %v862_v24  ;;  %v2805_v45 = vadd.f32 %v961_v17, %v2764_v4  ;;  %v1001_v44 = vpop.f32.mrb[65].mxu1  ;;  %v892_v20 = vadd.f32 %v1543_v10, %v747_v12 }
 0x17b   :  { %v1081_v21 = vmul.f32 %v2800_v14, %v2800_v14  ;;  %v2809_v23 = vadd.f32 %v1001_v44, %v857_v15  ;;  %v1042_v59 = vsel %vm1040_vm0, %v2800_v14, 0.0 }
 0x17c   :  { %v1080_v55 = vmul.f32 %v2805_v45, %v2805_v45  ;;  %v1613_v13 = vpop.f32.mrb[66].mxu0  ;;  %v1041_v24 = vsel %vm1040_vm0, %v2805_v45, 0.0 }
 0x17d   :  { %v1625_v26 = vpop.f32.mrb[66].mxu1  ;;  %v971_v4 = vpop.f32.mrb[67].mxu0  ;;  %v2818_v28 = vadd.f32 %v1613_v13, %v2773_v31  ;;  %v1097_v15 = vsel %vm1040_vm0, %v1081_v21, 0.0  ;;  %v1043_v36 = vadd.f32 %v1042_v59, %v1041_v24 }
 0x17e   :  { %v2820_v29 = vadd.f32 %v1625_v26, %v872_v43  ;;  %v1011_v53 = vpop.f32.mrb[67].mxu1  ;;  %v1096_v30 = vsel %vm1040_vm0, %v1080_v55, 0.0  ;;  %v2825_v32 = vadd.f32 %v971_v4, %v2770_v22  ;;  %v1089_v55 = vmul.f32 %v2802_v18, %v2802_v18 }
 0x17f   :  { %v2827_v3 = vadd.f32 %v1011_v53, %v867_v33  ;;  %v1083_v38 = vmul.f32 %v2818_v28, %v2818_v28  ;;  %v1098_v11 = vadd.f32 %v1097_v15, %v1096_v30  ;;  %v1046_v46 = vsel %vm1040_vm0, %v2818_v28, 0.0 }
 0x180   :  { %v1616_v37 = vpop.f32.mrb[68].mxu0  ;;  %v1044_v31 = vsel %vm1040_vm0, %v2825_v32, 0.0  ;;  %v1082_v62 = vmul.f32 %v2825_v32, %v2825_v32  ;;  %v1058_v15 = vsel %vm1040_vm0, %v2802_v18, 0.0 }
 0x181   :  { %v1628_v39 = vpop.f32.mrb[68].mxu1  ;;  %v981_v42 = vpop.f32.mrb[69].mxu0  ;;  %v1045_v43 = vadd.f32 %v1044_v31, %v1043_v36  ;;  %v2836_v22 = vadd.f32 %v1616_v37, %v2779_v50  ;;  %v1101_v56 = vsel %vm1040_vm0, %v1083_v38, 0.0  ;;  %v1090_v4 = vmul.f32 %v2827_v3, %v2827_v3 }
 0x182   :  { %v1021_v33 = vpop.f32.mrb[69].mxu1  ;;  %v1099_v47 = vsel %vm1040_vm0, %v1082_v62, 0.0  ;;  %v2841_v48 = vadd.f32 %v1628_v39, %v882_v0  ;;  %v2844_v7 = vadd.f32 %v981_v42, %v2776_v40  ;;  %v1113_v36 = vsel %vm1040_vm0, %v1089_v55, 0.0 }
 0x183   :  { %v1100_v49 = vadd.f32 %v1099_v47, %v1098_v11  ;;  %v1047_v52 = vadd.f32 %v1046_v46, %v1045_v43  ;;  %v1085_v50 = vmul.f32 %v2836_v22, %v2836_v22  ;;  %v2854_v40 = vadd.f32 %v1021_v33, %v2792_v54 }
 0x184   :  { %v1619_v19 = vpop.f32.mrb[70].mxu0  ;;  %v1048_v57 = vsel %vm1040_vm0, %v2844_v7, 0.0  ;;  %v1084_v16 = vmul.f32 %v2844_v7, %v2844_v7  ;;  %v1050_v8 = vsel %vm1040_vm0, %v2836_v22, 0.0  ;;  %v1091_v37 = vmul.f32 %v2820_v29, %v2820_v29 }
 0x185   :  { %v1631_v58 = vpop.f32.mrb[70].mxu1  ;;  %v991_v60 = vpop.f32.mrb[71].mxu0  ;;  %v1049_v63 = vadd.f32 %v1048_v57, %v1047_v52  ;;  %v1102_v27 = vadd.f32 %v1101_v56, %v1100_v49  ;;  %v2858_v2 = vadd.f32 %v1619_v19, %v2785_v6  ;;  %v1105_v35 = vsel %vm1040_vm0, %v1085_v50, 0.0 }
 0x186   :  { %v1031_v0 = vpop.f32.mrb[71].mxu1  ;;  %v1103_v1 = vsel %vm1040_vm0, %v1084_v16, 0.0  ;;  %v2860_v25 = vadd.f32 %v1631_v58, %v892_v20  ;;  %v2863_v41 = vadd.f32 %v991_v60, %v2782_v61  ;;  %v1088_v61 = vmul.f32 %v2809_v23, %v2809_v23 }
 0x187   :  { %v1104_v5 = vadd.f32 %v1103_v1, %v1102_v27  ;;  %v1087_v54 = vmul.f32 %v2858_v2, %v2858_v2  ;;  %v1051_v10 = vadd.f32 %v1050_v8, %v1049_v63  ;;  %v2875_v51 = vadd.f32 %v1031_v0, %v2796_v9 }
 0x188   :  { %v1052_v12 = vsel %vm1040_vm0, %v2863_v41, 0.0  ;;  %v1086_v6 = vmul.f32 %v2863_v41, %v2863_v41  ;;  %v1054_v20 = vsel %vm1040_vm0, %v2858_v2, 0.0  ;;  %v1056_v9 = vsel %vm1040_vm0, %v2809_v23, 0.0 }
 0x189   :  { %v1106_v34 = vadd.f32 %v1105_v35, %v1104_v5  ;;  %v1053_v17 = vadd.f32 %v1052_v12, %v1051_v10  ;;  %v1109_v13 = vsel %vm1040_vm0, %v1087_v54, 0.0  ;;  %v1111_v26 = vsel %vm1040_vm0, %v1088_v61, 0.0 }
 0x18a   :  { %v1107_v44 = vsel %vm1040_vm0, %v1086_v6, 0.0  ;;  %v1060_v31 = vsel %vm1040_vm0, %v2827_v3, 0.0  ;;  %v1115_v39 = vsel %vm1040_vm0, %v1090_v4, 0.0  ;;  %v1092_v42 = vmul.f32 %v2854_v40, %v2854_v40 }
 0x18b   :  { %v1108_v21 = vadd.f32 %v1107_v44, %v1106_v34  ;;  %v1055_v59 = vadd.f32 %v1054_v20, %v1053_v17  ;;  %v1062_v43 = vsel %vm1040_vm0, %v2820_v29, 0.0  ;;  %v1117_v46 = vsel %vm1040_vm0, %v1091_v37, 0.0 }
 0x18c   :  { %v1093_v47 = vmul.f32 %v2841_v48, %v2841_v48  ;;  %v1064_v52 = vsel %vm1040_vm0, %v2854_v40, 0.0  ;;  %v1119_v56 = vsel %vm1040_vm0, %v1092_v42, 0.0  ;;  %v1094_v57 = vmul.f32 %v2875_v51, %v2875_v51 }
 0x18d   :  { %v1110_v24 = vadd.f32 %v1109_v13, %v1108_v21  ;;  %v1057_v53 = vadd.f32 %v1056_v9, %v1055_v59  ;;  %v1066_v16 = vsel %vm1040_vm0, %v2841_v48, 0.0  ;;  %v1095_v63 = vmul.f32 %v2860_v25, %v2860_v25 }
 0x18e   :  { %v1121_v60 = vsel %vm1040_vm0, %v1093_v47, 0.0  ;;  %v1068_v0 = vsel %vm1040_vm0, %v2875_v51, 0.0  ;;  %v1123_v8 = vsel %vm1040_vm0, %v1094_v57, 0.0  ;;  %v1071_v35 = vsel %vm1070_vm1, %v2860_v25, 0.0 }
 0x18f   :  { %v1112_v30 = vadd.f32 %v1111_v26, %v1110_v24  ;;  %v1059_v38 = vadd.f32 %v1058_v15, %v1057_v53  ;;  %v1125_v10 = vsel %vm1070_vm1, %v1095_v63, 0.0  ;;  %v1144_v37 = vlaneseq }
 0x191   :  { %v1114_v62 = vadd.f32 %v1113_v36, %v1112_v30  ;;  %v1061_v11 = vadd.f32 %v1060_v31, %v1059_v38  ;;  %v1145_v38 = vshrl.u32 %v1144_v37, 7  ;;  %v1136_v31 = vld [vmem:[%s3010_s3] sm:$0x1] }
 0x193   :  { %v1116_v33 = vadd.f32 %v1115_v39, %v1114_v62  ;;  %v1063_v49 = vadd.f32 %v1062_v43, %v1061_v11  ;;  %v1146_v62 = vsub.s32 0, %v1145_v38  ;;  %v1140_v11 = vld [vmem:[%s3011_s4] sm:$0x1] }
 0x195   :  { %v1118_v19 = vadd.f32 %v1117_v46, %v1116_v33  ;;  %v1065_v50 = vadd.f32 %v1064_v52, %v1063_v49 }
 0x197   :  { %v1120_v58 = vadd.f32 %v1119_v56, %v1118_v19  ;;  %v1067_v27 = vadd.f32 %v1066_v16, %v1065_v50 }
 0x199   :  { %v1122_v1 = vadd.f32 %v1121_v60, %v1120_v58  ;;  %v1069_v5 = vadd.f32 %v1068_v0, %v1067_v27 }
 0x19b   :  { %v1124_v54 = vadd.f32 %v1123_v8, %v1122_v1  ;;  %v1072_v12 = vadd.f32 %v1071_v35, %v1069_v5 }
 0x19d   :  { %v1126_v6 = vadd.f32 %v1125_v10, %v1124_v54  ;;  %v1073_v34 = vrot.slane %v1072_v12, 4 }
 0x19f   :  { %v1127_v61 = vrot.slane %v1126_v6, 4  ;;  %v1074_v17 = vadd.f32 %v1073_v34, %v1072_v12 }
 0x1a1   :  { %v1128_v44 = vadd.f32 %v1127_v61, %v1126_v6  ;;  %v1075_v20 = vrot.slane %v1074_v17, 2 }
 0x1a3   :  { %v1129_v21 = vrot.slane %v1128_v44, 2  ;;  %v1076_v55 = vadd.f32 %v1075_v20, %v1074_v17 }
 0x1a5   :  { %v1130_v13 = vadd.f32 %v1129_v21, %v1128_v44  ;;  %v1077_v59 = vrot.slane %v1076_v55, 1 }
 0x1a7   :  { %v1131_v9 = vrot.slane %v1130_v13, 1  ;;  %v1078_v24 = vadd.f32 %v1077_v59, %v1076_v55 }
 0x1a9   :  { %v1132_v26 = vadd.f32 %v1131_v9, %v1130_v13  ;;  %v1079_v4 = vmul.f32 0.007936508, %v1078_v24 }
 0x1ab   :  { %v1133_v53 = vmul.f32 0.007936508, %v1132_v26  ;;  %v1134_v15 = vmul.f32 %v1079_v4, %v1079_v4 }
 0x1ad   :  { %v1135_v30 = vsub.f32 %v1133_v53, %v1134_v15 }
 0x1af   :  { %v1137_v36 = vadd.f32 1e-05, %v1135_v30 }
 0x1b1   :  { %1808 = vrsqrt.f32 %v1137_v36 }
 0x1bb   :  { %v1809_v39 = vpop.eup %1808 }
 0x1bc   :  { %v1139_v42 = vmul.f32 %v1809_v39, %v1136_v31 }
 0x1be   :  { %v1141_v43 = vmul.f32 %v1139_v42, %v1079_v4  ;;  %v1147_v33 = vrot.slane %v1139_v42, %v1146_v62 }
 0x1c0   :  { %v1142_v46 = vsub.f32 %v1140_v11, %v1141_v43  ;;  %v1149_v47 = vmul.f32 %v1147_v33, %v2805_v45  ;;  %v1152_v49 = vmul.f32 %v1147_v33, %v2818_v28  ;;  %v1153_v52 = vmul.f32 %v1147_v33, %v2844_v7 }
 0x1c1   :  { %v1154_v19 = vmul.f32 %v1147_v33, %v2836_v22  ;;  %v1155_v56 = vmul.f32 %v1147_v33, %v2863_v41  ;;  %v1156_v50 = vmul.f32 %v1147_v33, %v2858_v2  ;;  %v1157_v57 = vmul.f32 %v1147_v33, %v2809_v23 }
 0x1c2   :  { %v1158_v16 = vmul.f32 %v1147_v33, %v2802_v18  ;;  %v1159_v58 = vmul.f32 %v1147_v33, %v2827_v3  ;;  %v1160_v60 = vmul.f32 %v1147_v33, %v2820_v29  ;;  %v1161_v45 = vmul.f32 %v1147_v33, %v2854_v40 }
 0x1c3   :  { %v1162_v28 = vmul.f32 %v1147_v33, %v2841_v48  ;;  %v1163_v7 = vmul.f32 %v1147_v33, %v2875_v51  ;;  %v1150_v22 = vmul.f32 %v1147_v33, %v2800_v14  ;;  %v1151_v41 = vmul.f32 %v1147_v33, %v2825_v32 }
 0x1c4   :  { %v1164_v2 = vmul.f32 %v1147_v33, %v2860_v25  ;;  %v1169_v63 = vrot.slane %v1142_v46, %v1146_v62 }
 0x1c6   :  { %v1171_v23 = vadd.f32 %v1169_v63, %v1149_v47  ;;  %v1172_v27 = vadd.f32 %v1169_v63, %v1150_v22  ;;  %v1173_v18 = vadd.f32 %v1169_v63, %v1151_v41  ;;  %v1174_v0 = vadd.f32 %v1169_v63, %v1152_v49 }
 0x1c7   :  { %v1175_v3 = vadd.f32 %v1169_v63, %v1153_v52  ;;  %v1176_v1 = vadd.f32 %v1169_v63, %v1154_v19  ;;  %v1177_v29 = vadd.f32 %v1169_v63, %v1155_v56  ;;  %v1178_v5 = vadd.f32 %v1169_v63, %v1156_v50 }
 0x1c8   :  { %v1179_v40 = vadd.f32 %v1169_v63, %v1157_v57  ;;  %v1180_v8 = vadd.f32 %v1169_v63, %v1158_v16  ;;  %v1181_v48 = vadd.f32 %v1169_v63, %v1159_v58  ;;  %v1182_v35 = vadd.f32 %v1169_v63, %v1160_v60 }
 0x1c9   :  { %v1183_v51 = vadd.f32 %v1169_v63, %v1161_v45  ;;  %v1184_v54 = vadd.f32 %v1169_v63, %v1162_v28  ;;  %v1185_v14 = vadd.f32 %v1169_v63, %v1163_v7  ;;  %v1186_v10 = vadd.f32 %v1169_v63, %v1164_v2 }
 0x1ca   :  { %v1187_v32 = vmax.f32 %v1171_v23, 0.0  ;;  %v1188_v12 = vmax.f32 %v1172_v27, 0.0  ;;  %v1189_v25 = vmax.f32 %v1173_v18, 0.0  ;;  %v1190_v6 = vmax.f32 %v1174_v0, 0.0 }
 0x1cb   :  { %v1191_v34 = vmax.f32 %v1175_v3, 0.0  ;;  %v1192_v61 = vmax.f32 %v1176_v1, 0.0  ;;  %v1193_v17 = vmax.f32 %v1177_v29, 0.0  ;;  %v1194_v44 = vmax.f32 %v1178_v5, 0.0 }
 0x1cc   :  { %v1195_v20 = vmax.f32 %v1179_v40, 0.0  ;;  %v1196_v21 = vmax.f32 %v1180_v8, 0.0  ;;  %v1197_v55 = vmax.f32 %v1181_v48, 0.0  ;;  %v1198_v13 = vmax.f32 %v1182_v35, 0.0  ;;  %1203 = vst.msk [vmem:[%s3012_s5] sm:$0xff] %vm1040_vm0, %v1187_v32  ;;  %1204 = vst.msk [vmem:[%s3012_s5 + $0x8] sm:$0xff] %vm1040_vm0, %v1188_v12 }
 0x1cd   :  { %1205 = vst.msk [vmem:[%s3012_s5 + $0x10] sm:$0xff] %vm1040_vm0, %v1189_v25  ;;  %1206 = vst.msk [vmem:[%s3012_s5 + $0x18] sm:$0xff] %vm1040_vm0, %v1190_v6  ;;  %v1199_v59 = vmax.f32 %v1183_v51, 0.0  ;;  %v1200_v9 = vmax.f32 %v1184_v54, 0.0  ;;  %v1201_v24 = vmax.f32 %v1185_v14, 0.0  ;;  %v1202_v26 = vmax.f32 %v1186_v10, 0.0 }
 0x1ce   :  { %1207 = vst.msk [vmem:[%s3012_s5 + $0x20] sm:$0xff] %vm1040_vm0, %v1191_v34  ;;  %1208 = vst.msk [vmem:[%s3012_s5 + $0x28] sm:$0xff] %vm1040_vm0, %v1192_v61 }
 0x1cf   :  { %1209 = vst.msk [vmem:[%s3012_s5 + $0x30] sm:$0xff] %vm1040_vm0, %v1193_v17  ;;  %1210 = vst.msk [vmem:[%s3012_s5 + $0x38] sm:$0xff] %vm1040_vm0, %v1194_v44 }
 0x1d0   :  { %1211 = vst.msk [vmem:[%s3012_s5 + $0x40] sm:$0xff] %vm1040_vm0, %v1195_v20  ;;  %1212 = vst.msk [vmem:[%s3012_s5 + $0x48] sm:$0xff] %vm1040_vm0, %v1196_v21 }
 0x1d1   :  { %1213 = vst.msk [vmem:[%s3012_s5 + $0x50] sm:$0xff] %vm1040_vm0, %v1197_v55  ;;  %1214 = vst.msk [vmem:[%s3012_s5 + $0x58] sm:$0xff] %vm1040_vm0, %v1198_v13 }
 0x1d2   :  { %1215 = vst.msk [vmem:[%s3012_s5 + $0x60] sm:$0xff] %vm1040_vm0, %v1199_v59  ;;  %1216 = vst.msk [vmem:[%s3012_s5 + $0x68] sm:$0xff] %vm1040_vm0, %v1200_v9 }
 0x1d3   :  { %1217 = vst.msk [vmem:[%s3012_s5 + $0x70] sm:$0xff] %vm1040_vm0, %v1201_v24 }
 0x1d4   :  { %1218 = vst.msk [vmem:[%s3012_s5 + $0x78] sm:$0x3f] %vm1070_vm1, %v1202_v26 }

</bundles_post_ra>
